<compile_context>
chip_gen: v5e
topology: v5e:2x2
jax: 0.10.0
libtpu: 0.0.40
codegen_flags: <defaults>
</compile_context>

<pallas_src>
import functools

import numpy as np

import jax
import jax.numpy as jnp
from jax.experimental import pallas as pl
from jax.experimental.pallas import tpu as pltpu

ALPHA = 0.2          # LeakyReLU negative slope (module default)
BN_EPS = 1e-5        # nn.BatchNorm2d default eps
_MAX_TM = 8192       # lane-dim tile (columns of the transposed GEMM)
_SPLIT_M = 2048      # above this, force grid >= 2 so both v7x TCs get work


def _round_up(x, m):
    return (x + m - 1) // m * m


# ----------------------------- Pallas kernels -----------------------------
# Transposed GEMM:  y^T (NC, tm) = w^T (NC, K) @ patches^T (K, tm) + bias.
# M (the N*Kh*Kw phase-grid rows) lies on lanes, so loads and stores are
# lane-dense; the small NC (4..32) only costs sublane padding.

def _gemm_t_bias_kernel(w_ref, p_ref, b_ref, y_ref):
    acc = jnp.dot(w_ref[...], p_ref[...], preferred_element_type=jnp.float32)
    y_ref[...] = (acc + b_ref[...]).astype(y_ref.dtype)


def _gemm_t_lrelu_stats_kernel(w_ref, p_ref, b_ref, y_ref, s_ref, q_ref, *, alpha):
    # Fused ConvTranspose epilogue: bias + LeakyReLU + per-(phase, channel)
    # partial sum / sum-of-squares for training-mode BatchNorm.
    acc = jnp.dot(w_ref[...], p_ref[...], preferred_element_type=jnp.float32)
    acc = acc + b_ref[...]
    y = jnp.where(acc >= 0.0, acc, alpha * acc)          # LeakyReLU
    y_ref[...] = y.astype(y_ref.dtype)                   # bf16 writeback
    s_ref[0] = jnp.sum(y, axis=1, keepdims=True)         # (NC, 1) f32
    q_ref[0] = jnp.sum(y * y, axis=1, keepdims=True)     # (NC, 1) f32


# ----------------------------- GEMM wrapper -----------------------------

def _choose_tile(M):
    # Split into >= 2 lane blocks when there is enough work (megacore) and keep
    # tiles multiples of 256 lanes; tiny layers use a single full block.
    if M >= _SPLIT_M:
        return min(_MAX_TM, _round_up(-(-M // 2), 256))
    return _round_up(M, 8)


def _convt_gemm_t(w_t, patches_t, bias, *, act_bn, out_dtype, alpha=ALPHA):
    """y^T = w_t @ patches_t + bias, optionally fused LeakyReLU + BN stats.

    w_t (NC, K) bf16, patches_t (K, M) bf16, bias (NC, 1) f32.
    Returns y_t (NC, M) in out_dtype and, when act_bn, per-column (phase x
    channel) (sum, sumsq) over the M rows, each (NC,) f32.
    """
    NC, K = w_t.shape
    _, M = patches_t.shape
    tm = _choose_tile(M)
    m_pad = _round_up(M, tm)
    if m_pad != M:
        patches_t = jnp.pad(patches_t, ((0, 0), (0, m_pad - M)))
    grid = m_pad // tm

    in_specs = [
        pl.BlockSpec((NC, K), lambda i: (0, 0)),
        pl.BlockSpec((K, tm), lambda i: (0, i)),
        pl.BlockSpec((NC, 1), lambda i: (0, 0)),
    ]

    if act_bn:
        kernel = functools.partial(_gemm_t_lrelu_stats_kernel, alpha=alpha)
        out_shape = (
            jax.ShapeDtypeStruct((NC, m_pad), out_dtype),
            jax.ShapeDtypeStruct((grid, NC, 1), jnp.float32),
            jax.ShapeDtypeStruct((grid, NC, 1), jnp.float32),
        )
        out_specs = (
            pl.BlockSpec((NC, tm), lambda i: (0, i)),
            pl.BlockSpec((1, NC, 1), lambda i: (i, 0, 0)),
            pl.BlockSpec((1, NC, 1), lambda i: (i, 0, 0)),
        )
    else:
        kernel = _gemm_t_bias_kernel
        out_shape = jax.ShapeDtypeStruct((NC, m_pad), out_dtype)
        out_specs = pl.BlockSpec((NC, tm), lambda i: (0, i))

    # TODO(synk): at production widths (latent_size=1024, K up to 9216) add a
    # K-reduction grid axis ("arbitrary", last) with a VMEM f32 accumulator,
    # tile NC to 256-512, drop tm, and set vmem_limit_bytes; unnecessary here.
    res = pl.pallas_call(
        kernel,
        out_shape=out_shape,
        grid_spec=pltpu.PrefetchScalarGridSpec(
            num_scalar_prefetch=0,
            grid=(grid,),
            in_specs=in_specs,
            out_specs=out_specs,
        ),
        compiler_params=pltpu.CompilerParams(
            dimension_semantics=("parallel",)),
    )(w_t, patches_t, bias)

    if act_bn:
        y_t, s_part, q_part = res
        s_cols = jnp.sum(s_part, axis=0)[:, 0]            # (NC,)
        q_cols = jnp.sum(q_part, axis=0)[:, 0]
        if m_pad != M:
            # Zero-padded columns contribute LeakyReLU(bias) each; remove that
            # contribution exactly so the BN stats match the real batch.
            b0 = bias[:, 0]
            yb = jnp.where(b0 >= 0.0, b0, alpha * b0)
            n_pad = float(m_pad - M)
            s_cols = s_cols - n_pad * yb
            q_cols = q_cols - n_pad * yb * yb
        return y_t[:, :M], (s_cols, q_cols)
    return res[:, :M], None


# ----------------------------- host-side weight packing -----------------------------

def _tap_geometry(k, s, p):
    lo = -((k - 1 - p) // s)
    hi = (s - 1 + p) // s
    return lo, hi, hi - lo + 1


def _pack_convt(w, b, stride, padding):
    """Sub-pixel (stride-phase) ConvTranspose2d weight packing (numpy, host).

    w (Cin, Cout, kh, kw) -> wm (Uh*Uw*Cin, sh*sw*Cout), bias (sh*sw*Cout,) s.t.
      out[n, sh*k+qh, sw*l+qw, co] =
        sum_{dh,dw,ci} x[n, k+lo_h+dh, l+lo_w+dw, ci]
                       * wm[(dh*Uw+dw)*Cin+ci, (qh*sw+qw)*Cout+co]
        + bias[(qh*sw+qw)*Cout+co]          (out-of-range taps read zero).
    """
    Cin, Cout, kh, kw = w.shape
    sh, sw = stride
    ph, pw = padding
    lo_h, _, Uh = _tap_geometry(kh, sh, ph)
    lo_w, _, Uw = _tap_geometry(kw, sw, pw)
    wm = np.zeros((Uh * Uw * Cin, sh * sw * Cout), np.float32)
    for dh in range(Uh):
        for dw in range(Uw):
            for qh in range(sh):
                for qw in range(sw):
                    ki = qh + ph - sh * (lo_h + dh)
                    kj = qw + pw - sw * (lo_w + dw)
                    if 0 <= ki < kh and 0 <= kj < kw:
                        r0 = (dh * Uw + dw) * Cin
                        c0 = (qh * sw + qw) * Cout
                        wm[r0:r0 + Cin, c0:c0 + Cout] = w[:, :, ki, kj]
    bias_cols = np.tile(np.asarray(b, np.float32), sh * sw)
    return wm, bias_cols


def _is_pointwise(entry):
    cout, kh, kw, sh, sw, ph, pw, act_bn = entry
    return (kh == 1 and kw == 1 and sh == 1 and sw == 1
            and ph == 0 and pw == 0 and not act_bn)


def pack_params(params, cfg):
    """Precompute on the host everything that depends only on parameters:
    transposed bf16 phase-weight matrices, phase-tiled biases, and the fold of
    the trailing 1x1 ConvTranspose2d into the preceding layer's GEMM."""
    packed, metas = [], []
    i = 0
    while i < len(cfg):
        cout, kh, kw, sh, sw, ph, pw, act_bn = cfg[i]
        base = params[i]
        w = np.asarray(base["w"], np.float32)
        b = np.asarray(base["b"], np.float32)
        wm, bias_cols = _pack_convt(w, b, (sh, sw), (ph, pw))
        step = 1
        if (not act_bn) and i + 1 < len(cfg) and _is_pointwise(cfg[i + 1]):
            # Fold layer i+1 (1x1, stride 1, no act/BN) into this layer:
            #   wm'[:, (q, co2)] = sum_co wm[:, (q, co)] * w2[co, co2]
            #   bias'[(q, co2)]  = sum_co bias[(q, co)] * w2[co, co2] + b2[co2]
            w2 = np.asarray(params[i + 1]["w"], np.float32)[:, :, 0, 0]
            b2 = np.asarray(params[i + 1]["b"], np.float32)
            cout2 = w2.shape[1]
            wm = (wm.reshape(-1, sh * sw, cout) @ w2).reshape(-1, sh * sw * cout2)
            bias_cols = (bias_cols.reshape(sh * sw, cout) @ w2 + b2).reshape(-1)
            cout = cout2
            step = 2
        packed.append(dict(
            w_t=jnp.asarray(wm.T, jnp.bfloat16),                    # (NC, K)
            bias=jnp.asarray(bias_cols.reshape(-1, 1), jnp.float32),
            gamma=jnp.asarray(base["gamma"], jnp.float32),
            beta=jnp.asarray(base["beta"], jnp.float32),
        ))
        metas.append((cout, kh, kw, sh, sw, ph, pw, act_bn))
        i += step
    return packed, metas


# ----------------------------- ConvTranspose layer -----------------------------

def convt_layer(x, layer, meta, *, alpha=ALPHA, eps=BN_EPS):
    """One MFDecoder layer in NHWC: ConvTranspose2d (PyTorch semantics), then
    optionally fused LeakyReLU + training-mode BatchNorm2d (batch statistics)."""
    cout, kh, kw, sh, sw, ph, pw, act_bn = meta
    N, H, W, Cin = x.shape
    Ho = (H - 1) * sh - 2 * ph + kh
    Wo = (W - 1) * sw - 2 * pw + kw
    assert kh % sh == 0 and kw % sw == 0 and Ho % sh == 0 and Wo % sw == 0
    Kh, Kw = Ho // sh, Wo // sw
    lo_h, hi_h, Uh = _tap_geometry(kh, sh, ph)
    lo_w, hi_w, Uw = _tap_geometry(kw, sw, pw)

    # Tap gather over the UNDILATED input (no zero-insertion, no kh*kw im2col),
    # built transposed (K, M) so M lands on lanes inside the kernel.
    # TODO(synk): at production widths move this gather inside the kernel
    # (haloed input block + per-tap GEMM accumulation) to avoid the Uh*Uw x
    # HBM read amplification; at these shapes the bf16 patch pass is tiny.
    xb = x.astype(jnp.bfloat16)
    pa_h = max(0, Kh - 1 + hi_h - (H - 1))
    pa_w = max(0, Kw - 1 + hi_w - (W - 1))
    xp = jnp.pad(xb, ((0, 0), (-lo_h, pa_h), (-lo_w, pa_w), (0, 0)))
    taps = [xp[:, dh:dh + Kh, dw:dw + Kw, :]
            for dh in range(Uh) for dw in range(Uw)]
    pt = jnp.stack(taps, axis=0)                          # (T, N, Kh, Kw, Cin)
    pt = jnp.moveaxis(pt, -1, 1).reshape(Uh * Uw * Cin, N * Kh * Kw)

    y_t, stats = _convt_gemm_t(
        layer["w_t"], pt, layer["bias"], act_bn=act_bn, alpha=alpha,
        out_dtype=jnp.bfloat16 if act_bn else jnp.float32)

    if act_bn:
        # Training-mode BatchNorm2d normalization from the fused batch stats.
        # TODO(synk): running_mean/running_var buffer updates (train-time side
        # effect) are not tracked; they do not affect this forward output.
        # NOTE: var = E[y^2]-E[y]^2 in f32 (clamped); fine at these magnitudes.
        cnt = float(N * Ho * Wo)
        s = stats[0].reshape(sh * sw, cout).sum(axis=0)
        sq = stats[1].reshape(sh * sw, cout).sum(axis=0)
        mean = s / cnt
        var = jnp.maximum(sq / cnt - mean * mean, 0.0)
        scale = layer["gamma"] * jax.lax.rsqrt(var + eps)
        shift = layer["beta"] - mean * scale
        y_t = (y_t.astype(jnp.float32) * jnp.tile(scale, sh * sw)[:, None]
               + jnp.tile(shift, sh * sw)[:, None]).astype(jnp.bfloat16)

    # Interleave stride phases back to NHWC (XLA fuses this with the affine).
    y = y_t.reshape(sh, sw, cout, N, Kh, Kw).transpose(3, 4, 0, 5, 1, 2)
    return y.reshape(N, Ho, Wo, cout)


# ----------------------------- MFDecoder module -----------------------------

def mf_decoder_config(in_ch=1, latent_size=32):
    """Layer list mirroring the PyTorch module; channel widths proportional to
    latent_size exactly as in the original (1024 -> [1024,512,512,256x4,128,128])."""
    L = latent_size
    # (Cout, kh, kw, sh, sw, ph, pw, has_lrelu_bn)
    return [
        (L,       4, 1, 1, 1, 0, 0, True),
        (L // 2,  4, 1, 2, 1, 1, 0, True),
        (L // 2,  4, 1, 2, 1, 1, 0, True),
        (L // 4,  4, 4, 2, 2, 1, 1, True),
        (L // 4,  4, 4, 2, 2, 1, 1, True),
        (L // 4,  4, 4, 2, 2, 1, 1, True),
        (L // 4,  4, 4, 2, 2, 1, 1, True),
        (L // 8,  4, 4, 2, 2, 1, 1, True),
        (L // 8,  4, 4, 2, 2, 1, 1, False),   # plain ConvTranspose2d
        (in_ch,   1, 1, 1, 1, 0, 0, False),   # final 1x1 (folded into layer 9)
    ]


def init_params(key, cfg, latent_size):
    params = []
    cin = latent_size
    for (cout, kh, kw, *_rest) in cfg:
        key, kw_key, kb_key = jax.random.split(key, 3)
        params.append(dict(
            w=jax.random.normal(kw_key, (cin, cout, kh, kw), jnp.float32) * 0.05,
            b=jax.random.normal(kb_key, (cout,), jnp.float32) * 0.05,
            gamma=jnp.ones((cout,), jnp.float32),     # BatchNorm2d default init
            beta=jnp.zeros((cout,), jnp.float32),
        ))
        cin = cout
    return params


def mf_decoder_forward(x_nchw, packed_params, *, metas):
    # Single NCHW -> NHWC conversion at the boundary; NHWC / bf16 inside.
    x = jnp.transpose(x_nchw, (0, 2, 3, 1))
    for layer, meta in zip(packed_params, metas):
        x = convt_layer(x, layer, meta)
    return jnp.transpose(x, (0, 3, 1, 2))   # back to NCHW once (f32)


# ----------------------------- demo -----------------------------

if __name__ == "__main__":
    key = jax.random.PRNGKey(0)
    k_x, k_p = jax.random.split(key)

    latent_size = 32          # small-shape stand-in for the original 1024
    in_ch = 1
    cfg = mf_decoder_config(in_ch=in_ch, latent_size=latent_size)
    raw_params = init_params(k_p, cfg, latent_size)
    packed, metas = pack_params(raw_params, cfg)   # host-side; outside the jit

    # Input matches what the forward implies: a latent map of spatial size 1x1.
    x = jax.random.normal(k_x, (2, latent_size, 1, 1), jnp.float32)

    fwd = jax.jit(functools.partial(mf_decoder_forward, metas=metas))
    out = fwd(x, packed)
    jax.block_until_ready(out)

    assert out.shape == (2, in_ch, 1024, 64), out.shape
    assert out.dtype == jnp.float32
    assert bool(jnp.all(jnp.isfinite(out)))
    print("KERNEL_OK")
</pallas_src>

<mosaic_0001>
module attributes {stable_mosaic.version = 11 : i64} {
  func.func @_gemm_t_lrelu_stats_kernel(%arg0: i32, %arg1: memref<32x48xbf16, #tpu.memory_space<vmem>>, %arg2: memref<48x16xbf16, #tpu.memory_space<vmem>>, %arg3: memref<32x1xf32, #tpu.memory_space<vmem>>, %arg4: memref<32x16xbf16, #tpu.memory_space<vmem>>, %arg5: memref<1x32x1xf32, #tpu.memory_space<vmem>>, %arg6: memref<1x32x1xf32, #tpu.memory_space<vmem>>) attributes {dimension_semantics = [#tpu.dimension_semantics<parallel>], iteration_bounds = array<i64: 1>, scalar_prefetch = 0 : i64, scratch_operands = 0 : i64, tpu.core_type = #tpu.core_type<tc>, window_params = [{pipeline_mode = #tpu.pipeline_mode<synchronous>, transform_indices = @transform_0, window_bounds = array<i64: 32, 48>}, {transform_indices = @transform_1, window_bounds = array<i64: 48, 16>}, {pipeline_mode = #tpu.pipeline_mode<synchronous>, transform_indices = @transform_2, window_bounds = array<i64: 32, 1>}, {transform_indices = @transform_3, window_bounds = array<i64: 32, 16>}, {transform_indices = @transform_4, window_bounds = array<i64: 1, 32, 1>}, {transform_indices = @transform_5, window_bounds = array<i64: 1, 32, 1>}]} {
    %c0 = arith.constant 0 : index
    %c0_0 = arith.constant 0 : index
    %0 = vector.load %arg1[%c0, %c0_0] : memref<32x48xbf16, #tpu.memory_space<vmem>>, vector<32x48xbf16>
    %c0_1 = arith.constant 0 : index
    %c0_2 = arith.constant 0 : index
    %1 = vector.load %arg2[%c0_1, %c0_2] : memref<48x16xbf16, #tpu.memory_space<vmem>>, vector<48x16xbf16>
    %cst = arith.constant dense<0.000000e+00> : vector<32x16xf32>
    %2 = tpu.matmul %0, %1, %cst {dimension_numbers = #tpu.dot_dimension_numbers<[1], [0], [0], [1], [0, 0, 1, 1], [], []>} : vector<32x48xbf16>, vector<48x16xbf16>, vector<32x16xf32> -> vector<32x16xf32>
    %c0_3 = arith.constant 0 : index
    %c0_4 = arith.constant 0 : index
    %3 = vector.load %arg3[%c0_3, %c0_4] : memref<32x1xf32, #tpu.memory_space<vmem>>, vector<32x1xf32>
    %4 = vector.broadcast %3 : vector<32x1xf32> to vector<32x16xf32>
    %5 = arith.addf %2, %4 : vector<32x16xf32>
    %cst_5 = arith.constant 0.000000e+00 : f32
    %6 = vector.broadcast %cst_5 : f32 to vector<32x16xf32>
    %7 = arith.cmpf oge, %5, %6 : vector<32x16xf32>
    %cst_6 = arith.constant 2.000000e-01 : f32
    %8 = vector.broadcast %cst_6 : f32 to vector<32x16xf32>
    %9 = arith.mulf %8, %5 : vector<32x16xf32>
    %10 = arith.select %7, %5, %9 : vector<32x16xi1>, vector<32x16xf32>
    %11 = arith.truncf %10 : vector<32x16xf32> to vector<32x16xbf16>
    %c0_7 = arith.constant 0 : index
    %c0_8 = arith.constant 0 : index
    %12 = vector.load %arg4[%c0_7, %c0_8] : memref<32x16xbf16, #tpu.memory_space<vmem>>, vector<32x16xbf16>
    tpu.vector_store %arg4[%c0_7, %c0_8], %11 {strides = array<i32>} : memref<32x16xbf16, #tpu.memory_space<vmem>>, vector<32x16xbf16>,
    %cst_9 = arith.constant dense<0.000000e+00> : vector<32xf32>
    %13 = vector.multi_reduction <add>, %10, %cst_9 [1] : vector<32x16xf32> to vector<32xf32>
    %14 = vector.shape_cast %13 : vector<32xf32> to vector<32x1xf32>
    %c0_10 = arith.constant 0 : index
    %c0_11 = arith.constant 0 : index
    %c0_12 = arith.constant 0 : index
    %15 = vector.load %arg5[%c0_10, %c0_11, %c0_12] : memref<1x32x1xf32, #tpu.memory_space<vmem>>, vector<1x32x1xf32>
    %16 = vector.shape_cast %15 : vector<1x32x1xf32> to vector<32x1xf32>
    %17 = vector.shape_cast %14 : vector<32x1xf32> to vector<1x32x1xf32>
    tpu.vector_store %arg5[%c0_10, %c0_11, %c0_12], %17 {strides = array<i32>} : memref<1x32x1xf32, #tpu.memory_space<vmem>>, vector<1x32x1xf32>,
    %18 = arith.mulf %10, %10 : vector<32x16xf32>
    %cst_13 = arith.constant dense<0.000000e+00> : vector<32xf32>
    %19 = vector.multi_reduction <add>, %18, %cst_13 [1] : vector<32x16xf32> to vector<32xf32>
    %20 = vector.shape_cast %19 : vector<32xf32> to vector<32x1xf32>
    %c0_14 = arith.constant 0 : index
    %c0_15 = arith.constant 0 : index
    %c0_16 = arith.constant 0 : index
    %21 = vector.load %arg6[%c0_14, %c0_15, %c0_16] : memref<1x32x1xf32, #tpu.memory_space<vmem>>, vector<1x32x1xf32>
    %22 = vector.shape_cast %21 : vector<1x32x1xf32> to vector<32x1xf32>
    %23 = vector.shape_cast %20 : vector<32x1xf32> to vector<1x32x1xf32>
    tpu.vector_store %arg6[%c0_14, %c0_15, %c0_16], %23 {strides = array<i32>} : memref<1x32x1xf32, #tpu.memory_space<vmem>>, vector<1x32x1xf32>,
    return
  }
  func.func @transform_0(%arg0: i32) -> (i32, i32) {
    %c0_i32 = arith.constant 0 : i32
    %c0_i32_0 = arith.constant 0 : i32
    %c0_i32_1 = arith.constant 0 : i32
    return %c0_i32, %c0_i32_0 : i32, i32
  }
  func.func @transform_1(%arg0: i32) -> (i32, i32) {
    %c0_i32 = arith.constant 0 : i32
    %c0_i32_0 = arith.constant 0 : i32
    return %c0_i32, %arg0 : i32, i32
  }
  func.func @transform_2(%arg0: i32) -> (i32, i32) {
    %c0_i32 = arith.constant 0 : i32
    %c0_i32_0 = arith.constant 0 : i32
    %c0_i32_1 = arith.constant 0 : i32
    return %c0_i32, %c0_i32_0 : i32, i32
  }
  func.func @transform_3(%arg0: i32) -> (i32, i32) {
    %c0_i32 = arith.constant 0 : i32
    %c0_i32_0 = arith.constant 0 : i32
    return %c0_i32, %arg0 : i32, i32
  }
  func.func @transform_4(%arg0: i32) -> (i32, i32, i32) {
    %c0_i32 = arith.constant 0 : i32
    %c0_i32_0 = arith.constant 0 : i32
    %c0_i32_1 = arith.constant 0 : i32
    return %arg0, %c0_i32, %c0_i32_0 : i32, i32, i32
  }
  func.func @transform_5(%arg0: i32) -> (i32, i32, i32) {
    %c0_i32 = arith.constant 0 : i32
    %c0_i32_0 = arith.constant 0 : i32
    %c0_i32_1 = arith.constant 0 : i32
    return %arg0, %c0_i32, %c0_i32_0 : i32, i32, i32
  }
}

module attributes {stable_mosaic.version = 11 : i64} {
  func.func @_gemm_t_lrelu_stats_kernel(%arg0: i32, %arg1: memref<32x128xbf16, #tpu.memory_space<vmem>>, %arg2: memref<128x8xbf16, #tpu.memory_space<vmem>>, %arg3: memref<32x1xf32, #tpu.memory_space<vmem>>, %arg4: memref<32x8xbf16, #tpu.memory_space<vmem>>, %arg5: memref<1x32x1xf32, #tpu.memory_space<vmem>>, %arg6: memref<1x32x1xf32, #tpu.memory_space<vmem>>) attributes {dimension_semantics = [#tpu.dimension_semantics<parallel>], iteration_bounds = array<i64: 1>, scalar_prefetch = 0 : i64, scratch_operands = 0 : i64, tpu.core_type = #tpu.core_type<tc>, window_params = [{pipeline_mode = #tpu.pipeline_mode<synchronous>, transform_indices = @transform_0, window_bounds = array<i64: 32, 128>}, {transform_indices = @transform_1, window_bounds = array<i64: 128, 8>}, {pipeline_mode = #tpu.pipeline_mode<synchronous>, transform_indices = @transform_2, window_bounds = array<i64: 32, 1>}, {transform_indices = @transform_3, window_bounds = array<i64: 32, 8>}, {transform_indices = @transform_4, window_bounds = array<i64: 1, 32, 1>}, {transform_indices = @transform_5, window_bounds = array<i64: 1, 32, 1>}]} {
    %c0 = arith.constant 0 : index
    %c0_0 = arith.constant 0 : index
    %0 = vector.load %arg1[%c0, %c0_0] : memref<32x128xbf16, #tpu.memory_space<vmem>>, vector<32x128xbf16>
    %c0_1 = arith.constant 0 : index
    %c0_2 = arith.constant 0 : index
    %1 = vector.load %arg2[%c0_1, %c0_2] : memref<128x8xbf16, #tpu.memory_space<vmem>>, vector<128x8xbf16>
    %cst = arith.constant dense<0.000000e+00> : vector<32x8xf32>
    %2 = tpu.matmul %0, %1, %cst {dimension_numbers = #tpu.dot_dimension_numbers<[1], [0], [0], [1], [0, 0, 1, 1], [], []>} : vector<32x128xbf16>, vector<128x8xbf16>, vector<32x8xf32> -> vector<32x8xf32>
    %c0_3 = arith.constant 0 : index
    %c0_4 = arith.constant 0 : index
    %3 = vector.load %arg3[%c0_3, %c0_4] : memref<32x1xf32, #tpu.memory_space<vmem>>, vector<32x1xf32>
    %4 = vector.broadcast %3 : vector<32x1xf32> to vector<32x8xf32>
    %5 = arith.addf %2, %4 : vector<32x8xf32>
    %cst_5 = arith.constant 0.000000e+00 : f32
    %6 = vector.broadcast %cst_5 : f32 to vector<32x8xf32>
    %7 = arith.cmpf oge, %5, %6 : vector<32x8xf32>
    %cst_6 = arith.constant 2.000000e-01 : f32
    %8 = vector.broadcast %cst_6 : f32 to vector<32x8xf32>
    %9 = arith.mulf %8, %5 : vector<32x8xf32>
    %10 = arith.select %7, %5, %9 : vector<32x8xi1>, vector<32x8xf32>
    %11 = arith.truncf %10 : vector<32x8xf32> to vector<32x8xbf16>
    %c0_7 = arith.constant 0 : index
    %c0_8 = arith.constant 0 : index
    %12 = vector.load %arg4[%c0_7, %c0_8] : memref<32x8xbf16, #tpu.memory_space<vmem>>, vector<32x8xbf16>
    tpu.vector_store %arg4[%c0_7, %c0_8], %11 {strides = array<i32>} : memref<32x8xbf16, #tpu.memory_space<vmem>>, vector<32x8xbf16>,
    %cst_9 = arith.constant dense<0.000000e+00> : vector<32xf32>
    %13 = vector.multi_reduction <add>, %10, %cst_9 [1] : vector<32x8xf32> to vector<32xf32>
    %14 = vector.shape_cast %13 : vector<32xf32> to vector<32x1xf32>
    %c0_10 = arith.constant 0 : index
    %c0_11 = arith.constant 0 : index
    %c0_12 = arith.constant 0 : index
    %15 = vector.load %arg5[%c0_10, %c0_11, %c0_12] : memref<1x32x1xf32, #tpu.memory_space<vmem>>, vector<1x32x1xf32>
    %16 = vector.shape_cast %15 : vector<1x32x1xf32> to vector<32x1xf32>
    %17 = vector.shape_cast %14 : vector<32x1xf32> to vector<1x32x1xf32>
    tpu.vector_store %arg5[%c0_10, %c0_11, %c0_12], %17 {strides = array<i32>} : memref<1x32x1xf32, #tpu.memory_space<vmem>>, vector<1x32x1xf32>,
    %18 = arith.mulf %10, %10 : vector<32x8xf32>
    %cst_13 = arith.constant dense<0.000000e+00> : vector<32xf32>
    %19 = vector.multi_reduction <add>, %18, %cst_13 [1] : vector<32x8xf32> to vector<32xf32>
    %20 = vector.shape_cast %19 : vector<32xf32> to vector<32x1xf32>
    %c0_14 = arith.constant 0 : index
    %c0_15 = arith.constant 0 : index
    %c0_16 = arith.constant 0 : index
    %21 = vector.load %arg6[%c0_14, %c0_15, %c0_16] : memref<1x32x1xf32, #tpu.memory_space<vmem>>, vector<1x32x1xf32>
    %22 = vector.shape_cast %21 : vector<1x32x1xf32> to vector<32x1xf32>
    %23 = vector.shape_cast %20 : vector<32x1xf32> to vector<1x32x1xf32>
    tpu.vector_store %arg6[%c0_14, %c0_15, %c0_16], %23 {strides = array<i32>} : memref<1x32x1xf32, #tpu.memory_space<vmem>>, vector<1x32x1xf32>,
    return
  }
  func.func @transform_0(%arg0: i32) -> (i32, i32) {
    %c0_i32 = arith.constant 0 : i32
    %c0_i32_0 = arith.constant 0 : i32
    %c0_i32_1 = arith.constant 0 : i32
    return %c0_i32, %c0_i32_0 : i32, i32
  }
  func.func @transform_1(%arg0: i32) -> (i32, i32) {
    %c0_i32 = arith.constant 0 : i32
    %c0_i32_0 = arith.constant 0 : i32
    return %c0_i32, %arg0 : i32, i32
  }
  func.func @transform_2(%arg0: i32) -> (i32, i32) {
    %c0_i32 = arith.constant 0 : i32
    %c0_i32_0 = arith.constant 0 : i32
    %c0_i32_1 = arith.constant 0 : i32
    return %c0_i32, %c0_i32_0 : i32, i32
  }
  func.func @transform_3(%arg0: i32) -> (i32, i32) {
    %c0_i32 = arith.constant 0 : i32
    %c0_i32_0 = arith.constant 0 : i32
    return %c0_i32, %arg0 : i32, i32
  }
  func.func @transform_4(%arg0: i32) -> (i32, i32, i32) {
    %c0_i32 = arith.constant 0 : i32
    %c0_i32_0 = arith.constant 0 : i32
    %c0_i32_1 = arith.constant 0 : i32
    return %arg0, %c0_i32, %c0_i32_0 : i32, i32, i32
  }
  func.func @transform_5(%arg0: i32) -> (i32, i32, i32) {
    %c0_i32 = arith.constant 0 : i32
    %c0_i32_0 = arith.constant 0 : i32
    %c0_i32_1 = arith.constant 0 : i32
    return %arg0, %c0_i32, %c0_i32_0 : i32, i32, i32
  }
}

module attributes {stable_mosaic.version = 11 : i64} {
  func.func @_gemm_t_lrelu_stats_kernel(%arg0: i32, %arg1: memref<32x96xbf16, #tpu.memory_space<vmem>>, %arg2: memref<96x8xbf16, #tpu.memory_space<vmem>>, %arg3: memref<32x1xf32, #tpu.memory_space<vmem>>, %arg4: memref<32x8xbf16, #tpu.memory_space<vmem>>, %arg5: memref<1x32x1xf32, #tpu.memory_space<vmem>>, %arg6: memref<1x32x1xf32, #tpu.memory_space<vmem>>) attributes {dimension_semantics = [#tpu.dimension_semantics<parallel>], iteration_bounds = array<i64: 1>, scalar_prefetch = 0 : i64, scratch_operands = 0 : i64, tpu.core_type = #tpu.core_type<tc>, window_params = [{pipeline_mode = #tpu.pipeline_mode<synchronous>, transform_indices = @transform_0, window_bounds = array<i64: 32, 96>}, {transform_indices = @transform_1, window_bounds = array<i64: 96, 8>}, {pipeline_mode = #tpu.pipeline_mode<synchronous>, transform_indices = @transform_2, window_bounds = array<i64: 32, 1>}, {transform_indices = @transform_3, window_bounds = array<i64: 32, 8>}, {transform_indices = @transform_4, window_bounds = array<i64: 1, 32, 1>}, {transform_indices = @transform_5, window_bounds = array<i64: 1, 32, 1>}]} {
    %c0 = arith.constant 0 : index
    %c0_0 = arith.constant 0 : index
    %0 = vector.load %arg1[%c0, %c0_0] : memref<32x96xbf16, #tpu.memory_space<vmem>>, vector<32x96xbf16>
    %c0_1 = arith.constant 0 : index
    %c0_2 = arith.constant 0 : index
    %1 = vector.load %arg2[%c0_1, %c0_2] : memref<96x8xbf16, #tpu.memory_space<vmem>>, vector<96x8xbf16>
    %cst = arith.constant dense<0.000000e+00> : vector<32x8xf32>
    %2 = tpu.matmul %0, %1, %cst {dimension_numbers = #tpu.dot_dimension_numbers<[1], [0], [0], [1], [0, 0, 1, 1], [], []>} : vector<32x96xbf16>, vector<96x8xbf16>, vector<32x8xf32> -> vector<32x8xf32>
    %c0_3 = arith.constant 0 : index
    %c0_4 = arith.constant 0 : index
    %3 = vector.load %arg3[%c0_3, %c0_4] : memref<32x1xf32, #tpu.memory_space<vmem>>, vector<32x1xf32>
    %4 = vector.broadcast %3 : vector<32x1xf32> to vector<32x8xf32>
    %5 = arith.addf %2, %4 : vector<32x8xf32>
    %cst_5 = arith.constant 0.000000e+00 : f32
    %6 = vector.broadcast %cst_5 : f32 to vector<32x8xf32>
    %7 = arith.cmpf oge, %5, %6 : vector<32x8xf32>
    %cst_6 = arith.constant 2.000000e-01 : f32
    %8 = vector.broadcast %cst_6 : f32 to vector<32x8xf32>
    %9 = arith.mulf %8, %5 : vector<32x8xf32>
    %10 = arith.select %7, %5, %9 : vector<32x8xi1>, vector<32x8xf32>
    %11 = arith.truncf %10 : vector<32x8xf32> to vector<32x8xbf16>
    %c0_7 = arith.constant 0 : index
    %c0_8 = arith.constant 0 : index
    %12 = vector.load %arg4[%c0_7, %c0_8] : memref<32x8xbf16, #tpu.memory_space<vmem>>, vector<32x8xbf16>
    tpu.vector_store %arg4[%c0_7, %c0_8], %11 {strides = array<i32>} : memref<32x8xbf16, #tpu.memory_space<vmem>>, vector<32x8xbf16>,
    %cst_9 = arith.constant dense<0.000000e+00> : vector<32xf32>
    %13 = vector.multi_reduction <add>, %10, %cst_9 [1] : vector<32x8xf32> to vector<32xf32>
    %14 = vector.shape_cast %13 : vector<32xf32> to vector<32x1xf32>
    %c0_10 = arith.constant 0 : index
    %c0_11 = arith.constant 0 : index
    %c0_12 = arith.constant 0 : index
    %15 = vector.load %arg5[%c0_10, %c0_11, %c0_12] : memref<1x32x1xf32, #tpu.memory_space<vmem>>, vector<1x32x1xf32>
    %16 = vector.shape_cast %15 : vector<1x32x1xf32> to vector<32x1xf32>
    %17 = vector.shape_cast %14 : vector<32x1xf32> to vector<1x32x1xf32>
    tpu.vector_store %arg5[%c0_10, %c0_11, %c0_12], %17 {strides = array<i32>} : memref<1x32x1xf32, #tpu.memory_space<vmem>>, vector<1x32x1xf32>,
    %18 = arith.mulf %10, %10 : vector<32x8xf32>
    %cst_13 = arith.constant dense<0.000000e+00> : vector<32xf32>
    %19 = vector.multi_reduction <add>, %18, %cst_13 [1] : vector<32x8xf32> to vector<32xf32>
    %20 = vector.shape_cast %19 : vector<32xf32> to vector<32x1xf32>
    %c0_14 = arith.constant 0 : index
    %c0_15 = arith.constant 0 : index
    %c0_16 = arith.constant 0 : index
    %21 = vector.load %arg6[%c0_14, %c0_15, %c0_16] : memref<1x32x1xf32, #tpu.memory_space<vmem>>, vector<1x32x1xf32>
    %22 = vector.shape_cast %21 : vector<1x32x1xf32> to vector<32x1xf32>
    %23 = vector.shape_cast %20 : vector<32x1xf32> to vector<1x32x1xf32>
    tpu.vector_store %arg6[%c0_14, %c0_15, %c0_16], %23 {strides = array<i32>} : memref<1x32x1xf32, #tpu.memory_space<vmem>>, vector<1x32x1xf32>,
    return
  }
  func.func @transform_0(%arg0: i32) -> (i32, i32) {
    %c0_i32 = arith.constant 0 : i32
    %c0_i32_0 = arith.constant 0 : i32
    %c0_i32_1 = arith.constant 0 : i32
    return %c0_i32, %c0_i32_0 : i32, i32
  }
  func.func @transform_1(%arg0: i32) -> (i32, i32) {
    %c0_i32 = arith.constant 0 : i32
    %c0_i32_0 = arith.constant 0 : i32
    return %c0_i32, %arg0 : i32, i32
  }
  func.func @transform_2(%arg0: i32) -> (i32, i32) {
    %c0_i32 = arith.constant 0 : i32
    %c0_i32_0 = arith.constant 0 : i32
    %c0_i32_1 = arith.constant 0 : i32
    return %c0_i32, %c0_i32_0 : i32, i32
  }
  func.func @transform_3(%arg0: i32) -> (i32, i32) {
    %c0_i32 = arith.constant 0 : i32
    %c0_i32_0 = arith.constant 0 : i32
    return %c0_i32, %arg0 : i32, i32
  }
  func.func @transform_4(%arg0: i32) -> (i32, i32, i32) {
    %c0_i32 = arith.constant 0 : i32
    %c0_i32_0 = arith.constant 0 : i32
    %c0_i32_1 = arith.constant 0 : i32
    return %arg0, %c0_i32, %c0_i32_0 : i32, i32, i32
  }
  func.func @transform_5(%arg0: i32) -> (i32, i32, i32) {
    %c0_i32 = arith.constant 0 : i32
    %c0_i32_0 = arith.constant 0 : i32
    %c0_i32_1 = arith.constant 0 : i32
    return %arg0, %c0_i32, %c0_i32_0 : i32, i32, i32
  }
}

module attributes {stable_mosaic.version = 11 : i64} {
  func.func @_gemm_t_lrelu_stats_kernel(%arg0: i32, %arg1: memref<32x144xbf16, #tpu.memory_space<vmem>>, %arg2: memref<144x32xbf16, #tpu.memory_space<vmem>>, %arg3: memref<32x1xf32, #tpu.memory_space<vmem>>, %arg4: memref<32x32xbf16, #tpu.memory_space<vmem>>, %arg5: memref<1x32x1xf32, #tpu.memory_space<vmem>>, %arg6: memref<1x32x1xf32, #tpu.memory_space<vmem>>) attributes {dimension_semantics = [#tpu.dimension_semantics<parallel>], iteration_bounds = array<i64: 1>, scalar_prefetch = 0 : i64, scratch_operands = 0 : i64, tpu.core_type = #tpu.core_type<tc>, window_params = [{pipeline_mode = #tpu.pipeline_mode<synchronous>, transform_indices = @transform_0, window_bounds = array<i64: 32, 144>}, {transform_indices = @transform_1, window_bounds = array<i64: 144, 32>}, {pipeline_mode = #tpu.pipeline_mode<synchronous>, transform_indices = @transform_2, window_bounds = array<i64: 32, 1>}, {transform_indices = @transform_3, window_bounds = array<i64: 32, 32>}, {transform_indices = @transform_4, window_bounds = array<i64: 1, 32, 1>}, {transform_indices = @transform_5, window_bounds = array<i64: 1, 32, 1>}]} {
    %c0 = arith.constant 0 : index
    %c0_0 = arith.constant 0 : index
    %0 = vector.load %arg1[%c0, %c0_0] : memref<32x144xbf16, #tpu.memory_space<vmem>>, vector<32x144xbf16>
    %c0_1 = arith.constant 0 : index
    %c0_2 = arith.constant 0 : index
    %1 = vector.load %arg2[%c0_1, %c0_2] : memref<144x32xbf16, #tpu.memory_space<vmem>>, vector<144x32xbf16>
    %cst = arith.constant dense<0.000000e+00> : vector<32x32xf32>
    %2 = tpu.matmul %0, %1, %cst {dimension_numbers = #tpu.dot_dimension_numbers<[1], [0], [0], [1], [0, 0, 1, 1], [], []>} : vector<32x144xbf16>, vector<144x32xbf16>, vector<32x32xf32> -> vector<32x32xf32>
    %c0_3 = arith.constant 0 : index
    %c0_4 = arith.constant 0 : index
    %3 = vector.load %arg3[%c0_3, %c0_4] : memref<32x1xf32, #tpu.memory_space<vmem>>, vector<32x1xf32>
    %4 = vector.broadcast %3 : vector<32x1xf32> to vector<32x32xf32>
    %5 = arith.addf %2, %4 : vector<32x32xf32>
    %cst_5 = arith.constant 0.000000e+00 : f32
    %6 = vector.broadcast %cst_5 : f32 to vector<32x32xf32>
    %7 = arith.cmpf oge, %5, %6 : vector<32x32xf32>
    %cst_6 = arith.constant 2.000000e-01 : f32
    %8 = vector.broadcast %cst_6 : f32 to vector<32x32xf32>
    %9 = arith.mulf %8, %5 : vector<32x32xf32>
    %10 = arith.select %7, %5, %9 : vector<32x32xi1>, vector<32x32xf32>
    %11 = arith.truncf %10 : vector<32x32xf32> to vector<32x32xbf16>
    %c0_7 = arith.constant 0 : index
    %c0_8 = arith.constant 0 : index
    %12 = vector.load %arg4[%c0_7, %c0_8] : memref<32x32xbf16, #tpu.memory_space<vmem>>, vector<32x32xbf16>
    tpu.vector_store %arg4[%c0_7, %c0_8], %11 {strides = array<i32>} : memref<32x32xbf16, #tpu.memory_space<vmem>>, vector<32x32xbf16>,
    %cst_9 = arith.constant dense<0.000000e+00> : vector<32xf32>
    %13 = vector.multi_reduction <add>, %10, %cst_9 [1] : vector<32x32xf32> to vector<32xf32>
    %14 = vector.shape_cast %13 : vector<32xf32> to vector<32x1xf32>
    %c0_10 = arith.constant 0 : index
    %c0_11 = arith.constant 0 : index
    %c0_12 = arith.constant 0 : index
    %15 = vector.load %arg5[%c0_10, %c0_11, %c0_12] : memref<1x32x1xf32, #tpu.memory_space<vmem>>, vector<1x32x1xf32>
    %16 = vector.shape_cast %15 : vector<1x32x1xf32> to vector<32x1xf32>
    %17 = vector.shape_cast %14 : vector<32x1xf32> to vector<1x32x1xf32>
    tpu.vector_store %arg5[%c0_10, %c0_11, %c0_12], %17 {strides = array<i32>} : memref<1x32x1xf32, #tpu.memory_space<vmem>>, vector<1x32x1xf32>,
    %18 = arith.mulf %10, %10 : vector<32x32xf32>
    %cst_13 = arith.constant dense<0.000000e+00> : vector<32xf32>
    %19 = vector.multi_reduction <add>, %18, %cst_13 [1] : vector<32x32xf32> to vector<32xf32>
    %20 = vector.shape_cast %19 : vector<32xf32> to vector<32x1xf32>
    %c0_14 = arith.constant 0 : index
    %c0_15 = arith.constant 0 : index
    %c0_16 = arith.constant 0 : index
    %21 = vector.load %arg6[%c0_14, %c0_15, %c0_16] : memref<1x32x1xf32, #tpu.memory_space<vmem>>, vector<1x32x1xf32>
    %22 = vector.shape_cast %21 : vector<1x32x1xf32> to vector<32x1xf32>
    %23 = vector.shape_cast %20 : vector<32x1xf32> to vector<1x32x1xf32>
    tpu.vector_store %arg6[%c0_14, %c0_15, %c0_16], %23 {strides = array<i32>} : memref<1x32x1xf32, #tpu.memory_space<vmem>>, vector<1x32x1xf32>,
    return
  }
  func.func @transform_0(%arg0: i32) -> (i32, i32) {
    %c0_i32 = arith.constant 0 : i32
    %c0_i32_0 = arith.constant 0 : i32
    %c0_i32_1 = arith.constant 0 : i32
    return %c0_i32, %c0_i32_0 : i32, i32
  }
  func.func @transform_1(%arg0: i32) -> (i32, i32) {
    %c0_i32 = arith.constant 0 : i32
    %c0_i32_0 = arith.constant 0 : i32
    return %c0_i32, %arg0 : i32, i32
  }
  func.func @transform_2(%arg0: i32) -> (i32, i32) {
    %c0_i32 = arith.constant 0 : i32
    %c0_i32_0 = arith.constant 0 : i32
    %c0_i32_1 = arith.constant 0 : i32
    return %c0_i32, %c0_i32_0 : i32, i32
  }
  func.func @transform_3(%arg0: i32) -> (i32, i32) {
    %c0_i32 = arith.constant 0 : i32
    %c0_i32_0 = arith.constant 0 : i32
    return %c0_i32, %arg0 : i32, i32
  }
  func.func @transform_4(%arg0: i32) -> (i32, i32, i32) {
    %c0_i32 = arith.constant 0 : i32
    %c0_i32_0 = arith.constant 0 : i32
    %c0_i32_1 = arith.constant 0 : i32
    return %arg0, %c0_i32, %c0_i32_0 : i32, i32, i32
  }
  func.func @transform_5(%arg0: i32) -> (i32, i32, i32) {
    %c0_i32 = arith.constant 0 : i32
    %c0_i32_0 = arith.constant 0 : i32
    %c0_i32_1 = arith.constant 0 : i32
    return %arg0, %c0_i32, %c0_i32_0 : i32, i32, i32
  }
}

module attributes {stable_mosaic.version = 11 : i64} {
  func.func @_gemm_t_lrelu_stats_kernel(%arg0: i32, %arg1: memref<32x72xbf16, #tpu.memory_space<vmem>>, %arg2: memref<72x128xbf16, #tpu.memory_space<vmem>>, %arg3: memref<32x1xf32, #tpu.memory_space<vmem>>, %arg4: memref<32x128xbf16, #tpu.memory_space<vmem>>, %arg5: memref<1x32x1xf32, #tpu.memory_space<vmem>>, %arg6: memref<1x32x1xf32, #tpu.memory_space<vmem>>) attributes {dimension_semantics = [#tpu.dimension_semantics<parallel>], iteration_bounds = array<i64: 1>, scalar_prefetch = 0 : i64, scratch_operands = 0 : i64, tpu.core_type = #tpu.core_type<tc>, window_params = [{pipeline_mode = #tpu.pipeline_mode<synchronous>, transform_indices = @transform_0, window_bounds = array<i64: 32, 72>}, {transform_indices = @transform_1, window_bounds = array<i64: 72, 128>}, {pipeline_mode = #tpu.pipeline_mode<synchronous>, transform_indices = @transform_2, window_bounds = array<i64: 32, 1>}, {transform_indices = @transform_3, window_bounds = array<i64: 32, 128>}, {transform_indices = @transform_4, window_bounds = array<i64: 1, 32, 1>}, {transform_indices = @transform_5, window_bounds = array<i64: 1, 32, 1>}]} {
    %c0 = arith.constant 0 : index
    %c0_0 = arith.constant 0 : index
    %0 = vector.load %arg1[%c0, %c0_0] : memref<32x72xbf16, #tpu.memory_space<vmem>>, vector<32x72xbf16>
    %c0_1 = arith.constant 0 : index
    %c0_2 = arith.constant 0 : index
    %1 = vector.load %arg2[%c0_1, %c0_2] : memref<72x128xbf16, #tpu.memory_space<vmem>>, vector<72x128xbf16>
    %cst = arith.constant dense<0.000000e+00> : vector<32x128xf32>
    %2 = tpu.matmul %0, %1, %cst {dimension_numbers = #tpu.dot_dimension_numbers<[1], [0], [0], [1], [0, 0, 1, 1], [], []>} : vector<32x72xbf16>, vector<72x128xbf16>, vector<32x128xf32> -> vector<32x128xf32>
    %c0_3 = arith.constant 0 : index
    %c0_4 = arith.constant 0 : index
    %3 = vector.load %arg3[%c0_3, %c0_4] : memref<32x1xf32, #tpu.memory_space<vmem>>, vector<32x1xf32>
    %4 = vector.broadcast %3 : vector<32x1xf32> to vector<32x128xf32>
    %5 = arith.addf %2, %4 : vector<32x128xf32>
    %cst_5 = arith.constant 0.000000e+00 : f32
    %6 = vector.broadcast %cst_5 : f32 to vector<32x128xf32>
    %7 = arith.cmpf oge, %5, %6 : vector<32x128xf32>
    %cst_6 = arith.constant 2.000000e-01 : f32
    %8 = vector.broadcast %cst_6 : f32 to vector<32x128xf32>
    %9 = arith.mulf %8, %5 : vector<32x128xf32>
    %10 = arith.select %7, %5, %9 : vector<32x128xi1>, vector<32x128xf32>
    %11 = arith.truncf %10 : vector<32x128xf32> to vector<32x128xbf16>
    %c0_7 = arith.constant 0 : index
    %c0_8 = arith.constant 0 : index
    %12 = vector.load %arg4[%c0_7, %c0_8] : memref<32x128xbf16, #tpu.memory_space<vmem>>, vector<32x128xbf16>
    tpu.vector_store %arg4[%c0_7, %c0_8], %11 {strides = array<i32>} : memref<32x128xbf16, #tpu.memory_space<vmem>>, vector<32x128xbf16>,
    %cst_9 = arith.constant dense<0.000000e+00> : vector<32xf32>
    %13 = vector.multi_reduction <add>, %10, %cst_9 [1] : vector<32x128xf32> to vector<32xf32>
    %14 = vector.shape_cast %13 : vector<32xf32> to vector<32x1xf32>
    %c0_10 = arith.constant 0 : index
    %c0_11 = arith.constant 0 : index
    %c0_12 = arith.constant 0 : index
    %15 = vector.load %arg5[%c0_10, %c0_11, %c0_12] : memref<1x32x1xf32, #tpu.memory_space<vmem>>, vector<1x32x1xf32>
    %16 = vector.shape_cast %15 : vector<1x32x1xf32> to vector<32x1xf32>
    %17 = vector.shape_cast %14 : vector<32x1xf32> to vector<1x32x1xf32>
    tpu.vector_store %arg5[%c0_10, %c0_11, %c0_12], %17 {strides = array<i32>} : memref<1x32x1xf32, #tpu.memory_space<vmem>>, vector<1x32x1xf32>,
    %18 = arith.mulf %10, %10 : vector<32x128xf32>
    %cst_13 = arith.constant dense<0.000000e+00> : vector<32xf32>
    %19 = vector.multi_reduction <add>, %18, %cst_13 [1] : vector<32x128xf32> to vector<32xf32>
    %20 = vector.shape_cast %19 : vector<32xf32> to vector<32x1xf32>
    %c0_14 = arith.constant 0 : index
    %c0_15 = arith.constant 0 : index
    %c0_16 = arith.constant 0 : index
    %21 = vector.load %arg6[%c0_14, %c0_15, %c0_16] : memref<1x32x1xf32, #tpu.memory_space<vmem>>, vector<1x32x1xf32>
    %22 = vector.shape_cast %21 : vector<1x32x1xf32> to vector<32x1xf32>
    %23 = vector.shape_cast %20 : vector<32x1xf32> to vector<1x32x1xf32>
    tpu.vector_store %arg6[%c0_14, %c0_15, %c0_16], %23 {strides = array<i32>} : memref<1x32x1xf32, #tpu.memory_space<vmem>>, vector<1x32x1xf32>,
    return
  }
  func.func @transform_0(%arg0: i32) -> (i32, i32) {
    %c0_i32 = arith.constant 0 : i32
    %c0_i32_0 = arith.constant 0 : i32
    %c0_i32_1 = arith.constant 0 : i32
    return %c0_i32, %c0_i32_0 : i32, i32
  }
  func.func @transform_1(%arg0: i32) -> (i32, i32) {
    %c0_i32 = arith.constant 0 : i32
    %c0_i32_0 = arith.constant 0 : i32
    return %c0_i32, %arg0 : i32, i32
  }
  func.func @transform_2(%arg0: i32) -> (i32, i32) {
    %c0_i32 = arith.constant 0 : i32
    %c0_i32_0 = arith.constant 0 : i32
    %c0_i32_1 = arith.constant 0 : i32
    return %c0_i32, %c0_i32_0 : i32, i32
  }
  func.func @transform_3(%arg0: i32) -> (i32, i32) {
    %c0_i32 = arith.constant 0 : i32
    %c0_i32_0 = arith.constant 0 : i32
    return %c0_i32, %arg0 : i32, i32
  }
  func.func @transform_4(%arg0: i32) -> (i32, i32, i32) {
    %c0_i32 = arith.constant 0 : i32
    %c0_i32_0 = arith.constant 0 : i32
    %c0_i32_1 = arith.constant 0 : i32
    return %arg0, %c0_i32, %c0_i32_0 : i32, i32, i32
  }
  func.func @transform_5(%arg0: i32) -> (i32, i32, i32) {
    %c0_i32 = arith.constant 0 : i32
    %c0_i32_0 = arith.constant 0 : i32
    %c0_i32_1 = arith.constant 0 : i32
    return %arg0, %c0_i32, %c0_i32_0 : i32, i32, i32
  }
}

module attributes {stable_mosaic.version = 11 : i64} {
  func.func @_gemm_t_lrelu_stats_kernel(%arg0: i32, %arg1: memref<32x72xbf16, #tpu.memory_space<vmem>>, %arg2: memref<72x512xbf16, #tpu.memory_space<vmem>>, %arg3: memref<32x1xf32, #tpu.memory_space<vmem>>, %arg4: memref<32x512xbf16, #tpu.memory_space<vmem>>, %arg5: memref<1x32x1xf32, #tpu.memory_space<vmem>>, %arg6: memref<1x32x1xf32, #tpu.memory_space<vmem>>) attributes {dimension_semantics = [#tpu.dimension_semantics<parallel>], iteration_bounds = array<i64: 1>, scalar_prefetch = 0 : i64, scratch_operands = 0 : i64, tpu.core_type = #tpu.core_type<tc>, window_params = [{pipeline_mode = #tpu.pipeline_mode<synchronous>, transform_indices = @transform_0, window_bounds = array<i64: 32, 72>}, {transform_indices = @transform_1, window_bounds = array<i64: 72, 512>}, {pipeline_mode = #tpu.pipeline_mode<synchronous>, transform_indices = @transform_2, window_bounds = array<i64: 32, 1>}, {transform_indices = @transform_3, window_bounds = array<i64: 32, 512>}, {transform_indices = @transform_4, window_bounds = array<i64: 1, 32, 1>}, {transform_indices = @transform_5, window_bounds = array<i64: 1, 32, 1>}]} {
    %c0 = arith.constant 0 : index
    %c0_0 = arith.constant 0 : index
    %0 = vector.load %arg1[%c0, %c0_0] : memref<32x72xbf16, #tpu.memory_space<vmem>>, vector<32x72xbf16>
    %c0_1 = arith.constant 0 : index
    %c0_2 = arith.constant 0 : index
    %1 = vector.load %arg2[%c0_1, %c0_2] : memref<72x512xbf16, #tpu.memory_space<vmem>>, vector<72x512xbf16>
    %cst = arith.constant dense<0.000000e+00> : vector<32x512xf32>
    %2 = tpu.matmul %0, %1, %cst {dimension_numbers = #tpu.dot_dimension_numbers<[1], [0], [0], [1], [0, 0, 1, 1], [], []>} : vector<32x72xbf16>, vector<72x512xbf16>, vector<32x512xf32> -> vector<32x512xf32>
    %c0_3 = arith.constant 0 : index
    %c0_4 = arith.constant 0 : index
    %3 = vector.load %arg3[%c0_3, %c0_4] : memref<32x1xf32, #tpu.memory_space<vmem>>, vector<32x1xf32>
    %4 = vector.broadcast %3 : vector<32x1xf32> to vector<32x512xf32>
    %5 = arith.addf %2, %4 : vector<32x512xf32>
    %cst_5 = arith.constant 0.000000e+00 : f32
    %6 = vector.broadcast %cst_5 : f32 to vector<32x512xf32>
    %7 = arith.cmpf oge, %5, %6 : vector<32x512xf32>
    %cst_6 = arith.constant 2.000000e-01 : f32
    %8 = vector.broadcast %cst_6 : f32 to vector<32x512xf32>
    %9 = arith.mulf %8, %5 : vector<32x512xf32>
    %10 = arith.select %7, %5, %9 : vector<32x512xi1>, vector<32x512xf32>
    %11 = arith.truncf %10 : vector<32x512xf32> to vector<32x512xbf16>
    %c0_7 = arith.constant 0 : index
    %c0_8 = arith.constant 0 : index
    %12 = vector.load %arg4[%c0_7, %c0_8] : memref<32x512xbf16, #tpu.memory_space<vmem>>, vector<32x512xbf16>
    tpu.vector_store %arg4[%c0_7, %c0_8], %11 {strides = array<i32>} : memref<32x512xbf16, #tpu.memory_space<vmem>>, vector<32x512xbf16>,
    %cst_9 = arith.constant dense<0.000000e+00> : vector<32xf32>
    %13 = vector.multi_reduction <add>, %10, %cst_9 [1] : vector<32x512xf32> to vector<32xf32>
    %14 = vector.shape_cast %13 : vector<32xf32> to vector<32x1xf32>
    %c0_10 = arith.constant 0 : index
    %c0_11 = arith.constant 0 : index
    %c0_12 = arith.constant 0 : index
    %15 = vector.load %arg5[%c0_10, %c0_11, %c0_12] : memref<1x32x1xf32, #tpu.memory_space<vmem>>, vector<1x32x1xf32>
    %16 = vector.shape_cast %15 : vector<1x32x1xf32> to vector<32x1xf32>
    %17 = vector.shape_cast %14 : vector<32x1xf32> to vector<1x32x1xf32>
    tpu.vector_store %arg5[%c0_10, %c0_11, %c0_12], %17 {strides = array<i32>} : memref<1x32x1xf32, #tpu.memory_space<vmem>>, vector<1x32x1xf32>,
    %18 = arith.mulf %10, %10 : vector<32x512xf32>
    %cst_13 = arith.constant dense<0.000000e+00> : vector<32xf32>
    %19 = vector.multi_reduction <add>, %18, %cst_13 [1] : vector<32x512xf32> to vector<32xf32>
    %20 = vector.shape_cast %19 : vector<32xf32> to vector<32x1xf32>
    %c0_14 = arith.constant 0 : index
    %c0_15 = arith.constant 0 : index
    %c0_16 = arith.constant 0 : index
    %21 = vector.load %arg6[%c0_14, %c0_15, %c0_16] : memref<1x32x1xf32, #tpu.memory_space<vmem>>, vector<1x32x1xf32>
    %22 = vector.shape_cast %21 : vector<1x32x1xf32> to vector<32x1xf32>
    %23 = vector.shape_cast %20 : vector<32x1xf32> to vector<1x32x1xf32>
    tpu.vector_store %arg6[%c0_14, %c0_15, %c0_16], %23 {strides = array<i32>} : memref<1x32x1xf32, #tpu.memory_space<vmem>>, vector<1x32x1xf32>,
    return
  }
  func.func @transform_0(%arg0: i32) -> (i32, i32) {
    %c0_i32 = arith.constant 0 : i32
    %c0_i32_0 = arith.constant 0 : i32
    %c0_i32_1 = arith.constant 0 : i32
    return %c0_i32, %c0_i32_0 : i32, i32
  }
  func.func @transform_1(%arg0: i32) -> (i32, i32) {
    %c0_i32 = arith.constant 0 : i32
    %c0_i32_0 = arith.constant 0 : i32
    return %c0_i32, %arg0 : i32, i32
  }
  func.func @transform_2(%arg0: i32) -> (i32, i32) {
    %c0_i32 = arith.constant 0 : i32
    %c0_i32_0 = arith.constant 0 : i32
    %c0_i32_1 = arith.constant 0 : i32
    return %c0_i32, %c0_i32_0 : i32, i32
  }
  func.func @transform_3(%arg0: i32) -> (i32, i32) {
    %c0_i32 = arith.constant 0 : i32
    %c0_i32_0 = arith.constant 0 : i32
    return %c0_i32, %arg0 : i32, i32
  }
  func.func @transform_4(%arg0: i32) -> (i32, i32, i32) {
    %c0_i32 = arith.constant 0 : i32
    %c0_i32_0 = arith.constant 0 : i32
    %c0_i32_1 = arith.constant 0 : i32
    return %arg0, %c0_i32, %c0_i32_0 : i32, i32, i32
  }
  func.func @transform_5(%arg0: i32) -> (i32, i32, i32) {
    %c0_i32 = arith.constant 0 : i32
    %c0_i32_0 = arith.constant 0 : i32
    %c0_i32_1 = arith.constant 0 : i32
    return %arg0, %c0_i32, %c0_i32_0 : i32, i32, i32
  }
}

module attributes {stable_mosaic.version = 11 : i64} {
  func.func @_gemm_t_lrelu_stats_kernel(%arg0: i32, %arg1: memref<32x72xbf16, #tpu.memory_space<vmem>>, %arg2: memref<72x1024xbf16, #tpu.memory_space<vmem>>, %arg3: memref<32x1xf32, #tpu.memory_space<vmem>>, %arg4: memref<32x1024xbf16, #tpu.memory_space<vmem>>, %arg5: memref<1x32x1xf32, #tpu.memory_space<vmem>>, %arg6: memref<1x32x1xf32, #tpu.memory_space<vmem>>) attributes {dimension_semantics = [#tpu.dimension_semantics<parallel>], iteration_bounds = array<i64: 2>, scalar_prefetch = 0 : i64, scratch_operands = 0 : i64, tpu.core_type = #tpu.core_type<tc>, window_params = [{pipeline_mode = #tpu.pipeline_mode<synchronous>, transform_indices = @transform_0, window_bounds = array<i64: 32, 72>}, {transform_indices = @transform_1, window_bounds = array<i64: 72, 1024>}, {pipeline_mode = #tpu.pipeline_mode<synchronous>, transform_indices = @transform_2, window_bounds = array<i64: 32, 1>}, {transform_indices = @transform_3, window_bounds = array<i64: 32, 1024>}, {transform_indices = @transform_4, window_bounds = array<i64: 1, 32, 1>}, {transform_indices = @transform_5, window_bounds = array<i64: 1, 32, 1>}]} {
    %c0 = arith.constant 0 : index
    %c0_0 = arith.constant 0 : index
    %0 = vector.load %arg1[%c0, %c0_0] : memref<32x72xbf16, #tpu.memory_space<vmem>>, vector<32x72xbf16>
    %c0_1 = arith.constant 0 : index
    %c0_2 = arith.constant 0 : index
    %1 = vector.load %arg2[%c0_1, %c0_2] : memref<72x1024xbf16, #tpu.memory_space<vmem>>, vector<72x1024xbf16>
    %cst = arith.constant dense<0.000000e+00> : vector<32x1024xf32>
    %2 = tpu.matmul %0, %1, %cst {dimension_numbers = #tpu.dot_dimension_numbers<[1], [0], [0], [1], [0, 0, 1, 1], [], []>} : vector<32x72xbf16>, vector<72x1024xbf16>, vector<32x1024xf32> -> vector<32x1024xf32>
    %c0_3 = arith.constant 0 : index
    %c0_4 = arith.constant 0 : index
    %3 = vector.load %arg3[%c0_3, %c0_4] : memref<32x1xf32, #tpu.memory_space<vmem>>, vector<32x1xf32>
    %4 = vector.broadcast %3 : vector<32x1xf32> to vector<32x1024xf32>
    %5 = arith.addf %2, %4 : vector<32x1024xf32>
    %cst_5 = arith.constant 0.000000e+00 : f32
    %6 = vector.broadcast %cst_5 : f32 to vector<32x1024xf32>
    %7 = arith.cmpf oge, %5, %6 : vector<32x1024xf32>
    %cst_6 = arith.constant 2.000000e-01 : f32
    %8 = vector.broadcast %cst_6 : f32 to vector<32x1024xf32>
    %9 = arith.mulf %8, %5 : vector<32x1024xf32>
    %10 = arith.select %7, %5, %9 : vector<32x1024xi1>, vector<32x1024xf32>
    %11 = arith.truncf %10 : vector<32x1024xf32> to vector<32x1024xbf16>
    %c0_7 = arith.constant 0 : index
    %c0_8 = arith.constant 0 : index
    %12 = vector.load %arg4[%c0_7, %c0_8] : memref<32x1024xbf16, #tpu.memory_space<vmem>>, vector<32x1024xbf16>
    tpu.vector_store %arg4[%c0_7, %c0_8], %11 {strides = array<i32>} : memref<32x1024xbf16, #tpu.memory_space<vmem>>, vector<32x1024xbf16>,
    %cst_9 = arith.constant dense<0.000000e+00> : vector<32xf32>
    %13 = vector.multi_reduction <add>, %10, %cst_9 [1] : vector<32x1024xf32> to vector<32xf32>
    %14 = vector.shape_cast %13 : vector<32xf32> to vector<32x1xf32>
    %c0_10 = arith.constant 0 : index
    %c0_11 = arith.constant 0 : index
    %c0_12 = arith.constant 0 : index
    %15 = vector.load %arg5[%c0_10, %c0_11, %c0_12] : memref<1x32x1xf32, #tpu.memory_space<vmem>>, vector<1x32x1xf32>
    %16 = vector.shape_cast %15 : vector<1x32x1xf32> to vector<32x1xf32>
    %17 = vector.shape_cast %14 : vector<32x1xf32> to vector<1x32x1xf32>
    tpu.vector_store %arg5[%c0_10, %c0_11, %c0_12], %17 {strides = array<i32>} : memref<1x32x1xf32, #tpu.memory_space<vmem>>, vector<1x32x1xf32>,
    %18 = arith.mulf %10, %10 : vector<32x1024xf32>
    %cst_13 = arith.constant dense<0.000000e+00> : vector<32xf32>
    %19 = vector.multi_reduction <add>, %18, %cst_13 [1] : vector<32x1024xf32> to vector<32xf32>
    %20 = vector.shape_cast %19 : vector<32xf32> to vector<32x1xf32>
    %c0_14 = arith.constant 0 : index
    %c0_15 = arith.constant 0 : index
    %c0_16 = arith.constant 0 : index
    %21 = vector.load %arg6[%c0_14, %c0_15, %c0_16] : memref<1x32x1xf32, #tpu.memory_space<vmem>>, vector<1x32x1xf32>
    %22 = vector.shape_cast %21 : vector<1x32x1xf32> to vector<32x1xf32>
    %23 = vector.shape_cast %20 : vector<32x1xf32> to vector<1x32x1xf32>
    tpu.vector_store %arg6[%c0_14, %c0_15, %c0_16], %23 {strides = array<i32>} : memref<1x32x1xf32, #tpu.memory_space<vmem>>, vector<1x32x1xf32>,
    return
  }
  func.func @transform_0(%arg0: i32) -> (i32, i32) {
    %c0_i32 = arith.constant 0 : i32
    %c0_i32_0 = arith.constant 0 : i32
    %c0_i32_1 = arith.constant 0 : i32
    return %c0_i32, %c0_i32_0 : i32, i32
  }
  func.func @transform_1(%arg0: i32) -> (i32, i32) {
    %c0_i32 = arith.constant 0 : i32
    %c0_i32_0 = arith.constant 0 : i32
    return %c0_i32, %arg0 : i32, i32
  }
  func.func @transform_2(%arg0: i32) -> (i32, i32) {
    %c0_i32 = arith.constant 0 : i32
    %c0_i32_0 = arith.constant 0 : i32
    %c0_i32_1 = arith.constant 0 : i32
    return %c0_i32, %c0_i32_0 : i32, i32
  }
  func.func @transform_3(%arg0: i32) -> (i32, i32) {
    %c0_i32 = arith.constant 0 : i32
    %c0_i32_0 = arith.constant 0 : i32
    return %c0_i32, %arg0 : i32, i32
  }
  func.func @transform_4(%arg0: i32) -> (i32, i32, i32) {
    %c0_i32 = arith.constant 0 : i32
    %c0_i32_0 = arith.constant 0 : i32
    %c0_i32_1 = arith.constant 0 : i32
    return %arg0, %c0_i32, %c0_i32_0 : i32, i32, i32
  }
  func.func @transform_5(%arg0: i32) -> (i32, i32, i32) {
    %c0_i32 = arith.constant 0 : i32
    %c0_i32_0 = arith.constant 0 : i32
    %c0_i32_1 = arith.constant 0 : i32
    return %arg0, %c0_i32, %c0_i32_0 : i32, i32, i32
  }
}

module attributes {stable_mosaic.version = 11 : i64} {
  func.func @_gemm_t_lrelu_stats_kernel(%arg0: i32, %arg1: memref<16x72xbf16, #tpu.memory_space<vmem>>, %arg2: memref<72x4096xbf16, #tpu.memory_space<vmem>>, %arg3: memref<16x1xf32, #tpu.memory_space<vmem>>, %arg4: memref<16x4096xbf16, #tpu.memory_space<vmem>>, %arg5: memref<1x16x1xf32, #tpu.memory_space<vmem>>, %arg6: memref<1x16x1xf32, #tpu.memory_space<vmem>>) attributes {dimension_semantics = [#tpu.dimension_semantics<parallel>], iteration_bounds = array<i64: 2>, scalar_prefetch = 0 : i64, scratch_operands = 0 : i64, tpu.core_type = #tpu.core_type<tc>, window_params = [{pipeline_mode = #tpu.pipeline_mode<synchronous>, transform_indices = @transform_0, window_bounds = array<i64: 16, 72>}, {transform_indices = @transform_1, window_bounds = array<i64: 72, 4096>}, {pipeline_mode = #tpu.pipeline_mode<synchronous>, transform_indices = @transform_2, window_bounds = array<i64: 16, 1>}, {transform_indices = @transform_3, window_bounds = array<i64: 16, 4096>}, {transform_indices = @transform_4, window_bounds = array<i64: 1, 16, 1>}, {transform_indices = @transform_5, window_bounds = array<i64: 1, 16, 1>}]} {
    %c0 = arith.constant 0 : index
    %c0_0 = arith.constant 0 : index
    %0 = vector.load %arg1[%c0, %c0_0] : memref<16x72xbf16, #tpu.memory_space<vmem>>, vector<16x72xbf16>
    %c0_1 = arith.constant 0 : index
    %c0_2 = arith.constant 0 : index
    %1 = vector.load %arg2[%c0_1, %c0_2] : memref<72x4096xbf16, #tpu.memory_space<vmem>>, vector<72x4096xbf16>
    %cst = arith.constant dense<0.000000e+00> : vector<16x4096xf32>
    %2 = tpu.matmul %0, %1, %cst {dimension_numbers = #tpu.dot_dimension_numbers<[1], [0], [0], [1], [0, 0, 1, 1], [], []>} : vector<16x72xbf16>, vector<72x4096xbf16>, vector<16x4096xf32> -> vector<16x4096xf32>
    %c0_3 = arith.constant 0 : index
    %c0_4 = arith.constant 0 : index
    %3 = vector.load %arg3[%c0_3, %c0_4] : memref<16x1xf32, #tpu.memory_space<vmem>>, vector<16x1xf32>
    %4 = vector.broadcast %3 : vector<16x1xf32> to vector<16x4096xf32>
    %5 = arith.addf %2, %4 : vector<16x4096xf32>
    %cst_5 = arith.constant 0.000000e+00 : f32
    %6 = vector.broadcast %cst_5 : f32 to vector<16x4096xf32>
    %7 = arith.cmpf oge, %5, %6 : vector<16x4096xf32>
    %cst_6 = arith.constant 2.000000e-01 : f32
    %8 = vector.broadcast %cst_6 : f32 to vector<16x4096xf32>
    %9 = arith.mulf %8, %5 : vector<16x4096xf32>
    %10 = arith.select %7, %5, %9 : vector<16x4096xi1>, vector<16x4096xf32>
    %11 = arith.truncf %10 : vector<16x4096xf32> to vector<16x4096xbf16>
    %c0_7 = arith.constant 0 : index
    %c0_8 = arith.constant 0 : index
    %12 = vector.load %arg4[%c0_7, %c0_8] : memref<16x4096xbf16, #tpu.memory_space<vmem>>, vector<16x4096xbf16>
    tpu.vector_store %arg4[%c0_7, %c0_8], %11 {strides = array<i32>} : memref<16x4096xbf16, #tpu.memory_space<vmem>>, vector<16x4096xbf16>,
    %cst_9 = arith.constant dense<0.000000e+00> : vector<16xf32>
    %13 = vector.multi_reduction <add>, %10, %cst_9 [1] : vector<16x4096xf32> to vector<16xf32>
    %14 = vector.shape_cast %13 : vector<16xf32> to vector<16x1xf32>
    %c0_10 = arith.constant 0 : index
    %c0_11 = arith.constant 0 : index
    %c0_12 = arith.constant 0 : index
    %15 = vector.load %arg5[%c0_10, %c0_11, %c0_12] : memref<1x16x1xf32, #tpu.memory_space<vmem>>, vector<1x16x1xf32>
    %16 = vector.shape_cast %15 : vector<1x16x1xf32> to vector<16x1xf32>
    %17 = vector.shape_cast %14 : vector<16x1xf32> to vector<1x16x1xf32>
    tpu.vector_store %arg5[%c0_10, %c0_11, %c0_12], %17 {strides = array<i32>} : memref<1x16x1xf32, #tpu.memory_space<vmem>>, vector<1x16x1xf32>,
    %18 = arith.mulf %10, %10 : vector<16x4096xf32>
    %cst_13 = arith.constant dense<0.000000e+00> : vector<16xf32>
    %19 = vector.multi_reduction <add>, %18, %cst_13 [1] : vector<16x4096xf32> to vector<16xf32>
    %20 = vector.shape_cast %19 : vector<16xf32> to vector<16x1xf32>
    %c0_14 = arith.constant 0 : index
    %c0_15 = arith.constant 0 : index
    %c0_16 = arith.constant 0 : index
    %21 = vector.load %arg6[%c0_14, %c0_15, %c0_16] : memref<1x16x1xf32, #tpu.memory_space<vmem>>, vector<1x16x1xf32>
    %22 = vector.shape_cast %21 : vector<1x16x1xf32> to vector<16x1xf32>
    %23 = vector.shape_cast %20 : vector<16x1xf32> to vector<1x16x1xf32>
    tpu.vector_store %arg6[%c0_14, %c0_15, %c0_16], %23 {strides = array<i32>} : memref<1x16x1xf32, #tpu.memory_space<vmem>>, vector<1x16x1xf32>,
    return
  }
  func.func @transform_0(%arg0: i32) -> (i32, i32) {
    %c0_i32 = arith.constant 0 : i32
    %c0_i32_0 = arith.constant 0 : i32
    %c0_i32_1 = arith.constant 0 : i32
    return %c0_i32, %c0_i32_0 : i32, i32
  }
  func.func @transform_1(%arg0: i32) -> (i32, i32) {
    %c0_i32 = arith.constant 0 : i32
    %c0_i32_0 = arith.constant 0 : i32
    return %c0_i32, %arg0 : i32, i32
  }
  func.func @transform_2(%arg0: i32) -> (i32, i32) {
    %c0_i32 = arith.constant 0 : i32
    %c0_i32_0 = arith.constant 0 : i32
    %c0_i32_1 = arith.constant 0 : i32
    return %c0_i32, %c0_i32_0 : i32, i32
  }
  func.func @transform_3(%arg0: i32) -> (i32, i32) {
    %c0_i32 = arith.constant 0 : i32
    %c0_i32_0 = arith.constant 0 : i32
    return %c0_i32, %arg0 : i32, i32
  }
  func.func @transform_4(%arg0: i32) -> (i32, i32, i32) {
    %c0_i32 = arith.constant 0 : i32
    %c0_i32_0 = arith.constant 0 : i32
    %c0_i32_1 = arith.constant 0 : i32
    return %arg0, %c0_i32, %c0_i32_0 : i32, i32, i32
  }
  func.func @transform_5(%arg0: i32) -> (i32, i32, i32) {
    %c0_i32 = arith.constant 0 : i32
    %c0_i32_0 = arith.constant 0 : i32
    %c0_i32_1 = arith.constant 0 : i32
    return %arg0, %c0_i32, %c0_i32_0 : i32, i32, i32
  }
}

module attributes {stable_mosaic.version = 11 : i64} {
  func.func @_gemm_t_bias_kernel(%arg0: i32, %arg1: memref<4x36xbf16, #tpu.memory_space<vmem>>, %arg2: memref<36x8192xbf16, #tpu.memory_space<vmem>>, %arg3: memref<4x1xf32, #tpu.memory_space<vmem>>, %arg4: memref<4x8192xf32, #tpu.memory_space<vmem>>) attributes {dimension_semantics = [#tpu.dimension_semantics<parallel>], iteration_bounds = array<i64: 4>, scalar_prefetch = 0 : i64, scratch_operands = 0 : i64, tpu.core_type = #tpu.core_type<tc>, window_params = [{pipeline_mode = #tpu.pipeline_mode<synchronous>, transform_indices = @transform_0, window_bounds = array<i64: 4, 36>}, {transform_indices = @transform_1, window_bounds = array<i64: 36, 8192>}, {pipeline_mode = #tpu.pipeline_mode<synchronous>, transform_indices = @transform_2, window_bounds = array<i64: 4, 1>}, {transform_indices = @transform_3, window_bounds = array<i64: 4, 8192>}]} {
    %c0 = arith.constant 0 : index
    %c0_0 = arith.constant 0 : index
    %0 = vector.load %arg1[%c0, %c0_0] : memref<4x36xbf16, #tpu.memory_space<vmem>>, vector<4x36xbf16>
    %c0_1 = arith.constant 0 : index
    %c0_2 = arith.constant 0 : index
    %1 = vector.load %arg2[%c0_1, %c0_2] : memref<36x8192xbf16, #tpu.memory_space<vmem>>, vector<36x8192xbf16>
    %cst = arith.constant dense<0.000000e+00> : vector<4x8192xf32>
    %2 = tpu.matmul %0, %1, %cst {dimension_numbers = #tpu.dot_dimension_numbers<[1], [0], [0], [1], [0, 0, 1, 1], [], []>} : vector<4x36xbf16>, vector<36x8192xbf16>, vector<4x8192xf32> -> vector<4x8192xf32>
    %c0_3 = arith.constant 0 : index
    %c0_4 = arith.constant 0 : index
    %3 = vector.load %arg3[%c0_3, %c0_4] : memref<4x1xf32, #tpu.memory_space<vmem>>, vector<4x1xf32>
    %4 = vector.broadcast %3 : vector<4x1xf32> to vector<4x8192xf32>
    %5 = arith.addf %2, %4 : vector<4x8192xf32>
    %c0_5 = arith.constant 0 : index
    %c0_6 = arith.constant 0 : index
    %6 = vector.load %arg4[%c0_5, %c0_6] : memref<4x8192xf32, #tpu.memory_space<vmem>>, vector<4x8192xf32>
    tpu.vector_store %arg4[%c0_5, %c0_6], %5 {strides = array<i32>} : memref<4x8192xf32, #tpu.memory_space<vmem>>, vector<4x8192xf32>,
    return
  }
  func.func @transform_0(%arg0: i32) -> (i32, i32) {
    %c0_i32 = arith.constant 0 : i32
    %c0_i32_0 = arith.constant 0 : i32
    %c0_i32_1 = arith.constant 0 : i32
    return %c0_i32, %c0_i32_0 : i32, i32
  }
  func.func @transform_1(%arg0: i32) -> (i32, i32) {
    %c0_i32 = arith.constant 0 : i32
    %c0_i32_0 = arith.constant 0 : i32
    return %c0_i32, %arg0 : i32, i32
  }
  func.func @transform_2(%arg0: i32) -> (i32, i32) {
    %c0_i32 = arith.constant 0 : i32
    %c0_i32_0 = arith.constant 0 : i32
    %c0_i32_1 = arith.constant 0 : i32
    return %c0_i32, %c0_i32_0 : i32, i32
  }
  func.func @transform_3(%arg0: i32) -> (i32, i32) {
    %c0_i32 = arith.constant 0 : i32
    %c0_i32_0 = arith.constant 0 : i32
    return %c0_i32, %arg0 : i32, i32
  }
}

</mosaic_0001>

<bundles_post_ra>
// kernel: squeeze.18
= control target key start
LH: loop header
LB: loop body
LE: loop exit
PB: predicated region body
PF: predicated region fallthrough
CT: control target
= control target key end

     0   :  { %vm7_vm0 = vcmask 130048   ;;  %s39_s0 = inlined_call_operand.vmem [shape: f32[32], index: 0, kind: input, shape index: {}]   ;;  %s40_s1 = inlined_call_operand.vmem [shape: f32[2,16], index: 1, kind: output, shape index: {}]  }
   0x1   :  { %v4_v0 = vld [vmem:[%s39_s0] sm:$0x1]  ;;  %s22_s0 = smov 112  }
   0x2   :  { %5 = vst [vmem:[#allocation1] sm:$0x1] %v4_v0 }
   0x9   :  { %v9_v1 = vld [vmem:[#allocation1] sm:$0x1]  }
   0xa   :  { %v6_v2 = vld [vmem:[#allocation1] sm:$0x1]   ;;  %10 = vrot.lane.b32.xlu0 %v9_v1, %s22_s0 }
   0xb   :  { %8 = vst.msk [vmem:[#allocation0] sm:$0x1] %vm7_vm0, %v6_v2  }
  0x7c   :  { %v11_v3 = vpop.permute.xlu0 %10  }
  0x7d   :  { %14 = vst.msk [vmem:[#allocation0 + $0x1] sm:$0x1] %vm7_vm0, %v11_v3  }
  0x84   :  { %v17_v4 = vld [vmem:[#allocation0] sm:$0x3] }
  0x85   :  { %20 = vst [vmem:[%s40_s1] sm:$0x3] %v17_v4 }

// kernel: tile.82
= control target key start
LH: loop header
LB: loop body
LE: loop exit
PB: predicated region body
PF: predicated region fallthrough
CT: control target
= control target key end

     0   :  { %s22_s0 = inlined_call_operand.vmem [shape: f32[16], index: 0, kind: input, shape index: {}]   ;;  %s23_s1 = inlined_call_operand.vmem [shape: f32[2,16], index: 1, kind: output, shape index: {}]  }
   0x1   :  { %v4_v0 = vld [vmem:[%s22_s0] ss:$0 sm:$0xff] }
   0x2   :  { %5 = vst [vmem:[%s23_s1] sm:$0x3] %v4_v0 }

// kernel: mf_decoder_forward.10
= control target key start
LH: loop header
LB: loop body
LE: loop exit
PB: predicated region body
PF: predicated region fallthrough
CT: control target
= control target key end

     0   :  { %11 = vsyncpa [#allocation3], 0  ;;  %s298_s21 = smov [#allocation2]   ;;  %s299_s23 = smov 64   ;;  %s421_s0 = inlined_call_operand.hbm [shape: bf16[32,96], index: 0, kind: input, shape index: {}]   ;;  %s422_s1 = inlined_call_operand.vmem [shape: bf16[96,8], index: 1, kind: input, shape index: {}]   ;;  %s423_s2 = inlined_call_operand.vmem [shape: f32[32,1], index: 2, kind: input, shape index: {}]   ;;  %s424_s3 = inlined_call_operand.vmem [shape: bf16[32,8], index: 3, kind: output, shape index: {0}]   ;;  %s425_s4 = inlined_call_operand.vmem [shape: f32[1,32,1], index: 4, kind: output, shape index: {1}]   ;;  %s426_s5 = inlined_call_operand.vmem [shape: f32[1,32,1], index: 5, kind: output, shape index: {2}]  }
   0x1   :  { %s16_s20 = sshll.u32 %s421_s0, 4  ;;  %s18_s22 = sshll.u32 %s298_s21, 4  ;;  %s17_s20 = int_to_ptr.hbm [resolvable:$true] %s16_s20  ;;  %s19_s22 = int_to_ptr.vmem [resolvable:$true] %s18_s22 }
   0x2   :  { %s300_s24 = smov 4  }
   0x3   :  { %24 = dma.hbm_to_vmem [thread:$0]  %s17_s20, 256, %s19_s22, [#allocation3], %s299_s23, %s299_s23, %s300_s24  }
   0x4   :  { %296 = dma.done.wait [#allocation3], 256  }
   0x5   :  { %297 = vsyncadd [#allocation3], 4294967040  ;;  %v301_v0 = vmov 0   ;;  %v259_v1 = vld [vmem:[%s422_s1 + $0x28] sm:$0xff]  ;;  %v258_v2 = vld [vmem:[%s422_s1 + $0x20] sm:$0xff]  ;;  %vm120_vm0 = vcmask 785408  }
   0x6   :  { %270 = vset.pattern.permute.xlu0 %v301_v0  ;;  %271 = vset.pattern.permute.xlu1 %v301_v0  ;;  %v50_v3 = vld [vmem:[%s423_s2] sm:$0xff]  ;;  %v52_v4 = vld [vmem:[%s423_s2 + $0x10] sm:$0xff]  ;;  %v257_v5 = vld [vmem:[%s422_s1 + $0x18] sm:$0xff]  ;;  %vm167_vm1 = vcmask 64512   ;;  %vm162_vm4 = vcmask 60416   ;;  %vm180_vm7 = vcmask 7168  }
   0x7   :  { %129 = vmatpush.bf16.msra.mxu0 %v259_v1  ;;  %260 = vmatpush.bf16.msra.mxu1 %v259_v1  ;;  %v51_v6 = vld [vmem:[%s423_s2 + $0x8] sm:$0xff]  ;;  %v53_v7 = vld [vmem:[%s423_s2 + $0x18] sm:$0xff]  ;;  %v256_v8 = vld [vmem:[%s422_s1 + $0x10] sm:$0xff] }
   0x8   :  { %56 = vperm.xlu0 %270, %v50_v3   ;;  %66 = vperm.xlu1 %271, %v52_v4   ;;  %v255_v9 = vld [vmem:[%s422_s1 + $0x8] sm:$0xff]  ;;  %v254_v10 = vld [vmem:[%s422_s1] sm:$0xff] }
   0x9   :  { %v252_v11 = vld [vmem:[#allocation2] sm:$0xff]  ;;  %v253_v12 = vld [vmem:[#allocation2 + $0x8] sm:$0xff] }
   0xb   :  { %130 = vmatpush.bf16.msra.mxu0 %v258_v2  ;;  %261 = vmatpush.bf16.msra.mxu1 %v258_v2 }
   0xf   :  { %131 = vmatpush.bf16.msra.mxu0 %v257_v5  ;;  %262 = vmatpush.bf16.msra.mxu1 %v257_v5 }
  0x10   :  { %61 = vperm.xlu0 %270, %v51_v6   ;;  %71 = vperm.xlu1 %271, %v53_v7  }
  0x13   :  { %132 = vmatpush.bf16.msra.mxu0 %v256_v8  ;;  %263 = vmatpush.bf16.msra.mxu1 %v256_v8 }
  0x17   :  { %133 = vmatpush.bf16.msra.mxu0 %v255_v9  ;;  %264 = vmatpush.bf16.msra.mxu1 %v255_v9 }
  0x1b   :  { %134 = vmatpush.bf16.msra.mxu0 %v254_v10  ;;  %265 = vmatpush.bf16.msra.mxu1 %v254_v10 }
  0x1e   :  { %250 = vmatmul.msk.bf16.vlgmr.msra.gmra.mxu0 %vm120_vm0, %v252_v11  ;;  %251 = vmatmul.msk.bf16.vlgmr.msra.gmra.mxu1 %vm120_vm0, %v253_v12 }
  0x7a   :  { %v67_v13 = vpop.permute.xlu1 %66  ;;  %v57_v14 = vpop.permute.xlu0 %56 }
  0x82   :  { %v72_v25 = vpop.permute.xlu1 %71  ;;  %v62_v27 = vpop.permute.xlu0 %61 }
  0x9b   :  { %v136_v15 = vpop.f32.mrf.mxu0  ;;  %v141_v16 = vpop.f32.mrf.mxu1 }
  0x9c   :  { %v137_v17 = vadd.f32 %v136_v15, %v57_v14  ;;  %v142_v18 = vadd.f32 %v141_v16, %v67_v13 }
  0x9e   :  { %v150_v19 = vmul.f32 0.2, %v137_v17  ;;  %vm146_vm2 = vcmp.ge.f32.partialorder %v137_v17, 0.0  ;;  %v152_v20 = vmul.f32 0.2, %v142_v18  ;;  %vm148_vm3 = vcmp.ge.f32.partialorder %v142_v18, 0.0 }
  0xa0   :  { %v154_v21 = vsel %vm146_vm2, %v137_v17, %v150_v19  ;;  %v156_v22 = vsel %vm148_vm3, %v142_v18, %v152_v20 }
  0xa1   :  { %v168_v23 = vsel %vm167_vm1, %v154_v21, 0.0  ;;  %v158_v24 = vpack.c.bf16 %v154_v21, %v154_v21  ;;  %v174_v26 = vsel %vm167_vm1, %v156_v22, 0.0  ;;  %v160_v28 = vpack.c.bf16 %v156_v22, %v156_v22 }
  0xa2   :  { %169 = vadd.xlane.f32.xlu2 %v168_v23  ;;  %175 = vadd.xlane.f32.xlu0 %v174_v26  ;;  %v185_v41 = vmul.f32 %v154_v21, %v154_v21  ;;  %v187_v43 = vmul.f32 %v156_v22, %v156_v22 }
  0xa3   :  { %163 = vst.msk [vmem:[%s424_s3] sm:$0xf] %vm162_vm4, %v158_v24  ;;  %v138_v29 = vpop.f32.mrf.mxu0  ;;  %v143_v30 = vpop.f32.mrf.mxu1 }
  0xa4   :  { %v139_v31 = vadd.f32 %v138_v29, %v62_v27  ;;  %v144_v32 = vadd.f32 %v143_v30, %v72_v25  ;;  %165 = vst.msk [vmem:[%s424_s3 + $0x8] sm:$0xf] %vm162_vm4, %v160_v28  ;;  %v189_v42 = vsel %vm167_vm1, %v185_v41, 0.0  ;;  %v195_v44 = vsel %vm167_vm1, %v187_v43, 0.0 }
  0xa6   :  { %v151_v33 = vmul.f32 0.2, %v139_v31  ;;  %vm147_vm5 = vcmp.ge.f32.partialorder %v139_v31, 0.0  ;;  %v153_v34 = vmul.f32 0.2, %v144_v32  ;;  %vm149_vm6 = vcmp.ge.f32.partialorder %v144_v32, 0.0 }
  0xa8   :  { %v155_v35 = vsel %vm147_vm5, %v139_v31, %v151_v33  ;;  %v157_v36 = vsel %vm149_vm6, %v144_v32, %v153_v34 }
  0xa9   :  { %v159_v37 = vpack.c.bf16 %v155_v35, %v155_v35  ;;  %v171_v38 = vsel %vm167_vm1, %v155_v35, 0.0  ;;  %v177_v39 = vsel %vm167_vm1, %v157_v36, 0.0  ;;  %v161_v40 = vpack.c.bf16 %v157_v36, %v157_v36 }
  0xaa   :  { %172 = vadd.xlane.f32.xlu2 %v171_v38  ;;  %178 = vadd.xlane.f32.xlu1 %v177_v39  ;;  %v186_v45 = vmul.f32 %v155_v35, %v155_v35  ;;  %v188_v47 = vmul.f32 %v157_v36, %v157_v36 }
  0xab   :  { %164 = vst.msk [vmem:[%s424_s3 + $0x4] sm:$0xf] %vm162_vm4, %v159_v37 }
  0xac   :  { %166 = vst.msk [vmem:[%s424_s3 + $0xc] sm:$0xf] %vm162_vm4, %v161_v40  ;;  %v192_v46 = vsel %vm167_vm1, %v186_v45, 0.0  ;;  %v198_v48 = vsel %vm167_vm1, %v188_v47, 0.0 }
  0xb2   :  { %190 = vadd.xlane.f32.xlu2 %v189_v42 }
  0xba   :  { %196 = vadd.xlane.f32.xlu2 %v195_v44 }
  0xc2   :  { %193 = vadd.xlane.f32.xlu2 %v192_v46 }
  0xca   :  { %199 = vadd.xlane.f32.xlu2 %v198_v48 }
 0x115   :  { %v170_v49 = vpop.xlane.xlu2 %169  ;;  %v176_v50 = vpop.xlane.xlu0 %175 }
 0x116   :  { %181 = vst.msk [vmem:[%s425_s4] sm:$0xff] %vm180_vm7, %v170_v49 }
 0x117   :  { %183 = vst.msk [vmem:[%s425_s4 + $0x10] sm:$0xff] %vm180_vm7, %v176_v50 }
 0x11d   :  { %v173_v51 = vpop.xlane.xlu2 %172  ;;  %v179_v52 = vpop.xlane.xlu1 %178 }
 0x11e   :  { %182 = vst.msk [vmem:[%s425_s4 + $0x8] sm:$0xff] %vm180_vm7, %v173_v51 }
 0x11f   :  { %184 = vst.msk [vmem:[%s425_s4 + $0x18] sm:$0xff] %vm180_vm7, %v179_v52 }
 0x125   :  { %v191_v53 = vpop.xlane.xlu2 %190 }
 0x126   :  { %201 = vst.msk [vmem:[%s426_s5] sm:$0xff] %vm180_vm7, %v191_v53 }
 0x12d   :  { %v197_v54 = vpop.xlane.xlu2 %196 }
 0x12e   :  { %203 = vst.msk [vmem:[%s426_s5 + $0x10] sm:$0xff] %vm180_vm7, %v197_v54 }
 0x135   :  { %v194_v55 = vpop.xlane.xlu2 %193 }
 0x136   :  { %202 = vst.msk [vmem:[%s426_s5 + $0x8] sm:$0xff] %vm180_vm7, %v194_v55 }
 0x13d   :  { %v200_v56 = vpop.xlane.xlu2 %199 }
 0x13e   :  { %204 = vst.msk [vmem:[%s426_s5 + $0x18] sm:$0xff] %vm180_vm7, %v200_v56 }
 0x13f   :  { %217 = vsyncpa [#allocation3], 1 }

// kernel: mf_decoder_forward.9
= control target key start
LH: loop header
LB: loop body
LE: loop exit
PB: predicated region body
PF: predicated region fallthrough
CT: control target
= control target key end

     0   :  { %11 = vsyncpa [#allocation3], 0  ;;  %s318_s21 = smov [#allocation2]   ;;  %s319_s23 = smov 64   ;;  %s447_s0 = inlined_call_operand.hbm [shape: bf16[32,128], index: 0, kind: input, shape index: {}]   ;;  %s448_s1 = inlined_call_operand.vmem [shape: bf16[128,8], index: 1, kind: input, shape index: {}]   ;;  %s449_s2 = inlined_call_operand.vmem [shape: f32[32,1], index: 2, kind: input, shape index: {}]   ;;  %s450_s3 = inlined_call_operand.vmem [shape: bf16[32,8], index: 3, kind: output, shape index: {0}]   ;;  %s451_s4 = inlined_call_operand.vmem [shape: f32[1,32,1], index: 4, kind: output, shape index: {1}]   ;;  %s452_s5 = inlined_call_operand.vmem [shape: f32[1,32,1], index: 5, kind: output, shape index: {2}]  }
   0x1   :  { %s16_s20 = sshll.u32 %s447_s0, 4  ;;  %s18_s22 = sshll.u32 %s318_s21, 4  ;;  %s17_s20 = int_to_ptr.hbm [resolvable:$true] %s16_s20  ;;  %s19_s22 = int_to_ptr.vmem [resolvable:$true] %s18_s22 }
   0x2   :  { %s320_s24 = smov 4  }
   0x3   :  { %24 = dma.hbm_to_vmem [thread:$0]  %s17_s20, 256, %s19_s22, [#allocation3], %s319_s23, %s319_s23, %s320_s24  }
   0x4   :  { %316 = dma.done.wait [#allocation3], 256  }
   0x5   :  { %317 = vsyncadd [#allocation3], 4294967040  ;;  %v277_v0 = vld [vmem:[%s448_s1 + $0x38] sm:$0xff]  ;;  %v276_v1 = vld [vmem:[%s448_s1 + $0x30] sm:$0xff]  ;;  %v321_v2 = vmov 0   ;;  %vm177_vm0 = vcmask 64512  }
   0x6   :  { %137 = vmatpush.bf16.msra.mxu0 %v277_v0  ;;  %278 = vmatpush.bf16.msra.mxu1 %v277_v0  ;;  %v53_v3 = vld [vmem:[%s449_s2] sm:$0xff]  ;;  %v55_v4 = vld [vmem:[%s449_s2 + $0x10] sm:$0xff]  ;;  %v275_v5 = vld [vmem:[%s448_s1 + $0x28] sm:$0xff]  ;;  %vm172_vm3 = vcmask 60416   ;;  %vm190_vm6 = vcmask 7168  }
   0x7   :  { %290 = vset.pattern.permute.xlu0 %v321_v2  ;;  %291 = vset.pattern.permute.xlu1 %v321_v2  ;;  %v54_v6 = vld [vmem:[%s449_s2 + $0x8] sm:$0xff]  ;;  %v274_v7 = vld [vmem:[%s448_s1 + $0x20] sm:$0xff]  ;;  %v56_v8 = vld [vmem:[%s449_s2 + $0x18] sm:$0xff] }
   0x8   :  { %59 = vperm.xlu0 %290, %v53_v3   ;;  %69 = vperm.xlu1 %291, %v55_v4   ;;  %v273_v9 = vld [vmem:[%s448_s1 + $0x18] sm:$0xff]  ;;  %v272_v10 = vld [vmem:[%s448_s1 + $0x10] sm:$0xff]  ;;  %v271_v11 = vld [vmem:[%s448_s1 + $0x8] sm:$0xff] }
   0x9   :  { %v270_v12 = vld [vmem:[%s448_s1] sm:$0xff]  ;;  %v269_v14 = vld [vmem:[#allocation2 + $0x8] sm:$0xff] }
   0xa   :  { %138 = vmatpush.bf16.msra.mxu0 %v276_v1  ;;  %279 = vmatpush.bf16.msra.mxu1 %v276_v1  ;;  %v268_v13 = vld [vmem:[#allocation2] sm:$0xff] }
   0xe   :  { %139 = vmatpush.bf16.msra.mxu0 %v275_v5  ;;  %280 = vmatpush.bf16.msra.mxu1 %v275_v5 }
  0x10   :  { %64 = vperm.xlu0 %290, %v54_v6   ;;  %74 = vperm.xlu1 %291, %v56_v8  }
  0x12   :  { %140 = vmatpush.bf16.msra.mxu0 %v274_v7  ;;  %281 = vmatpush.bf16.msra.mxu1 %v274_v7 }
  0x16   :  { %141 = vmatpush.bf16.msra.mxu0 %v273_v9  ;;  %282 = vmatpush.bf16.msra.mxu1 %v273_v9 }
  0x1a   :  { %142 = vmatpush.bf16.msra.mxu0 %v272_v10  ;;  %283 = vmatpush.bf16.msra.mxu1 %v272_v10 }
  0x1e   :  { %143 = vmatpush.bf16.msra.mxu0 %v271_v11  ;;  %284 = vmatpush.bf16.msra.mxu1 %v271_v11 }
  0x22   :  { %144 = vmatpush.bf16.msra.mxu0 %v270_v12  ;;  %285 = vmatpush.bf16.msra.mxu1 %v270_v12 }
  0x25   :  { %145 = vmatmul.bf16.vlgmr.msra.gmra.mxu0 %v268_v13  ;;  %150 = vmatmul.bf16.vlgmr.msra.gmra.mxu1 %v269_v14 }
  0x7a   :  { %v70_v15 = vpop.permute.xlu1 %69  ;;  %v60_v16 = vpop.permute.xlu0 %59 }
  0x82   :  { %v75_v27 = vpop.permute.xlu1 %74  ;;  %v65_v29 = vpop.permute.xlu0 %64 }
  0xa2   :  { %v146_v17 = vpop.f32.mrf.mxu0  ;;  %v151_v18 = vpop.f32.mrf.mxu1 }
  0xa3   :  { %v147_v19 = vadd.f32 %v146_v17, %v60_v16  ;;  %v152_v20 = vadd.f32 %v151_v18, %v70_v15 }
  0xa5   :  { %v160_v21 = vmul.f32 0.2, %v147_v19  ;;  %vm156_vm1 = vcmp.ge.f32.partialorder %v147_v19, 0.0  ;;  %v162_v22 = vmul.f32 0.2, %v152_v20  ;;  %vm158_vm2 = vcmp.ge.f32.partialorder %v152_v20, 0.0 }
  0xa7   :  { %v164_v23 = vsel %vm156_vm1, %v147_v19, %v160_v21  ;;  %v166_v24 = vsel %vm158_vm2, %v152_v20, %v162_v22 }
  0xa8   :  { %v178_v25 = vsel %vm177_vm0, %v164_v23, 0.0  ;;  %v168_v26 = vpack.c.bf16 %v164_v23, %v164_v23  ;;  %v184_v28 = vsel %vm177_vm0, %v166_v24, 0.0  ;;  %v170_v30 = vpack.c.bf16 %v166_v24, %v166_v24 }
  0xa9   :  { %179 = vadd.xlane.f32.xlu2 %v178_v25  ;;  %185 = vadd.xlane.f32.xlu0 %v184_v28  ;;  %v195_v43 = vmul.f32 %v164_v23, %v164_v23  ;;  %v197_v45 = vmul.f32 %v166_v24, %v166_v24 }
  0xaa   :  { %173 = vst.msk [vmem:[%s450_s3] sm:$0xf] %vm172_vm3, %v168_v26  ;;  %v148_v31 = vpop.f32.mrf.mxu0  ;;  %v153_v32 = vpop.f32.mrf.mxu1 }
  0xab   :  { %v149_v33 = vadd.f32 %v148_v31, %v65_v29  ;;  %v154_v34 = vadd.f32 %v153_v32, %v75_v27  ;;  %175 = vst.msk [vmem:[%s450_s3 + $0x8] sm:$0xf] %vm172_vm3, %v170_v30  ;;  %v199_v44 = vsel %vm177_vm0, %v195_v43, 0.0  ;;  %v205_v46 = vsel %vm177_vm0, %v197_v45, 0.0 }
  0xad   :  { %v161_v35 = vmul.f32 0.2, %v149_v33  ;;  %vm157_vm4 = vcmp.ge.f32.partialorder %v149_v33, 0.0  ;;  %v163_v36 = vmul.f32 0.2, %v154_v34  ;;  %vm159_vm5 = vcmp.ge.f32.partialorder %v154_v34, 0.0 }
  0xaf   :  { %v165_v37 = vsel %vm157_vm4, %v149_v33, %v161_v35  ;;  %v167_v38 = vsel %vm159_vm5, %v154_v34, %v163_v36 }
  0xb0   :  { %v169_v39 = vpack.c.bf16 %v165_v37, %v165_v37  ;;  %v181_v40 = vsel %vm177_vm0, %v165_v37, 0.0  ;;  %v187_v41 = vsel %vm177_vm0, %v167_v38, 0.0  ;;  %v171_v42 = vpack.c.bf16 %v167_v38, %v167_v38 }
  0xb1   :  { %182 = vadd.xlane.f32.xlu2 %v181_v40  ;;  %188 = vadd.xlane.f32.xlu1 %v187_v41  ;;  %v196_v47 = vmul.f32 %v165_v37, %v165_v37  ;;  %v198_v49 = vmul.f32 %v167_v38, %v167_v38 }
  0xb2   :  { %174 = vst.msk [vmem:[%s450_s3 + $0x4] sm:$0xf] %vm172_vm3, %v169_v39 }
  0xb3   :  { %176 = vst.msk [vmem:[%s450_s3 + $0xc] sm:$0xf] %vm172_vm3, %v171_v42  ;;  %v202_v48 = vsel %vm177_vm0, %v196_v47, 0.0  ;;  %v208_v50 = vsel %vm177_vm0, %v198_v49, 0.0 }
  0xb9   :  { %200 = vadd.xlane.f32.xlu2 %v199_v44 }
  0xc1   :  { %206 = vadd.xlane.f32.xlu2 %v205_v46 }
  0xc9   :  { %203 = vadd.xlane.f32.xlu2 %v202_v48 }
  0xd1   :  { %209 = vadd.xlane.f32.xlu2 %v208_v50 }
 0x11c   :  { %v180_v51 = vpop.xlane.xlu2 %179  ;;  %v186_v52 = vpop.xlane.xlu0 %185 }
 0x11d   :  { %191 = vst.msk [vmem:[%s451_s4] sm:$0xff] %vm190_vm6, %v180_v51 }
 0x11e   :  { %193 = vst.msk [vmem:[%s451_s4 + $0x10] sm:$0xff] %vm190_vm6, %v186_v52 }
 0x124   :  { %v183_v53 = vpop.xlane.xlu2 %182  ;;  %v189_v54 = vpop.xlane.xlu1 %188 }
 0x125   :  { %192 = vst.msk [vmem:[%s451_s4 + $0x8] sm:$0xff] %vm190_vm6, %v183_v53 }
 0x126   :  { %194 = vst.msk [vmem:[%s451_s4 + $0x18] sm:$0xff] %vm190_vm6, %v189_v54 }
 0x12c   :  { %v201_v55 = vpop.xlane.xlu2 %200 }
 0x12d   :  { %211 = vst.msk [vmem:[%s452_s5] sm:$0xff] %vm190_vm6, %v201_v55 }
 0x134   :  { %v207_v56 = vpop.xlane.xlu2 %206 }
 0x135   :  { %213 = vst.msk [vmem:[%s452_s5 + $0x10] sm:$0xff] %vm190_vm6, %v207_v56 }
 0x13c   :  { %v204_v57 = vpop.xlane.xlu2 %203 }
 0x13d   :  { %212 = vst.msk [vmem:[%s452_s5 + $0x8] sm:$0xff] %vm190_vm6, %v204_v57 }
 0x144   :  { %v210_v58 = vpop.xlane.xlu2 %209 }
 0x145   :  { %214 = vst.msk [vmem:[%s452_s5 + $0x18] sm:$0xff] %vm190_vm6, %v210_v58 }
 0x146   :  { %227 = vsyncpa [#allocation3], 1 }

// kernel: mf_decoder_forward.11
= control target key start
LH: loop header
LB: loop body
LE: loop exit
PB: predicated region body
PF: predicated region fallthrough
CT: control target
= control target key end

     0   :  { %11 = vsyncpa [#allocation3], 0  ;;  %s256_s21 = smov [#allocation2]   ;;  %s257_s23 = smov 64   ;;  %s370_s0 = inlined_call_operand.hbm [shape: bf16[32,48], index: 0, kind: input, shape index: {}]   ;;  %s371_s1 = inlined_call_operand.vmem [shape: bf16[48,16], index: 1, kind: input, shape index: {}]   ;;  %s372_s2 = inlined_call_operand.vmem [shape: f32[32,1], index: 2, kind: input, shape index: {}]   ;;  %s373_s3 = inlined_call_operand.vmem [shape: bf16[32,16], index: 3, kind: output, shape index: {0}]   ;;  %s374_s4 = inlined_call_operand.vmem [shape: f32[1,32,1], index: 4, kind: output, shape index: {1}]   ;;  %s375_s5 = inlined_call_operand.vmem [shape: f32[1,32,1], index: 5, kind: output, shape index: {2}]  }
   0x1   :  { %s16_s20 = sshll.u32 %s370_s0, 4  ;;  %s18_s22 = sshll.u32 %s256_s21, 4  ;;  %s17_s20 = int_to_ptr.hbm [resolvable:$true] %s16_s20  ;;  %s19_s22 = int_to_ptr.vmem [resolvable:$true] %s18_s22 }
   0x2   :  { %s258_s24 = smov 4  }
   0x3   :  { %24 = dma.hbm_to_vmem [thread:$0]  %s17_s20, 256, %s19_s22, [#allocation3], %s257_s23, %s257_s23, %s258_s24  }
   0x4   :  { %254 = dma.done.wait [#allocation3], 256  }
   0x5   :  { %255 = vsyncadd [#allocation3], 4294967040  ;;  %v259_v0 = vmov 0   ;;  %v220_v1 = vld [vmem:[%s371_s1 + $0x10] sm:$0xff]  ;;  %v44_v2 = vld [vmem:[%s372_s2] sm:$0xff]  ;;  %vm96_vm0 = vcmask 392192  }
   0x6   :  { %228 = vset.pattern.permute.xlu0 %v259_v0  ;;  %229 = vset.pattern.permute.xlu1 %v259_v0  ;;  %v219_v3 = vld [vmem:[%s371_s1 + $0x8] sm:$0xff]  ;;  %v46_v4 = vld [vmem:[%s372_s2 + $0x10] sm:$0xff]  ;;  %v218_v5 = vld [vmem:[%s371_s1] sm:$0xff]  ;;  %vm143_vm1 = vcmask 130048   ;;  %vm138_vm4 = vcmask 125952   ;;  %vm156_vm7 = vcmask 7168  }
   0x7   :  { %108 = vmatpush.bf16.msra.mxu0 %v220_v1  ;;  %221 = vmatpush.bf16.msra.mxu1 %v220_v1  ;;  %v45_v6 = vld [vmem:[%s372_s2 + $0x8] sm:$0xff]  ;;  %v47_v7 = vld [vmem:[%s372_s2 + $0x18] sm:$0xff]  ;;  %v216_v8 = vld [vmem:[#allocation2] sm:$0xff] }
   0x8   :  { %50 = vperm.xlu0 %228, %v44_v2   ;;  %60 = vperm.xlu1 %229, %v46_v4   ;;  %v217_v9 = vld [vmem:[#allocation2 + $0x8] sm:$0xff] }
   0xb   :  { %109 = vmatpush.bf16.msra.mxu0 %v219_v3  ;;  %222 = vmatpush.bf16.msra.mxu1 %v219_v3 }
   0xf   :  { %110 = vmatpush.bf16.msra.mxu0 %v218_v5  ;;  %223 = vmatpush.bf16.msra.mxu1 %v218_v5 }
  0x10   :  { %55 = vperm.xlu0 %228, %v45_v6   ;;  %65 = vperm.xlu1 %229, %v47_v7  }
  0x12   :  { %214 = vmatmul.msk.bf16.vlgmr.msra.gmra.mxu0 %vm96_vm0, %v216_v8  ;;  %215 = vmatmul.msk.bf16.vlgmr.msra.gmra.mxu1 %vm96_vm0, %v217_v9 }
  0x7a   :  { %v61_v10 = vpop.permute.xlu1 %60  ;;  %v51_v11 = vpop.permute.xlu0 %50 }
  0x82   :  { %v66_v22 = vpop.permute.xlu1 %65  ;;  %v56_v24 = vpop.permute.xlu0 %55 }
  0x8f   :  { %v112_v12 = vpop.f32.mrf.mxu0  ;;  %v117_v13 = vpop.f32.mrf.mxu1 }
  0x90   :  { %v113_v14 = vadd.f32 %v112_v12, %v51_v11  ;;  %v118_v15 = vadd.f32 %v117_v13, %v61_v10 }
  0x92   :  { %v126_v16 = vmul.f32 0.2, %v113_v14  ;;  %vm122_vm2 = vcmp.ge.f32.partialorder %v113_v14, 0.0  ;;  %v128_v17 = vmul.f32 0.2, %v118_v15  ;;  %vm124_vm3 = vcmp.ge.f32.partialorder %v118_v15, 0.0 }
  0x94   :  { %v130_v18 = vsel %vm122_vm2, %v113_v14, %v126_v16  ;;  %v132_v19 = vsel %vm124_vm3, %v118_v15, %v128_v17 }
  0x95   :  { %v144_v20 = vsel %vm143_vm1, %v130_v18, 0.0  ;;  %v134_v21 = vpack.c.bf16 %v130_v18, %v130_v18  ;;  %v150_v23 = vsel %vm143_vm1, %v132_v19, 0.0  ;;  %v136_v25 = vpack.c.bf16 %v132_v19, %v132_v19 }
  0x96   :  { %145 = vadd.xlane.f32.xlu2 %v144_v20  ;;  %151 = vadd.xlane.f32.xlu0 %v150_v23  ;;  %v161_v38 = vmul.f32 %v130_v18, %v130_v18  ;;  %v163_v40 = vmul.f32 %v132_v19, %v132_v19 }
  0x97   :  { %139 = vst.msk [vmem:[%s373_s3] sm:$0xf] %vm138_vm4, %v134_v21  ;;  %v114_v26 = vpop.f32.mrf.mxu0  ;;  %v119_v27 = vpop.f32.mrf.mxu1 }
  0x98   :  { %v115_v28 = vadd.f32 %v114_v26, %v56_v24  ;;  %v120_v29 = vadd.f32 %v119_v27, %v66_v22  ;;  %141 = vst.msk [vmem:[%s373_s3 + $0x8] sm:$0xf] %vm138_vm4, %v136_v25  ;;  %v165_v39 = vsel %vm143_vm1, %v161_v38, 0.0  ;;  %v171_v41 = vsel %vm143_vm1, %v163_v40, 0.0 }
  0x9a   :  { %v127_v30 = vmul.f32 0.2, %v115_v28  ;;  %vm123_vm5 = vcmp.ge.f32.partialorder %v115_v28, 0.0  ;;  %v129_v31 = vmul.f32 0.2, %v120_v29  ;;  %vm125_vm6 = vcmp.ge.f32.partialorder %v120_v29, 0.0 }
  0x9c   :  { %v131_v32 = vsel %vm123_vm5, %v115_v28, %v127_v30  ;;  %v133_v33 = vsel %vm125_vm6, %v120_v29, %v129_v31 }
  0x9d   :  { %v135_v34 = vpack.c.bf16 %v131_v32, %v131_v32  ;;  %v147_v35 = vsel %vm143_vm1, %v131_v32, 0.0  ;;  %v153_v36 = vsel %vm143_vm1, %v133_v33, 0.0  ;;  %v137_v37 = vpack.c.bf16 %v133_v33, %v133_v33 }
  0x9e   :  { %148 = vadd.xlane.f32.xlu2 %v147_v35  ;;  %154 = vadd.xlane.f32.xlu1 %v153_v36  ;;  %v162_v42 = vmul.f32 %v131_v32, %v131_v32  ;;  %v164_v44 = vmul.f32 %v133_v33, %v133_v33 }
  0x9f   :  { %140 = vst.msk [vmem:[%s373_s3 + $0x4] sm:$0xf] %vm138_vm4, %v135_v34 }
  0xa0   :  { %142 = vst.msk [vmem:[%s373_s3 + $0xc] sm:$0xf] %vm138_vm4, %v137_v37  ;;  %v168_v43 = vsel %vm143_vm1, %v162_v42, 0.0  ;;  %v174_v45 = vsel %vm143_vm1, %v164_v44, 0.0 }
  0xa6   :  { %166 = vadd.xlane.f32.xlu2 %v165_v39 }
  0xae   :  { %172 = vadd.xlane.f32.xlu2 %v171_v41 }
  0xb6   :  { %169 = vadd.xlane.f32.xlu2 %v168_v43 }
  0xbe   :  { %175 = vadd.xlane.f32.xlu2 %v174_v45 }
 0x109   :  { %v146_v46 = vpop.xlane.xlu2 %145  ;;  %v152_v47 = vpop.xlane.xlu0 %151 }
 0x10a   :  { %157 = vst.msk [vmem:[%s374_s4] sm:$0xff] %vm156_vm7, %v146_v46 }
 0x10b   :  { %159 = vst.msk [vmem:[%s374_s4 + $0x10] sm:$0xff] %vm156_vm7, %v152_v47 }
 0x111   :  { %v149_v48 = vpop.xlane.xlu2 %148  ;;  %v155_v49 = vpop.xlane.xlu1 %154 }
 0x112   :  { %158 = vst.msk [vmem:[%s374_s4 + $0x8] sm:$0xff] %vm156_vm7, %v149_v48 }
 0x113   :  { %160 = vst.msk [vmem:[%s374_s4 + $0x18] sm:$0xff] %vm156_vm7, %v155_v49 }
 0x119   :  { %v167_v50 = vpop.xlane.xlu2 %166 }
 0x11a   :  { %177 = vst.msk [vmem:[%s375_s5] sm:$0xff] %vm156_vm7, %v167_v50 }
 0x121   :  { %v173_v51 = vpop.xlane.xlu2 %172 }
 0x122   :  { %179 = vst.msk [vmem:[%s375_s5 + $0x10] sm:$0xff] %vm156_vm7, %v173_v51 }
 0x129   :  { %v170_v52 = vpop.xlane.xlu2 %169 }
 0x12a   :  { %178 = vst.msk [vmem:[%s375_s5 + $0x8] sm:$0xff] %vm156_vm7, %v170_v52 }
 0x131   :  { %v176_v53 = vpop.xlane.xlu2 %175 }
 0x132   :  { %180 = vst.msk [vmem:[%s375_s5 + $0x18] sm:$0xff] %vm156_vm7, %v176_v53 }
 0x133   :  { %193 = vsyncpa [#allocation3], 1 }

// kernel: squeeze.22
= control target key start
LH: loop header
LB: loop body
LE: loop exit
PB: predicated region body
PF: predicated region fallthrough
CT: control target
= control target key end

     0   :  { %s37_s8 = smov 104   ;;  %s38_s9 = smov 112   ;;  %vm7_vm0 = vcmask 64512   ;;  %s55_s0 = inlined_call_operand.vmem [shape: f32[32], index: 0, kind: input, shape index: {}]   ;;  %s56_s1 = inlined_call_operand.vmem [shape: f32[4,8], index: 1, kind: output, shape index: {}]  }
   0x1   :  { %v4_v0 = vld [vmem:[%s55_s0] sm:$0x1]  ;;  %s36_s0 = smov 120  }
   0x2   :  { %5 = vst [vmem:[#allocation1] sm:$0x1] %v4_v0 }
   0x9   :  { %v9_v1 = vld [vmem:[#allocation1] sm:$0x1]  }
   0xa   :  { %v21_v2 = vld [vmem:[#allocation1] sm:$0x1]   ;;  %10 = vrot.lane.b32.xlu0 %v9_v1, %s36_s0 }
   0xb   :  { %22 = vrot.lane.b32.xlu1 %v21_v2, %s37_s8  ;;  %v15_v3 = vld [vmem:[#allocation1] sm:$0x1]  }
   0xc   :  { %v6_v4 = vld [vmem:[#allocation1] sm:$0x1]  }
   0xd   :  { %8 = vst.msk [vmem:[#allocation0] sm:$0x1] %vm7_vm0, %v6_v4  }
  0x12   :  { %16 = vrot.lane.b32.xlu0 %v15_v3, %s38_s9 }
  0x7c   :  { %v11_v5 = vpop.permute.xlu0 %10  }
  0x7d   :  { %v23_v6 = vpop.permute.xlu1 %22   ;;  %14 = vst.msk [vmem:[#allocation0 + $0x1] sm:$0x1] %vm7_vm0, %v11_v5  }
  0x7e   :  { %26 = vst.msk [vmem:[#allocation0 + $0x3] sm:$0x1] %vm7_vm0, %v23_v6  }
  0x84   :  { %v17_v7 = vpop.permute.xlu0 %16  }
  0x85   :  { %20 = vst.msk [vmem:[#allocation0 + $0x2] sm:$0x1] %vm7_vm0, %v17_v7  }
  0x8c   :  { %v29_v8 = vld [vmem:[#allocation0] sm:$0xf] }
  0x8d   :  { %32 = vst [vmem:[%s56_s1] sm:$0xf] %v29_v8 }

// kernel: tile.102
= control target key start
LH: loop header
LB: loop body
LE: loop exit
PB: predicated region body
PF: predicated region fallthrough
CT: control target
= control target key end

     0   :  { %s22_s0 = inlined_call_operand.vmem [shape: f32[8], index: 0, kind: input, shape index: {}]   ;;  %s23_s1 = inlined_call_operand.vmem [shape: f32[4,8], index: 1, kind: output, shape index: {}]  }
   0x1   :  { %v4_v0 = vld [vmem:[%s22_s0] ss:$0 sm:$0xff] }
   0x2   :  { %5 = vst [vmem:[%s23_s1] sm:$0xf] %v4_v0 }

// kernel: mf_decoder_forward.12
= control target key start
LH: loop header
LB: loop body
LE: loop exit
PB: predicated region body
PF: predicated region fallthrough
CT: control target
= control target key end

     0   :  { %11 = vsyncpa [#allocation3], 0  ;;  %s376_s21 = smov [#allocation2]   ;;  %s377_s23 = smov 128   ;;  %s510_s0 = inlined_call_operand.hbm [shape: bf16[32,144], index: 0, kind: input, shape index: {}]   ;;  %s511_s1 = inlined_call_operand.vmem [shape: bf16[144,32], index: 1, kind: input, shape index: {}]   ;;  %s512_s2 = inlined_call_operand.vmem [shape: f32[32,1], index: 2, kind: input, shape index: {}]   ;;  %s513_s3 = inlined_call_operand.vmem [shape: bf16[32,32], index: 3, kind: output, shape index: {0}]   ;;  %s514_s4 = inlined_call_operand.vmem [shape: f32[1,32,1], index: 4, kind: output, shape index: {1}]   ;;  %s515_s5 = inlined_call_operand.vmem [shape: f32[1,32,1], index: 5, kind: output, shape index: {2}]  }
   0x1   :  { %s16_s20 = sshll.u32 %s510_s0, 4  ;;  %s18_s22 = sshll.u32 %s376_s21, 4  ;;  %s17_s20 = int_to_ptr.hbm [resolvable:$true] %s16_s20  ;;  %s19_s22 = int_to_ptr.vmem [resolvable:$true] %s18_s22 }
   0x2   :  { %s378_s24 = smov 8  }
   0x3   :  { %24 = dma.hbm_to_vmem [thread:$0]  %s17_s20, 512, %s19_s22, [#allocation3], %s377_s23, %s377_s23, %s378_s24  }
   0x4   :  { %374 = dma.done.wait [#allocation3], 512  }
   0x5   :  { %375 = vsyncadd [#allocation3], 4294966784  ;;  %v334_v0 = vld [vmem:[%s511_s1 + $0x38] sm:$0xff]  ;;  %v333_v1 = vld [vmem:[%s511_s1 + $0x30] sm:$0xff]  ;;  %v379_v5 = vmov 0   ;;  %vm152_vm0 = vcmask 130048  }
   0x6   :  { %159 = vmatpush.bf16.msra.mxu0 %v334_v0  ;;  %336 = vmatpush.bf16.msra.mxu2 %v334_v0  ;;  %v335_v2 = vld [vmem:[%s511_s1 + $0x40] sm:$0xff]  ;;  %v273_v4 = vld [vmem:[#allocation2 + $0x8] sm:$0xf0]  ;;  %v58_v9 = vld [vmem:[%s512_s2 + $0x10] sm:$0xff]  ;;  %vm218_vm2 = vcmask 261120   ;;  %vm213_vm3 = vcmask 257024  }
   0x7   :  { %v323_v3 = vld [vmem:[#allocation2 + $0x4] sm:$0xf]  ;;  %348 = vset.pattern.permute.xlu0 %v379_v5  ;;  %349 = vset.pattern.permute.xlu1 %v379_v5  ;;  %v332_v8 = vld [vmem:[%s511_s1 + $0x28] sm:$0xff]  ;;  %v59_v12 = vld [vmem:[%s512_s2 + $0x18] sm:$0xff]  ;;  %vm231_vm7 = vcmask 7168  }
   0x8   :  { %185 = vmatpush.bf16.msra.mxu1 %v335_v2  ;;  %v276_v6 = vor.u32 %v323_v3, %v273_v4  ;;  %v56_v7 = vld [vmem:[%s512_s2] sm:$0xff]  ;;  %72 = vperm.xlu1 %349, %v58_v9   ;;  %v57_v11 = vld [vmem:[%s512_s2 + $0x8] sm:$0xff]  ;;  %v330_v13 = vld [vmem:[%s511_s1 + $0x18] sm:$0xff] }
   0x9   :  { %62 = vperm.xlu0 %348, %v56_v7   ;;  %v331_v10 = vld [vmem:[%s511_s1 + $0x20] sm:$0xff]  ;;  %v325_v14 = vld [vmem:[#allocation2 + $0x14] sm:$0xf]  ;;  %v281_v15 = vld [vmem:[#allocation2 + $0x18] sm:$0xf0] }
   0xa   :  { %160 = vmatpush.bf16.msra.mxu0 %v333_v1  ;;  %337 = vmatpush.bf16.msra.mxu2 %v333_v1  ;;  %v329_v16 = vld [vmem:[%s511_s1 + $0x10] sm:$0xff]  ;;  %v284_v17 = vor.u32 %v325_v14, %v281_v15  ;;  %v328_v18 = vld [vmem:[%s511_s1 + $0x8] sm:$0xff]  ;;  %v327_v19 = vld [vmem:[%s511_s1] sm:$0xff] }
   0xb   :  { %321 = vmatmul.msk.bf16.vlgmr.msra.gmra.mxu1 %vm152_vm0, %v276_v6  ;;  %v271_v20 = vld [vmem:[#allocation2] sm:$0xf]  ;;  %v324_v21 = vld [vmem:[#allocation2 + $0x4] sm:$0xf0]  ;;  %v279_v22 = vld [vmem:[#allocation2 + $0x10] sm:$0xf] }
   0xc   :  { %v326_v23 = vld [vmem:[#allocation2 + $0x14] sm:$0xf0]  ;;  %v272_v24 = vor.u32 %v324_v21, %v271_v20 }
   0xd   :  { %v280_v25 = vor.u32 %v326_v23, %v279_v22 }
   0xe   :  { %161 = vmatpush.bf16.msra.mxu0 %v332_v8  ;;  %338 = vmatpush.bf16.msra.mxu2 %v332_v8 }
  0x10   :  { %77 = vperm.xlu1 %349, %v59_v12  }
  0x11   :  { %67 = vperm.xlu0 %348, %v57_v11  }
  0x12   :  { %162 = vmatpush.bf16.msra.mxu0 %v331_v10  ;;  %339 = vmatpush.bf16.msra.mxu2 %v331_v10 }
  0x16   :  { %163 = vmatpush.bf16.msra.mxu0 %v330_v13  ;;  %340 = vmatpush.bf16.msra.mxu2 %v330_v13 }
  0x1a   :  { %164 = vmatpush.bf16.msra.mxu0 %v329_v16  ;;  %341 = vmatpush.bf16.msra.mxu2 %v329_v16 }
  0x1b   :  { %322 = vmatmul.msk.bf16.gmra.mxu1 %vm152_vm0, %v284_v17 }
  0x1e   :  { %165 = vmatpush.bf16.msra.mxu0 %v328_v18  ;;  %342 = vmatpush.bf16.msra.mxu2 %v328_v18 }
  0x22   :  { %166 = vmatpush.bf16.msra.mxu0 %v327_v19  ;;  %343 = vmatpush.bf16.msra.mxu2 %v327_v19 }
  0x25   :  { %167 = vmatmul.bf16.vlgmr.msra.gmra.mxu0 %v272_v24  ;;  %172 = vmatmul.bf16.vlgmr.msra.gmra.mxu2 %v280_v25 }
  0x7a   :  { %v73_v31 = vpop.permute.xlu1 %72 }
  0x7b   :  { %v63_v28 = vpop.permute.xlu0 %62 }
  0x82   :  { %v78_v46 = vpop.permute.xlu1 %77 }
  0x83   :  { %v68_v38 = vpop.permute.xlu0 %67 }
  0x88   :  { %v187_v26 = vpop.f32.mrf.mxu1 }
  0x90   :  { %v189_v27 = vpop.f32.mrf.mxu1 }
  0x98   :  { %v192_v33 = vpop.f32.mrf.mxu1 }
  0xa0   :  { %v194_v50 = vpop.f32.mrf.mxu1 }
  0xa2   :  { %v168_v29 = vpop.f32.mrf.mxu0 }
  0xa3   :  { %v169_v30 = vadd.f32 %v168_v29, %v63_v28 }
  0xa5   :  { %v188_v32 = vadd.f32 %v187_v26, %v169_v30 }
  0xa7   :  { %vm197_vm1 = vcmp.ge.f32.partialorder %v188_v32, 0.0  ;;  %v201_v34 = vmul.f32 0.2, %v188_v32 }
  0xa8   :  { %v173_v35 = vpop.f32.mrf.mxu2 }
  0xa9   :  { %v205_v36 = vsel %vm197_vm1, %v188_v32, %v201_v34  ;;  %v174_v37 = vadd.f32 %v173_v35, %v73_v31 }
  0xaa   :  { %v170_v39 = vpop.f32.mrf.mxu0  ;;  %v219_v40 = vsel %vm218_vm2, %v205_v36, 0.0  ;;  %v209_v41 = vpack.c.bf16 %v205_v36, %v205_v36  ;;  %v236_v59 = vmul.f32 %v205_v36, %v205_v36 }
  0xab   :  { %v171_v42 = vadd.f32 %v170_v39, %v68_v38  ;;  %220 = vadd.xlane.f32.xlu2 %v219_v40  ;;  %v193_v43 = vadd.f32 %v192_v33, %v174_v37 }
  0xac   :  { %214 = vst.msk [vmem:[%s513_s3] sm:$0xf] %vm213_vm3, %v209_v41  ;;  %v240_v63 = vsel %vm218_vm2, %v236_v59, 0.0 }
  0xad   :  { %v190_v44 = vadd.f32 %v189_v27, %v171_v42  ;;  %v203_v45 = vmul.f32 0.2, %v193_v43  ;;  %vm199_vm4 = vcmp.ge.f32.partialorder %v193_v43, 0.0 }
  0xaf   :  { %v202_v47 = vmul.f32 0.2, %v190_v44  ;;  %vm198_vm5 = vcmp.ge.f32.partialorder %v190_v44, 0.0  ;;  %v207_v48 = vsel %vm199_vm4, %v193_v43, %v203_v45 }
  0xb0   :  { %v175_v49 = vpop.f32.mrf.mxu2  ;;  %v225_v51 = vsel %vm218_vm2, %v207_v48, 0.0  ;;  %v211_v52 = vpack.c.bf16 %v207_v48, %v207_v48  ;;  %v238_v2 = vmul.f32 %v207_v48, %v207_v48 }
  0xb1   :  { %v206_v53 = vsel %vm198_vm5, %v190_v44, %v202_v47  ;;  %v176_v54 = vadd.f32 %v175_v49, %v78_v46  ;;  %226 = vadd.xlane.f32.xlu0 %v225_v51 }
  0xb2   :  { %v210_v55 = vpack.c.bf16 %v206_v53, %v206_v53  ;;  %v222_v56 = vsel %vm218_vm2, %v206_v53, 0.0  ;;  %216 = vst.msk [vmem:[%s513_s3 + $0x8] sm:$0xf] %vm213_vm3, %v211_v52  ;;  %v237_v0 = vmul.f32 %v206_v53, %v206_v53  ;;  %v246_v3 = vsel %vm218_vm2, %v238_v2, 0.0 }
  0xb3   :  { %223 = vadd.xlane.f32.xlu2 %v222_v56  ;;  %v195_v57 = vadd.f32 %v194_v50, %v176_v54 }
  0xb4   :  { %215 = vst.msk [vmem:[%s513_s3 + $0x4] sm:$0xf] %vm213_vm3, %v210_v55  ;;  %v243_v1 = vsel %vm218_vm2, %v237_v0, 0.0 }
  0xb5   :  { %v204_v58 = vmul.f32 0.2, %v195_v57  ;;  %vm200_vm6 = vcmp.ge.f32.partialorder %v195_v57, 0.0 }
  0xb7   :  { %v208_v60 = vsel %vm200_vm6, %v195_v57, %v204_v58 }
  0xb8   :  { %v228_v61 = vsel %vm218_vm2, %v208_v60, 0.0  ;;  %v212_v62 = vpack.c.bf16 %v208_v60, %v208_v60  ;;  %v239_v4 = vmul.f32 %v208_v60, %v208_v60 }
  0xb9   :  { %229 = vadd.xlane.f32.xlu1 %v228_v61 }
  0xba   :  { %217 = vst.msk [vmem:[%s513_s3 + $0xc] sm:$0xf] %vm213_vm3, %v212_v62  ;;  %v249_v5 = vsel %vm218_vm2, %v239_v4, 0.0 }
  0xbb   :  { %241 = vadd.xlane.f32.xlu2 %v240_v63 }
  0xc3   :  { %244 = vadd.xlane.f32.xlu2 %v243_v1 }
  0xcb   :  { %247 = vadd.xlane.f32.xlu2 %v246_v3 }
  0xd3   :  { %250 = vadd.xlane.f32.xlu2 %v249_v5 }
 0x11e   :  { %v221_v6 = vpop.xlane.xlu2 %220 }
 0x11f   :  { %232 = vst.msk [vmem:[%s514_s4] sm:$0xff] %vm231_vm7, %v221_v6 }
 0x124   :  { %v227_v7 = vpop.xlane.xlu0 %226 }
 0x125   :  { %234 = vst.msk [vmem:[%s514_s4 + $0x10] sm:$0xff] %vm231_vm7, %v227_v7 }
 0x126   :  { %v224_v8 = vpop.xlane.xlu2 %223 }
 0x127   :  { %233 = vst.msk [vmem:[%s514_s4 + $0x8] sm:$0xff] %vm231_vm7, %v224_v8 }
 0x12c   :  { %v230_v9 = vpop.xlane.xlu1 %229 }
 0x12d   :  { %235 = vst.msk [vmem:[%s514_s4 + $0x18] sm:$0xff] %vm231_vm7, %v230_v9 }
 0x12e   :  { %v242_v10 = vpop.xlane.xlu2 %241 }
 0x12f   :  { %252 = vst.msk [vmem:[%s515_s5] sm:$0xff] %vm231_vm7, %v242_v10 }
 0x136   :  { %v245_v11 = vpop.xlane.xlu2 %244 }
 0x137   :  { %253 = vst.msk [vmem:[%s515_s5 + $0x8] sm:$0xff] %vm231_vm7, %v245_v11 }
 0x13e   :  { %v248_v12 = vpop.xlane.xlu2 %247 }
 0x13f   :  { %254 = vst.msk [vmem:[%s515_s5 + $0x10] sm:$0xff] %vm231_vm7, %v248_v12 }
 0x146   :  { %v251_v13 = vpop.xlane.xlu2 %250 }
 0x147   :  { %255 = vst.msk [vmem:[%s515_s5 + $0x18] sm:$0xff] %vm231_vm7, %v251_v13 }
 0x148   :  { %268 = vsyncpa [#allocation3], 1 }

// kernel: mf_decoder_forward.13
= control target key start
LH: loop header
LB: loop body
LE: loop exit
PB: predicated region body
PF: predicated region fallthrough
CT: control target
= control target key end

     0   :  { %v234_v1 = vmov 0   ;;  %vm99_vm0 = vcmask 1043456   ;;  %vm92_vm1 = vcmask 588800   ;;  %vm150_vm6 = vcmask 7168   ;;  %s336_s1 = inlined_call_operand.vmem [shape: bf16[72,128], index: 1, kind: input, shape index: {}]   ;;  %s337_s2 = inlined_call_operand.vmem [shape: f32[32,1], index: 2, kind: input, shape index: {}]   ;;  %s338_s0 = inlined_call_operand.vmem [shape: bf16[32,72], index: 0, kind: input, shape index: {}]   ;;  %s339_s3 = inlined_call_operand.vmem [shape: bf16[32,128], index: 3, kind: output, shape index: {0}]   ;;  %s340_s4 = inlined_call_operand.vmem [shape: f32[1,32,1], index: 4, kind: output, shape index: {1}]   ;;  %s341_s5 = inlined_call_operand.vmem [shape: f32[1,32,1], index: 5, kind: output, shape index: {2}]  }
   0x1   :  { %v30_v0 = vld [vmem:[%s336_s1 + $0x20] sm:$0xf]  ;;  %232 = vset.pattern.permute.xlu0 %v234_v1  ;;  %233 = vset.pattern.permute.xlu1 %v234_v1  ;;  %v33_v5 = vld [vmem:[%s337_s2 + $0x10] sm:$0xff]  ;;  %v214_v7 = vld [vmem:[%s336_s1 + $0x18] sm:$0xff] }
   0x2   :  { %v82_v2 = vunpack.c.l.b16 %v30_v0  ;;  %v31_v3 = vld [vmem:[%s337_s2] sm:$0xff]  ;;  %47 = vperm.xlu1 %233, %v33_v5   ;;  %v32_v8 = vld [vmem:[%s337_s2 + $0x8] sm:$0xff]  ;;  %v34_v9 = vld [vmem:[%s337_s2 + $0x18] sm:$0xff] }
   0x3   :  { %37 = vperm.xlu0 %232, %v31_v3   ;;  %v213_v10 = vld [vmem:[%s336_s1 + $0x10] sm:$0xff]  ;;  %v212_v11 = vld [vmem:[%s336_s1 + $0x8] sm:$0xff]  ;;  %v211_v12 = vld [vmem:[%s336_s1] sm:$0xff] }
   0x4   :  { %v87_v4 = vpack.c.b16 %v82_v2, %v82_v2  ;;  %v209_v13 = vld [vmem:[%s338_s0] sm:$0xff]  ;;  %v210_v14 = vld [vmem:[%s338_s0 + $0x8] sm:$0xff] }
   0x6   :  { %v101_v6 = vsel %vm99_vm0, %v87_v4, 0 }
   0x7   :  { %106 = vmatpush.bf16.msra.mxu0 %v101_v6  ;;  %226 = vmatpush.bf16.msra.mxu1 %v101_v6 }
   0xa   :  { %52 = vperm.xlu1 %233, %v34_v9  }
   0xb   :  { %107 = vmatpush.bf16.msra.mxu0 %v214_v7  ;;  %227 = vmatpush.bf16.msra.mxu1 %v214_v7 }
   0xc   :  { %42 = vperm.xlu0 %232, %v32_v8  }
   0xf   :  { %108 = vmatpush.bf16.msra.mxu0 %v213_v10  ;;  %228 = vmatpush.bf16.msra.mxu1 %v213_v10 }
  0x13   :  { %109 = vmatpush.bf16.msra.mxu0 %v212_v11  ;;  %229 = vmatpush.bf16.msra.mxu1 %v212_v11 }
  0x17   :  { %110 = vmatpush.bf16.msra.mxu0 %v211_v12  ;;  %230 = vmatpush.bf16.msra.mxu1 %v211_v12 }
  0x1a   :  { %207 = vmatmul.msk.bf16.vlgmr.msra.gmra.mxu0 %vm92_vm1, %v209_v13  ;;  %208 = vmatmul.msk.bf16.vlgmr.msra.gmra.mxu1 %vm92_vm1, %v210_v14 }
  0x74   :  { %v48_v15 = vpop.permute.xlu1 %47 }
  0x75   :  { %v38_v16 = vpop.permute.xlu0 %37 }
  0x7c   :  { %v53_v25 = vpop.permute.xlu1 %52 }
  0x7e   :  { %v43_v26 = vpop.permute.xlu0 %42 }
  0x97   :  { %v112_v17 = vpop.f32.mrf.mxu0  ;;  %v117_v18 = vpop.f32.mrf.mxu1 }
  0x98   :  { %v113_v19 = vadd.f32 %v112_v17, %v38_v16  ;;  %v118_v20 = vadd.f32 %v117_v18, %v48_v15 }
  0x9a   :  { %v126_v21 = vmul.f32 0.2, %v113_v19  ;;  %vm122_vm2 = vcmp.ge.f32.partialorder %v113_v19, 0.0  ;;  %v128_v22 = vmul.f32 0.2, %v118_v20  ;;  %vm124_vm3 = vcmp.ge.f32.partialorder %v118_v20, 0.0 }
  0x9c   :  { %v130_v23 = vsel %vm122_vm2, %v113_v19, %v126_v21  ;;  %v132_v24 = vsel %vm124_vm3, %v118_v20, %v128_v22 }
  0x9d   :  { %142 = vadd.xlane.f32.xlu2 %v130_v23  ;;  %146 = vadd.xlane.f32.xlu0 %v132_v24  ;;  %v155_v37 = vmul.f32 %v130_v23, %v130_v23  ;;  %v157_v38 = vmul.f32 %v132_v24, %v132_v24 }
  0x9f   :  { %v114_v27 = vpop.f32.mrf.mxu0  ;;  %v119_v28 = vpop.f32.mrf.mxu1 }
  0xa0   :  { %v115_v29 = vadd.f32 %v114_v27, %v43_v26  ;;  %v120_v30 = vadd.f32 %v119_v28, %v53_v25 }
  0xa2   :  { %v127_v31 = vmul.f32 0.2, %v115_v29  ;;  %vm123_vm4 = vcmp.ge.f32.partialorder %v115_v29, 0.0  ;;  %v129_v32 = vmul.f32 0.2, %v120_v30  ;;  %vm125_vm5 = vcmp.ge.f32.partialorder %v120_v30, 0.0 }
  0xa4   :  { %v131_v33 = vsel %vm123_vm4, %v115_v29, %v127_v31  ;;  %v133_v34 = vsel %vm125_vm5, %v120_v30, %v129_v32 }
  0xa5   :  { %144 = vadd.xlane.f32.xlu2 %v131_v33  ;;  %v218_v35 = vpack.c.bf16 %v131_v33, %v130_v23  ;;  %148 = vadd.xlane.f32.xlu1 %v133_v34  ;;  %v223_v36 = vpack.c.bf16 %v133_v34, %v132_v24  ;;  %v156_v39 = vmul.f32 %v131_v33, %v131_v33 }
  0xa6   :  { %v158_v40 = vmul.f32 %v133_v34, %v133_v34 }
  0xa7   :  { %219 = vst [vmem:[%s339_s3] sm:$0xff] %v218_v35  }
  0xa8   :  { %225 = vst [vmem:[%s339_s3 + $0x8] sm:$0xff] %v223_v36  }
  0xad   :  { %159 = vadd.xlane.f32.xlu2 %v155_v37 }
  0xb5   :  { %163 = vadd.xlane.f32.xlu2 %v157_v38 }
  0xbd   :  { %161 = vadd.xlane.f32.xlu2 %v156_v39 }
  0xc5   :  { %165 = vadd.xlane.f32.xlu2 %v158_v40 }
 0x110   :  { %v143_v41 = vpop.xlane.xlu2 %142  ;;  %v147_v42 = vpop.xlane.xlu0 %146 }
 0x111   :  { %151 = vst.msk [vmem:[%s340_s4] sm:$0xff] %vm150_vm6, %v143_v41 }
 0x112   :  { %153 = vst.msk [vmem:[%s340_s4 + $0x10] sm:$0xff] %vm150_vm6, %v147_v42 }
 0x118   :  { %v145_v43 = vpop.xlane.xlu2 %144  ;;  %v149_v44 = vpop.xlane.xlu1 %148 }
 0x119   :  { %152 = vst.msk [vmem:[%s340_s4 + $0x8] sm:$0xff] %vm150_vm6, %v145_v43 }
 0x11a   :  { %154 = vst.msk [vmem:[%s340_s4 + $0x18] sm:$0xff] %vm150_vm6, %v149_v44 }
 0x120   :  { %v160_v45 = vpop.xlane.xlu2 %159 }
 0x121   :  { %167 = vst.msk [vmem:[%s341_s5] sm:$0xff] %vm150_vm6, %v160_v45 }
 0x128   :  { %v164_v46 = vpop.xlane.xlu2 %163 }
 0x129   :  { %169 = vst.msk [vmem:[%s341_s5 + $0x10] sm:$0xff] %vm150_vm6, %v164_v46 }
 0x130   :  { %v162_v47 = vpop.xlane.xlu2 %161 }
 0x131   :  { %168 = vst.msk [vmem:[%s341_s5 + $0x8] sm:$0xff] %vm150_vm6, %v162_v47 }
 0x138   :  { %v166_v48 = vpop.xlane.xlu2 %165 }
 0x139   :  { %170 = vst.msk [vmem:[%s341_s5 + $0x18] sm:$0xff] %vm150_vm6, %v166_v48 }

// kernel: mf_decoder_forward.14
= control target key start
LH: loop header
LB: loop body
LE: loop exit
PB: predicated region body
PF: predicated region fallthrough
CT: control target
= control target key end

     0   :  { %v502_v2 = vmov 0   ;;  %vm171_vm0 = vcmask 1043456   ;;  %vm164_vm1 = vcmask 588800   ;;  %s725_s1 = inlined_call_operand.vmem [shape: bf16[72,512], index: 1, kind: input, shape index: {}]   ;;  %s726_s2 = inlined_call_operand.vmem [shape: f32[32,1], index: 2, kind: input, shape index: {}]   ;;  %s727_s0 = inlined_call_operand.vmem [shape: bf16[32,72], index: 0, kind: input, shape index: {}]   ;;  %s728_s3 = inlined_call_operand.vmem [shape: bf16[32,512], index: 3, kind: output, shape index: {0}]   ;;  %s729_s4 = inlined_call_operand.vmem [shape: f32[1,32,1], index: 4, kind: output, shape index: {1}]   ;;  %s730_s5 = inlined_call_operand.vmem [shape: f32[1,32,1], index: 5, kind: output, shape index: {2}]  }
   0x1   :  { %v38_v0 = vld [vmem:[%s725_s1 + $0x80] sm:$0xff]  ;;  %v39_v1 = vld [vmem:[%s725_s1 + $0x88] sm:$0xff]  ;;  %500 = vset.pattern.permute.xlu0 %v502_v2  ;;  %501 = vset.pattern.permute.xlu1 %v502_v2  ;;  %v497_v8 = vld [vmem:[%s725_s1 + $0x6c] sm:$0xf0] }
   0x2   :  { %v124_v3 = vunpack.c.l.b16 %v38_v0  ;;  %v125_v4 = vunpack.c.h.b16 %v38_v0  ;;  %v126_v5 = vunpack.c.l.b16 %v39_v1  ;;  %v127_v6 = vunpack.c.h.b16 %v39_v1  ;;  %v459_v7 = vld [vmem:[%s725_s1 + $0x60] sm:$0xf]  ;;  %v495_v13 = vld [vmem:[%s725_s1 + $0x64] sm:$0xf]  ;;  %v461_v14 = vld [vmem:[%s725_s1 + $0x70] sm:$0xf0] }
   0x3   :  { %v467_v15 = vld [vmem:[%s725_s1 + $0x68] sm:$0xf]  ;;  %v498_v16 = vld [vmem:[%s725_s1 + $0x74] sm:$0xf0]  ;;  %v496_v17 = vld [vmem:[%s725_s1 + $0x6c] sm:$0xf]  ;;  %v460_v23 = vor.u32 %v497_v8, %v459_v7  ;;  %v464_v24 = vor.u32 %v495_v13, %v461_v14 }
   0x4   :  { %v144_v9 = vpack.c.b16 %v124_v3, %v124_v3  ;;  %v145_v10 = vpack.c.b16 %v125_v4, %v125_v4  ;;  %v146_v11 = vpack.c.b16 %v126_v5, %v126_v5  ;;  %v147_v12 = vpack.c.b16 %v127_v6, %v127_v6  ;;  %v469_v18 = vld [vmem:[%s725_s1 + $0x78] sm:$0xf0]  ;;  %v443_v25 = vld [vmem:[%s725_s1 + $0x40] sm:$0xf]  ;;  %v493_v26 = vld [vmem:[%s725_s1 + $0x4c] sm:$0xf0] }
   0x5   :  { %v468_v27 = vor.u32 %v498_v16, %v467_v15  ;;  %v472_v28 = vor.u32 %v496_v17, %v469_v18  ;;  %v491_v29 = vld [vmem:[%s725_s1 + $0x44] sm:$0xf]  ;;  %v445_v30 = vld [vmem:[%s725_s1 + $0x50] sm:$0xf0]  ;;  %v451_v31 = vld [vmem:[%s725_s1 + $0x48] sm:$0xf]  ;;  %v444_v35 = vor.u32 %v493_v26, %v443_v25 }
   0x6   :  { %v173_v19 = vsel %vm171_vm0, %v144_v9, 0  ;;  %v176_v20 = vsel %vm171_vm0, %v145_v10, 0  ;;  %v179_v21 = vsel %vm171_vm0, %v146_v11, 0  ;;  %v182_v22 = vsel %vm171_vm0, %v147_v12, 0  ;;  %v494_v32 = vld [vmem:[%s725_s1 + $0x54] sm:$0xf0] }
   0x7   :  { %187 = vmatpush.bf16.msra.mxu0 %v173_v19  ;;  %206 = vmatpush.bf16.msra.mxu1 %v176_v20  ;;  %v492_v33 = vld [vmem:[%s725_s1 + $0x4c] sm:$0xf]  ;;  %v453_v34 = vld [vmem:[%s725_s1 + $0x58] sm:$0xf0]  ;;  %v448_v36 = vor.u32 %v491_v29, %v445_v30  ;;  %v427_v37 = vld [vmem:[%s725_s1 + $0x20] sm:$0xf]  ;;  %v452_v40 = vor.u32 %v494_v32, %v451_v31 }
   0x8   :  { %225 = vmatpush.bf16.msra.mxu2 %v179_v21  ;;  %244 = vmatpush.bf16.msra.mxu3 %v182_v22  ;;  %v489_v38 = vld [vmem:[%s725_s1 + $0x2c] sm:$0xf0]  ;;  %v487_v39 = vld [vmem:[%s725_s1 + $0x24] sm:$0xf]  ;;  %v456_v41 = vor.u32 %v492_v33, %v453_v34  ;;  %v429_v42 = vld [vmem:[%s725_s1 + $0x30] sm:$0xf0] }
   0x9   :  { %v435_v43 = vld [vmem:[%s725_s1 + $0x28] sm:$0xf]  ;;  %v490_v44 = vld [vmem:[%s725_s1 + $0x34] sm:$0xf0]  ;;  %v488_v45 = vld [vmem:[%s725_s1 + $0x2c] sm:$0xf]  ;;  %v428_v49 = vor.u32 %v489_v38, %v427_v37  ;;  %v432_v50 = vor.u32 %v487_v39, %v429_v42 }
   0xa   :  { %v437_v46 = vld [vmem:[%s725_s1 + $0x38] sm:$0xf0]  ;;  %v40_v47 = vld [vmem:[%s726_s2] sm:$0xff]  ;;  %v42_v48 = vld [vmem:[%s726_s2 + $0x10] sm:$0xff]  ;;  %v436_v53 = vor.u32 %v490_v44, %v435_v43 }
   0xb   :  { %188 = vmatpush.bf16.msra.mxu0 %v460_v23  ;;  %207 = vmatpush.bf16.msra.mxu1 %v464_v24  ;;  %v411_v51 = vld [vmem:[%s725_s1] sm:$0xf]  ;;  %v485_v52 = vld [vmem:[%s725_s1 + $0xc] sm:$0xf0]  ;;  %v440_v54 = vor.u32 %v488_v45, %v437_v46  ;;  %v483_v55 = vld [vmem:[%s725_s1 + $0x4] sm:$0xf] }
   0xc   :  { %226 = vmatpush.bf16.msra.mxu2 %v468_v27  ;;  %245 = vmatpush.bf16.msra.mxu3 %v472_v28  ;;  %v413_v56 = vld [vmem:[%s725_s1 + $0x10] sm:$0xf0]  ;;  %v419_v57 = vld [vmem:[%s725_s1 + $0x8] sm:$0xf]  ;;  %v486_v58 = vld [vmem:[%s725_s1 + $0x14] sm:$0xf0]  ;;  %v412_v61 = vor.u32 %v485_v52, %v411_v51 }
   0xd   :  { %46 = vperm.xlu0 %500, %v40_v47   ;;  %v484_v59 = vld [vmem:[%s725_s1 + $0xc] sm:$0xf]  ;;  %v421_v60 = vld [vmem:[%s725_s1 + $0x18] sm:$0xf0]  ;;  %56 = vperm.xlu1 %501, %v42_v48   ;;  %v416_v62 = vor.u32 %v483_v55, %v413_v56  ;;  %v420_v0 = vor.u32 %v486_v58, %v419_v57  ;;  %v481_v2 = vld [vmem:[%s727_s0] sm:$0xff] }
   0xe   :  { %v41_v63 = vld [vmem:[%s726_s2 + $0x8] sm:$0xff]  ;;  %v424_v1 = vor.u32 %v484_v59, %v421_v60  ;;  %v43_v3 = vld [vmem:[%s726_s2 + $0x18] sm:$0xff] }
   0xf   :  { %189 = vmatpush.bf16.msra.mxu0 %v444_v35  ;;  %208 = vmatpush.bf16.msra.mxu1 %v448_v36  ;;  %v482_v4 = vld [vmem:[%s727_s0 + $0x8] sm:$0xff] }
  0x10   :  { %227 = vmatpush.bf16.msra.mxu2 %v452_v40  ;;  %246 = vmatpush.bf16.msra.mxu3 %v456_v41 }
  0x13   :  { %190 = vmatpush.bf16.msra.mxu0 %v428_v49  ;;  %209 = vmatpush.bf16.msra.mxu1 %v432_v50 }
  0x14   :  { %228 = vmatpush.bf16.msra.mxu2 %v436_v53  ;;  %247 = vmatpush.bf16.msra.mxu3 %v440_v54 }
  0x15   :  { %51 = vperm.xlu0 %500, %v41_v63   ;;  %61 = vperm.xlu1 %501, %v43_v3  }
  0x17   :  { %191 = vmatpush.bf16.msra.mxu0 %v412_v61  ;;  %210 = vmatpush.bf16.msra.mxu1 %v416_v62 }
  0x18   :  { %229 = vmatpush.bf16.msra.mxu2 %v420_v0  ;;  %248 = vmatpush.bf16.msra.mxu3 %v424_v1 }
  0x1a   :  { %473 = vmatmul.msk.bf16.vlgmr.msra.gmra.mxu0 %vm164_vm1, %v481_v2  ;;  %475 = vmatmul.msk.bf16.vlgmr.msra.gmra.mxu1 %vm164_vm1, %v481_v2 }
  0x1b   :  { %477 = vmatmul.msk.bf16.vlgmr.msra.gmra.mxu2 %vm164_vm1, %v481_v2  ;;  %479 = vmatmul.msk.bf16.vlgmr.msra.gmra.mxu3 %vm164_vm1, %v481_v2 }
  0x2a   :  { %474 = vmatmul.msk.bf16.gmra.mxu0 %vm164_vm1, %v482_v4  ;;  %476 = vmatmul.msk.bf16.gmra.mxu1 %vm164_vm1, %v482_v4 }
  0x2b   :  { %478 = vmatmul.msk.bf16.gmra.mxu2 %vm164_vm1, %v482_v4  ;;  %480 = vmatmul.msk.bf16.gmra.mxu3 %vm164_vm1, %v482_v4 }
  0x7f   :  { %v47_v5 = vpop.permute.xlu0 %46  ;;  %v57_v31 = vpop.permute.xlu1 %56 }
  0x87   :  { %v52_v15 = vpop.permute.xlu0 %51  ;;  %v62_v61 = vpop.permute.xlu1 %61 }
  0x97   :  { %v193_v6 = vpop.f32.mrf.mxu0  ;;  %v212_v7 = vpop.f32.mrf.mxu1 }
  0x98   :  { %v194_v8 = vadd.f32 %v193_v6, %v47_v5  ;;  %v213_v9 = vadd.f32 %v212_v7, %v47_v5 }
  0x9a   :  { %vm260_vm2 = vcmp.ge.f32.partialorder %v194_v8, 0.0  ;;  %v276_v10 = vmul.f32 0.2, %v194_v8  ;;  %vm261_vm3 = vcmp.ge.f32.partialorder %v213_v9, 0.0  ;;  %v277_v11 = vmul.f32 0.2, %v213_v9 }
  0x9c   :  { %v292_v12 = vsel %vm260_vm2, %v194_v8, %v276_v10  ;;  %v293_v13 = vsel %vm261_vm3, %v213_v9, %v277_v11  ;;  %vm344_vm2 = vcmask 7168  }
  0x9d   :  { %v308_v14 = vpack.c.bf16 %v293_v13, %v292_v12  ;;  %v324_v24 = vadd.f32 %v293_v13, %v292_v12  ;;  %v349_v40 = vmul.f32 %v292_v12, %v292_v12  ;;  %v350_v45 = vmul.f32 %v293_v13, %v293_v13 }
  0x9e   :  { %v231_v16 = vpop.f32.mrf.mxu2  ;;  %v250_v17 = vpop.f32.mrf.mxu3 }
  0x9f   :  { %316 = vst [vmem:[%s728_s3] sm:$0xff] %v308_v14  ;;  %v232_v18 = vadd.f32 %v231_v16, %v47_v5  ;;  %v251_v19 = vadd.f32 %v250_v17, %v47_v5  ;;  %v195_v20 = vpop.f32.mrf.mxu0  ;;  %v214_v21 = vpop.f32.mrf.mxu1  ;;  %v365_v1 = vadd.f32 %v350_v45, %v349_v40 }
  0xa0   :  { %v196_v22 = vadd.f32 %v195_v20, %v52_v15  ;;  %v215_v23 = vadd.f32 %v214_v21, %v52_v15 }
  0xa1   :  { %vm262_vm4 = vcmp.ge.f32.partialorder %v232_v18, 0.0  ;;  %v278_v25 = vmul.f32 0.2, %v232_v18  ;;  %v279_v26 = vmul.f32 0.2, %v251_v19  ;;  %vm263_vm5 = vcmp.ge.f32.partialorder %v251_v19, 0.0 }
  0xa2   :  { %vm264_vm6 = vcmp.ge.f32.partialorder %v196_v22, 0.0  ;;  %v280_v27 = vmul.f32 0.2, %v196_v22  ;;  %vm265_vm7 = vcmp.ge.f32.partialorder %v215_v23, 0.0  ;;  %v281_v28 = vmul.f32 0.2, %v215_v23 }
  0xa3   :  { %v294_v29 = vsel %vm262_vm4, %v232_v18, %v278_v25  ;;  %v660_v30 = vsel %vm263_vm5, %v251_v19, %v279_v26 }
  0xa4   :  { %v296_v32 = vsel %vm264_vm6, %v196_v22, %v280_v27  ;;  %v297_v33 = vsel %vm265_vm7, %v215_v23, %v281_v28  ;;  %v309_v34 = vpack.c.bf16 %v660_v30, %v294_v29  ;;  %v325_v35 = vadd.f32 %v324_v24, %v294_v29 }
  0xa5   :  { %v310_v36 = vpack.c.bf16 %v297_v33, %v296_v32  ;;  %v329_v48 = vadd.f32 %v297_v33, %v296_v32  ;;  %v351_v55 = vmul.f32 %v294_v29, %v294_v29  ;;  %v353_v2 = vmul.f32 %v296_v32, %v296_v32 }
  0xa6   :  { %v233_v37 = vpop.f32.mrf.mxu2  ;;  %v252_v38 = vpop.f32.mrf.mxu3  ;;  %317 = vst [vmem:[%s728_s3 + $0x8] sm:$0xff] %v309_v34  ;;  %v326_v39 = vadd.f32 %v325_v35, %v660_v30  ;;  %v352_v17 = vmul.f32 %v660_v30, %v660_v30 }
  0xa7   :  { %318 = vst [vmem:[%s728_s3 + $0x10] sm:$0xff] %v310_v36  ;;  %v234_v41 = vadd.f32 %v233_v37, %v52_v15  ;;  %v253_v42 = vadd.f32 %v252_v38, %v52_v15  ;;  %v198_v43 = vpop.f32.mrf.mxu0  ;;  %v217_v44 = vpop.f32.mrf.mxu1  ;;  %v366_v9 = vadd.f32 %v365_v1, %v351_v55  ;;  %v354_v15 = vmul.f32 %v297_v33, %v297_v33 }
  0xa8   :  { %327 = vadd.xlane.f32.xlu2 %v326_v39  ;;  %v199_v46 = vadd.f32 %v198_v43, %v57_v31  ;;  %v218_v47 = vadd.f32 %v217_v44, %v57_v31 }
  0xa9   :  { %vm266_vm8 = vcmp.ge.f32.partialorder %v234_v41, 0.0  ;;  %v282_v49 = vmul.f32 0.2, %v234_v41  ;;  %vm267_vm9 = vcmp.ge.f32.partialorder %v253_v42, 0.0  ;;  %v283_v50 = vmul.f32 0.2, %v253_v42 }
  0xaa   :  { %vm268_vm10 = vcmp.ge.f32.partialorder %v199_v46, 0.0  ;;  %v284_v51 = vmul.f32 0.2, %v199_v46  ;;  %vm269_vm11 = vcmp.ge.f32.partialorder %v218_v47, 0.0  ;;  %v285_v52 = vmul.f32 0.2, %v218_v47 }
  0xab   :  { %v298_v53 = vsel %vm266_vm8, %v234_v41, %v282_v49  ;;  %v670_v54 = vsel %vm267_vm9, %v253_v42, %v283_v50  ;;  %v367_v26 = vadd.f32 %v366_v9, %v352_v17  ;;  %v370_v32 = vadd.f32 %v354_v15, %v353_v2 }
  0xac   :  { %v300_v56 = vsel %vm268_vm10, %v199_v46, %v284_v51  ;;  %v301_v57 = vsel %vm269_vm11, %v218_v47, %v285_v52  ;;  %v311_v58 = vpack.c.bf16 %v670_v54, %v298_v53  ;;  %v330_v59 = vadd.f32 %v329_v48, %v298_v53 }
  0xad   :  { %v312_v60 = vpack.c.bf16 %v301_v57, %v300_v56  ;;  %v334_v10 = vadd.f32 %v301_v57, %v300_v56  ;;  %v355_v28 = vmul.f32 %v298_v53, %v298_v53  ;;  %v357_v35 = vmul.f32 %v300_v56, %v300_v56 }
  0xae   :  { %v236_v62 = vpop.f32.mrf.mxu2  ;;  %v255_v63 = vpop.f32.mrf.mxu3  ;;  %319 = vst [vmem:[%s728_s3 + $0x18] sm:$0xff] %v311_v58  ;;  %v331_v0 = vadd.f32 %v330_v59, %v670_v54  ;;  %v358_v36 = vmul.f32 %v301_v57, %v301_v57  ;;  %v356_v42 = vmul.f32 %v670_v54, %v670_v54 }
  0xaf   :  { %320 = vst [vmem:[%s728_s3 + $0x20] sm:$0xff] %v312_v60  ;;  %v237_v3 = vadd.f32 %v236_v62, %v57_v31  ;;  %v256_v4 = vadd.f32 %v255_v63, %v57_v31  ;;  %v200_v5 = vpop.f32.mrf.mxu0  ;;  %v219_v6 = vpop.f32.mrf.mxu1  ;;  %v371_v37 = vadd.f32 %v370_v32, %v355_v28 }
  0xb0   :  { %332 = vadd.xlane.f32.xlu2 %v331_v0  ;;  %v201_v7 = vadd.f32 %v200_v5, %v62_v61  ;;  %v220_v8 = vadd.f32 %v219_v6, %v62_v61  ;;  %v375_v46 = vadd.f32 %v358_v36, %v357_v35 }
  0xb1   :  { %vm270_vm12 = vcmp.ge.f32.partialorder %v237_v3, 0.0  ;;  %v286_v11 = vmul.f32 0.2, %v237_v3  ;;  %vm271_vm13 = vcmp.ge.f32.partialorder %v256_v4, 0.0  ;;  %v287_v12 = vmul.f32 0.2, %v256_v4 }
  0xb2   :  { %vm272_vm14 = vcmp.ge.f32.partialorder %v201_v7, 0.0  ;;  %v288_v13 = vmul.f32 0.2, %v201_v7  ;;  %vm273_vm15 = vcmp.ge.f32.partialorder %v220_v8, 0.0  ;;  %v289_v14 = vmul.f32 0.2, %v220_v8 }
  0xb3   :  { %v302_v16 = vsel %vm270_vm12, %v237_v3, %v286_v11  ;;  %v303_v18 = vsel %vm271_vm13, %v256_v4, %v287_v12  ;;  %v372_v44 = vadd.f32 %v371_v37, %v356_v42 }
  0xb4   :  { %v304_v19 = vsel %vm272_vm14, %v201_v7, %v288_v13  ;;  %v305_v20 = vsel %vm273_vm15, %v220_v8, %v289_v14  ;;  %v313_v21 = vpack.c.bf16 %v303_v18, %v302_v16  ;;  %v335_v22 = vadd.f32 %v334_v10, %v302_v16 }
  0xb5   :  { %v314_v23 = vpack.c.bf16 %v305_v20, %v304_v19  ;;  %v339_v31 = vadd.f32 %v305_v20, %v304_v19  ;;  %v359_v45 = vmul.f32 %v302_v16, %v302_v16  ;;  %v361_v47 = vmul.f32 %v304_v19, %v304_v19 }
  0xb6   :  { %v238_v24 = vpop.f32.mrf.mxu2  ;;  %v257_v25 = vpop.f32.mrf.mxu3  ;;  %321 = vst [vmem:[%s728_s3 + $0x28] sm:$0xff] %v313_v21  ;;  %v336_v27 = vadd.f32 %v335_v22, %v303_v18  ;;  %v362_v48 = vmul.f32 %v305_v20, %v305_v20  ;;  %v360_v49 = vmul.f32 %v303_v18, %v303_v18 }
  0xb7   :  { %322 = vst [vmem:[%s728_s3 + $0x30] sm:$0xff] %v314_v23  ;;  %v239_v29 = vadd.f32 %v238_v24, %v62_v61  ;;  %v258_v30 = vadd.f32 %v257_v25, %v62_v61  ;;  %v376_v50 = vadd.f32 %v375_v46, %v359_v45 }
  0xb8   :  { %368 = vadd.xlane.f32.xlu2 %v367_v26  ;;  %337 = vadd.xlane.f32.xlu0 %v336_v27  ;;  %v380_v53 = vadd.f32 %v362_v48, %v361_v47 }
  0xb9   :  { %vm274_vm0 = vcmp.ge.f32.partialorder %v239_v29, 0.0  ;;  %v290_v33 = vmul.f32 0.2, %v239_v29  ;;  %vm275_vm1 = vcmp.ge.f32.partialorder %v258_v30, 0.0  ;;  %v291_v34 = vmul.f32 0.2, %v258_v30 }
  0xba   :  { %v377_v51 = vadd.f32 %v376_v50, %v360_v49 }
  0xbb   :  { %v306_v38 = vsel %vm274_vm0, %v239_v29, %v290_v33  ;;  %v307_v39 = vsel %vm275_vm1, %v258_v30, %v291_v34 }
  0xbc   :  { %v315_v40 = vpack.c.bf16 %v307_v39, %v306_v38  ;;  %v340_v41 = vadd.f32 %v339_v31, %v306_v38  ;;  %v363_v52 = vmul.f32 %v306_v38, %v306_v38  ;;  %v364_v55 = vmul.f32 %v307_v39, %v307_v39 }
  0xbe   :  { %323 = vst [vmem:[%s728_s3 + $0x38] sm:$0xff] %v315_v40  ;;  %v341_v43 = vadd.f32 %v340_v41, %v307_v39  ;;  %v381_v54 = vadd.f32 %v380_v53, %v363_v52 }
  0xc0   :  { %342 = vadd.xlane.f32.xlu1 %v341_v43  ;;  %373 = vadd.xlane.f32.xlu2 %v372_v44  ;;  %v382_v56 = vadd.f32 %v381_v54, %v364_v55 }
  0xc8   :  { %378 = vadd.xlane.f32.xlu2 %v377_v51 }
  0xd0   :  { %383 = vadd.xlane.f32.xlu2 %v382_v56 }
 0x11b   :  { %v328_v57 = vpop.xlane.xlu2 %327 }
 0x11c   :  { %345 = vst.msk [vmem:[%s729_s4] sm:$0xff] %vm344_vm2, %v328_v57 }
 0x123   :  { %v333_v58 = vpop.xlane.xlu2 %332 }
 0x124   :  { %346 = vst.msk [vmem:[%s729_s4 + $0x8] sm:$0xff] %vm344_vm2, %v333_v58 }
 0x12b   :  { %v369_v59 = vpop.xlane.xlu2 %368  ;;  %v338_v60 = vpop.xlane.xlu0 %337 }
 0x12c   :  { %385 = vst.msk [vmem:[%s730_s5] sm:$0xff] %vm344_vm2, %v369_v59 }
 0x12d   :  { %347 = vst.msk [vmem:[%s729_s4 + $0x10] sm:$0xff] %vm344_vm2, %v338_v60 }
 0x133   :  { %v343_v61 = vpop.xlane.xlu1 %342  ;;  %v374_v62 = vpop.xlane.xlu2 %373 }
 0x134   :  { %348 = vst.msk [vmem:[%s729_s4 + $0x18] sm:$0xff] %vm344_vm2, %v343_v61 }
 0x135   :  { %386 = vst.msk [vmem:[%s730_s5 + $0x8] sm:$0xff] %vm344_vm2, %v374_v62 }
 0x13b   :  { %v379_v63 = vpop.xlane.xlu2 %378 }
 0x13c   :  { %387 = vst.msk [vmem:[%s730_s5 + $0x10] sm:$0xff] %vm344_vm2, %v379_v63 }
 0x143   :  { %v384_v0 = vpop.xlane.xlu2 %383 }
 0x144   :  { %388 = vst.msk [vmem:[%s730_s5 + $0x18] sm:$0xff] %vm344_vm2, %v384_v0 }

// kernel: mf_decoder_forward.15
= control target key start
LH: loop header
LB: loop body
LE: loop exit
PB: predicated region body
PF: predicated region fallthrough
CT: control target
= control target key end

     0   :  { %s1486_s18 = smov 0   ;;  %s1488_s19 = smov 0   ;;  %s1979_s0 = inlined_call_operand.vmem [shape: bf16[32,72], index: 0, kind: input, shape index: {}]   ;;  %s1980_s1 = inlined_call_operand.vmem [shape: bf16[72,2048], index: 1, kind: input, shape index: {}]   ;;  %s1981_s2 = inlined_call_operand.vmem [shape: f32[32,1], index: 2, kind: input, shape index: {}]   ;;  %s1982_s3 = inlined_call_operand.vmem [shape: bf16[32,2048], index: 3, kind: output, shape index: {0}]   ;;  %s1983_s4 = inlined_call_operand.vmem [shape: f32[2,32,1], index: 4, kind: output, shape index: {1}]   ;;  %s1984_s5 = inlined_call_operand.vmem [shape: f32[2,32,1], index: 5, kind: output, shape index: {2}]  }
   0x1   :  { %s1490_s20 = smov 0  }
   0x2 LB: > { %s1502_s21 = sadd.s32 4294967295, %s1453_s20   ;;  %s1505_s22 = sadd.s32 1, %s1453_s20   ;;  %s1453_s20 = sphi %s1490_s20, %s1988_s20   ;;  %s1449_s19 = sphi %s1488_s19, %s1987_s19   ;;  %s1445_s18 = sphi %s1486_s18, %s1986_s18  }
   0x3   : > { %s41_s23 = ssub.s32 %s1453_s20, %s1505_s22  ;;  %s44_s24 = sadd.s32 1, %s1449_s19 }
   0x4   : > { %p42_p0 = scmp.eq.s32.totalorder %s41_s23, 0  ;;  %p51_p1 = scmp.ne.s32.totalorder %s1449_s19, %s1445_s18 }
   0x5   : > { %p52_p2 = scmp.eq.s32.totalorder %s1453_s20, 0  ;;  %p102_p3 = scmp.eq.s32.totalorder %s1502_s21, 1 }
   0x6   : > { %s1515_s25 = scalar_select %p42_p0, %s1449_s19, %s44_s24  }
   0x7   : > { %p53_p4 = por %p52_p2, %p51_p1  ;;  %p1517_p5 = por %p102_p3, %p51_p1 }
   0x8   : > { %p1198_p6 = scmp.ge.s32.totalorder %s1453_s20, 2 }
   0xa   : > { %182 = sbr.rel (%p1198_p6) target bundleno = 55 (0x37), region = 24 }
   0xf   : > { %185 = sbr.rel (!%p53_p4) target bundleno = 55 (0x37), region = 28  ;;  %s187_s27 = sand.u32 (%p53_p4), 1, %s1449_s19  }
  0x10   : > { %s1364_s28 = sshll.u32 (%p53_p4), %s1453_s20, 5  ;;  %s1402_s29 = smul.u32 (%p53_p4), 288, %s187_s27 }
  0x11   : > { %s1527_s7 = scalar_lea.vmem (%p53_p4), %s1980_s1, %s1364_s28 }
  0x12   : > { %v205_v0 = vld [vmem:[%s1527_s7] sm:$0xff] (%p53_p4)  ;;  %v207_v1 = vld [vmem:[%s1527_s7 + $0x8] sm:$0xff] (%p53_p4)  ;;  %v209_v2 = vld [vmem:[%s1527_s7 + $0x10] sm:$0xff] (%p53_p4)  ;;  %s1532_s8 = scalar_lea.vmem (%p53_p4), [#allocation2], %s1402_s29 }
  0x13   : > { %206 = vst [vmem:[%s1532_s8] sm:$0xff] (%p53_p4), %v205_v0  ;;  %v211_v3 = vld [vmem:[%s1527_s7 + $0x18] sm:$0xff] (%p53_p4)  ;;  %v213_v4 = vld [vmem:[%s1527_s7 + $0x40] sm:$0xff] (%p53_p4)  ;;  %v215_v5 = vld [vmem:[%s1527_s7 + $0x48] sm:$0xff] (%p53_p4) }
  0x14   : > { %208 = vst [vmem:[%s1532_s8 + $0x8] sm:$0xff] %v207_v1  ;;  %v217_v6 = vld [vmem:[%s1527_s7 + $0x50] sm:$0xff]  ;;  %v219_v7 = vld [vmem:[%s1527_s7 + $0x58] sm:$0xff]  ;;  %v221_v8 = vld [vmem:[%s1527_s7 + $0x80] sm:$0xff] }
  0x15   : > { %210 = vst [vmem:[%s1532_s8 + $0x10] sm:$0xff] %v209_v2  ;;  %v223_v9 = vld [vmem:[%s1527_s7 + $0x88] sm:$0xff]  ;;  %v225_v10 = vld [vmem:[%s1527_s7 + $0x90] sm:$0xff]  ;;  %v227_v11 = vld [vmem:[%s1527_s7 + $0x98] sm:$0xff] }
  0x16   : > { %212 = vst [vmem:[%s1532_s8 + $0x18] sm:$0xff] %v211_v3  ;;  %v229_v12 = vld [vmem:[%s1527_s7 + $0xc0] sm:$0xff]  ;;  %v231_v13 = vld [vmem:[%s1527_s7 + $0xc8] sm:$0xff]  ;;  %v233_v14 = vld [vmem:[%s1527_s7 + $0xd0] sm:$0xff] }
  0x17   : > { %214 = vst [vmem:[%s1532_s8 + $0x20] sm:$0xff] %v213_v4  ;;  %v235_v15 = vld [vmem:[%s1527_s7 + $0xd8] sm:$0xff]  ;;  %v237_v16 = vld [vmem:[%s1527_s7 + $0x100] sm:$0xff]  ;;  %v239_v17 = vld [vmem:[%s1527_s7 + $0x108] sm:$0xff] }
  0x18   : > { %216 = vst [vmem:[%s1532_s8 + $0x28] sm:$0xff] %v215_v5  ;;  %v241_v18 = vld [vmem:[%s1527_s7 + $0x110] sm:$0xff]  ;;  %v243_v19 = vld [vmem:[%s1527_s7 + $0x118] sm:$0xff]  ;;  %v245_v20 = vld [vmem:[%s1527_s7 + $0x140] sm:$0xff] }
  0x19   : > { %218 = vst [vmem:[%s1532_s8 + $0x30] sm:$0xff] %v217_v6  ;;  %v247_v21 = vld [vmem:[%s1527_s7 + $0x148] sm:$0xff]  ;;  %v249_v22 = vld [vmem:[%s1527_s7 + $0x150] sm:$0xff]  ;;  %v251_v23 = vld [vmem:[%s1527_s7 + $0x158] sm:$0xff] }
  0x1a   : > { %220 = vst [vmem:[%s1532_s8 + $0x38] sm:$0xff] %v219_v7  ;;  %v253_v24 = vld [vmem:[%s1527_s7 + $0x180] sm:$0xff]  ;;  %v255_v25 = vld [vmem:[%s1527_s7 + $0x188] sm:$0xff]  ;;  %v257_v26 = vld [vmem:[%s1527_s7 + $0x190] sm:$0xff] }
  0x1b   : > { %222 = vst [vmem:[%s1532_s8 + $0x40] sm:$0xff] %v221_v8  ;;  %v259_v27 = vld [vmem:[%s1527_s7 + $0x198] sm:$0xff]  ;;  %v261_v28 = vld [vmem:[%s1527_s7 + $0x1c0] sm:$0xff]  ;;  %v263_v29 = vld [vmem:[%s1527_s7 + $0x1c8] sm:$0xff] }
  0x1c   : > { %224 = vst [vmem:[%s1532_s8 + $0x48] sm:$0xff] %v223_v9  ;;  %v265_v30 = vld [vmem:[%s1527_s7 + $0x1d0] sm:$0xff]  ;;  %v267_v31 = vld [vmem:[%s1527_s7 + $0x1d8] sm:$0xff]  ;;  %v269_v32 = vld [vmem:[%s1527_s7 + $0x200] sm:$0xff] }
  0x1d   : > { %226 = vst [vmem:[%s1532_s8 + $0x50] sm:$0xff] %v225_v10  ;;  %v271_v33 = vld [vmem:[%s1527_s7 + $0x208] sm:$0xff]  ;;  %v273_v34 = vld [vmem:[%s1527_s7 + $0x210] sm:$0xff]  ;;  %v275_v35 = vld [vmem:[%s1527_s7 + $0x218] sm:$0xff] }
  0x1e   : > { %228 = vst [vmem:[%s1532_s8 + $0x58] sm:$0xff] %v227_v11 }
  0x1f   : > { %230 = vst [vmem:[%s1532_s8 + $0x60] sm:$0xff] %v229_v12 }
  0x20   : > { %232 = vst [vmem:[%s1532_s8 + $0x68] sm:$0xff] %v231_v13 }
  0x21   : > { %234 = vst [vmem:[%s1532_s8 + $0x70] sm:$0xff] %v233_v14 }
  0x22   : > { %236 = vst [vmem:[%s1532_s8 + $0x78] sm:$0xff] %v235_v15 }
  0x23   : > { %238 = vst [vmem:[%s1532_s8 + $0x80] sm:$0xff] %v237_v16 }
  0x24   : > { %240 = vst [vmem:[%s1532_s8 + $0x88] sm:$0xff] %v239_v17 }
  0x25   : > { %242 = vst [vmem:[%s1532_s8 + $0x90] sm:$0xff] %v241_v18 }
  0x26   : > { %244 = vst [vmem:[%s1532_s8 + $0x98] sm:$0xff] %v243_v19 }
  0x27   : > { %246 = vst [vmem:[%s1532_s8 + $0xa0] sm:$0xff] %v245_v20 }
  0x28   : > { %248 = vst [vmem:[%s1532_s8 + $0xa8] sm:$0xff] %v247_v21 }
  0x29   : > { %250 = vst [vmem:[%s1532_s8 + $0xb0] sm:$0xff] %v249_v22 }
  0x2a   : > { %252 = vst [vmem:[%s1532_s8 + $0xb8] sm:$0xff] %v251_v23 }
  0x2b   : > { %254 = vst [vmem:[%s1532_s8 + $0xc0] sm:$0xff] %v253_v24 }
  0x2c   : > { %256 = vst [vmem:[%s1532_s8 + $0xc8] sm:$0xff] %v255_v25 }
  0x2d   : > { %258 = vst [vmem:[%s1532_s8 + $0xd0] sm:$0xff] %v257_v26 }
  0x2e   : > { %260 = vst [vmem:[%s1532_s8 + $0xd8] sm:$0xff] %v259_v27 }
  0x2f   : > { %262 = vst [vmem:[%s1532_s8 + $0xe0] sm:$0xff] %v261_v28 }
  0x30   : > { %264 = vst [vmem:[%s1532_s8 + $0xe8] sm:$0xff] %v263_v29 }
  0x31   : > { %266 = vst [vmem:[%s1532_s8 + $0xf0] sm:$0xff] %v265_v30 }
  0x32   : > { %268 = vst [vmem:[%s1532_s8 + $0xf8] sm:$0xff] %v267_v31 }
  0x33   : > { %270 = vst [vmem:[%s1532_s8 + $0x100] sm:$0xff] %v269_v32 }
  0x34   : > { %272 = vst [vmem:[%s1532_s8 + $0x108] sm:$0xff] %v271_v33 }
  0x35   : > { %274 = vst [vmem:[%s1532_s8 + $0x110] sm:$0xff] %v273_v34 }
  0x36   : > { %276 = vst [vmem:[%s1532_s8 + $0x118] sm:$0xff] %v275_v35 }
  0x37 PF: > { %p1201_p7 = scmp.ge.s32.totalorder %s1453_s20, 1  ;;  %p281_p8 = scmp.lt.s32.totalorder %s1453_s20, 3 }
  0x39   : > { %p282_p9 = pnand %p1201_p7, %p281_p8 }
  0x3a   : > { %s288_s9 = sand.u32 (!%p282_p9), 1, %s1445_s18   ;;  %p326_p10 = scmp.lt.s32.totalorder (!%p282_p9), %s1502_s21, 1 }
  0x3b   : > { %285 = sbr.rel (%p282_p9) target bundleno = 419 (0x1a3), region = 51  ;;  %s1202_s30 = sshll.u32 (!%p282_p9), %s288_s9, 7 }
  0x3c   : > { %s1403_s10 = smul.u32 (!%p282_p9), 288, %s288_s9  ;;  %s1744_s6 = scalar_lea.vmem (!%p282_p9), [#allocation3], %s1202_s30 }
  0x3e   : > { %s1611_s13 = scalar_lea.vmem (!%p282_p9), [#allocation2], %s1403_s10 }
  0x40   : > { %v377_v36 = vld [vmem:[%s1981_s2] sm:$0xff]  ;;  %v374_v38 = vld [vmem:[%s1611_s13 + $0x108] sm:$0xff]  ;;  %v1455_v39 = vmov 0   ;;  %vm598_vm0 = vcmask 1043456   ;;  %v376_v20 = vld [vmem:[%s1611_s13 + $0x118] sm:$0xff]  ;;  %vm591_vm1 = vcmask 588800  }
  0x41   : > { %v373_v37 = vld [vmem:[%s1611_s13 + $0x100] sm:$0xff]  ;;  %1429 = vset.pattern.permute.xlu0 %v1455_v39  ;;  %1430 = vset.pattern.permute.xlu1 %v1455_v39  ;;  %v513_v42 = vunpack.c.l.b16 %v374_v38  ;;  %v514_v43 = vunpack.c.h.b16 %v374_v38  ;;  %v1321_v52 = vld [vmem:[%s1611_s13 + $0xc8] sm:$0xf]  ;;  %v1394_v54 = vld [vmem:[%s1611_s13 + $0xcc] sm:$0xf]  ;;  %v517_v22 = vunpack.c.l.b16 %v376_v20  ;;  %s327_s18 = scalar_select %p326_p10, %s1502_s21, 1 }
  0x42   : > { %v511_v40 = vunpack.c.l.b16 %v373_v37  ;;  %v512_v41 = vunpack.c.h.b16 %v373_v37  ;;  %383 = vperm.xlu0 %1429, %v377_v36   ;;  %v1313_v44 = vld [vmem:[%s1611_s13 + $0xc0] sm:$0xf]  ;;  %v1393_v50 = vld [vmem:[%s1611_s13 + $0xc4] sm:$0xf]  ;;  %v1398_v53 = vld [vmem:[%s1611_s13 + $0xe4] sm:$0xf0]  ;;  %v518_v36 = vunpack.c.h.b16 %v376_v20 }
  0x43   : > { %v1397_v45 = vld [vmem:[%s1611_s13 + $0xdc] sm:$0xf0]  ;;  %v553_v48 = vpack.c.b16 %v513_v42, %v513_v42  ;;  %v554_v49 = vpack.c.b16 %v514_v43, %v514_v43  ;;  %v1315_v51 = vld [vmem:[%s1611_s13 + $0xe0] sm:$0xf0]  ;;  %v1323_v55 = vld [vmem:[%s1611_s13 + $0xe8] sm:$0xf0]  ;;  %v1322_v0 = vor.u32 %v1398_v53, %v1321_v52  ;;  %v557_v38 = vpack.c.b16 %v517_v22, %v517_v22 }
  0x44   : > { %v551_v46 = vpack.c.b16 %v511_v40, %v511_v40  ;;  %v552_v47 = vpack.c.b16 %v512_v41, %v512_v41  ;;  %v1314_v60 = vor.u32 %v1397_v45, %v1313_v44  ;;  %v1318_v61 = vor.u32 %v1393_v50, %v1315_v51  ;;  %v1281_v62 = vld [vmem:[%s1611_s13 + $0x80] sm:$0xf]  ;;  %v1385_v2 = vld [vmem:[%s1611_s13 + $0x84] sm:$0xf]  ;;  %v1289_v4 = vld [vmem:[%s1611_s13 + $0x88] sm:$0xf] }
  0x45   : > { %v606_v58 = vsel %vm598_vm0, %v553_v48, 0  ;;  %v609_v59 = vsel %vm598_vm0, %v554_v49, 0  ;;  %v1389_v63 = vld [vmem:[%s1611_s13 + $0x9c] sm:$0xf0]  ;;  %v1326_v1 = vor.u32 %v1394_v54, %v1323_v55  ;;  %v1283_v3 = vld [vmem:[%s1611_s13 + $0xa0] sm:$0xf0] }
  0x46   : > { %v600_v56 = vsel %vm598_vm0, %v551_v46, 0  ;;  %v603_v57 = vsel %vm598_vm0, %v552_v47, 0  ;;  %664 = vmatpush.bf16.msra.mxu2 %v606_v58  ;;  %683 = vmatpush.bf16.msra.mxu3 %v609_v59  ;;  %v1390_v5 = vld [vmem:[%s1611_s13 + $0xa4] sm:$0xf0]  ;;  %v1386_v6 = vld [vmem:[%s1611_s13 + $0x8c] sm:$0xf]  ;;  %v1282_v9 = vor.u32 %v1389_v63, %v1281_v62  ;;  %v1286_v10 = vor.u32 %v1385_v2, %v1283_v3 }
  0x47   : > { %626 = vmatpush.bf16.msra.mxu0 %v600_v56  ;;  %645 = vmatpush.bf16.msra.mxu1 %v603_v57  ;;  %v1291_v7 = vld [vmem:[%s1611_s13 + $0xa8] sm:$0xf0]  ;;  %v1249_v8 = vld [vmem:[%s1611_s13 + $0x40] sm:$0xf]  ;;  %v1377_v12 = vld [vmem:[%s1611_s13 + $0x44] sm:$0xf]  ;;  %v1290_v14 = vor.u32 %v1390_v5, %v1289_v4  ;;  %v558_v46 = vpack.c.b16 %v518_v36, %v518_v36 }
  0x48   : > { %v1381_v11 = vld [vmem:[%s1611_s13 + $0x5c] sm:$0xf0]  ;;  %v1251_v13 = vld [vmem:[%s1611_s13 + $0x60] sm:$0xf0]  ;;  %v1294_v15 = vor.u32 %v1386_v6, %v1291_v7  ;;  %v1257_v16 = vld [vmem:[%s1611_s13 + $0x48] sm:$0xf] }
  0x49   : > { %v1382_v17 = vld [vmem:[%s1611_s13 + $0x64] sm:$0xf0]  ;;  %v1378_v18 = vld [vmem:[%s1611_s13 + $0x4c] sm:$0xf]  ;;  %v375_v21 = vld [vmem:[%s1611_s13 + $0x110] sm:$0xff]  ;;  %v1250_v24 = vor.u32 %v1381_v11, %v1249_v8  ;;  %v1254_v25 = vor.u32 %v1377_v12, %v1251_v13  ;;  %v618_v50 = vsel %vm598_vm0, %v557_v38, 0 }
  0x4a   : > { %665 = vmatpush.bf16.msra.mxu2 %v1322_v0  ;;  %684 = vmatpush.bf16.msra.mxu3 %v1326_v1  ;;  %v1259_v19 = vld [vmem:[%s1611_s13 + $0x68] sm:$0xf0]  ;;  %v515_v23 = vunpack.c.l.b16 %v375_v21  ;;  %v1217_v26 = vld [vmem:[%s1611_s13] sm:$0xf]  ;;  %v1258_v28 = vor.u32 %v1382_v17, %v1257_v16  ;;  %v1369_v30 = vld [vmem:[%s1611_s13 + $0x4] sm:$0xf]  ;;  %v516_v37 = vunpack.c.h.b16 %v375_v21 }
  0x4b   : > { %627 = vmatpush.bf16.msra.mxu0 %v1314_v60  ;;  %646 = vmatpush.bf16.msra.mxu1 %v1318_v61  ;;  %v1373_v27 = vld [vmem:[%s1611_s13 + $0x1c] sm:$0xf0]  ;;  %v1262_v29 = vor.u32 %v1378_v18, %v1259_v19  ;;  %v1219_v31 = vld [vmem:[%s1611_s13 + $0x20] sm:$0xf0]  ;;  %v1225_v32 = vld [vmem:[%s1611_s13 + $0x8] sm:$0xf] }
  0x4c   : > { %v1374_v33 = vld [vmem:[%s1611_s13 + $0x24] sm:$0xf0]  ;;  %v1370_v34 = vld [vmem:[%s1611_s13 + $0xc] sm:$0xf]  ;;  %v555_v39 = vpack.c.b16 %v515_v23, %v515_v23  ;;  %v1218_v40 = vor.u32 %v1373_v27, %v1217_v26  ;;  %v1222_v41 = vor.u32 %v1369_v30, %v1219_v31  ;;  %v1659_v45 = vld [vmem:[%s1979_s0] sm:$0xff]  ;;  %v556_v47 = vpack.c.b16 %v516_v37, %v516_v37  ;;  %s1365_s7 = sshll.u32 %s327_s18, 5 }
  0x4d   : > { %v1227_v35 = vld [vmem:[%s1611_s13 + $0x28] sm:$0xf0]  ;;  %v1226_v43 = vor.u32 %v1374_v33, %v1225_v32  ;;  %v1337_v48 = vld [vmem:[%s1611_s13 + $0xd8] sm:$0xf]  ;;  %v1329_v52 = vld [vmem:[%s1611_s13 + $0xd0] sm:$0xf]  ;;  %s330_s10 = scalar_lea.vmem %s1983_s4, %s1365_s7 }
  0x4e   : > { %666 = vmatpush.bf16.msra.mxu2 %v1290_v14  ;;  %685 = vmatpush.bf16.msra.mxu3 %v1294_v15  ;;  %v378_v42 = vld [vmem:[%s1981_s2 + $0x8] sm:$0xff]  ;;  %v1230_v44 = vor.u32 %v1370_v34, %v1227_v35  ;;  %v1400_v49 = vld [vmem:[%s1611_s13 + $0xf4] sm:$0xf0]  ;;  %v612_v51 = vsel %vm598_vm0, %v555_v39, 0  ;;  %v1399_v53 = vld [vmem:[%s1611_s13 + $0xec] sm:$0xf0] }
  0x4f   : > { %628 = vmatpush.bf16.msra.mxu0 %v1282_v9  ;;  %647 = vmatpush.bf16.msra.mxu1 %v1286_v10  ;;  %v1396_v54 = vld [vmem:[%s1611_s13 + $0xdc] sm:$0xf]  ;;  %v1395_v56 = vld [vmem:[%s1611_s13 + $0xd4] sm:$0xf]  ;;  %v621_v57 = vsel %vm598_vm0, %v558_v46, 0  ;;  %v615_v58 = vsel %vm598_vm0, %v556_v47, 0  ;;  %v1338_v59 = vor.u32 %v1400_v49, %v1337_v48  ;;  %v1330_v60 = vor.u32 %v1399_v53, %v1329_v52 }
  0x50   : > { %388 = vperm.xlu0 %1429, %v378_v42   ;;  %v1339_v55 = vld [vmem:[%s1611_s13 + $0xf8] sm:$0xf0]  ;;  %v1331_v61 = vld [vmem:[%s1611_s13 + $0xf0] sm:$0xf0]  ;;  %v1305_v62 = vld [vmem:[%s1611_s13 + $0x98] sm:$0xf] }
  0x51   : > { %v1392_v63 = vld [vmem:[%s1611_s13 + $0xb4] sm:$0xf0]  ;;  %v1297_v0 = vld [vmem:[%s1611_s13 + $0x90] sm:$0xf]  ;;  %v1342_v3 = vor.u32 %v1396_v54, %v1339_v55  ;;  %v1334_v4 = vor.u32 %v1395_v56, %v1331_v61  ;;  %v1388_v5 = vld [vmem:[%s1611_s13 + $0x9c] sm:$0xf] }
  0x52   : > { %667 = vmatpush.bf16.msra.mxu2 %v1258_v28  ;;  %686 = vmatpush.bf16.msra.mxu3 %v1262_v29  ;;  %v1391_v1 = vld [vmem:[%s1611_s13 + $0xac] sm:$0xf0]  ;;  %v1307_v6 = vld [vmem:[%s1611_s13 + $0xb8] sm:$0xf0]  ;;  %v1306_v7 = vor.u32 %v1392_v63, %v1305_v62  ;;  %v1387_v9 = vld [vmem:[%s1611_s13 + $0x94] sm:$0xf] }
  0x53   : > { %629 = vmatpush.bf16.msra.mxu0 %v1250_v24  ;;  %648 = vmatpush.bf16.msra.mxu1 %v1254_v25  ;;  %v379_v2 = vld [vmem:[%s1981_s2 + $0x10] sm:$0xff]  ;;  %v1298_v8 = vor.u32 %v1391_v1, %v1297_v0  ;;  %v1273_v11 = vld [vmem:[%s1611_s13 + $0x58] sm:$0xf]  ;;  %v1310_v15 = vor.u32 %v1388_v5, %v1307_v6  ;;  %v1380_v17 = vld [vmem:[%s1611_s13 + $0x5c] sm:$0xf]  ;;  %s1401_s14 = sshll.u32 (%p1517_p5), %s1502_s21, 5 }
  0x54   : > { %v1299_v10 = vld [vmem:[%s1611_s13 + $0xb0] sm:$0xf0]  ;;  %v1384_v12 = vld [vmem:[%s1611_s13 + $0x74] sm:$0xf0]  ;;  %v1265_v13 = vld [vmem:[%s1611_s13 + $0x50] sm:$0xf]  ;;  %393 = vperm.xlu1 %1430, %v379_v2   ;;  %s1035_s17 = scalar_lea.vmem (%p1517_p5), %s1982_s3, %s1401_s14 }
  0x55   : > { %v1383_v14 = vld [vmem:[%s1611_s13 + $0x6c] sm:$0xf0]  ;;  %v1302_v16 = vor.u32 %v1387_v9, %v1299_v10  ;;  %v1275_v18 = vld [vmem:[%s1611_s13 + $0x78] sm:$0xf0]  ;;  %v1274_v19 = vor.u32 %v1384_v12, %v1273_v11  ;;  %v1379_v21 = vld [vmem:[%s1611_s13 + $0x54] sm:$0xf] }
  0x56   : > { %668 = vmatpush.bf16.msra.mxu2 %v1226_v43  ;;  %687 = vmatpush.bf16.msra.mxu3 %v1230_v44  ;;  %v1266_v20 = vor.u32 %v1383_v14, %v1265_v13  ;;  %v1267_v22 = vld [vmem:[%s1611_s13 + $0x70] sm:$0xf0]  ;;  %v1241_v23 = vld [vmem:[%s1611_s13 + $0x18] sm:$0xf]  ;;  %v1233_v25 = vld [vmem:[%s1611_s13 + $0x10] sm:$0xf]  ;;  %v1278_v28 = vor.u32 %v1380_v17, %v1275_v18 }
  0x57   : > { %630 = vmatpush.bf16.msra.mxu0 %v1218_v40  ;;  %649 = vmatpush.bf16.msra.mxu1 %v1222_v41  ;;  %v1376_v24 = vld [vmem:[%s1611_s13 + $0x34] sm:$0xf0]  ;;  %v1375_v26 = vld [vmem:[%s1611_s13 + $0x2c] sm:$0xf0]  ;;  %v1270_v29 = vor.u32 %v1379_v21, %v1267_v22  ;;  %v1372_v30 = vld [vmem:[%s1611_s13 + $0x1c] sm:$0xf] }
  0x58   : > { %v380_v27 = vld [vmem:[%s1981_s2 + $0x18] sm:$0xff]  ;;  %v1242_v31 = vor.u32 %v1376_v24, %v1241_v23  ;;  %v1234_v32 = vor.u32 %v1375_v26, %v1233_v25  ;;  %v1371_v34 = vld [vmem:[%s1611_s13 + $0x14] sm:$0xf]  ;;  %v1368_v36 = vld [vmem:[%s1979_s0 + $0x8] sm:$0xff] }
  0x59   : > { %1347 = vmatmul.msk.bf16.vlgmr.msra.gmra.mxu2 %vm591_vm1, %v1659_v45  ;;  %1349 = vmatmul.msk.bf16.vlgmr.msra.gmra.mxu3 %vm591_vm1, %v1659_v45  ;;  %v1243_v33 = vld [vmem:[%s1611_s13 + $0x38] sm:$0xf0]  ;;  %v1235_v35 = vld [vmem:[%s1611_s13 + $0x30] sm:$0xf0]  ;;  %s335_s13 = scalar_lea.vmem %s1984_s5, %s1365_s7 }
  0x5a   : > { %740 = vmatpush.bf16.msrb.mxu2 %v618_v50  ;;  %1343 = vmatmul.msk.bf16.vlgmr.msra.gmra.mxu0 %vm591_vm1, %v1659_v45  ;;  %v1246_v37 = vor.u32 %v1372_v30, %v1243_v33  ;;  %v1238_v38 = vor.u32 %v1371_v34, %v1235_v35 }
  0x5b   : > { %702 = vmatpush.bf16.msrb.mxu0 %v612_v51  ;;  %1345 = vmatmul.msk.bf16.vlgmr.msra.gmra.mxu1 %vm591_vm1, %v1659_v45 }
  0x5c   : > { %759 = vmatpush.bf16.msrb.mxu3 %v621_v57  ;;  %721 = vmatpush.bf16.msrb.mxu1 %v615_v58 }
  0x5d   : > { %398 = vperm.xlu1 %1430, %v380_v27  }
  0x5e   : > { %741 = vmatpush.bf16.msrb.mxu2 %v1338_v59 }
  0x5f   : > { %703 = vmatpush.bf16.msrb.mxu0 %v1330_v60 }
  0x60   : > { %760 = vmatpush.bf16.msrb.mxu3 %v1342_v3  ;;  %722 = vmatpush.bf16.msrb.mxu1 %v1334_v4 }
  0x62   : > { %742 = vmatpush.bf16.msrb.mxu2 %v1306_v7 }
  0x63   : > { %704 = vmatpush.bf16.msrb.mxu0 %v1298_v8 }
  0x64   : > { %761 = vmatpush.bf16.msrb.mxu3 %v1310_v15  ;;  %723 = vmatpush.bf16.msrb.mxu1 %v1302_v16 }
  0x66   : > { %743 = vmatpush.bf16.msrb.mxu2 %v1274_v19 }
  0x67   : > { %705 = vmatpush.bf16.msrb.mxu0 %v1266_v20 }
  0x68   : > { %762 = vmatpush.bf16.msrb.mxu3 %v1278_v28  ;;  %724 = vmatpush.bf16.msrb.mxu1 %v1270_v29 }
  0x69   : > { %1348 = vmatmul.msk.bf16.gmra.mxu2 %vm591_vm1, %v1368_v36  ;;  %1350 = vmatmul.msk.bf16.gmra.mxu3 %vm591_vm1, %v1368_v36 }
  0x6a   : > { %744 = vmatpush.bf16.msrb.mxu2 %v1242_v31  ;;  %1344 = vmatmul.msk.bf16.gmra.mxu0 %vm591_vm1, %v1368_v36 }
  0x6b   : > { %706 = vmatpush.bf16.msrb.mxu0 %v1234_v32  ;;  %1346 = vmatmul.msk.bf16.gmra.mxu1 %vm591_vm1, %v1368_v36 }
  0x6c   : > { %763 = vmatpush.bf16.msrb.mxu3 %v1246_v37  ;;  %725 = vmatpush.bf16.msrb.mxu1 %v1238_v38 }
  0x79   : > { %1355 = vmatmul.msk.bf16.vlgmr.msrb.gmra.mxu2 %vm591_vm1, %v1659_v45  ;;  %1357 = vmatmul.msk.bf16.vlgmr.msrb.gmra.mxu3 %vm591_vm1, %v1659_v45 }
  0x7a   : > { %1351 = vmatmul.msk.bf16.vlgmr.msrb.gmra.mxu0 %vm591_vm1, %v1659_v45 }
  0x7b   : > { %1353 = vmatmul.msk.bf16.vlgmr.msrb.gmra.mxu1 %vm591_vm1, %v1659_v45 }
  0x89   : > { %1356 = vmatmul.msk.bf16.gmra.mxu2 %vm591_vm1, %v1368_v36  ;;  %1358 = vmatmul.msk.bf16.gmra.mxu3 %vm591_vm1, %v1368_v36 }
  0x8a   : > { %1352 = vmatmul.msk.bf16.gmra.mxu0 %vm591_vm1, %v1368_v36 }
  0x8b   : > { %1354 = vmatmul.msk.bf16.gmra.mxu1 %vm591_vm1, %v1368_v36 }
  0xb4   : > { %v1730_v39 = vpop.permute.xlu0 %383 }
  0xc2   : > { %v1742_v49 = vpop.permute.xlu0 %388 }
  0xc6   : > { %v1755_v0 = vpop.permute.xlu1 %393 }
  0xcf   : > { %v1781_v22 = vpop.permute.xlu1 %398 }
  0xd7   : > { %v632_v40 = vpop.f32.mrf.mxu0 }
  0xd8   : > { %v651_v41 = vpop.f32.mrf.mxu1  ;;  %v633_v42 = vadd.f32 %v632_v40, %v1730_v39 }
  0xd9   : > { %v652_v43 = vadd.f32 %v651_v41, %v1730_v39 }
  0xda   : > { %vm775_vm2 = vcmp.ge.f32.partialorder %v633_v42, 0.0  ;;  %v807_v44 = vmul.f32 0.2, %v633_v42 }
  0xdb   : > { %vm776_vm3 = vcmp.ge.f32.partialorder %v652_v43, 0.0  ;;  %v808_v45 = vmul.f32 0.2, %v652_v43 }
  0xdc   : > { %v1736_v46 = vsel %vm775_vm2, %v633_v42, %v807_v44  ;;  %v670_v50 = vpop.f32.mrf.mxu2  ;;  %v689_v51 = vpop.f32.mrf.mxu3 }
  0xdd   : > { %v1738_v47 = vsel %vm776_vm3, %v652_v43, %v808_v45  ;;  %v671_v52 = vadd.f32 %v670_v50, %v1730_v39  ;;  %v690_v53 = vadd.f32 %v689_v51, %v1730_v39  ;;  %v944_v43 = vmul.f32 %v1736_v46, %v1736_v46 }
  0xde   : > { %v871_v48 = vpack.c.bf16 %v1738_v47, %v1736_v46  ;;  %v903_v40 = vadd.f32 %v1738_v47, %v1736_v46  ;;  %v945_v50 = vmul.f32 %v1738_v47, %v1738_v47 }
  0xdf   : > { %v634_v54 = vpop.f32.mrf.mxu0  ;;  %vm777_vm4 = vcmp.ge.f32.partialorder %v671_v52, 0.0  ;;  %v809_v58 = vmul.f32 0.2, %v671_v52  ;;  %vm778_vm5 = vcmp.ge.f32.partialorder %v690_v53, 0.0  ;;  %v810_v59 = vmul.f32 0.2, %v690_v53 }
  0xe0   : > { %887 = vst [vmem:[%s1744_s6] sm:$0xff] %v871_v48  ;;  %v653_v55 = vpop.f32.mrf.mxu1  ;;  %v635_v56 = vadd.f32 %v634_v54, %v1742_v49 }
  0xe1   : > { %v654_v57 = vadd.f32 %v653_v55, %v1742_v49  ;;  %v1751_v62 = vsel %vm777_vm4, %v671_v52, %v809_v58  ;;  %v1753_v63 = vsel %vm778_vm5, %v690_v53, %v810_v59 }
  0xe2   : > { %vm783_vm6 = vcmp.ge.f32.partialorder %v635_v56, 0.0  ;;  %v815_v60 = vmul.f32 0.2, %v635_v56  ;;  %v872_v1 = vpack.c.bf16 %v1753_v63, %v1751_v62  ;;  %v904_v51 = vadd.f32 %v903_v40, %v1751_v62 }
  0xe3   : > { %vm784_vm7 = vcmp.ge.f32.partialorder %v654_v57, 0.0  ;;  %v816_v61 = vmul.f32 0.2, %v654_v57  ;;  %v946_v46 = vmul.f32 %v1751_v62, %v1751_v62 }
  0xe4   : > { %v1759_v2 = vsel %vm783_vm6, %v635_v56, %v815_v60  ;;  %888 = vst [vmem:[%s1744_s6 + $0x8] sm:$0xff] %v872_v1  ;;  %v672_v5 = vpop.f32.mrf.mxu2  ;;  %v691_v6 = vpop.f32.mrf.mxu3 }
  0xe5   : > { %v1761_v3 = vsel %vm784_vm7, %v654_v57, %v816_v61  ;;  %v673_v7 = vadd.f32 %v672_v5, %v1742_v49  ;;  %v692_v8 = vadd.f32 %v691_v6, %v1742_v49  ;;  %v952_v56 = vmul.f32 %v1759_v2, %v1759_v2 }
  0xe6   : > { %v875_v4 = vpack.c.bf16 %v1761_v3, %v1759_v2  ;;  %v953_v58 = vmul.f32 %v1761_v3, %v1761_v3 }
  0xe7   : > { %v637_v9 = vpop.f32.mrf.mxu0  ;;  %vm785_vm8 = vcmp.ge.f32.partialorder %v673_v7, 0.0  ;;  %v817_v13 = vmul.f32 0.2, %v673_v7  ;;  %vm786_vm9 = vcmp.ge.f32.partialorder %v692_v8, 0.0  ;;  %v818_v14 = vmul.f32 0.2, %v692_v8 }
  0xe8   : > { %v656_v10 = vpop.f32.mrf.mxu1  ;;  %891 = vst [vmem:[%s1744_s6 + $0x20] sm:$0xff] %v875_v4  ;;  %v638_v11 = vadd.f32 %v637_v9, %v1755_v0  ;;  %v976_v4 = vadd.f32 %v945_v50, %v944_v43 }
  0xe9   : > { %v657_v12 = vadd.f32 %v656_v10, %v1755_v0  ;;  %v1771_v16 = vsel %vm785_vm8, %v673_v7, %v817_v13  ;;  %v1773_v18 = vsel %vm786_vm9, %v692_v8, %v818_v14  ;;  %v947_v7 = vmul.f32 %v1753_v63, %v1753_v63 }
  0xea   : > { %vm791_vm10 = vcmp.ge.f32.partialorder %v638_v11, 0.0  ;;  %v823_v15 = vmul.f32 0.2, %v638_v11  ;;  %v876_v20 = vpack.c.bf16 %v1773_v18, %v1771_v16  ;;  %v912_v8 = vadd.f32 %v1761_v3, %v1759_v2 }
  0xeb   : > { %vm792_vm11 = vcmp.ge.f32.partialorder %v657_v12, 0.0  ;;  %v824_v17 = vmul.f32 0.2, %v657_v12  ;;  %v985_v13 = vadd.f32 %v953_v58, %v952_v56 }
  0xec   : > { %v1775_v19 = vsel %vm791_vm10, %v638_v11, %v823_v15  ;;  %v675_v24 = vpop.f32.mrf.mxu2  ;;  %v694_v25 = vpop.f32.mrf.mxu3  ;;  %892 = vst [vmem:[%s1744_s6 + $0x28] sm:$0xff] %v876_v20  ;;  %v977_v11 = vadd.f32 %v976_v4, %v946_v46  ;;  %v913_v20 = vadd.f32 %v912_v8, %v1771_v16 }
  0xed   : > { %v1779_v21 = vsel %vm792_vm11, %v657_v12, %v824_v17  ;;  %v676_v26 = vadd.f32 %v675_v24, %v1755_v0  ;;  %v695_v27 = vadd.f32 %v694_v25, %v1755_v0  ;;  %v905_v12 = vadd.f32 %v904_v51, %v1753_v63 }
  0xee   : > { %v879_v23 = vpack.c.bf16 %v1779_v21, %v1775_v19  ;;  %v921_v63 = vadd.f32 %v1779_v21, %v1775_v19  ;;  %v955_v51 = vmul.f32 %v1773_v18, %v1773_v18 }
  0xef   : > { %v639_v28 = vpop.f32.mrf.mxu0  ;;  %vm793_vm12 = vcmp.ge.f32.partialorder %v676_v26, 0.0  ;;  %v825_v32 = vmul.f32 0.2, %v676_v26  ;;  %vm794_vm13 = vcmp.ge.f32.partialorder %v695_v27, 0.0  ;;  %v826_v33 = vmul.f32 0.2, %v695_v27 }
  0xf0   : > { %v658_v29 = vpop.f32.mrf.mxu1  ;;  %895 = vst [vmem:[%s1744_s6 + $0x40] sm:$0xff] %v879_v23  ;;  %v640_v30 = vadd.f32 %v639_v28, %v1781_v22  ;;  %v954_v23 = vmul.f32 %v1771_v16, %v1771_v16 }
  0xf1   : > { %v659_v31 = vadd.f32 %v658_v29, %v1781_v22  ;;  %v1791_v35 = vsel %vm793_vm12, %v676_v26, %v825_v32  ;;  %v1793_v37 = vsel %vm794_vm13, %v695_v27, %v826_v33 }
  0xf2   : > { %vm799_vm14 = vcmp.ge.f32.partialorder %v640_v30, 0.0  ;;  %v831_v34 = vmul.f32 0.2, %v640_v30  ;;  %v880_v41 = vpack.c.bf16 %v1793_v37, %v1791_v35  ;;  %v922_v32 = vadd.f32 %v921_v63, %v1791_v35 }
  0xf3   : > { %vm800_vm15 = vcmp.ge.f32.partialorder %v659_v31, 0.0  ;;  %v832_v36 = vmul.f32 0.2, %v659_v31  ;;  %v986_v50 = vadd.f32 %v985_v13, %v954_v23 }
  0xf4   : > { %v1795_v38 = vsel %vm799_vm14, %v640_v30, %v831_v34  ;;  %v677_v45 = vpop.f32.mrf.mxu2  ;;  %v696_v48 = vpop.f32.mrf.mxu3  ;;  %896 = vst [vmem:[%s1744_s6 + $0x48] sm:$0xff] %v880_v41  ;;  %v923_v46 = vadd.f32 %v922_v32, %v1793_v37 }
  0xf5   : > { %v1801_v42 = vsel %vm800_vm15, %v659_v31, %v832_v36  ;;  %v678_v52 = vadd.f32 %v677_v45, %v1781_v22  ;;  %v697_v53 = vadd.f32 %v696_v48, %v1781_v22 }
  0xf6   : > { %v883_v44 = vpack.c.bf16 %v1801_v42, %v1795_v38 }
  0xf7   : > { %v708_v54 = vpop.f32.mrf.mxu0  ;;  %vm801_vm0 = vcmp.ge.f32.partialorder %v678_v52, 0.0  ;;  %v833_v59 = vmul.f32 0.2, %v678_v52  ;;  %vm802_vm1 = vcmp.ge.f32.partialorder %v697_v53, 0.0  ;;  %v834_v60 = vmul.f32 0.2, %v697_v53 }
  0xf8   : > { %v727_v55 = vpop.f32.mrf.mxu1  ;;  %899 = vst [vmem:[%s1744_s6 + $0x60] sm:$0xff] %v883_v44  ;;  %v709_v57 = vadd.f32 %v708_v54, %v1730_v39  ;;  %v978_v44 = vadd.f32 %v977_v11, %v947_v7 }
  0xf9   : > { %v728_v47 = vadd.f32 %v727_v55, %v1730_v39  ;;  %v1822_v1 = vsel %vm801_vm0, %v678_v52, %v833_v59  ;;  %v1824_v5 = vsel %vm802_vm1, %v697_v53, %v834_v60  ;;  %v1860_v52 = vmul.f32 %v1775_v19, %v1775_v19 }
  0xfa   : > { %vm779_vm2 = vcmp.ge.f32.partialorder %v709_v57, 0.0  ;;  %v811_v61 = vmul.f32 0.2, %v709_v57  ;;  %v884_v9 = vpack.c.bf16 %v1824_v5, %v1822_v1 }
  0xfb   : > { %vm780_vm3 = vcmp.ge.f32.partialorder %v728_v47, 0.0  ;;  %v812_v62 = vmul.f32 0.2, %v728_v47 }
  0xfc   : > { %v843_v6 = vsel %vm779_vm2, %v709_v57, %v811_v61  ;;  %v746_v15 = vpop.f32.mrf.mxu2  ;;  %v765_v17 = vpop.f32.mrf.mxu3  ;;  %900 = vst [vmem:[%s1744_s6 + $0x68] sm:$0xff] %v884_v9  ;;  %vm939_vm2 = vcmask 7168  }
  0xfd   : > { %v1832_v10 = vsel %vm780_vm3, %v728_v47, %v812_v62  ;;  %v747_v2 = vadd.f32 %v746_v15, %v1730_v39  ;;  %v766_v3 = vadd.f32 %v765_v17, %v1730_v39  ;;  %v906_v28 = vadd.f32 %v905_v12, %v843_v6 }
  0xfe   : > { %v873_v14 = vpack.c.bf16 %v1832_v10, %v843_v6  ;;  %v914_v39 = vadd.f32 %v913_v20, %v1773_v18  ;;  %v948_v56 = vmul.f32 %v843_v6, %v843_v6  ;;  %v961_v17 = vmul.f32 %v1779_v21, %v1779_v21 }
  0xff   : > { %v710_v24 = vpop.f32.mrf.mxu0  ;;  %vm781_vm4 = vcmp.ge.f32.partialorder %v747_v2, 0.0  ;;  %v813_v29 = vmul.f32 0.2, %v747_v2  ;;  %v814_v30 = vmul.f32 0.2, %v766_v3  ;;  %vm782_vm5 = vcmp.ge.f32.partialorder %v766_v3, 0.0 }
 0x100   : > { %v729_v25 = vpop.f32.mrf.mxu1  ;;  %889 = vst [vmem:[%s1744_s6 + $0x10] sm:$0xff] %v873_v14  ;;  %v711_v26 = vadd.f32 %v710_v24, %v1742_v49  ;;  %v907_v43 = vadd.f32 %v906_v28, %v1832_v10  ;;  %v979_v11 = vadd.f32 %v978_v44, %v948_v56  ;;  %v949_v20 = vmul.f32 %v1832_v10, %v1832_v10 }
 0x101   : > { %v730_v27 = vadd.f32 %v729_v25, %v1742_v49  ;;  %v845_v33 = vsel %vm781_vm4, %v747_v2, %v813_v29  ;;  %v1849_v34 = vsel %vm782_vm5, %v766_v3, %v814_v30  ;;  %v987_v3 = vadd.f32 %v986_v50, %v955_v51 }
 0x102   : > { %vm787_vm6 = vcmp.ge.f32.partialorder %v711_v26, 0.0  ;;  %v819_v16 = vmul.f32 0.2, %v711_v26  ;;  %v874_v41 = vpack.c.bf16 %v1849_v34, %v845_v33  ;;  %v908_v55 = vadd.f32 %v907_v43, %v845_v33 }
 0x103   : > { %vm788_vm7 = vcmp.ge.f32.partialorder %v730_v27, 0.0  ;;  %v820_v31 = vmul.f32 0.2, %v730_v27  ;;  %v962_v24 = vmul.f32 %v1791_v35, %v1791_v35  ;;  %v950_v30 = vmul.f32 %v845_v33, %v845_v33 }
 0x104   : > { %v851_v36 = vsel %vm787_vm6, %v711_v26, %v819_v16  ;;  %v748_v53 = vpop.f32.mrf.mxu2  ;;  %v767_v54 = vpop.f32.mrf.mxu3  ;;  %890 = vst [vmem:[%s1744_s6 + $0x18] sm:$0xff] %v874_v41  ;;  %v909_v19 = vadd.f32 %v908_v55, %v1849_v34  ;;  %v980_v16 = vadd.f32 %v979_v11, %v949_v20  ;;  %v994_v55 = vadd.f32 %v961_v17, %v1860_v52 }
 0x105   : > { %v1851_v40 = vsel %vm788_vm7, %v730_v27, %v820_v31  ;;  %v915_v45 = vadd.f32 %v914_v39, %v851_v36  ;;  %v749_v57 = vadd.f32 %v748_v53, %v1742_v49  ;;  %v768_v47 = vadd.f32 %v767_v54, %v1742_v49 }
 0x106   : > { %v877_v48 = vpack.c.bf16 %v1851_v40, %v851_v36  ;;  %910 = vadd.xlane.f32.xlu2 %v909_v19  ;;  %v930_v49 = vadd.f32 %v1801_v42, %v1795_v38  ;;  %v956_v31 = vmul.f32 %v851_v36, %v851_v36  ;;  %v995_v19 = vadd.f32 %v994_v55, %v962_v24  ;;  %v1058_v55 = vld [vmem:[%s1744_s6 + $0x28] sm:$0xff] (%p1517_p5) }
 0x107   : > { %v713_v58 = vpop.f32.mrf.mxu0  ;;  %v916_v61 = vadd.f32 %v915_v45, %v1851_v40  ;;  %vm789_vm8 = vcmp.ge.f32.partialorder %v749_v57, 0.0  ;;  %v821_v62 = vmul.f32 0.2, %v749_v57  ;;  %vm790_vm9 = vcmp.ge.f32.partialorder %v768_v47, 0.0  ;;  %1059 = vst [vmem:[%s1035_s17 + $0x48] sm:$0xff] (%p1517_p5), %v1058_v55 }
 0x108   : > { %893 = vst [vmem:[%s1744_s6 + $0x30] sm:$0xff] %v877_v48  ;;  %v732_v59 = vpop.f32.mrf.mxu1  ;;  %v714_v18 = vadd.f32 %v713_v58, %v1755_v0  ;;  %v822_v4 = vmul.f32 0.2, %v768_v47  ;;  %v931_v25 = vadd.f32 %v930_v49, %v1822_v1  ;;  %v981_v48 = vadd.f32 %v980_v16, %v950_v30 }
 0x109   : > { %v733_v60 = vadd.f32 %v732_v59, %v1755_v0  ;;  %v1873_v8 = vsel %vm789_vm8, %v749_v57, %v821_v62 }
 0x10a   : > { %vm795_vm10 = vcmp.ge.f32.partialorder %v714_v18, 0.0  ;;  %v827_v6 = vmul.f32 0.2, %v714_v18  ;;  %v1875_v9 = vsel %vm790_vm9, %v768_v47, %v822_v4  ;;  %v917_v15 = vadd.f32 %v916_v61, %v1873_v8 }
 0x10b   : > { %vm796_vm11 = vcmp.ge.f32.partialorder %v733_v60, 0.0  ;;  %v828_v7 = vmul.f32 0.2, %v733_v60  ;;  %v878_v14 = vpack.c.bf16 %v1875_v9, %v1873_v8  ;;  %v968_v61 = vmul.f32 %v1795_v38, %v1795_v38 }
 0x10c   : > { %v1877_v12 = vsel %vm795_vm10, %v714_v18, %v827_v6  ;;  %v751_v63 = vpop.f32.mrf.mxu2  ;;  %v770_v26 = vpop.f32.mrf.mxu3  ;;  %v918_v27 = vadd.f32 %v917_v15, %v1875_v9  ;;  %v951_v18 = vmul.f32 %v1849_v34, %v1849_v34  ;;  %v957_v4 = vmul.f32 %v1851_v40, %v1851_v40 }
 0x10d   : > { %v1879_v13 = vsel %vm796_vm11, %v733_v60, %v828_v7  ;;  %v924_v23 = vadd.f32 %v923_v46, %v1877_v12  ;;  %894 = vst [vmem:[%s1744_s6 + $0x38] sm:$0xff] %v878_v14  ;;  %v752_v21 = vadd.f32 %v751_v63, %v1755_v0  ;;  %v771_v10 = vadd.f32 %v770_v26, %v1755_v0 }
 0x10e   : > { %v881_v2 = vpack.c.bf16 %v1879_v13, %v1877_v12  ;;  %919 = vadd.xlane.f32.xlu2 %v918_v27  ;;  %v932_v0 = vadd.f32 %v931_v25, %v1824_v5  ;;  %v963_v46 = vmul.f32 %v1793_v37, %v1793_v37  ;;  %v988_v60 = vadd.f32 %v987_v3, %v956_v31 }
 0x10f   : > { %v715_v28 = vpop.f32.mrf.mxu0  ;;  %v925_v32 = vadd.f32 %v924_v23, %v1879_v13  ;;  %vm797_vm12 = vcmp.ge.f32.partialorder %v752_v21, 0.0  ;;  %v829_v41 = vmul.f32 0.2, %v752_v21  ;;  %vm798_vm13 = vcmp.ge.f32.partialorder %v771_v10, 0.0 }
 0x110   : > { %897 = vst [vmem:[%s1744_s6 + $0x50] sm:$0xff] %v881_v2  ;;  %v734_v29 = vpop.f32.mrf.mxu1  ;;  %v716_v39 = vadd.f32 %v715_v28, %v1781_v22  ;;  %v830_v43 = vmul.f32 0.2, %v771_v10  ;;  %v969_v37 = vmul.f32 %v1801_v42, %v1801_v42  ;;  %v982_v6 = vadd.f32 %v981_v48, %v951_v18  ;;  %v1048_v48 = vld [vmem:[%s1744_s6] sm:$0xff] (%p1517_p5) }
 0x111   : > { %v735_v35 = vadd.f32 %v734_v29, %v1781_v22  ;;  %v861_v33 = vsel %vm797_vm12, %v752_v21, %v829_v41  ;;  %v958_v34 = vmul.f32 %v1873_v8, %v1873_v8  ;;  %v964_v49 = vmul.f32 %v1877_v12, %v1877_v12  ;;  %1049 = vst [vmem:[%s1035_s17] sm:$0xff] (%p1517_p5), %v1048_v48  ;;  %v1072_v18 = vld [vmem:[%s1744_s6 + $0x60] sm:$0xff] (%p1517_p5) }
 0x112   : > { %vm803_vm14 = vcmp.ge.f32.partialorder %v716_v39, 0.0  ;;  %v835_v44 = vmul.f32 0.2, %v716_v39  ;;  %v862_v36 = vsel %vm798_vm13, %v771_v10, %v830_v43  ;;  %v926_v54 = vadd.f32 %v925_v32, %v861_v33  ;;  %1073 = vst [vmem:[%s1035_s17 + $0xc0] sm:$0xff] (%p1517_p5), %v1072_v18 }
 0x113   : > { %vm804_vm15 = vcmp.ge.f32.partialorder %v735_v35, 0.0  ;;  %v836_v45 = vmul.f32 0.2, %v735_v35  ;;  %v882_v53 = vpack.c.bf16 %v862_v36, %v861_v33  ;;  %v989_v11 = vadd.f32 %v988_v60, %v957_v4  ;;  %v1074_v60 = vld [vmem:[%s1744_s6 + $0x68] sm:$0xff] (%p1517_p5) }
 0x114   : > { %v867_v50 = vsel %vm803_vm14, %v716_v39, %v835_v44  ;;  %v753_v47 = vpop.f32.mrf.mxu2  ;;  %v772_v58 = vpop.f32.mrf.mxu3  ;;  %v927_v59 = vadd.f32 %v926_v54, %v862_v36  ;;  %v996_v42 = vadd.f32 %v995_v19, %v963_v46  ;;  %v970_v40 = vmul.f32 %v1822_v1, %v1822_v1  ;;  %v1056_v54 = vld [vmem:[%s1744_s6 + $0x20] sm:$0xff] (%p1517_p5)  ;;  %v1060_v46 = vld [vmem:[%s1744_s6 + $0x30] sm:$0xff] (%p1517_p5)  ;;  %1075 = vst [vmem:[%s1035_s17 + $0xc8] sm:$0xff] (%p1517_p5), %v1074_v60 }
 0x115   : > { %v868_v51 = vsel %vm804_vm15, %v735_v35, %v836_v45  ;;  %v933_v57 = vadd.f32 %v932_v0, %v867_v50  ;;  %898 = vst [vmem:[%s1744_s6 + $0x58] sm:$0xff] %v882_v53  ;;  %v754_v52 = vadd.f32 %v753_v47, %v1781_v22  ;;  %v773_v62 = vadd.f32 %v772_v58, %v1781_v22  ;;  %v1054_v53 = vld [vmem:[%s1744_s6 + $0x18] sm:$0xff] (%p1517_p5)  ;;  %v1066_v47 = vld [vmem:[%s1744_s6 + $0x48] sm:$0xff] (%p1517_p5) }
 0x116   : > { %v885_v56 = vpack.c.bf16 %v868_v51, %v867_v50  ;;  %928 = vadd.xlane.f32.xlu0 %v927_v59  ;;  %983 = vadd.xlane.f32.xlu2 %v982_v6  ;;  %v990_v8 = vadd.f32 %v989_v11, %v958_v34  ;;  %v1003_v23 = vadd.f32 %v969_v37, %v968_v61 }
 0x117   : > { %vm805_vm0 = vcmp.ge.f32.partialorder %v754_v52, 0.0  ;;  %v837_v7 = vmul.f32 0.2, %v754_v52  ;;  %vm806_vm1 = vcmp.ge.f32.partialorder %v773_v62, 0.0  ;;  %v838_v38 = vmul.f32 0.2, %v773_v62 }
 0x118   : > { %901 = vst [vmem:[%s1744_s6 + $0x70] sm:$0xff] %v885_v56  ;;  %v934_v22 = vadd.f32 %v933_v57, %v868_v51  ;;  %v965_v2 = vmul.f32 %v1879_v13, %v1879_v13  ;;  %v959_v12 = vmul.f32 %v1875_v9, %v1875_v9  ;;  %v997_v24 = vadd.f32 %v996_v42, %v964_v49  ;;  %v1062_v56 = vld [vmem:[%s1744_s6 + $0x38] sm:$0xff] (%p1517_p5)  ;;  %v1064_v57 = vld [vmem:[%s1744_s6 + $0x40] sm:$0xff] (%p1517_p5)  ;;  %v1068_v58 = vld [vmem:[%s1744_s6 + $0x50] sm:$0xff] (%p1517_p5) }
 0x119   : > { %v869_v14 = vsel %vm805_vm0, %v754_v52, %v837_v7  ;;  %v870_v15 = vsel %vm806_vm1, %v773_v62, %v838_v38  ;;  %v1004_v25 = vadd.f32 %v1003_v23, %v970_v40  ;;  %v966_v26 = vmul.f32 %v861_v33, %v861_v33  ;;  %1055 = vst [vmem:[%s1035_s17 + $0x18] sm:$0xff] (%p1517_p5), %v1054_v53 }
 0x11a   : > { %v886_v17 = vpack.c.bf16 %v870_v15, %v869_v14  ;;  %v935_v20 = vadd.f32 %v934_v22, %v869_v14  ;;  %v991_v63 = vadd.f32 %v990_v8, %v959_v12  ;;  %v971_v1 = vmul.f32 %v1824_v5, %v1824_v5  ;;  %1057 = vst [vmem:[%s1035_s17 + $0x40] sm:$0xff] (%p1517_p5), %v1056_v54 }
 0x11b   : > { %v972_v27 = vmul.f32 %v867_v50, %v867_v50  ;;  %v998_v21 = vadd.f32 %v997_v24, %v965_v2  ;;  %v967_v13 = vmul.f32 %v862_v36, %v862_v36  ;;  %v973_v30 = vmul.f32 %v868_v51, %v868_v51  ;;  %v1050_v50 = vld [vmem:[%s1744_s6 + $0x8] sm:$0xff] (%p1517_p5)  ;;  %v1052_v51 = vld [vmem:[%s1744_s6 + $0x10] sm:$0xff] (%p1517_p5)  ;;  %1061 = vst [vmem:[%s1035_s17 + $0x50] sm:$0xff] (%p1517_p5), %v1060_v46 }
 0x11c   : > { %902 = vst [vmem:[%s1744_s6 + $0x78] sm:$0xff] %v886_v17  ;;  %v936_v3 = vadd.f32 %v935_v20, %v870_v15  ;;  %v1005_v10 = vadd.f32 %v1004_v25, %v971_v1  ;;  %v974_v9 = vmul.f32 %v869_v14, %v869_v14  ;;  %v975_v35 = vmul.f32 %v870_v15, %v870_v15  ;;  %v1070_v59 = vld [vmem:[%s1744_s6 + $0x58] sm:$0xff] (%p1517_p5) }
 0x11d   : > { %v999_v28 = vadd.f32 %v998_v21, %v966_v26  ;;  %1051 = vst [vmem:[%s1035_s17 + $0x8] sm:$0xff] (%p1517_p5), %v1050_v50 }
 0x11e   : > { %937 = vadd.xlane.f32.xlu1 %v936_v3  ;;  %992 = vadd.xlane.f32.xlu2 %v991_v63  ;;  %v1006_v29 = vadd.f32 %v1005_v10, %v972_v27  ;;  %1053 = vst [vmem:[%s1035_s17 + $0x10] sm:$0xff] (%p1517_p5), %v1052_v51 }
 0x11f   : > { %v1000_v16 = vadd.f32 %v999_v28, %v967_v13  ;;  %1063 = vst [vmem:[%s1035_s17 + $0x58] sm:$0xff] (%p1517_p5), %v1062_v56  ;;  %v1076_v19 = vld [vmem:[%s1744_s6 + $0x70] sm:$0xff] (%p1517_p5) }
 0x120   : > { %v1007_v31 = vadd.f32 %v1006_v29, %v973_v30  ;;  %1065 = vst [vmem:[%s1035_s17 + $0x80] sm:$0xff] (%p1517_p5), %v1064_v57 }
 0x121   : > { %1067 = vst [vmem:[%s1035_s17 + $0x88] sm:$0xff] (%p1517_p5), %v1066_v47 }
 0x122   : > { %v1008_v39 = vadd.f32 %v1007_v31, %v974_v9  ;;  %1069 = vst [vmem:[%s1035_s17 + $0x90] sm:$0xff] (%p1517_p5), %v1068_v58 }
 0x123   : > { %1071 = vst [vmem:[%s1035_s17 + $0x98] sm:$0xff] (%p1517_p5), %v1070_v59  ;;  %v1078_v61 = vld [vmem:[%s1744_s6 + $0x78] sm:$0xff] (%p1517_p5) }
 0x124   : > { %v1009_v32 = vadd.f32 %v1008_v39, %v975_v35  ;;  %1077 = vst [vmem:[%s1035_s17 + $0xd0] sm:$0xff] (%p1517_p5), %v1076_v19 }
 0x125   : > { %1079 = vst [vmem:[%s1035_s17 + $0xd8] sm:$0xff] (%p1517_p5), %v1078_v61 }
 0x126   : > { %1001 = vadd.xlane.f32.xlu2 %v1000_v16 }
 0x12e   : > { %1010 = vadd.xlane.f32.xlu2 %v1009_v32 }
 0x179   : > { %v911_v5 = vpop.xlane.xlu2 %910 }
 0x17a   : > { %940 = vst.msk [vmem:[%s330_s10] sm:$0xff] %vm939_vm2, %v911_v5 }
 0x181   : > { %v920_v41 = vpop.xlane.xlu2 %919 }
 0x182   : > { %941 = vst.msk [vmem:[%s330_s10 + $0x8] sm:$0xff] %vm939_vm2, %v920_v41 }
 0x189   : > { %v929_v43 = vpop.xlane.xlu0 %928  ;;  %v984_v44 = vpop.xlane.xlu2 %983 }
 0x18a   : > { %942 = vst.msk [vmem:[%s330_s10 + $0x10] sm:$0xff] %vm939_vm2, %v929_v43 }
 0x18b   : > { %1012 = vst.msk [vmem:[%s335_s13] sm:$0xff] %vm939_vm2, %v984_v44 }
 0x191   : > { %v938_v45 = vpop.xlane.xlu1 %937  ;;  %v993_v0 = vpop.xlane.xlu2 %992 }
 0x192   : > { %943 = vst.msk [vmem:[%s330_s10 + $0x18] sm:$0xff] %vm939_vm2, %v938_v45 }
 0x193   : > { %1013 = vst.msk [vmem:[%s335_s13 + $0x8] sm:$0xff] %vm939_vm2, %v993_v0 }
 0x199   : > { %v1002_v33 = vpop.xlane.xlu2 %1001 }
 0x19a   : > { %1014 = vst.msk [vmem:[%s335_s13 + $0x10] sm:$0xff] %vm939_vm2, %v1002_v33 }
 0x19e   : > { %1032 = sbr.rel (!%p1517_p5) target bundleno = 419 (0x1a3), region = 59 }
 0x1a1   : > { %v1011_v36 = vpop.xlane.xlu2 %1010 }
 0x1a2   : > { %1015 = vst.msk [vmem:[%s335_s13 + $0x18] sm:$0xff] %vm939_vm2, %v1011_v36 }
 0x1a3 PF: > { %p13_p11 = scmp.ge.s32.totalorder %s1505_s22, 4   ;;  %s1986_s18 = smov %s1449_s19 }
 0x1a4   : > { %s1987_s19 = smov %s1515_s25  ;;  %s1988_s20 = smov %s1505_s22 }
 0x1a5   :  { %15 = sbr.rel (!%p13_p11) target bundleno = 2 (0x2), region = 137 }

// kernel: mf_decoder_forward.16
= control target key start
LH: loop header
LB: loop body
LE: loop exit
PB: predicated region body
PF: predicated region fallthrough
CT: control target
= control target key end

     0   :  { %s3435_s18 = smov 0   ;;  %s3437_s19 = smov 0   ;;  %s4481_s0 = inlined_call_operand.vmem [shape: bf16[16,72], index: 0, kind: input, shape index: {}]   ;;  %s4482_s1 = inlined_call_operand.vmem [shape: bf16[72,8192], index: 1, kind: input, shape index: {}]   ;;  %s4483_s2 = inlined_call_operand.vmem [shape: f32[16,1], index: 2, kind: input, shape index: {}]   ;;  %s4484_s3 = inlined_call_operand.vmem [shape: bf16[16,8192], index: 3, kind: output, shape index: {0}]   ;;  %s4485_s4 = inlined_call_operand.vmem [shape: f32[2,16,1], index: 4, kind: output, shape index: {1}]   ;;  %s4486_s5 = inlined_call_operand.vmem [shape: f32[2,16,1], index: 5, kind: output, shape index: {2}]  }
   0x1   :  { %s3439_s20 = smov 0  }
   0x2 LB: > { %s3451_s21 = sadd.s32 4294967295, %s3402_s20   ;;  %s3454_s22 = sadd.s32 1, %s3402_s20   ;;  %s3402_s20 = sphi %s3439_s20, %s4490_s20   ;;  %s3398_s19 = sphi %s3437_s19, %s4489_s19   ;;  %s3394_s18 = sphi %s3435_s18, %s4488_s18  }
   0x3   : > { %s41_s23 = ssub.s32 %s3402_s20, %s3454_s22  ;;  %s44_s24 = sadd.s32 1, %s3398_s19 }
   0x4   : > { %p42_p0 = scmp.eq.s32.totalorder %s41_s23, 0  ;;  %p51_p1 = scmp.ne.s32.totalorder %s3398_s19, %s3394_s18 }
   0x5   : > { %p52_p2 = scmp.eq.s32.totalorder %s3402_s20, 0  ;;  %p102_p3 = scmp.eq.s32.totalorder %s3451_s21, 1 }
   0x6   : > { %s3464_s25 = scalar_select %p42_p0, %s3398_s19, %s44_s24  }
   0x7   : > { %p53_p4 = por %p52_p2, %p51_p1  ;;  %p3466_p5 = por %p102_p3, %p51_p1 }
   0x8   : > { %p2656_p6 = scmp.ge.s32.totalorder %s3402_s20, 2 }
   0xa   : > { %182 = sbr.rel (%p2656_p6) target bundleno = 163 (0xa3), region = 24 }
   0xf   : > { %185 = sbr.rel (!%p53_p4) target bundleno = 163 (0xa3), region = 28  ;;  %s187_s27 = sand.u32 (%p53_p4), 1, %s3398_s19  }
  0x10   : > { %s3218_s28 = sshll.u32 (%p53_p4), %s3402_s20, 7  ;;  %s3351_s29 = smul.u32 (%p53_p4), 1152, %s187_s27 }
  0x11   : > { %s3476_s7 = scalar_lea.vmem (%p53_p4), %s4482_s1, %s3218_s28 }
  0x12   : > { %v205_v0 = vld [vmem:[%s3476_s7] sm:$0xff] (%p53_p4)  ;;  %v207_v1 = vld [vmem:[%s3476_s7 + $0x8] sm:$0xff] (%p53_p4)  ;;  %v209_v2 = vld [vmem:[%s3476_s7 + $0x10] sm:$0xff] (%p53_p4)  ;;  %s3481_s8 = scalar_lea.vmem (%p53_p4), [#allocation2], %s3351_s29 }
  0x13   : > { %206 = vst [vmem:[%s3481_s8] sm:$0xff] (%p53_p4), %v205_v0  ;;  %v211_v3 = vld [vmem:[%s3476_s7 + $0x18] sm:$0xff] (%p53_p4)  ;;  %v213_v4 = vld [vmem:[%s3476_s7 + $0x20] sm:$0xff] (%p53_p4)  ;;  %v215_v5 = vld [vmem:[%s3476_s7 + $0x28] sm:$0xff] (%p53_p4) }
  0x14   : > { %208 = vst [vmem:[%s3481_s8 + $0x8] sm:$0xff] %v207_v1  ;;  %v217_v6 = vld [vmem:[%s3476_s7 + $0x30] sm:$0xff]  ;;  %v219_v7 = vld [vmem:[%s3476_s7 + $0x38] sm:$0xff]  ;;  %v221_v8 = vld [vmem:[%s3476_s7 + $0x40] sm:$0xff] }
  0x15   : > { %210 = vst [vmem:[%s3481_s8 + $0x10] sm:$0xff] %v209_v2  ;;  %v223_v9 = vld [vmem:[%s3476_s7 + $0x48] sm:$0xff]  ;;  %v225_v10 = vld [vmem:[%s3476_s7 + $0x50] sm:$0xff]  ;;  %v227_v11 = vld [vmem:[%s3476_s7 + $0x58] sm:$0xff] }
  0x16   : > { %212 = vst [vmem:[%s3481_s8 + $0x18] sm:$0xff] %v211_v3  ;;  %v229_v12 = vld [vmem:[%s3476_s7 + $0x60] sm:$0xff]  ;;  %v231_v13 = vld [vmem:[%s3476_s7 + $0x68] sm:$0xff]  ;;  %v233_v14 = vld [vmem:[%s3476_s7 + $0x70] sm:$0xff] }
  0x17   : > { %214 = vst [vmem:[%s3481_s8 + $0x20] sm:$0xff] %v213_v4  ;;  %v235_v15 = vld [vmem:[%s3476_s7 + $0x78] sm:$0xff]  ;;  %v237_v16 = vld [vmem:[%s3476_s7 + $0x100] sm:$0xff]  ;;  %v239_v17 = vld [vmem:[%s3476_s7 + $0x108] sm:$0xff] }
  0x18   : > { %216 = vst [vmem:[%s3481_s8 + $0x28] sm:$0xff] %v215_v5  ;;  %v241_v18 = vld [vmem:[%s3476_s7 + $0x110] sm:$0xff]  ;;  %v243_v19 = vld [vmem:[%s3476_s7 + $0x118] sm:$0xff]  ;;  %v245_v20 = vld [vmem:[%s3476_s7 + $0x120] sm:$0xff] }
  0x19   : > { %218 = vst [vmem:[%s3481_s8 + $0x30] sm:$0xff] %v217_v6  ;;  %v247_v21 = vld [vmem:[%s3476_s7 + $0x128] sm:$0xff]  ;;  %v249_v22 = vld [vmem:[%s3476_s7 + $0x130] sm:$0xff]  ;;  %v251_v23 = vld [vmem:[%s3476_s7 + $0x138] sm:$0xff] }
  0x1a   : > { %220 = vst [vmem:[%s3481_s8 + $0x38] sm:$0xff] %v219_v7  ;;  %v253_v24 = vld [vmem:[%s3476_s7 + $0x140] sm:$0xff]  ;;  %v255_v25 = vld [vmem:[%s3476_s7 + $0x148] sm:$0xff]  ;;  %v257_v26 = vld [vmem:[%s3476_s7 + $0x150] sm:$0xff] }
  0x1b   : > { %222 = vst [vmem:[%s3481_s8 + $0x40] sm:$0xff] %v221_v8  ;;  %v259_v27 = vld [vmem:[%s3476_s7 + $0x158] sm:$0xff]  ;;  %v261_v28 = vld [vmem:[%s3476_s7 + $0x160] sm:$0xff]  ;;  %v263_v29 = vld [vmem:[%s3476_s7 + $0x168] sm:$0xff] }
  0x1c   : > { %224 = vst [vmem:[%s3481_s8 + $0x48] sm:$0xff] %v223_v9  ;;  %v265_v30 = vld [vmem:[%s3476_s7 + $0x170] sm:$0xff]  ;;  %v267_v31 = vld [vmem:[%s3476_s7 + $0x178] sm:$0xff]  ;;  %v269_v32 = vld [vmem:[%s3476_s7 + $0x200] sm:$0xff] }
  0x1d   : > { %226 = vst [vmem:[%s3481_s8 + $0x50] sm:$0xff] %v225_v10  ;;  %v271_v33 = vld [vmem:[%s3476_s7 + $0x208] sm:$0xff]  ;;  %v273_v34 = vld [vmem:[%s3476_s7 + $0x210] sm:$0xff]  ;;  %v275_v35 = vld [vmem:[%s3476_s7 + $0x218] sm:$0xff] }
  0x1e   : > { %228 = vst [vmem:[%s3481_s8 + $0x58] sm:$0xff] %v227_v11  ;;  %v277_v36 = vld [vmem:[%s3476_s7 + $0x220] sm:$0xff]  ;;  %v279_v37 = vld [vmem:[%s3476_s7 + $0x228] sm:$0xff]  ;;  %v281_v38 = vld [vmem:[%s3476_s7 + $0x230] sm:$0xff] }
  0x1f   : > { %230 = vst [vmem:[%s3481_s8 + $0x60] sm:$0xff] %v229_v12  ;;  %v283_v39 = vld [vmem:[%s3476_s7 + $0x238] sm:$0xff]  ;;  %v285_v40 = vld [vmem:[%s3476_s7 + $0x240] sm:$0xff]  ;;  %v287_v41 = vld [vmem:[%s3476_s7 + $0x248] sm:$0xff] }
  0x20   : > { %232 = vst [vmem:[%s3481_s8 + $0x68] sm:$0xff] %v231_v13  ;;  %v289_v42 = vld [vmem:[%s3476_s7 + $0x250] sm:$0xff]  ;;  %v291_v43 = vld [vmem:[%s3476_s7 + $0x258] sm:$0xff]  ;;  %v293_v44 = vld [vmem:[%s3476_s7 + $0x260] sm:$0xff] }
  0x21   : > { %234 = vst [vmem:[%s3481_s8 + $0x70] sm:$0xff] %v233_v14  ;;  %v295_v45 = vld [vmem:[%s3476_s7 + $0x268] sm:$0xff]  ;;  %v297_v46 = vld [vmem:[%s3476_s7 + $0x270] sm:$0xff]  ;;  %v299_v47 = vld [vmem:[%s3476_s7 + $0x278] sm:$0xff] }
  0x22   : > { %236 = vst [vmem:[%s3481_s8 + $0x78] sm:$0xff] %v235_v15  ;;  %v301_v48 = vld [vmem:[%s3476_s7 + $0x300] sm:$0xff]  ;;  %v303_v49 = vld [vmem:[%s3476_s7 + $0x308] sm:$0xff]  ;;  %v305_v50 = vld [vmem:[%s3476_s7 + $0x310] sm:$0xff] }
  0x23   : > { %238 = vst [vmem:[%s3481_s8 + $0x80] sm:$0xff] %v237_v16  ;;  %v307_v51 = vld [vmem:[%s3476_s7 + $0x318] sm:$0xff]  ;;  %v309_v52 = vld [vmem:[%s3476_s7 + $0x320] sm:$0xff]  ;;  %v311_v53 = vld [vmem:[%s3476_s7 + $0x328] sm:$0xff] }
  0x24   : > { %240 = vst [vmem:[%s3481_s8 + $0x88] sm:$0xff] %v239_v17  ;;  %v313_v54 = vld [vmem:[%s3476_s7 + $0x330] sm:$0xff]  ;;  %v315_v55 = vld [vmem:[%s3476_s7 + $0x338] sm:$0xff]  ;;  %v317_v56 = vld [vmem:[%s3476_s7 + $0x340] sm:$0xff] }
  0x25   : > { %242 = vst [vmem:[%s3481_s8 + $0x90] sm:$0xff] %v241_v18  ;;  %v319_v57 = vld [vmem:[%s3476_s7 + $0x348] sm:$0xff]  ;;  %v321_v58 = vld [vmem:[%s3476_s7 + $0x350] sm:$0xff]  ;;  %v323_v59 = vld [vmem:[%s3476_s7 + $0x358] sm:$0xff] }
  0x26   : > { %244 = vst [vmem:[%s3481_s8 + $0x98] sm:$0xff] %v243_v19  ;;  %v325_v60 = vld [vmem:[%s3476_s7 + $0x360] sm:$0xff]  ;;  %v327_v61 = vld [vmem:[%s3476_s7 + $0x368] sm:$0xff]  ;;  %v329_v62 = vld [vmem:[%s3476_s7 + $0x370] sm:$0xff] }
  0x27   : > { %246 = vst [vmem:[%s3481_s8 + $0xa0] sm:$0xff] %v245_v20  ;;  %v331_v63 = vld [vmem:[%s3476_s7 + $0x378] sm:$0xff]  ;;  %v333_v0 = vld [vmem:[%s3476_s7 + $0x400] sm:$0xff]  ;;  %v335_v1 = vld [vmem:[%s3476_s7 + $0x408] sm:$0xff] }
  0x28   : > { %248 = vst [vmem:[%s3481_s8 + $0xa8] sm:$0xff] %v247_v21  ;;  %v337_v2 = vld [vmem:[%s3476_s7 + $0x410] sm:$0xff]  ;;  %v339_v3 = vld [vmem:[%s3476_s7 + $0x418] sm:$0xff]  ;;  %v341_v4 = vld [vmem:[%s3476_s7 + $0x420] sm:$0xff] }
  0x29   : > { %250 = vst [vmem:[%s3481_s8 + $0xb0] sm:$0xff] %v249_v22  ;;  %v343_v5 = vld [vmem:[%s3476_s7 + $0x428] sm:$0xff]  ;;  %v345_v6 = vld [vmem:[%s3476_s7 + $0x430] sm:$0xff]  ;;  %v347_v7 = vld [vmem:[%s3476_s7 + $0x438] sm:$0xff] }
  0x2a   : > { %252 = vst [vmem:[%s3481_s8 + $0xb8] sm:$0xff] %v251_v23  ;;  %v349_v8 = vld [vmem:[%s3476_s7 + $0x440] sm:$0xff]  ;;  %v351_v9 = vld [vmem:[%s3476_s7 + $0x448] sm:$0xff]  ;;  %v353_v10 = vld [vmem:[%s3476_s7 + $0x450] sm:$0xff] }
  0x2b   : > { %254 = vst [vmem:[%s3481_s8 + $0xc0] sm:$0xff] %v253_v24  ;;  %v355_v11 = vld [vmem:[%s3476_s7 + $0x458] sm:$0xff]  ;;  %v357_v12 = vld [vmem:[%s3476_s7 + $0x460] sm:$0xff]  ;;  %v359_v13 = vld [vmem:[%s3476_s7 + $0x468] sm:$0xff] }
  0x2c   : > { %256 = vst [vmem:[%s3481_s8 + $0xc8] sm:$0xff] %v255_v25  ;;  %v361_v14 = vld [vmem:[%s3476_s7 + $0x470] sm:$0xff]  ;;  %v363_v15 = vld [vmem:[%s3476_s7 + $0x478] sm:$0xff]  ;;  %v365_v16 = vld [vmem:[%s3476_s7 + $0x500] sm:$0xff] }
  0x2d   : > { %258 = vst [vmem:[%s3481_s8 + $0xd0] sm:$0xff] %v257_v26  ;;  %v367_v17 = vld [vmem:[%s3476_s7 + $0x508] sm:$0xff]  ;;  %v369_v18 = vld [vmem:[%s3476_s7 + $0x510] sm:$0xff]  ;;  %v371_v19 = vld [vmem:[%s3476_s7 + $0x518] sm:$0xff] }
  0x2e   : > { %260 = vst [vmem:[%s3481_s8 + $0xd8] sm:$0xff] %v259_v27  ;;  %v373_v20 = vld [vmem:[%s3476_s7 + $0x520] sm:$0xff]  ;;  %v375_v21 = vld [vmem:[%s3476_s7 + $0x528] sm:$0xff]  ;;  %v377_v22 = vld [vmem:[%s3476_s7 + $0x530] sm:$0xff] }
  0x2f   : > { %262 = vst [vmem:[%s3481_s8 + $0xe0] sm:$0xff] %v261_v28  ;;  %v379_v23 = vld [vmem:[%s3476_s7 + $0x538] sm:$0xff]  ;;  %v381_v24 = vld [vmem:[%s3476_s7 + $0x540] sm:$0xff]  ;;  %v383_v25 = vld [vmem:[%s3476_s7 + $0x548] sm:$0xff] }
  0x30   : > { %264 = vst [vmem:[%s3481_s8 + $0xe8] sm:$0xff] %v263_v29  ;;  %v385_v26 = vld [vmem:[%s3476_s7 + $0x550] sm:$0xff]  ;;  %v387_v27 = vld [vmem:[%s3476_s7 + $0x558] sm:$0xff]  ;;  %v389_v28 = vld [vmem:[%s3476_s7 + $0x560] sm:$0xff] }
  0x31   : > { %266 = vst [vmem:[%s3481_s8 + $0xf0] sm:$0xff] %v265_v30  ;;  %v391_v29 = vld [vmem:[%s3476_s7 + $0x568] sm:$0xff]  ;;  %v393_v30 = vld [vmem:[%s3476_s7 + $0x570] sm:$0xff] }
  0x32   : > { %268 = vst [vmem:[%s3481_s8 + $0xf8] sm:$0xff] %v267_v31  ;;  %v395_v31 = vld [vmem:[%s3476_s7 + $0x578] sm:$0xff] }
  0x33   : > { %270 = vst [vmem:[%s3481_s8 + $0x100] sm:$0xff] %v269_v32  ;;  %v397_v32 = vld [vmem:[%s3476_s7 + $0x600] sm:$0xff] }
  0x34   : > { %272 = vst [vmem:[%s3481_s8 + $0x108] sm:$0xff] %v271_v33  ;;  %v399_v33 = vld [vmem:[%s3476_s7 + $0x608] sm:$0xff] }
  0x35   : > { %274 = vst [vmem:[%s3481_s8 + $0x110] sm:$0xff] %v273_v34  ;;  %v401_v34 = vld [vmem:[%s3476_s7 + $0x610] sm:$0xff] }
  0x36   : > { %276 = vst [vmem:[%s3481_s8 + $0x118] sm:$0xff] %v275_v35  ;;  %v403_v35 = vld [vmem:[%s3476_s7 + $0x618] sm:$0xff] }
  0x37   : > { %278 = vst [vmem:[%s3481_s8 + $0x120] sm:$0xff] %v277_v36  ;;  %v405_v36 = vld [vmem:[%s3476_s7 + $0x620] sm:$0xff] }
  0x38   : > { %280 = vst [vmem:[%s3481_s8 + $0x128] sm:$0xff] %v279_v37  ;;  %v407_v37 = vld [vmem:[%s3476_s7 + $0x628] sm:$0xff] }
  0x39   : > { %282 = vst [vmem:[%s3481_s8 + $0x130] sm:$0xff] %v281_v38  ;;  %v409_v38 = vld [vmem:[%s3476_s7 + $0x630] sm:$0xff] }
  0x3a   : > { %284 = vst [vmem:[%s3481_s8 + $0x138] sm:$0xff] %v283_v39  ;;  %v411_v39 = vld [vmem:[%s3476_s7 + $0x638] sm:$0xff] }
  0x3b   : > { %286 = vst [vmem:[%s3481_s8 + $0x140] sm:$0xff] %v285_v40  ;;  %v413_v40 = vld [vmem:[%s3476_s7 + $0x640] sm:$0xff] }
  0x3c   : > { %288 = vst [vmem:[%s3481_s8 + $0x148] sm:$0xff] %v287_v41  ;;  %v415_v41 = vld [vmem:[%s3476_s7 + $0x648] sm:$0xff] }
  0x3d   : > { %290 = vst [vmem:[%s3481_s8 + $0x150] sm:$0xff] %v289_v42  ;;  %v417_v42 = vld [vmem:[%s3476_s7 + $0x650] sm:$0xff] }
  0x3e   : > { %292 = vst [vmem:[%s3481_s8 + $0x158] sm:$0xff] %v291_v43  ;;  %v419_v43 = vld [vmem:[%s3476_s7 + $0x658] sm:$0xff] }
  0x3f   : > { %294 = vst [vmem:[%s3481_s8 + $0x160] sm:$0xff] %v293_v44  ;;  %v421_v44 = vld [vmem:[%s3476_s7 + $0x660] sm:$0xff] }
  0x40   : > { %296 = vst [vmem:[%s3481_s8 + $0x168] sm:$0xff] %v295_v45  ;;  %v423_v45 = vld [vmem:[%s3476_s7 + $0x668] sm:$0xff] }
  0x41   : > { %298 = vst [vmem:[%s3481_s8 + $0x170] sm:$0xff] %v297_v46  ;;  %v425_v46 = vld [vmem:[%s3476_s7 + $0x670] sm:$0xff] }
  0x42   : > { %300 = vst [vmem:[%s3481_s8 + $0x178] sm:$0xff] %v299_v47  ;;  %v427_v47 = vld [vmem:[%s3476_s7 + $0x678] sm:$0xff] }
  0x43   : > { %302 = vst [vmem:[%s3481_s8 + $0x180] sm:$0xff] %v301_v48  ;;  %v429_v48 = vld [vmem:[%s3476_s7 + $0x700] sm:$0xff] }
  0x44   : > { %304 = vst [vmem:[%s3481_s8 + $0x188] sm:$0xff] %v303_v49  ;;  %v431_v49 = vld [vmem:[%s3476_s7 + $0x708] sm:$0xff] }
  0x45   : > { %306 = vst [vmem:[%s3481_s8 + $0x190] sm:$0xff] %v305_v50  ;;  %v433_v50 = vld [vmem:[%s3476_s7 + $0x710] sm:$0xff] }
  0x46   : > { %308 = vst [vmem:[%s3481_s8 + $0x198] sm:$0xff] %v307_v51  ;;  %v435_v51 = vld [vmem:[%s3476_s7 + $0x718] sm:$0xff] }
  0x47   : > { %310 = vst [vmem:[%s3481_s8 + $0x1a0] sm:$0xff] %v309_v52  ;;  %v437_v52 = vld [vmem:[%s3476_s7 + $0x720] sm:$0xff] }
  0x48   : > { %312 = vst [vmem:[%s3481_s8 + $0x1a8] sm:$0xff] %v311_v53  ;;  %v439_v53 = vld [vmem:[%s3476_s7 + $0x728] sm:$0xff] }
  0x49   : > { %314 = vst [vmem:[%s3481_s8 + $0x1b0] sm:$0xff] %v313_v54  ;;  %v441_v54 = vld [vmem:[%s3476_s7 + $0x730] sm:$0xff] }
  0x4a   : > { %316 = vst [vmem:[%s3481_s8 + $0x1b8] sm:$0xff] %v315_v55  ;;  %v443_v55 = vld [vmem:[%s3476_s7 + $0x738] sm:$0xff] }
  0x4b   : > { %318 = vst [vmem:[%s3481_s8 + $0x1c0] sm:$0xff] %v317_v56  ;;  %v445_v56 = vld [vmem:[%s3476_s7 + $0x740] sm:$0xff] }
  0x4c   : > { %320 = vst [vmem:[%s3481_s8 + $0x1c8] sm:$0xff] %v319_v57  ;;  %v447_v57 = vld [vmem:[%s3476_s7 + $0x748] sm:$0xff] }
  0x4d   : > { %322 = vst [vmem:[%s3481_s8 + $0x1d0] sm:$0xff] %v321_v58  ;;  %v449_v58 = vld [vmem:[%s3476_s7 + $0x750] sm:$0xff] }
  0x4e   : > { %324 = vst [vmem:[%s3481_s8 + $0x1d8] sm:$0xff] %v323_v59  ;;  %v451_v59 = vld [vmem:[%s3476_s7 + $0x758] sm:$0xff] }
  0x4f   : > { %326 = vst [vmem:[%s3481_s8 + $0x1e0] sm:$0xff] %v325_v60  ;;  %v453_v60 = vld [vmem:[%s3476_s7 + $0x760] sm:$0xff] }
  0x50   : > { %328 = vst [vmem:[%s3481_s8 + $0x1e8] sm:$0xff] %v327_v61  ;;  %v455_v61 = vld [vmem:[%s3476_s7 + $0x768] sm:$0xff] }
  0x51   : > { %330 = vst [vmem:[%s3481_s8 + $0x1f0] sm:$0xff] %v329_v62  ;;  %v457_v62 = vld [vmem:[%s3476_s7 + $0x770] sm:$0xff] }
  0x52   : > { %332 = vst [vmem:[%s3481_s8 + $0x1f8] sm:$0xff] %v331_v63  ;;  %v459_v63 = vld [vmem:[%s3476_s7 + $0x778] sm:$0xff] }
  0x53   : > { %334 = vst [vmem:[%s3481_s8 + $0x200] sm:$0xff] %v333_v0  ;;  %v461_v0 = vld [vmem:[%s3476_s7 + $0x800] sm:$0xff] }
  0x54   : > { %336 = vst [vmem:[%s3481_s8 + $0x208] sm:$0xff] %v335_v1  ;;  %v463_v1 = vld [vmem:[%s3476_s7 + $0x808] sm:$0xff] }
  0x55   : > { %338 = vst [vmem:[%s3481_s8 + $0x210] sm:$0xff] %v337_v2  ;;  %v465_v2 = vld [vmem:[%s3476_s7 + $0x810] sm:$0xff] }
  0x56   : > { %340 = vst [vmem:[%s3481_s8 + $0x218] sm:$0xff] %v339_v3  ;;  %v467_v3 = vld [vmem:[%s3476_s7 + $0x818] sm:$0xff] }
  0x57   : > { %342 = vst [vmem:[%s3481_s8 + $0x220] sm:$0xff] %v341_v4  ;;  %v469_v4 = vld [vmem:[%s3476_s7 + $0x820] sm:$0xff] }
  0x58   : > { %344 = vst [vmem:[%s3481_s8 + $0x228] sm:$0xff] %v343_v5  ;;  %v471_v5 = vld [vmem:[%s3476_s7 + $0x828] sm:$0xff] }
  0x59   : > { %346 = vst [vmem:[%s3481_s8 + $0x230] sm:$0xff] %v345_v6  ;;  %v473_v6 = vld [vmem:[%s3476_s7 + $0x830] sm:$0xff] }
  0x5a   : > { %348 = vst [vmem:[%s3481_s8 + $0x238] sm:$0xff] %v347_v7  ;;  %v475_v7 = vld [vmem:[%s3476_s7 + $0x838] sm:$0xff] }
  0x5b   : > { %350 = vst [vmem:[%s3481_s8 + $0x240] sm:$0xff] %v349_v8  ;;  %v477_v8 = vld [vmem:[%s3476_s7 + $0x840] sm:$0xff] }
  0x5c   : > { %352 = vst [vmem:[%s3481_s8 + $0x248] sm:$0xff] %v351_v9  ;;  %v479_v9 = vld [vmem:[%s3476_s7 + $0x848] sm:$0xff] }
  0x5d   : > { %354 = vst [vmem:[%s3481_s8 + $0x250] sm:$0xff] %v353_v10  ;;  %v481_v10 = vld [vmem:[%s3476_s7 + $0x850] sm:$0xff] }
  0x5e   : > { %356 = vst [vmem:[%s3481_s8 + $0x258] sm:$0xff] %v355_v11  ;;  %v483_v11 = vld [vmem:[%s3476_s7 + $0x858] sm:$0xff] }
  0x5f   : > { %358 = vst [vmem:[%s3481_s8 + $0x260] sm:$0xff] %v357_v12  ;;  %v485_v12 = vld [vmem:[%s3476_s7 + $0x860] sm:$0xff] }
  0x60   : > { %360 = vst [vmem:[%s3481_s8 + $0x268] sm:$0xff] %v359_v13  ;;  %v487_v13 = vld [vmem:[%s3476_s7 + $0x868] sm:$0xff] }
  0x61   : > { %362 = vst [vmem:[%s3481_s8 + $0x270] sm:$0xff] %v361_v14  ;;  %v489_v14 = vld [vmem:[%s3476_s7 + $0x870] sm:$0xff] }
  0x62   : > { %364 = vst [vmem:[%s3481_s8 + $0x278] sm:$0xff] %v363_v15  ;;  %v491_v15 = vld [vmem:[%s3476_s7 + $0x878] sm:$0xff] }
  0x63   : > { %366 = vst [vmem:[%s3481_s8 + $0x280] sm:$0xff] %v365_v16 }
  0x64   : > { %368 = vst [vmem:[%s3481_s8 + $0x288] sm:$0xff] %v367_v17 }
  0x65   : > { %370 = vst [vmem:[%s3481_s8 + $0x290] sm:$0xff] %v369_v18 }
  0x66   : > { %372 = vst [vmem:[%s3481_s8 + $0x298] sm:$0xff] %v371_v19 }
  0x67   : > { %374 = vst [vmem:[%s3481_s8 + $0x2a0] sm:$0xff] %v373_v20 }
  0x68   : > { %376 = vst [vmem:[%s3481_s8 + $0x2a8] sm:$0xff] %v375_v21 }
  0x69   : > { %378 = vst [vmem:[%s3481_s8 + $0x2b0] sm:$0xff] %v377_v22 }
  0x6a   : > { %380 = vst [vmem:[%s3481_s8 + $0x2b8] sm:$0xff] %v379_v23 }
  0x6b   : > { %382 = vst [vmem:[%s3481_s8 + $0x2c0] sm:$0xff] %v381_v24 }
  0x6c   : > { %384 = vst [vmem:[%s3481_s8 + $0x2c8] sm:$0xff] %v383_v25 }
  0x6d   : > { %386 = vst [vmem:[%s3481_s8 + $0x2d0] sm:$0xff] %v385_v26 }
  0x6e   : > { %388 = vst [vmem:[%s3481_s8 + $0x2d8] sm:$0xff] %v387_v27 }
  0x6f   : > { %390 = vst [vmem:[%s3481_s8 + $0x2e0] sm:$0xff] %v389_v28 }
  0x70   : > { %392 = vst [vmem:[%s3481_s8 + $0x2e8] sm:$0xff] %v391_v29 }
  0x71   : > { %394 = vst [vmem:[%s3481_s8 + $0x2f0] sm:$0xff] %v393_v30 }
  0x72   : > { %396 = vst [vmem:[%s3481_s8 + $0x2f8] sm:$0xff] %v395_v31 }
  0x73   : > { %398 = vst [vmem:[%s3481_s8 + $0x300] sm:$0xff] %v397_v32 }
  0x74   : > { %400 = vst [vmem:[%s3481_s8 + $0x308] sm:$0xff] %v399_v33 }
  0x75   : > { %402 = vst [vmem:[%s3481_s8 + $0x310] sm:$0xff] %v401_v34 }
  0x76   : > { %404 = vst [vmem:[%s3481_s8 + $0x318] sm:$0xff] %v403_v35 }
  0x77   : > { %406 = vst [vmem:[%s3481_s8 + $0x320] sm:$0xff] %v405_v36 }
  0x78   : > { %408 = vst [vmem:[%s3481_s8 + $0x328] sm:$0xff] %v407_v37 }
  0x79   : > { %410 = vst [vmem:[%s3481_s8 + $0x330] sm:$0xff] %v409_v38 }
  0x7a   : > { %412 = vst [vmem:[%s3481_s8 + $0x338] sm:$0xff] %v411_v39 }
  0x7b   : > { %414 = vst [vmem:[%s3481_s8 + $0x340] sm:$0xff] %v413_v40 }
  0x7c   : > { %416 = vst [vmem:[%s3481_s8 + $0x348] sm:$0xff] %v415_v41 }
  0x7d   : > { %418 = vst [vmem:[%s3481_s8 + $0x350] sm:$0xff] %v417_v42 }
  0x7e   : > { %420 = vst [vmem:[%s3481_s8 + $0x358] sm:$0xff] %v419_v43 }
  0x7f   : > { %422 = vst [vmem:[%s3481_s8 + $0x360] sm:$0xff] %v421_v44 }
  0x80   : > { %424 = vst [vmem:[%s3481_s8 + $0x368] sm:$0xff] %v423_v45 }
  0x81   : > { %426 = vst [vmem:[%s3481_s8 + $0x370] sm:$0xff] %v425_v46 }
  0x82   : > { %428 = vst [vmem:[%s3481_s8 + $0x378] sm:$0xff] %v427_v47 }
  0x83   : > { %430 = vst [vmem:[%s3481_s8 + $0x380] sm:$0xff] %v429_v48 }
  0x84   : > { %432 = vst [vmem:[%s3481_s8 + $0x388] sm:$0xff] %v431_v49 }
  0x85   : > { %434 = vst [vmem:[%s3481_s8 + $0x390] sm:$0xff] %v433_v50 }
  0x86   : > { %436 = vst [vmem:[%s3481_s8 + $0x398] sm:$0xff] %v435_v51 }
  0x87   : > { %438 = vst [vmem:[%s3481_s8 + $0x3a0] sm:$0xff] %v437_v52 }
  0x88   : > { %440 = vst [vmem:[%s3481_s8 + $0x3a8] sm:$0xff] %v439_v53 }
  0x89   : > { %442 = vst [vmem:[%s3481_s8 + $0x3b0] sm:$0xff] %v441_v54 }
  0x8a   : > { %444 = vst [vmem:[%s3481_s8 + $0x3b8] sm:$0xff] %v443_v55 }
  0x8b   : > { %446 = vst [vmem:[%s3481_s8 + $0x3c0] sm:$0xff] %v445_v56 }
  0x8c   : > { %448 = vst [vmem:[%s3481_s8 + $0x3c8] sm:$0xff] %v447_v57 }
  0x8d   : > { %450 = vst [vmem:[%s3481_s8 + $0x3d0] sm:$0xff] %v449_v58 }
  0x8e   : > { %452 = vst [vmem:[%s3481_s8 + $0x3d8] sm:$0xff] %v451_v59 }
  0x8f   : > { %454 = vst [vmem:[%s3481_s8 + $0x3e0] sm:$0xff] %v453_v60 }
  0x90   : > { %456 = vst [vmem:[%s3481_s8 + $0x3e8] sm:$0xff] %v455_v61 }
  0x91   : > { %458 = vst [vmem:[%s3481_s8 + $0x3f0] sm:$0xff] %v457_v62 }
  0x92   : > { %460 = vst [vmem:[%s3481_s8 + $0x3f8] sm:$0xff] %v459_v63 }
  0x93   : > { %462 = vst [vmem:[%s3481_s8 + $0x400] sm:$0xff] %v461_v0 }
  0x94   : > { %464 = vst [vmem:[%s3481_s8 + $0x408] sm:$0xff] %v463_v1 }
  0x95   : > { %466 = vst [vmem:[%s3481_s8 + $0x410] sm:$0xff] %v465_v2 }
  0x96   : > { %468 = vst [vmem:[%s3481_s8 + $0x418] sm:$0xff] %v467_v3 }
  0x97   : > { %470 = vst [vmem:[%s3481_s8 + $0x420] sm:$0xff] %v469_v4 }
  0x98   : > { %472 = vst [vmem:[%s3481_s8 + $0x428] sm:$0xff] %v471_v5 }
  0x99   : > { %474 = vst [vmem:[%s3481_s8 + $0x430] sm:$0xff] %v473_v6 }
  0x9a   : > { %476 = vst [vmem:[%s3481_s8 + $0x438] sm:$0xff] %v475_v7 }
  0x9b   : > { %478 = vst [vmem:[%s3481_s8 + $0x440] sm:$0xff] %v477_v8 }
  0x9c   : > { %480 = vst [vmem:[%s3481_s8 + $0x448] sm:$0xff] %v479_v9 }
  0x9d   : > { %482 = vst [vmem:[%s3481_s8 + $0x450] sm:$0xff] %v481_v10 }
  0x9e   : > { %484 = vst [vmem:[%s3481_s8 + $0x458] sm:$0xff] %v483_v11 }
  0x9f   : > { %486 = vst [vmem:[%s3481_s8 + $0x460] sm:$0xff] %v485_v12 }
  0xa0   : > { %488 = vst [vmem:[%s3481_s8 + $0x468] sm:$0xff] %v487_v13 }
  0xa1   : > { %490 = vst [vmem:[%s3481_s8 + $0x470] sm:$0xff] %v489_v14 }
  0xa2   : > { %492 = vst [vmem:[%s3481_s8 + $0x478] sm:$0xff] %v491_v15 }
  0xa3 PF: > { %p2659_p7 = scmp.ge.s32.totalorder %s3402_s20, 1  ;;  %p497_p8 = scmp.lt.s32.totalorder %s3402_s20, 3 }
  0xa5   : > { %p498_p9 = pnand %p2659_p7, %p497_p8 }
  0xa6   : > { %s504_s9 = sand.u32 (!%p498_p9), 1, %s3394_s18   ;;  %p542_p10 = scmp.lt.s32.totalorder (!%p498_p9), %s3451_s21, 1 }
  0xa7   : > { %501 = sbr.rel (%p498_p9) target bundleno = 608 (0x260), region = 51  ;;  %s2660_s24 = sshll.u32 (!%p498_p9), %s504_s9, 8 }
  0xa8   : > { %s3352_s10 = smul.u32 (!%p498_p9), 1152, %s504_s9  ;;  %s4157_s27 = scalar_lea.vmem (!%p498_p9), [#allocation3], %s2660_s24 }
  0xaa   : > { %s3773_s11 = scalar_lea.vmem (!%p498_p9), [#allocation2], %s3352_s10 }
  0xac   : > { %v683_v16 = vld [vmem:[%s3773_s11 + $0x400] sm:$0xff]  ;;  %v684_v17 = vld [vmem:[%s3773_s11 + $0x408] sm:$0xff]  ;;  %vm1440_vm0 = vcmask 1043456   ;;  %v685_v62 = vld [vmem:[%s3773_s11 + $0x410] sm:$0xff]  ;;  %v3404_v2 = vmov 0   ;;  %vm1436_vm1 = vcmask 588800  }
  0xad   : > { %v1116_v18 = vunpack.c.l.b16 %v683_v16  ;;  %v1117_v19 = vunpack.c.h.b16 %v683_v16  ;;  %v1118_v20 = vunpack.c.l.b16 %v684_v17  ;;  %v1119_v21 = vunpack.c.h.b16 %v684_v17  ;;  %v3055_v22 = vld [vmem:[%s3773_s11 + $0x300] sm:$0xf]  ;;  %v3318_v28 = vld [vmem:[%s3773_s11 + $0x304] sm:$0xf]  ;;  %v3063_v30 = vld [vmem:[%s3773_s11 + $0x308] sm:$0xf]  ;;  %3378 = vset.pattern.permute.xlu0 %v3404_v2 }
  0xae   : > { %v3334_v23 = vld [vmem:[%s3773_s11 + $0x37c] sm:$0xf0]  ;;  %v3057_v29 = vld [vmem:[%s3773_s11 + $0x380] sm:$0xf0]  ;;  %v3335_v31 = vld [vmem:[%s3773_s11 + $0x384] sm:$0xf0]  ;;  %v1120_v0 = vunpack.c.l.b16 %v685_v62  ;;  %v1121_v1 = vunpack.c.h.b16 %v685_v62 }
  0xaf   : > { %v1276_v24 = vpack.c.b16 %v1116_v18, %v1116_v18  ;;  %v1277_v25 = vpack.c.b16 %v1117_v19, %v1117_v19  ;;  %v1278_v26 = vpack.c.b16 %v1118_v20, %v1118_v20  ;;  %v1279_v27 = vpack.c.b16 %v1119_v21, %v1119_v21  ;;  %v3319_v32 = vld [vmem:[%s3773_s11 + $0x30c] sm:$0xf]  ;;  %v2927_v40 = vld [vmem:[%s3773_s11 + $0x200] sm:$0xf]  ;;  %v3286_v44 = vld [vmem:[%s3773_s11 + $0x204] sm:$0xf] }
  0xb0   : > { %v3065_v33 = vld [vmem:[%s3773_s11 + $0x388] sm:$0xf0]  ;;  %v3056_v38 = vor.u32 %v3334_v23, %v3055_v22  ;;  %v3060_v39 = vor.u32 %v3318_v28, %v3057_v29  ;;  %v3302_v41 = vld [vmem:[%s3773_s11 + $0x27c] sm:$0xf0]  ;;  %v3064_v42 = vor.u32 %v3335_v31, %v3063_v30  ;;  %v2929_v45 = vld [vmem:[%s3773_s11 + $0x280] sm:$0xf0]  ;;  %v1280_v18 = vpack.c.b16 %v1120_v0, %v1120_v0 }
  0xb1   : > { %v1442_v34 = vsel %vm1440_vm0, %v1276_v24, 0  ;;  %v1445_v35 = vsel %vm1440_vm0, %v1277_v25, 0  ;;  %v1448_v36 = vsel %vm1440_vm0, %v1278_v26, 0  ;;  %v1451_v37 = vsel %vm1440_vm0, %v1279_v27, 0  ;;  %v2935_v46 = vld [vmem:[%s3773_s11 + $0x208] sm:$0xf] }
  0xb2   : > { %1540 = vmatpush.bf16.msra.mxu0 %v1442_v34  ;;  %1554 = vmatpush.bf16.msra.mxu1 %v1445_v35  ;;  %v3068_v43 = vor.u32 %v3319_v32, %v3065_v33  ;;  %v3303_v47 = vld [vmem:[%s3773_s11 + $0x284] sm:$0xf0]  ;;  %v3287_v48 = vld [vmem:[%s3773_s11 + $0x20c] sm:$0xf]  ;;  %v2799_v50 = vld [vmem:[%s3773_s11 + $0x100] sm:$0xf]  ;;  %v2928_v51 = vor.u32 %v3302_v41, %v2927_v40  ;;  %v2932_v52 = vor.u32 %v3286_v44, %v2929_v45 }
  0xb3   : > { %1568 = vmatpush.bf16.msra.mxu2 %v1448_v36  ;;  %1582 = vmatpush.bf16.msra.mxu3 %v1451_v37  ;;  %v2937_v49 = vld [vmem:[%s3773_s11 + $0x288] sm:$0xf0]  ;;  %v3270_v53 = vld [vmem:[%s3773_s11 + $0x17c] sm:$0xf0]  ;;  %v3254_v54 = vld [vmem:[%s3773_s11 + $0x104] sm:$0xf]  ;;  %v2936_v56 = vor.u32 %v3303_v47, %v2935_v46  ;;  %v1281_v19 = vpack.c.b16 %v1121_v1, %v1121_v1 }
  0xb4   : > { %v2801_v55 = vld [vmem:[%s3773_s11 + $0x180] sm:$0xf0]  ;;  %v2940_v57 = vor.u32 %v3287_v48, %v2937_v49  ;;  %v2807_v58 = vld [vmem:[%s3773_s11 + $0x108] sm:$0xf]  ;;  %v3255_v60 = vld [vmem:[%s3773_s11 + $0x10c] sm:$0xf]  ;;  %v2800_v3 = vor.u32 %v3270_v53, %v2799_v50 }
  0xb5   : > { %v3271_v59 = vld [vmem:[%s3773_s11 + $0x184] sm:$0xf0]  ;;  %v2809_v61 = vld [vmem:[%s3773_s11 + $0x188] sm:$0xf0]  ;;  %v686_v63 = vld [vmem:[%s3773_s11 + $0x418] sm:$0xff]  ;;  %v2804_v4 = vor.u32 %v3254_v54, %v2801_v55  ;;  %v1454_v31 = vsel %vm1440_vm0, %v1280_v18, 0 }
  0xb6   : > { %1541 = vmatpush.bf16.msra.mxu0 %v3056_v38  ;;  %1555 = vmatpush.bf16.msra.mxu1 %v3060_v39  ;;  %v2671_v5 = vld [vmem:[%s3773_s11] sm:$0xf]  ;;  %v1122_v7 = vunpack.c.l.b16 %v686_v63  ;;  %v1123_v8 = vunpack.c.h.b16 %v686_v63  ;;  %v2808_v9 = vor.u32 %v3271_v59, %v2807_v58  ;;  %v2812_v10 = vor.u32 %v3255_v60, %v2809_v61  ;;  %v3222_v11 = vld [vmem:[%s3773_s11 + $0x4] sm:$0xf]  ;;  %v2679_v13 = vld [vmem:[%s3773_s11 + $0x8] sm:$0xf] }
  0xb7   : > { %1569 = vmatpush.bf16.msra.mxu2 %v3064_v42  ;;  %1583 = vmatpush.bf16.msra.mxu3 %v3068_v43  ;;  %v3238_v6 = vld [vmem:[%s3773_s11 + $0x7c] sm:$0xf0]  ;;  %v2673_v12 = vld [vmem:[%s3773_s11 + $0x80] sm:$0xf0]  ;;  %v3239_v14 = vld [vmem:[%s3773_s11 + $0x84] sm:$0xf0] }
  0xb8   : > { %v3223_v15 = vld [vmem:[%s3773_s11 + $0xc] sm:$0xf]  ;;  %v2672_v17 = vor.u32 %v3238_v6, %v2671_v5  ;;  %v699_v20 = vld [vmem:[%s4483_s2] sm:$0xff]  ;;  %v2676_v21 = vor.u32 %v3222_v11, %v2673_v12  ;;  %v1282_v22 = vpack.c.b16 %v1122_v7, %v1122_v7  ;;  %v1283_v23 = vpack.c.b16 %v1123_v8, %v1123_v8  ;;  %v3071_v26 = vld [vmem:[%s3773_s11 + $0x310] sm:$0xf]  ;;  %s543_s18 = scalar_select %p542_p10, %s3451_s21, 1 }
  0xb9   : > { %v2681_v16 = vld [vmem:[%s3773_s11 + $0x88] sm:$0xf0]  ;;  %v2680_v24 = vor.u32 %v3239_v14, %v2679_v13  ;;  %v3822_v27 = vld [vmem:[%s4481_s0] sm:$0xff]  ;;  %v3336_v28 = vld [vmem:[%s3773_s11 + $0x38c] sm:$0xf0]  ;;  %703 = vperm.xlu0 %3378, %v699_v20   ;;  %v1457_v32 = vsel %vm1440_vm0, %v1281_v19, 0 }
  0xba   : > { %1542 = vmatpush.bf16.msra.mxu0 %v2928_v51  ;;  %1556 = vmatpush.bf16.msra.mxu1 %v2932_v52  ;;  %v2684_v25 = vor.u32 %v3223_v15, %v2681_v16  ;;  %v3320_v29 = vld [vmem:[%s3773_s11 + $0x314] sm:$0xf]  ;;  %v3079_v33 = vld [vmem:[%s3773_s11 + $0x318] sm:$0xf]  ;;  %v1460_v35 = vsel %vm1440_vm0, %v1282_v22, 0  ;;  %v1463_v36 = vsel %vm1440_vm0, %v1283_v23, 0  ;;  %v3072_v39 = vor.u32 %v3336_v28, %v3071_v26 }
  0xbb   : > { %1570 = vmatpush.bf16.msra.mxu2 %v2936_v56  ;;  %1584 = vmatpush.bf16.msra.mxu3 %v2940_v57  ;;  %v3073_v30 = vld [vmem:[%s3773_s11 + $0x390] sm:$0xf0]  ;;  %v3337_v34 = vld [vmem:[%s3773_s11 + $0x394] sm:$0xf0]  ;;  %v3321_v37 = vld [vmem:[%s3773_s11 + $0x31c] sm:$0xf] }
  0xbc   : > { %v3081_v38 = vld [vmem:[%s3773_s11 + $0x398] sm:$0xf0]  ;;  %v3076_v40 = vor.u32 %v3320_v29, %v3073_v30  ;;  %v2943_v41 = vld [vmem:[%s3773_s11 + $0x210] sm:$0xf]  ;;  %v3288_v43 = vld [vmem:[%s3773_s11 + $0x214] sm:$0xf]  ;;  %v3080_v44 = vor.u32 %v3337_v34, %v3079_v33 }
  0xbd   : > { %v3304_v42 = vld [vmem:[%s3773_s11 + $0x28c] sm:$0xf0]  ;;  %v3084_v45 = vor.u32 %v3321_v37, %v3081_v38  ;;  %v2945_v46 = vld [vmem:[%s3773_s11 + $0x290] sm:$0xf0]  ;;  %v2951_v47 = vld [vmem:[%s3773_s11 + $0x218] sm:$0xf] }
  0xbe   : > { %1543 = vmatpush.bf16.msra.mxu0 %v2800_v3  ;;  %1557 = vmatpush.bf16.msra.mxu1 %v2804_v4  ;;  %v3305_v48 = vld [vmem:[%s3773_s11 + $0x294] sm:$0xf0]  ;;  %v3289_v49 = vld [vmem:[%s3773_s11 + $0x21c] sm:$0xf]  ;;  %v687_v51 = vld [vmem:[%s3773_s11 + $0x420] sm:$0xff]  ;;  %v2944_v54 = vor.u32 %v3304_v42, %v2943_v41  ;;  %v2948_v55 = vor.u32 %v3288_v43, %v2945_v46  ;;  %s3219_s28 = sshll.u32 %s543_s18, 4 }
  0xbf   : > { %1571 = vmatpush.bf16.msra.mxu2 %v2808_v9  ;;  %1585 = vmatpush.bf16.msra.mxu3 %v2812_v10  ;;  %v2953_v50 = vld [vmem:[%s3773_s11 + $0x298] sm:$0xf0]  ;;  %v2815_v52 = vld [vmem:[%s3773_s11 + $0x110] sm:$0xf]  ;;  %v700_v53 = vld [vmem:[%s4483_s2 + $0x8] sm:$0xff]  ;;  %v2952_v59 = vor.u32 %v3305_v48, %v2951_v47  ;;  %v1124_v63 = vunpack.c.l.b16 %v687_v51  ;;  %v1125_v0 = vunpack.c.h.b16 %v687_v51  ;;  %s546_s6 = scalar_lea.vmem %s4485_s4, %s3219_s28  ;;  %s551_s9 = scalar_lea.vmem %s4486_s5, %s3219_s28 }
  0xc0   : > { %v3272_v56 = vld [vmem:[%s3773_s11 + $0x18c] sm:$0xf0]  ;;  %v3256_v57 = vld [vmem:[%s3773_s11 + $0x114] sm:$0xf]  ;;  %v2956_v60 = vor.u32 %v3289_v49, %v2953_v50  ;;  %v2823_v61 = vld [vmem:[%s3773_s11 + $0x118] sm:$0xf] }
  0xc1   : > { %v2817_v58 = vld [vmem:[%s3773_s11 + $0x190] sm:$0xf0]  ;;  %v3273_v62 = vld [vmem:[%s3773_s11 + $0x194] sm:$0xf0]  ;;  %v688_v1 = vld [vmem:[%s3773_s11 + $0x428] sm:$0xff]  ;;  %708 = vperm.xlu0 %3378, %v700_v53   ;;  %v2816_v4 = vor.u32 %v3272_v56, %v2815_v52  ;;  %v1284_v15 = vpack.c.b16 %v1124_v63, %v1124_v63  ;;  %v1285_v16 = vpack.c.b16 %v1125_v0, %v1125_v0  ;;  %s3350_s10 = sshll.u32 (%p3466_p5), %s3451_s21, 7 }
  0xc2   : > { %1544 = vmatpush.bf16.msra.mxu0 %v2672_v17  ;;  %1558 = vmatpush.bf16.msra.mxu1 %v2676_v21  ;;  %v3257_v2 = vld [vmem:[%s3773_s11 + $0x11c] sm:$0xf]  ;;  %v2820_v5 = vor.u32 %v3256_v57, %v2817_v58  ;;  %v2824_v6 = vor.u32 %v3273_v62, %v2823_v61  ;;  %v2687_v7 = vld [vmem:[%s3773_s11 + $0x10] sm:$0xf]  ;;  %v1126_v9 = vunpack.c.l.b16 %v688_v1  ;;  %v1127_v10 = vunpack.c.h.b16 %v688_v1  ;;  %v3224_v12 = vld [vmem:[%s3773_s11 + $0x14] sm:$0xf]  ;;  %s4407_s13 = scalar_lea.vmem (%p3466_p5), %s4484_s3, %s3350_s10 }
  0xc3   : > { %1572 = vmatpush.bf16.msra.mxu2 %v2680_v24  ;;  %1586 = vmatpush.bf16.msra.mxu3 %v2684_v25  ;;  %v2825_v3 = vld [vmem:[%s3773_s11 + $0x198] sm:$0xf0]  ;;  %v3240_v8 = vld [vmem:[%s3773_s11 + $0x8c] sm:$0xf0]  ;;  %v2689_v13 = vld [vmem:[%s3773_s11 + $0x90] sm:$0xf0] }
  0xc4   : > { %v2828_v11 = vor.u32 %v3257_v2, %v2825_v3  ;;  %v2695_v14 = vld [vmem:[%s3773_s11 + $0x18] sm:$0xf]  ;;  %v3225_v18 = vld [vmem:[%s3773_s11 + $0x1c] sm:$0xf]  ;;  %v2688_v20 = vor.u32 %v3240_v8, %v2687_v7  ;;  %v2692_v21 = vor.u32 %v3224_v12, %v2689_v13  ;;  %v1286_v22 = vpack.c.b16 %v1126_v9, %v1126_v9  ;;  %v3087_v29 = vld [vmem:[%s3773_s11 + $0x320] sm:$0xf] }
  0xc5   : > { %3181 = vmatmul.msk.bf16.vlgmr.msra.gmra.mxu0 %vm1436_vm1, %v3822_v27  ;;  %3182 = vmatmul.msk.bf16.vlgmr.msra.gmra.mxu1 %vm1436_vm1, %v3822_v27  ;;  %v3241_v17 = vld [vmem:[%s3773_s11 + $0x94] sm:$0xf0]  ;;  %v2697_v19 = vld [vmem:[%s3773_s11 + $0x98] sm:$0xf0]  ;;  %v1287_v23 = vpack.c.b16 %v1127_v10, %v1127_v10  ;;  %v1466_v26 = vsel %vm1440_vm0, %v1284_v15, 0  ;;  %v1469_v28 = vsel %vm1440_vm0, %v1285_v16, 0 }
  0xc6   : > { %1596 = vmatpush.bf16.msrb.mxu0 %v1454_v31  ;;  %1610 = vmatpush.bf16.msrb.mxu1 %v1457_v32  ;;  %v2696_v24 = vor.u32 %v3241_v17, %v2695_v14  ;;  %v2700_v25 = vor.u32 %v3225_v18, %v2697_v19  ;;  %v3338_v30 = vld [vmem:[%s3773_s11 + $0x39c] sm:$0xf0]  ;;  %v3322_v31 = vld [vmem:[%s3773_s11 + $0x324] sm:$0xf]  ;;  %v3095_v33 = vld [vmem:[%s3773_s11 + $0x328] sm:$0xf] }
  0xc7   : > { %1624 = vmatpush.bf16.msrb.mxu2 %v1460_v35  ;;  %1638 = vmatpush.bf16.msrb.mxu3 %v1463_v36  ;;  %v3089_v32 = vld [vmem:[%s3773_s11 + $0x3a0] sm:$0xf0]  ;;  %v3339_v34 = vld [vmem:[%s3773_s11 + $0x3a4] sm:$0xf0]  ;;  %v1472_v35 = vsel %vm1440_vm0, %v1286_v22, 0  ;;  %v1475_v36 = vsel %vm1440_vm0, %v1287_v23, 0 }
  0xc8   : > { %3183 = vmatmul.msk.bf16.vlgmr.msra.gmra.mxu2 %vm1436_vm1, %v3822_v27  ;;  %3184 = vmatmul.msk.bf16.vlgmr.msra.gmra.mxu3 %vm1436_vm1, %v3822_v27  ;;  %v3323_v37 = vld [vmem:[%s3773_s11 + $0x32c] sm:$0xf]  ;;  %v2959_v41 = vld [vmem:[%s3773_s11 + $0x220] sm:$0xf]  ;;  %v3096_v43 = vor.u32 %v3339_v34, %v3095_v33  ;;  %v2961_v46 = vld [vmem:[%s3773_s11 + $0x2a0] sm:$0xf0] }
  0xc9   : > { %v3097_v38 = vld [vmem:[%s3773_s11 + $0x3a8] sm:$0xf0]  ;;  %v3306_v42 = vld [vmem:[%s3773_s11 + $0x29c] sm:$0xf0]  ;;  %v2967_v47 = vld [vmem:[%s3773_s11 + $0x228] sm:$0xf] }
  0xca   : > { %1597 = vmatpush.bf16.msrb.mxu0 %v3072_v39  ;;  %1611 = vmatpush.bf16.msrb.mxu1 %v3076_v40  ;;  %v3088_v39 = vor.u32 %v3338_v30, %v3087_v29  ;;  %v3092_v40 = vor.u32 %v3322_v31, %v3089_v32  ;;  %v3307_v48 = vld [vmem:[%s3773_s11 + $0x2a4] sm:$0xf0]  ;;  %v3291_v49 = vld [vmem:[%s3773_s11 + $0x22c] sm:$0xf]  ;;  %v2831_v51 = vld [vmem:[%s3773_s11 + $0x120] sm:$0xf]  ;;  %v2960_v52 = vor.u32 %v3306_v42, %v2959_v41 }
  0xcb   : > { %1625 = vmatpush.bf16.msrb.mxu2 %v3080_v44  ;;  %1639 = vmatpush.bf16.msrb.mxu3 %v3084_v45  ;;  %v3100_v44 = vor.u32 %v3323_v37, %v3097_v38  ;;  %v3290_v45 = vld [vmem:[%s3773_s11 + $0x224] sm:$0xf]  ;;  %v2969_v50 = vld [vmem:[%s3773_s11 + $0x2a8] sm:$0xf0]  ;;  %v689_v56 = vld [vmem:[%s3773_s11 + $0x430] sm:$0xff]  ;;  %v2968_v57 = vor.u32 %v3307_v48, %v2967_v47 }
  0xcc   : > { %v2964_v53 = vor.u32 %v3290_v45, %v2961_v46  ;;  %v2972_v58 = vor.u32 %v3291_v49, %v2969_v50  ;;  %v690_v61 = vld [vmem:[%s3773_s11 + $0x438] sm:$0xff]  ;;  %v3275_v62 = vld [vmem:[%s3773_s11 + $0x1a4] sm:$0xf0]  ;;  %v3259_v63 = vld [vmem:[%s3773_s11 + $0x12c] sm:$0xf]  ;;  %v1128_v1 = vunpack.c.l.b16 %v689_v56  ;;  %v1129_v2 = vunpack.c.h.b16 %v689_v56 }
  0xcd   : > { %v2841_v0 = vld [vmem:[%s3773_s11 + $0x1a8] sm:$0xf0]  ;;  %v1130_v7 = vunpack.c.l.b16 %v690_v61  ;;  %v1131_v8 = vunpack.c.h.b16 %v690_v61  ;;  %v2705_v12 = vld [vmem:[%s3773_s11 + $0xa0] sm:$0xf0]  ;;  %v2711_v13 = vld [vmem:[%s3773_s11 + $0x28] sm:$0xf] }
  0xce   : > { %1598 = vmatpush.bf16.msrb.mxu0 %v2944_v54  ;;  %1612 = vmatpush.bf16.msrb.mxu1 %v2948_v55  ;;  %v3274_v54 = vld [vmem:[%s3773_s11 + $0x19c] sm:$0xf0]  ;;  %v3258_v55 = vld [vmem:[%s3773_s11 + $0x124] sm:$0xf]  ;;  %v2844_v10 = vor.u32 %v3259_v63, %v2841_v0  ;;  %v3243_v14 = vld [vmem:[%s3773_s11 + $0xa4] sm:$0xf0]  ;;  %v1288_v18 = vpack.c.b16 %v1128_v1, %v1128_v1  ;;  %v1289_v19 = vpack.c.b16 %v1129_v2, %v1129_v2 }
  0xcf   : > { %1626 = vmatpush.bf16.msrb.mxu2 %v2952_v59  ;;  %1640 = vmatpush.bf16.msrb.mxu3 %v2956_v60  ;;  %v2833_v59 = vld [vmem:[%s3773_s11 + $0x1a0] sm:$0xf0]  ;;  %v2839_v60 = vld [vmem:[%s3773_s11 + $0x128] sm:$0xf]  ;;  %v2832_v3 = vor.u32 %v3274_v54, %v2831_v51  ;;  %v3227_v15 = vld [vmem:[%s3773_s11 + $0x2c] sm:$0xf]  ;;  %v1291_v22 = vpack.c.b16 %v1131_v8, %v1131_v8  ;;  %v2712_v23 = vor.u32 %v3243_v14, %v2711_v13 }
  0xd0   : > { %v2840_v9 = vor.u32 %v3275_v62, %v2839_v60  ;;  %v2713_v16 = vld [vmem:[%s3773_s11 + $0xa8] sm:$0xf0]  ;;  %v3105_v29 = vld [vmem:[%s3773_s11 + $0x3b0] sm:$0xf0]  ;;  %v1478_v30 = vsel %vm1440_vm0, %v1288_v18, 0  ;;  %v1481_v31 = vsel %vm1440_vm0, %v1289_v19, 0 }
  0xd1   : > { %v3111_v32 = vld [vmem:[%s3773_s11 + $0x338] sm:$0xf]  ;;  %v3113_v37 = vld [vmem:[%s3773_s11 + $0x3b8] sm:$0xf0]  ;;  %v3308_v41 = vld [vmem:[%s3773_s11 + $0x2ac] sm:$0xf0] }
  0xd2   : > { %1599 = vmatpush.bf16.msrb.mxu0 %v2816_v4  ;;  %1613 = vmatpush.bf16.msrb.mxu1 %v2820_v5  ;;  %v2836_v4 = vor.u32 %v3258_v55, %v2833_v59  ;;  %v2703_v5 = vld [vmem:[%s3773_s11 + $0x20] sm:$0xf]  ;;  %v3341_v33 = vld [vmem:[%s3773_s11 + $0x3b4] sm:$0xf0]  ;;  %v2977_v45 = vld [vmem:[%s3773_s11 + $0x2b0] sm:$0xf0] }
  0xd3   : > { %1627 = vmatpush.bf16.msrb.mxu2 %v2824_v6  ;;  %1641 = vmatpush.bf16.msrb.mxu3 %v2828_v11  ;;  %v3242_v6 = vld [vmem:[%s3773_s11 + $0x9c] sm:$0xf0]  ;;  %v3226_v11 = vld [vmem:[%s3773_s11 + $0x24] sm:$0xf]  ;;  %v3112_v42 = vor.u32 %v3341_v33, %v3111_v32  ;;  %v2983_v46 = vld [vmem:[%s3773_s11 + $0x238] sm:$0xf] }
  0xd4   : > { %v2704_v17 = vor.u32 %v3242_v6, %v2703_v5  ;;  %v3309_v47 = vld [vmem:[%s3773_s11 + $0x2b4] sm:$0xf0]  ;;  %v3293_v48 = vld [vmem:[%s3773_s11 + $0x23c] sm:$0xf]  ;;  %v2847_v50 = vld [vmem:[%s3773_s11 + $0x130] sm:$0xf] }
  0xd5   : > { %v2985_v49 = vld [vmem:[%s3773_s11 + $0x2b8] sm:$0xf0]  ;;  %v3260_v54 = vld [vmem:[%s3773_s11 + $0x134] sm:$0xf]  ;;  %v691_v55 = vld [vmem:[%s3773_s11 + $0x440] sm:$0xff]  ;;  %v2984_v56 = vor.u32 %v3309_v47, %v2983_v46 }
  0xd6   : > { %1600 = vmatpush.bf16.msrb.mxu0 %v2688_v20  ;;  %1614 = vmatpush.bf16.msrb.mxu1 %v2692_v21  ;;  %v2708_v20 = vor.u32 %v3226_v11, %v2705_v12  ;;  %v1290_v21 = vpack.c.b16 %v1130_v7, %v1130_v7  ;;  %v2855_v59 = vld [vmem:[%s3773_s11 + $0x138] sm:$0xf]  ;;  %v692_v60 = vld [vmem:[%s3773_s11 + $0x448] sm:$0xff]  ;;  %v3261_v62 = vld [vmem:[%s3773_s11 + $0x13c] sm:$0xf]  ;;  %v1132_v0 = vunpack.c.l.b16 %v691_v55  ;;  %v1133_v1 = vunpack.c.h.b16 %v691_v55 }
  0xd7   : > { %1628 = vmatpush.bf16.msrb.mxu2 %v2696_v24  ;;  %1642 = vmatpush.bf16.msrb.mxu3 %v2700_v25  ;;  %v2716_v24 = vor.u32 %v3227_v15, %v2713_v16  ;;  %v3103_v25 = vld [vmem:[%s3773_s11 + $0x330] sm:$0xf]  ;;  %v3277_v61 = vld [vmem:[%s3773_s11 + $0x1b4] sm:$0xf0]  ;;  %v2857_v63 = vld [vmem:[%s3773_s11 + $0x1b8] sm:$0xf0]  ;;  %v1134_v6 = vunpack.c.l.b16 %v692_v60  ;;  %v1135_v7 = vunpack.c.h.b16 %v692_v60 }
  0xd8   : > { %v1484_v34 = vsel %vm1440_vm0, %v1290_v21, 0  ;;  %v3244_v5 = vld [vmem:[%s3773_s11 + $0xac] sm:$0xf0]  ;;  %v2856_v8 = vor.u32 %v3277_v61, %v2855_v59  ;;  %v2721_v11 = vld [vmem:[%s3773_s11 + $0xb0] sm:$0xf0]  ;;  %v1293_v18 = vpack.c.b16 %v1133_v1, %v1133_v1 }
  0xd9   : > { %3185 = vmatmul.msk.bf16.vlgmr.msrb.gmra.mxu0 %vm1436_vm1, %v3822_v27  ;;  %3186 = vmatmul.msk.bf16.vlgmr.msrb.gmra.mxu1 %vm1436_vm1, %v3822_v27  ;;  %v2727_v12 = vld [vmem:[%s3773_s11 + $0x38] sm:$0xf]  ;;  %v3229_v14 = vld [vmem:[%s3773_s11 + $0x3c] sm:$0xf]  ;;  %v1295_v21 = vpack.c.b16 %v1135_v7, %v1135_v7  ;;  %v3343_v32 = vld [vmem:[%s3773_s11 + $0x3c4] sm:$0xf0] }
  0xda   : > { %1652 = vmatpush.bf16.msra.mxu0 %v1466_v26  ;;  %1666 = vmatpush.bf16.msra.mxu1 %v1469_v28  ;;  %v3340_v26 = vld [vmem:[%s3773_s11 + $0x3ac] sm:$0xf0]  ;;  %v3324_v28 = vld [vmem:[%s3773_s11 + $0x334] sm:$0xf]  ;;  %v3245_v13 = vld [vmem:[%s3773_s11 + $0xb4] sm:$0xf0] }
  0xdb   : > { %1680 = vmatpush.bf16.msra.mxu2 %v1472_v35  ;;  %1694 = vmatpush.bf16.msra.mxu3 %v1475_v36  ;;  %v1487_v35 = vsel %vm1440_vm0, %v1291_v22, 0  ;;  %v3325_v36 = vld [vmem:[%s3773_s11 + $0x33c] sm:$0xf]  ;;  %v3104_v38 = vor.u32 %v3340_v26, %v3103_v25  ;;  %v2728_v22 = vor.u32 %v3245_v13, %v2727_v12  ;;  %v3342_v25 = vld [vmem:[%s3773_s11 + $0x3bc] sm:$0xf0] }
  0xdc   : > { %3187 = vmatmul.msk.bf16.vlgmr.msrb.gmra.mxu2 %vm1436_vm1, %v3822_v27  ;;  %3188 = vmatmul.msk.bf16.vlgmr.msrb.gmra.mxu3 %vm1436_vm1, %v3822_v27  ;;  %v2729_v15 = vld [vmem:[%s3773_s11 + $0xb8] sm:$0xf0]  ;;  %v3326_v26 = vld [vmem:[%s3773_s11 + $0x344] sm:$0xf]  ;;  %v3311_v46 = vld [vmem:[%s3773_s11 + $0x2c4] sm:$0xf0] }
  0xdd   : > { %v3295_v47 = vld [vmem:[%s3773_s11 + $0x24c] sm:$0xf]  ;;  %v3262_v55 = vld [vmem:[%s3773_s11 + $0x144] sm:$0xf]  ;;  %v2871_v59 = vld [vmem:[%s3773_s11 + $0x148] sm:$0xf] }
  0xde   : > { %1653 = vmatpush.bf16.msra.mxu0 %v3088_v39  ;;  %1667 = vmatpush.bf16.msra.mxu1 %v3092_v40  ;;  %v3108_v39 = vor.u32 %v3324_v28, %v3105_v29  ;;  %v2975_v40 = vld [vmem:[%s3773_s11 + $0x230] sm:$0xf]  ;;  %v3121_v28 = vld [vmem:[%s3773_s11 + $0x3c0] sm:$0xf0]  ;;  %v3279_v60 = vld [vmem:[%s3773_s11 + $0x1c4] sm:$0xf0] }
  0xdf   : > { %1681 = vmatpush.bf16.msra.mxu2 %v3096_v43  ;;  %1695 = vmatpush.bf16.msra.mxu3 %v3100_v44  ;;  %v3116_v43 = vor.u32 %v3325_v36, %v3113_v37  ;;  %v3292_v44 = vld [vmem:[%s3773_s11 + $0x234] sm:$0xf]  ;;  %v2976_v51 = vor.u32 %v3308_v41, %v2975_v40  ;;  %v3129_v36 = vld [vmem:[%s3773_s11 + $0x3c8] sm:$0xf0]  ;;  %v3310_v40 = vld [vmem:[%s3773_s11 + $0x2bc] sm:$0xf0] }
  0xe0   : > { %v3294_v41 = vld [vmem:[%s3773_s11 + $0x244] sm:$0xf]  ;;  %v3246_v7 = vld [vmem:[%s3773_s11 + $0xbc] sm:$0xf0] }
  0xe2   : > { %1654 = vmatpush.bf16.msra.mxu0 %v2960_v52  ;;  %1668 = vmatpush.bf16.msra.mxu1 %v2964_v53  ;;  %v2980_v52 = vor.u32 %v3292_v44, %v2977_v45  ;;  %v3276_v53 = vld [vmem:[%s3773_s11 + $0x1ac] sm:$0xf0]  ;;  %v2993_v44 = vld [vmem:[%s3773_s11 + $0x2c0] sm:$0xf0]  ;;  %v2999_v45 = vld [vmem:[%s3773_s11 + $0x248] sm:$0xf] }
  0xe3   : > { %1682 = vmatpush.bf16.msra.mxu2 %v2968_v57  ;;  %1696 = vmatpush.bf16.msra.mxu3 %v2972_v58  ;;  %v2988_v57 = vor.u32 %v3293_v48, %v2985_v49  ;;  %v2849_v58 = vld [vmem:[%s3773_s11 + $0x1b0] sm:$0xf0]  ;;  %v2848_v2 = vor.u32 %v3276_v53, %v2847_v50  ;;  %v3001_v48 = vld [vmem:[%s3773_s11 + $0x2c8] sm:$0xf0]  ;;  %v694_v50 = vld [vmem:[%s3773_s11 + $0x458] sm:$0xff] }
  0xe4   : > { %v693_v49 = vld [vmem:[%s3773_s11 + $0x450] sm:$0xff]  ;;  %v2863_v53 = vld [vmem:[%s3773_s11 + $0x140] sm:$0xf]  ;;  %v1138_v1 = vunpack.c.l.b16 %v694_v50 }
  0xe5   : > { %v1136_v61 = vunpack.c.l.b16 %v693_v49 }
  0xe6   : > { %1655 = vmatpush.bf16.msra.mxu0 %v2832_v3  ;;  %1669 = vmatpush.bf16.msra.mxu1 %v2836_v4  ;;  %v2852_v3 = vor.u32 %v3260_v54, %v2849_v58  ;;  %v2719_v4 = vld [vmem:[%s3773_s11 + $0x30] sm:$0xf]  ;;  %v3278_v54 = vld [vmem:[%s3773_s11 + $0x1bc] sm:$0xf0]  ;;  %v2865_v58 = vld [vmem:[%s3773_s11 + $0x1c0] sm:$0xf0] }
  0xe7   : > { %1683 = vmatpush.bf16.msra.mxu2 %v2840_v9  ;;  %1697 = vmatpush.bf16.msra.mxu3 %v2844_v10  ;;  %v2860_v9 = vor.u32 %v3261_v62, %v2857_v63  ;;  %v3228_v10 = vld [vmem:[%s3773_s11 + $0x34] sm:$0xf]  ;;  %v2720_v16 = vor.u32 %v3244_v5, %v2719_v4  ;;  %v1137_v62 = vunpack.c.h.b16 %v693_v49  ;;  %v3263_v63 = vld [vmem:[%s3773_s11 + $0x14c] sm:$0xf]  ;;  %v2868_v4 = vor.u32 %v3262_v55, %v2865_v58  ;;  %v2887_v58 = vld [vmem:[%s3773_s11 + $0x158] sm:$0xf] }
  0xe8   : > { %v2724_v19 = vor.u32 %v3228_v10, %v2721_v11  ;;  %v2872_v5 = vor.u32 %v3279_v60, %v2871_v59  ;;  %v2737_v10 = vld [vmem:[%s3773_s11 + $0xc0] sm:$0xf0]  ;;  %v2743_v11 = vld [vmem:[%s3773_s11 + $0x48] sm:$0xf]  ;;  %v1296_v12 = vpack.c.b16 %v1136_v61, %v1136_v61  ;;  %v3281_v59 = vld [vmem:[%s3773_s11 + $0x1d4] sm:$0xf0] }
  0xe9   : > { %v1297_v13 = vpack.c.b16 %v1137_v62, %v1137_v62  ;;  %v696_v49 = vld [vmem:[%s3773_s11 + $0x468] sm:$0xff]  ;;  %v3265_v62 = vld [vmem:[%s3773_s11 + $0x15c] sm:$0xf] }
  0xea   : > { %1656 = vmatpush.bf16.msra.mxu0 %v2704_v17  ;;  %1670 = vmatpush.bf16.msra.mxu1 %v2708_v20  ;;  %v1292_v17 = vpack.c.b16 %v1132_v0, %v1132_v0  ;;  %v1294_v20 = vpack.c.b16 %v1134_v6, %v1134_v6  ;;  %v2873_v0 = vld [vmem:[%s3773_s11 + $0x1c8] sm:$0xf0]  ;;  %v2735_v6 = vld [vmem:[%s3773_s11 + $0x40] sm:$0xf] }
  0xeb   : > { %1684 = vmatpush.bf16.msra.mxu2 %v2712_v23  ;;  %1698 = vmatpush.bf16.msra.mxu3 %v2716_v24  ;;  %v2732_v23 = vor.u32 %v3229_v14, %v2729_v15  ;;  %v3119_v24 = vld [vmem:[%s3773_s11 + $0x340] sm:$0xf]  ;;  %v3247_v14 = vld [vmem:[%s3773_s11 + $0xc4] sm:$0xf0]  ;;  %v3231_v15 = vld [vmem:[%s3773_s11 + $0x4c] sm:$0xf] }
  0xec   : > { %v1490_v29 = vsel %vm1440_vm0, %v1292_v17, 0  ;;  %v1496_v33 = vsel %vm1440_vm0, %v1294_v20, 0  ;;  %v3120_v37 = vor.u32 %v3342_v25, %v3119_v24  ;;  %v1298_v17 = vpack.c.b16 %v1138_v1, %v1138_v1 }
  0xed   : > { %3189 = vmatmul.msk.bf16.vlgmr.msra.gmra.mxu0 %vm1436_vm1, %v3822_v27  ;;  %3190 = vmatmul.msk.bf16.vlgmr.msra.gmra.mxu1 %vm1436_vm1, %v3822_v27  ;;  %v1505_v24 = vsel %vm1440_vm0, %v1297_v13, 0  ;;  %v1143_v1 = vunpack.c.h.b16 %v696_v49  ;;  %v3249_v13 = vld [vmem:[%s3773_s11 + $0xd4] sm:$0xf0] }
  0xee   : > { %1708 = vmatpush.bf16.msrb.mxu0 %v1478_v30  ;;  %1722 = vmatpush.bf16.msrb.mxu1 %v1481_v31  ;;  %v1493_v30 = vsel %vm1440_vm0, %v1293_v18, 0  ;;  %v3127_v31 = vld [vmem:[%s3773_s11 + $0x348] sm:$0xf]  ;;  %v1508_v25 = vsel %vm1440_vm0, %v1298_v17, 0 }
  0xef   : > { %1736 = vmatpush.bf16.msrb.mxu2 %v1484_v34  ;;  %1750 = vmatpush.bf16.msrb.mxu3 %v1487_v35  ;;  %v1499_v34 = vsel %vm1440_vm0, %v1295_v21, 0  ;;  %v3327_v35 = vld [vmem:[%s3773_s11 + $0x34c] sm:$0xf]  ;;  %v2744_v21 = vor.u32 %v3247_v14, %v2743_v11  ;;  %v3233_v14 = vld [vmem:[%s3773_s11 + $0x5c] sm:$0xf]  ;;  %v1303_v17 = vpack.c.b16 %v1143_v1, %v1143_v1 }
  0xf0   : > { %3191 = vmatmul.msk.bf16.vlgmr.msra.gmra.mxu2 %vm1436_vm1, %v3822_v27  ;;  %3192 = vmatmul.msk.bf16.vlgmr.msra.gmra.mxu3 %vm1436_vm1, %v3822_v27 }
  0xf2   : > { %1709 = vmatpush.bf16.msrb.mxu0 %v3104_v38  ;;  %1723 = vmatpush.bf16.msrb.mxu1 %v3108_v39  ;;  %v3124_v38 = vor.u32 %v3326_v26, %v3121_v28  ;;  %v2991_v39 = vld [vmem:[%s3773_s11 + $0x240] sm:$0xf]  ;;  %v3135_v28 = vld [vmem:[%s3773_s11 + $0x350] sm:$0xf] }
  0xf3   : > { %1737 = vmatpush.bf16.msrb.mxu2 %v3112_v42  ;;  %1751 = vmatpush.bf16.msrb.mxu3 %v3116_v43  ;;  %v3128_v42 = vor.u32 %v3343_v32, %v3127_v31  ;;  %v3132_v43 = vor.u32 %v3327_v35, %v3129_v36  ;;  %v3137_v31 = vld [vmem:[%s3773_s11 + $0x3d0] sm:$0xf0]  ;;  %v3143_v32 = vld [vmem:[%s3773_s11 + $0x358] sm:$0xf]  ;;  %v3145_v35 = vld [vmem:[%s3773_s11 + $0x3d8] sm:$0xf0] }
  0xf6   : > { %1710 = vmatpush.bf16.msrb.mxu0 %v2976_v51  ;;  %1724 = vmatpush.bf16.msrb.mxu1 %v2980_v52  ;;  %v2992_v51 = vor.u32 %v3310_v40, %v2991_v39  ;;  %v2996_v52 = vor.u32 %v3294_v41, %v2993_v44  ;;  %v3312_v39 = vld [vmem:[%s3773_s11 + $0x2cc] sm:$0xf0]  ;;  %v3296_v40 = vld [vmem:[%s3773_s11 + $0x254] sm:$0xf]  ;;  %v3015_v44 = vld [vmem:[%s3773_s11 + $0x258] sm:$0xf] }
  0xf7   : > { %1738 = vmatpush.bf16.msrb.mxu2 %v2984_v56  ;;  %1752 = vmatpush.bf16.msrb.mxu3 %v2988_v57  ;;  %v3000_v56 = vor.u32 %v3311_v46, %v2999_v45  ;;  %v3004_v57 = vor.u32 %v3295_v47, %v3001_v48  ;;  %v3313_v45 = vld [vmem:[%s3773_s11 + $0x2d4] sm:$0xf0]  ;;  %v3297_v46 = vld [vmem:[%s3773_s11 + $0x25c] sm:$0xf]  ;;  %v695_v48 = vld [vmem:[%s3773_s11 + $0x460] sm:$0xff] }
  0xf8   : > { %v3017_v47 = vld [vmem:[%s3773_s11 + $0x2d8] sm:$0xf0]  ;;  %v3016_v55 = vor.u32 %v3313_v45, %v3015_v44  ;;  %v1140_v60 = vunpack.c.l.b16 %v695_v48  ;;  %v1141_v61 = vunpack.c.h.b16 %v695_v48  ;;  %v3315_v44 = vld [vmem:[%s3773_s11 + $0x2e4] sm:$0xf0]  ;;  %v3299_v45 = vld [vmem:[%s3773_s11 + $0x26c] sm:$0xf] }
  0xf9   : > { %v698_v48 = vld [vmem:[%s3773_s11 + $0x478] sm:$0xff] }
  0xfa   : > { %1711 = vmatpush.bf16.msrb.mxu0 %v2848_v2  ;;  %1725 = vmatpush.bf16.msrb.mxu1 %v2852_v3  ;;  %v1139_v2 = vunpack.c.h.b16 %v694_v50  ;;  %v2864_v3 = vor.u32 %v3278_v54, %v2863_v53  ;;  %v3280_v53 = vld [vmem:[%s3773_s11 + $0x1cc] sm:$0xf0]  ;;  %v3264_v54 = vld [vmem:[%s3773_s11 + $0x154] sm:$0xf]  ;;  %v1300_v11 = vpack.c.b16 %v1140_v60, %v1140_v60  ;;  %v3267_v60 = vld [vmem:[%s3773_s11 + $0x16c] sm:$0xf] }
  0xfb   : > { %1739 = vmatpush.bf16.msrb.mxu2 %v2856_v8  ;;  %1753 = vmatpush.bf16.msrb.mxu3 %v2860_v9  ;;  %v2876_v8 = vor.u32 %v3263_v63, %v2873_v0  ;;  %v3230_v9 = vld [vmem:[%s3773_s11 + $0x44] sm:$0xf]  ;;  %v2889_v63 = vld [vmem:[%s3773_s11 + $0x1d8] sm:$0xf0]  ;;  %v1142_v0 = vunpack.c.l.b16 %v696_v49 }
  0xfc   : > { %v1299_v18 = vpack.c.b16 %v1139_v2, %v1139_v2  ;;  %v2740_v20 = vor.u32 %v3230_v9, %v2737_v10  ;;  %v2753_v9 = vld [vmem:[%s3773_s11 + $0xd0] sm:$0xf0]  ;;  %v2759_v10 = vld [vmem:[%s3773_s11 + $0x58] sm:$0xf] }
  0xfe   : > { %1712 = vmatpush.bf16.msrb.mxu0 %v2720_v16  ;;  %1726 = vmatpush.bf16.msrb.mxu1 %v2724_v19  ;;  %v2745_v16 = vld [vmem:[%s3773_s11 + $0xc8] sm:$0xf0]  ;;  %v2736_v19 = vor.u32 %v3246_v7, %v2735_v6  ;;  %v1511_v26 = vsel %vm1440_vm0, %v1299_v18, 0  ;;  %v3248_v6 = vld [vmem:[%s3773_s11 + $0xcc] sm:$0xf0]  ;;  %v2892_v7 = vor.u32 %v3265_v62, %v2889_v63  ;;  %v1146_v62 = vunpack.c.l.b16 %v698_v48 }
  0xff   : > { %1740 = vmatpush.bf16.msrb.mxu2 %v2728_v22  ;;  %1754 = vmatpush.bf16.msrb.mxu3 %v2732_v23  ;;  %v2748_v22 = vor.u32 %v3231_v15, %v2745_v16  ;;  %v1502_v23 = vsel %vm1440_vm0, %v1296_v12, 0  ;;  %v1301_v12 = vpack.c.b16 %v1141_v61, %v1141_v61  ;;  %v2761_v15 = vld [vmem:[%s3773_s11 + $0xd8] sm:$0xf0]  ;;  %v1302_v16 = vpack.c.b16 %v1142_v0, %v1142_v0  ;;  %v2905_v61 = vld [vmem:[%s3773_s11 + $0x1e8] sm:$0xf0] }
 0x100   : > { %v1147_v63 = vunpack.c.h.b16 %v698_v48  ;;  %v2911_v48 = vld [vmem:[%s3773_s11 + $0x170] sm:$0xf] }
 0x101   : > { %3193 = vmatmul.msk.bf16.vlgmr.msrb.gmra.mxu0 %vm1436_vm1, %v3822_v27  ;;  %3194 = vmatmul.msk.bf16.vlgmr.msrb.gmra.mxu1 %vm1436_vm1, %v3822_v27 }
 0x102   : > { %1764 = vmatpush.bf16.msra.mxu0 %v1490_v29  ;;  %1778 = vmatpush.bf16.msra.mxu1 %v1493_v30  ;;  %v3344_v29 = vld [vmem:[%s3773_s11 + $0x3cc] sm:$0xf0]  ;;  %v3328_v30 = vld [vmem:[%s3773_s11 + $0x354] sm:$0xf] }
 0x103   : > { %1792 = vmatpush.bf16.msra.mxu2 %v1496_v33  ;;  %1806 = vmatpush.bf16.msra.mxu3 %v1499_v34  ;;  %v3345_v33 = vld [vmem:[%s3773_s11 + $0x3d4] sm:$0xf0]  ;;  %v3329_v34 = vld [vmem:[%s3773_s11 + $0x35c] sm:$0xf]  ;;  %v3136_v36 = vor.u32 %v3344_v29, %v3135_v28  ;;  %v3346_v28 = vld [vmem:[%s3773_s11 + $0x3dc] sm:$0xf0] }
 0x104   : > { %3195 = vmatmul.msk.bf16.vlgmr.msrb.gmra.mxu2 %vm1436_vm1, %v3822_v27  ;;  %3196 = vmatmul.msk.bf16.vlgmr.msrb.gmra.mxu3 %vm1436_vm1, %v3822_v27  ;;  %v3144_v41 = vor.u32 %v3345_v33, %v3143_v32  ;;  %v3330_v29 = vld [vmem:[%s3773_s11 + $0x364] sm:$0xf]  ;;  %v3347_v32 = vld [vmem:[%s3773_s11 + $0x3e4] sm:$0xf0]  ;;  %v3331_v33 = vld [vmem:[%s3773_s11 + $0x36c] sm:$0xf] }
 0x106   : > { %1765 = vmatpush.bf16.msra.mxu0 %v3120_v37  ;;  %1779 = vmatpush.bf16.msra.mxu1 %v3124_v38  ;;  %v3140_v37 = vor.u32 %v3328_v30, %v3137_v31  ;;  %v3007_v38 = vld [vmem:[%s3773_s11 + $0x250] sm:$0xf]  ;;  %v3153_v30 = vld [vmem:[%s3773_s11 + $0x3e0] sm:$0xf0]  ;;  %v3159_v31 = vld [vmem:[%s3773_s11 + $0x368] sm:$0xf] }
 0x107   : > { %1793 = vmatpush.bf16.msra.mxu2 %v3128_v42  ;;  %1807 = vmatpush.bf16.msra.mxu3 %v3132_v43  ;;  %v3148_v42 = vor.u32 %v3329_v34, %v3145_v35  ;;  %v3009_v43 = vld [vmem:[%s3773_s11 + $0x2d0] sm:$0xf0]  ;;  %v3008_v50 = vor.u32 %v3312_v39, %v3007_v38  ;;  %v3161_v34 = vld [vmem:[%s3773_s11 + $0x3e8] sm:$0xf0]  ;;  %v3314_v38 = vld [vmem:[%s3773_s11 + $0x2dc] sm:$0xf0] }
 0x108   : > { %v3298_v39 = vld [vmem:[%s3773_s11 + $0x264] sm:$0xf] }
 0x10a   : > { %1766 = vmatpush.bf16.msra.mxu0 %v2992_v51  ;;  %1780 = vmatpush.bf16.msra.mxu1 %v2996_v52  ;;  %v3012_v51 = vor.u32 %v3296_v40, %v3009_v43  ;;  %v2879_v52 = vld [vmem:[%s3773_s11 + $0x150] sm:$0xf]  ;;  %v3160_v40 = vor.u32 %v3347_v32, %v3159_v31  ;;  %v3031_v43 = vld [vmem:[%s3773_s11 + $0x268] sm:$0xf]  ;;  %v3333_v31 = vld [vmem:[%s3773_s11 + $0x37c] sm:$0xf] }
 0x10b   : > { %1794 = vmatpush.bf16.msra.mxu2 %v3000_v56  ;;  %1808 = vmatpush.bf16.msra.mxu3 %v3004_v57  ;;  %v3020_v56 = vor.u32 %v3297_v46, %v3017_v47  ;;  %v2881_v57 = vld [vmem:[%s3773_s11 + $0x1d0] sm:$0xf0]  ;;  %v2880_v2 = vor.u32 %v3280_v53, %v2879_v52  ;;  %v3033_v46 = vld [vmem:[%s3773_s11 + $0x2e8] sm:$0xf0]  ;;  %v3282_v52 = vld [vmem:[%s3773_s11 + $0x1dc] sm:$0xf0] }
 0x10c   : > { %v697_v47 = vld [vmem:[%s3773_s11 + $0x470] sm:$0xff]  ;;  %v3266_v53 = vld [vmem:[%s3773_s11 + $0x164] sm:$0xf]  ;;  %v3177_v32 = vld [vmem:[%s3773_s11 + $0x3f8] sm:$0xf0] }
 0x10e   : > { %1767 = vmatpush.bf16.msra.mxu0 %v2864_v3  ;;  %1781 = vmatpush.bf16.msra.mxu1 %v2868_v4  ;;  %v2884_v3 = vor.u32 %v3264_v54, %v2881_v57  ;;  %v2888_v4 = vor.u32 %v3281_v59, %v2887_v58  ;;  %v3032_v54 = vor.u32 %v3315_v44, %v3031_v43  ;;  %v2903_v57 = vld [vmem:[%s3773_s11 + $0x168] sm:$0xf]  ;;  %v1145_v59 = vunpack.c.h.b16 %v697_v47  ;;  %v3317_v43 = vld [vmem:[%s3773_s11 + $0x2f4] sm:$0xf0]  ;;  %v3301_v44 = vld [vmem:[%s3773_s11 + $0x27c] sm:$0xf] }
 0x10f   : > { %1795 = vmatpush.bf16.msra.mxu2 %v2872_v5  ;;  %1809 = vmatpush.bf16.msra.mxu3 %v2876_v8  ;;  %v2751_v5 = vld [vmem:[%s3773_s11 + $0x50] sm:$0xf]  ;;  %v3232_v8 = vld [vmem:[%s3773_s11 + $0x54] sm:$0xf]  ;;  %v3283_v58 = vld [vmem:[%s3773_s11 + $0x1e4] sm:$0xf0] }
 0x110   : > { %v2752_v18 = vor.u32 %v3248_v6, %v2751_v5  ;;  %v2908_v5 = vor.u32 %v3267_v60, %v2905_v61  ;;  %v3234_v6 = vld [vmem:[%s3773_s11 + $0x64] sm:$0xf]  ;;  %v3252_v60 = vld [vmem:[%s3773_s11 + $0xec] sm:$0xf0] }
 0x112   : > { %1768 = vmatpush.bf16.msra.mxu0 %v2736_v19  ;;  %1782 = vmatpush.bf16.msra.mxu1 %v2740_v20  ;;  %v2756_v19 = vor.u32 %v3232_v8, %v2753_v9  ;;  %v2760_v20 = vor.u32 %v3249_v13, %v2759_v10  ;;  %v2775_v8 = vld [vmem:[%s3773_s11 + $0x68] sm:$0xf]  ;;  %v1305_v10 = vpack.c.b16 %v1145_v59, %v1145_v59  ;;  %v2777_v13 = vld [vmem:[%s3773_s11 + $0xe8] sm:$0xf0]  ;;  %v2783_v59 = vld [vmem:[%s3773_s11 + $0x70] sm:$0xf] }
 0x113   : > { %1796 = vmatpush.bf16.msra.mxu2 %v2744_v21  ;;  %1810 = vmatpush.bf16.msra.mxu3 %v2748_v22  ;;  %v2764_v21 = vor.u32 %v3233_v14, %v2761_v15  ;;  %v1514_v22 = vsel %vm1440_vm0, %v1300_v11, 0  ;;  %v3251_v11 = vld [vmem:[%s3773_s11 + $0xe4] sm:$0xf0]  ;;  %v1306_v14 = vpack.c.b16 %v1146_v62, %v1146_v62  ;;  %v1307_v15 = vpack.c.b16 %v1147_v63, %v1147_v63  ;;  %v3236_v63 = vld [vmem:[%s3773_s11 + $0x74] sm:$0xf] }
 0x115   : > { %3197 = vmatmul.msk.bf16.vlgmr.msra.gmra.mxu0 %vm1436_vm1, %v3822_v27  ;;  %3198 = vmatmul.msk.bf16.vlgmr.msra.gmra.mxu1 %vm1436_vm1, %v3822_v27 }
 0x116   : > { %1820 = vmatpush.bf16.msrb.mxu0 %v1502_v23  ;;  %1834 = vmatpush.bf16.msrb.mxu1 %v1505_v24  ;;  %v1517_v23 = vsel %vm1440_vm0, %v1301_v12, 0  ;;  %v1520_v24 = vsel %vm1440_vm0, %v1302_v16, 0  ;;  %v3235_v12 = vld [vmem:[%s3773_s11 + $0x6c] sm:$0xf] }
 0x117   : > { %1848 = vmatpush.bf16.msrb.mxu2 %v1508_v25  ;;  %1862 = vmatpush.bf16.msrb.mxu3 %v1511_v26  ;;  %v1523_v25 = vsel %vm1440_vm0, %v1303_v17, 0  ;;  %v3151_v26 = vld [vmem:[%s3773_s11 + $0x360] sm:$0xf] }
 0x118   : > { %3199 = vmatmul.msk.bf16.vlgmr.msra.gmra.mxu2 %vm1436_vm1, %v3822_v27  ;;  %3200 = vmatmul.msk.bf16.vlgmr.msra.gmra.mxu3 %vm1436_vm1, %v3822_v27  ;;  %v3152_v35 = vor.u32 %v3346_v28, %v3151_v26  ;;  %v3332_v26 = vld [vmem:[%s3773_s11 + $0x374] sm:$0xf] }
 0x119   : > { %v3169_v28 = vld [vmem:[%s3773_s11 + $0x3f0] sm:$0xf0] }
 0x11a   : > { %1821 = vmatpush.bf16.msrb.mxu0 %v3136_v36  ;;  %1835 = vmatpush.bf16.msrb.mxu1 %v3140_v37  ;;  %v3156_v36 = vor.u32 %v3330_v29, %v3153_v30  ;;  %v3023_v37 = vld [vmem:[%s3773_s11 + $0x260] sm:$0xf]  ;;  %v3175_v29 = vld [vmem:[%s3773_s11 + $0x378] sm:$0xf] }
 0x11b   : > { %1849 = vmatpush.bf16.msrb.mxu2 %v3144_v41  ;;  %1863 = vmatpush.bf16.msrb.mxu3 %v3148_v42  ;;  %v3164_v41 = vor.u32 %v3331_v33, %v3161_v34  ;;  %v3025_v42 = vld [vmem:[%s3773_s11 + $0x2e0] sm:$0xf0]  ;;  %v3024_v49 = vor.u32 %v3314_v38, %v3023_v37  ;;  %v3349_v30 = vld [vmem:[%s3773_s11 + $0x3f4] sm:$0xf0]  ;;  %v3172_v34 = vor.u32 %v3332_v26, %v3169_v28 }
 0x11c   : > { %v3176_v37 = vor.u32 %v3349_v30, %v3175_v29  ;;  %v3180_v38 = vor.u32 %v3333_v31, %v3177_v32 }
 0x11e   : > { %1822 = vmatpush.bf16.msrb.mxu0 %v3008_v50  ;;  %1836 = vmatpush.bf16.msrb.mxu1 %v3012_v51  ;;  %v3028_v50 = vor.u32 %v3298_v39, %v3025_v42  ;;  %v2895_v51 = vld [vmem:[%s3773_s11 + $0x160] sm:$0xf]  ;;  %v3300_v39 = vld [vmem:[%s3773_s11 + $0x274] sm:$0xf] }
 0x11f   : > { %1850 = vmatpush.bf16.msrb.mxu2 %v3016_v55  ;;  %1864 = vmatpush.bf16.msrb.mxu3 %v3020_v56  ;;  %v3036_v55 = vor.u32 %v3299_v45, %v3033_v46  ;;  %v2897_v56 = vld [vmem:[%s3773_s11 + $0x1e0] sm:$0xf0]  ;;  %v2896_v0 = vor.u32 %v3282_v52, %v2895_v51  ;;  %v3049_v45 = vld [vmem:[%s3773_s11 + $0x2f8] sm:$0xf0]  ;;  %v3268_v52 = vld [vmem:[%s3773_s11 + $0x174] sm:$0xf] }
 0x120   : > { %v2900_v1 = vor.u32 %v3266_v53, %v2897_v56  ;;  %v3379_v42 = vld [vmem:[%s4481_s0] sm:$0xff]  ;;  %v3052_v51 = vor.u32 %v3301_v44, %v3049_v45  ;;  %v2913_v53 = vld [vmem:[%s3773_s11 + $0x1f0] sm:$0xf0]  ;;  %v3269_v56 = vld [vmem:[%s3773_s11 + $0x17c] sm:$0xf] }
 0x122   : > { %1823 = vmatpush.bf16.msrb.mxu0 %v2880_v2  ;;  %1837 = vmatpush.bf16.msrb.mxu1 %v2884_v3  ;;  %v2904_v2 = vor.u32 %v3283_v58, %v2903_v57  ;;  %v2767_v3 = vld [vmem:[%s3773_s11 + $0x60] sm:$0xf]  ;;  %v2921_v57 = vld [vmem:[%s3773_s11 + $0x1f8] sm:$0xf0] }
 0x123   : > { %1851 = vmatpush.bf16.msrb.mxu2 %v2888_v4  ;;  %1865 = vmatpush.bf16.msrb.mxu3 %v2892_v7  ;;  %v3250_v4 = vld [vmem:[%s3773_s11 + $0xdc] sm:$0xf0]  ;;  %v2769_v7 = vld [vmem:[%s3773_s11 + $0xe0] sm:$0xf0]  ;;  %v2924_v62 = vor.u32 %v3269_v56, %v2921_v57 }
 0x124   : > { %v2768_v16 = vor.u32 %v3250_v4, %v2767_v3  ;;  %v2772_v17 = vor.u32 %v3234_v6, %v2769_v7  ;;  %v3237_v3 = vld [vmem:[%s3773_s11 + $0x7c] sm:$0xf] }
 0x125   : > { %v2793_v4 = vld [vmem:[%s3773_s11 + $0xf8] sm:$0xf0] }
 0x126   : > { %1824 = vmatpush.bf16.msrb.mxu0 %v2752_v18  ;;  %1838 = vmatpush.bf16.msrb.mxu1 %v2756_v19  ;;  %v2776_v18 = vor.u32 %v3251_v11, %v2775_v8  ;;  %v2780_v19 = vor.u32 %v3235_v12, %v2777_v13  ;;  %v2796_v8 = vor.u32 %v3237_v3, %v2793_v4 }
 0x127   : > { %1852 = vmatpush.bf16.msrb.mxu2 %v2760_v20  ;;  %1866 = vmatpush.bf16.msrb.mxu3 %v2764_v21  ;;  %v1529_v21 = vsel %vm1440_vm0, %v1305_v10, 0 }
 0x129   : > { %3201 = vmatmul.msk.bf16.vlgmr.msrb.gmra.mxu0 %vm1436_vm1, %v3822_v27  ;;  %3202 = vmatmul.msk.bf16.vlgmr.msrb.gmra.mxu1 %vm1436_vm1, %v3822_v27 }
 0x12a   : > { %1876 = vmatpush.bf16.msra.mxu0 %v1514_v22  ;;  %1890 = vmatpush.bf16.msra.mxu1 %v1517_v23  ;;  %v1532_v22 = vsel %vm1440_vm0, %v1306_v14, 0  ;;  %v1535_v23 = vsel %vm1440_vm0, %v1307_v15, 0 }
 0x12b   : > { %1904 = vmatpush.bf16.msra.mxu2 %v1520_v24  ;;  %1918 = vmatpush.bf16.msra.mxu3 %v1523_v25  ;;  %v3167_v24 = vld [vmem:[%s3773_s11 + $0x370] sm:$0xf] }
 0x12c   : > { %3203 = vmatmul.msk.bf16.vlgmr.msrb.gmra.mxu2 %vm1436_vm1, %v3822_v27  ;;  %3204 = vmatmul.msk.bf16.vlgmr.msrb.gmra.mxu3 %vm1436_vm1, %v3822_v27  ;;  %v1144_v27 = vunpack.c.l.b16 %v697_v47  ;;  %v3348_v25 = vld [vmem:[%s3773_s11 + $0x3ec] sm:$0xf0] }
 0x12d   : > { %v3168_v33 = vor.u32 %v3348_v25, %v3167_v24 }
 0x12e   : > { %1877 = vmatpush.bf16.msra.mxu0 %v3152_v35  ;;  %1891 = vmatpush.bf16.msra.mxu1 %v3156_v36  ;;  %v1304_v9 = vpack.c.b16 %v1144_v27, %v1144_v27  ;;  %v3039_v35 = vld [vmem:[%s3773_s11 + $0x270] sm:$0xf]  ;;  %v2916_v27 = vor.u32 %v3268_v52, %v2913_v53 }
 0x12f   : > { %1905 = vmatpush.bf16.msra.mxu2 %v3160_v40  ;;  %1919 = vmatpush.bf16.msra.mxu3 %v3164_v41  ;;  %v3316_v36 = vld [vmem:[%s3773_s11 + $0x2ec] sm:$0xf0]  ;;  %v3041_v40 = vld [vmem:[%s3773_s11 + $0x2f0] sm:$0xf0]  ;;  %v3047_v41 = vld [vmem:[%s3773_s11 + $0x278] sm:$0xf] }
 0x130   : > { %v1526_v20 = vsel %vm1440_vm0, %v1304_v9, 0  ;;  %v3040_v46 = vor.u32 %v3316_v36, %v3039_v35  ;;  %v3044_v47 = vor.u32 %v3300_v39, %v3041_v40  ;;  %v4145_v9 = vpop.permute.xlu0 %703 }
 0x132   : > { %1878 = vmatpush.bf16.msra.mxu0 %v3024_v49  ;;  %1892 = vmatpush.bf16.msra.mxu1 %v3028_v50  ;;  %v3284_v49 = vld [vmem:[%s3773_s11 + $0x1ec] sm:$0xf0]  ;;  %v3048_v50 = vor.u32 %v3317_v43, %v3047_v41 }
 0x133   : > { %1906 = vmatpush.bf16.msra.mxu2 %v3032_v54  ;;  %1920 = vmatpush.bf16.msra.mxu3 %v3036_v55  ;;  %v2919_v54 = vld [vmem:[%s3773_s11 + $0x178] sm:$0xf]  ;;  %v2912_v58 = vor.u32 %v3284_v49, %v2911_v48 }
 0x134   : > { %v3285_v55 = vld [vmem:[%s3773_s11 + $0x1f4] sm:$0xf0] }
 0x135   : > { %v2920_v61 = vor.u32 %v3285_v55, %v2919_v54 }
 0x136   : > { %1879 = vmatpush.bf16.msra.mxu0 %v2896_v0  ;;  %1893 = vmatpush.bf16.msra.mxu1 %v2900_v1  ;;  %v2785_v0 = vld [vmem:[%s3773_s11 + $0xf0] sm:$0xf0]  ;;  %v2791_v1 = vld [vmem:[%s3773_s11 + $0x78] sm:$0xf] }
 0x137   : > { %1907 = vmatpush.bf16.msra.mxu2 %v2904_v2  ;;  %1921 = vmatpush.bf16.msra.mxu3 %v2908_v5  ;;  %v3253_v2 = vld [vmem:[%s3773_s11 + $0xf4] sm:$0xf0]  ;;  %v2784_v5 = vor.u32 %v3252_v60, %v2783_v59  ;;  %v2788_v6 = vor.u32 %v3236_v63, %v2785_v0 }
 0x138   : > { %v2792_v7 = vor.u32 %v3253_v2, %v2791_v1 }
 0x13a   : > { %1880 = vmatpush.bf16.msra.mxu0 %v2768_v16  ;;  %1894 = vmatpush.bf16.msra.mxu1 %v2772_v17 }
 0x13b   : > { %1908 = vmatpush.bf16.msra.mxu2 %v2776_v18  ;;  %1922 = vmatpush.bf16.msra.mxu3 %v2780_v19 }
 0x13d   : > { %3205 = vmatmul.msk.bf16.vlgmr.msra.gmra.mxu0 %vm1436_vm1, %v3379_v42  ;;  %3206 = vmatmul.msk.bf16.vlgmr.msra.gmra.mxu1 %vm1436_vm1, %v3379_v42 }
 0x13e   : > { %1932 = vmatpush.bf16.msrb.mxu0 %v1526_v20  ;;  %1946 = vmatpush.bf16.msrb.mxu1 %v1529_v21 }
 0x13f   : > { %1960 = vmatpush.bf16.msrb.mxu2 %v1532_v22  ;;  %1974 = vmatpush.bf16.msrb.mxu3 %v1535_v23  ;;  %v4155_v22 = vpop.permute.xlu0 %708 }
 0x140   : > { %3207 = vmatmul.msk.bf16.vlgmr.msra.gmra.mxu2 %vm1436_vm1, %v3379_v42  ;;  %3208 = vmatmul.msk.bf16.vlgmr.msra.gmra.mxu3 %vm1436_vm1, %v3379_v42 }
 0x142   : > { %1933 = vmatpush.bf16.msrb.mxu0 %v3168_v33  ;;  %1947 = vmatpush.bf16.msrb.mxu1 %v3172_v34  ;;  %v1546_v10 = vpop.f32.mrf.mxu0  ;;  %v1560_v11 = vpop.f32.mrf.mxu1 }
 0x143   : > { %1961 = vmatpush.bf16.msrb.mxu2 %v3176_v37  ;;  %1975 = vmatpush.bf16.msrb.mxu3 %v3180_v38  ;;  %v1547_v12 = vadd.f32 %v1546_v10, %v4145_v9  ;;  %v1561_v13 = vadd.f32 %v1560_v11, %v4145_v9 }
 0x145   : > { %vm1985_vm2 = vcmp.ge.f32.partialorder %v1547_v12, 0.0  ;;  %v2049_v14 = vmul.f32 0.2, %v1547_v12  ;;  %vm1986_vm3 = vcmp.ge.f32.partialorder %v1561_v13, 0.0  ;;  %v2050_v15 = vmul.f32 0.2, %v1561_v13 }
 0x146   : > { %1934 = vmatpush.bf16.msrb.mxu0 %v3040_v46  ;;  %1948 = vmatpush.bf16.msrb.mxu1 %v3044_v47 }
 0x147   : > { %1962 = vmatpush.bf16.msrb.mxu2 %v3048_v50  ;;  %1976 = vmatpush.bf16.msrb.mxu3 %v3052_v51  ;;  %v2113_v16 = vsel %vm1985_vm2, %v1547_v12, %v2049_v14  ;;  %v2114_v17 = vsel %vm1986_vm3, %v1561_v13, %v2050_v15 }
 0x148   : > { %v2310_v18 = vmul.f32 %v2113_v16, %v2113_v16  ;;  %v2177_v19 = vpack.c.bf16 %v2114_v17, %v2113_v16  ;;  %v2241_v20 = vadd.f32 %v2114_v17, %v2113_v16  ;;  %v2311_v21 = vmul.f32 %v2114_v17, %v2114_v17 }
 0x14a   : > { %1935 = vmatpush.bf16.msrb.mxu0 %v2912_v58  ;;  %1949 = vmatpush.bf16.msrb.mxu1 %v2916_v27  ;;  %2209 = vst [vmem:[%s4157_s27] sm:$0xff] %v2177_v19  ;;  %v2374_v25 = vadd.f32 %v2311_v21, %v2310_v18  ;;  %v1548_v29 = vpop.f32.mrf.mxu0  ;;  %v1562_v30 = vpop.f32.mrf.mxu1 }
 0x14b   : > { %1963 = vmatpush.bf16.msrb.mxu2 %v2920_v61  ;;  %1977 = vmatpush.bf16.msrb.mxu3 %v2924_v62  ;;  %v1574_v23 = vpop.f32.mrf.mxu2  ;;  %v1588_v24 = vpop.f32.mrf.mxu3  ;;  %v1549_v31 = vadd.f32 %v1548_v29, %v4155_v22  ;;  %v1563_v32 = vadd.f32 %v1562_v30, %v4155_v22 }
 0x14c   : > { %v1575_v26 = vadd.f32 %v1574_v23, %v4145_v9  ;;  %v1589_v28 = vadd.f32 %v1588_v24, %v4145_v9 }
 0x14d   : > { %vm2017_vm6 = vcmp.ge.f32.partialorder %v1549_v31, 0.0  ;;  %v2081_v35 = vmul.f32 0.2, %v1549_v31  ;;  %vm2018_vm7 = vcmp.ge.f32.partialorder %v1563_v32, 0.0  ;;  %v2082_v36 = vmul.f32 0.2, %v1563_v32 }
 0x14e   : > { %1936 = vmatpush.bf16.msrb.mxu0 %v2784_v5  ;;  %1950 = vmatpush.bf16.msrb.mxu1 %v2788_v6  ;;  %vm1987_vm4 = vcmp.ge.f32.partialorder %v1575_v26, 0.0  ;;  %v2051_v33 = vmul.f32 0.2, %v1575_v26  ;;  %vm1988_vm5 = vcmp.ge.f32.partialorder %v1589_v28, 0.0  ;;  %v2052_v34 = vmul.f32 0.2, %v1589_v28 }
 0x14f   : > { %1964 = vmatpush.bf16.msrb.mxu2 %v2792_v7  ;;  %1978 = vmatpush.bf16.msrb.mxu3 %v2796_v8  ;;  %v2145_v43 = vsel %vm2017_vm6, %v1549_v31, %v2081_v35  ;;  %v2146_v44 = vsel %vm2018_vm7, %v1563_v32, %v2082_v36 }
 0x150   : > { %v2115_v37 = vsel %vm1987_vm4, %v1575_v26, %v2051_v33  ;;  %v2116_v38 = vsel %vm1988_vm5, %v1589_v28, %v2052_v34  ;;  %v2342_v47 = vmul.f32 %v2145_v43, %v2145_v43  ;;  %v2193_v48 = vpack.c.bf16 %v2146_v44, %v2145_v43 }
 0x151   : > { %3209 = vmatmul.msk.bf16.vlgmr.msrb.gmra.mxu0 %vm1436_vm1, %v3379_v42  ;;  %3210 = vmatmul.msk.bf16.vlgmr.msrb.gmra.mxu1 %vm1436_vm1, %v3379_v42  ;;  %v2242_v39 = vadd.f32 %v2241_v20, %v2115_v37  ;;  %v2312_v40 = vmul.f32 %v2115_v37, %v2115_v37  ;;  %v2178_v41 = vpack.c.bf16 %v2116_v38, %v2115_v37 }
 0x152   : > { %3211 = vmatmul.msk.bf16.vlgmr.msrb.gmra.mxu2 %vm1436_vm1, %v3379_v42  ;;  %3212 = vmatmul.msk.bf16.vlgmr.msrb.gmra.mxu3 %vm1436_vm1, %v3379_v42  ;;  %v2313_v42 = vmul.f32 %v2116_v38, %v2116_v38  ;;  %v2274_v51 = vadd.f32 %v2146_v44, %v2145_v43  ;;  %v2343_v52 = vmul.f32 %v2146_v44, %v2146_v44 }
 0x153   : > { %v2375_v45 = vadd.f32 %v2374_v25, %v2312_v40  ;;  %2210 = vst [vmem:[%s4157_s27 + $0x8] sm:$0xff] %v2178_v41  ;;  %v4165_v46 = vadd.f32 %v2242_v39, %v2116_v38  ;;  %v1576_v49 = vpop.f32.mrf.mxu2  ;;  %v1590_v50 = vpop.f32.mrf.mxu3 }
 0x154   : > { %v1577_v53 = vadd.f32 %v1576_v49, %v4155_v22  ;;  %v1591_v54 = vadd.f32 %v1590_v50, %v4155_v22  ;;  %2225 = vst [vmem:[%s4157_s27 + $0x80] sm:$0xff] %v2193_v48  ;;  %v2407_v56 = vadd.f32 %v2343_v52, %v2342_v47 }
 0x155   : > { %v2376_v55 = vadd.f32 %v2375_v45, %v2313_v42 }
 0x156   : > { %vm2019_vm8 = vcmp.ge.f32.partialorder %v1577_v53, 0.0  ;;  %v2083_v57 = vmul.f32 0.2, %v1577_v53  ;;  %vm2020_vm9 = vcmp.ge.f32.partialorder %v1591_v54, 0.0  ;;  %v1602_v58 = vpop.f32.mrf.mxu0  ;;  %v1616_v27 = vpop.f32.mrf.mxu1  ;;  %v2084_v59 = vmul.f32 0.2, %v1591_v54 }
 0x157   : > { %v1603_v60 = vadd.f32 %v1602_v58, %v4145_v9  ;;  %v1617_v61 = vadd.f32 %v1616_v27, %v4145_v9 }
 0x158   : > { %v2147_v62 = vsel %vm2019_vm8, %v1577_v53, %v2083_v57  ;;  %v2148_v1 = vsel %vm2020_vm9, %v1591_v54, %v2084_v59 }
 0x159   : > { %v2275_v63 = vadd.f32 %v2274_v51, %v2147_v62  ;;  %v2344_v0 = vmul.f32 %v2147_v62, %v2147_v62  ;;  %vm1989_vm10 = vcmp.ge.f32.partialorder %v1603_v60, 0.0  ;;  %v2194_v2 = vpack.c.bf16 %v2148_v1, %v2147_v62 }
 0x15a   : > { %v2053_v3 = vmul.f32 0.2, %v1603_v60  ;;  %vm1990_vm11 = vcmp.ge.f32.partialorder %v1617_v61, 0.0  ;;  %v2345_v6 = vmul.f32 %v2148_v1, %v2148_v1  ;;  %v2054_v7 = vmul.f32 0.2, %v1617_v61 }
 0x15b   : > { %v2408_v4 = vadd.f32 %v2407_v56, %v2344_v0  ;;  %v4172_v5 = vadd.f32 %v2275_v63, %v2148_v1  ;;  %2226 = vst [vmem:[%s4157_s27 + $0x88] sm:$0xff] %v2194_v2 }
 0x15c   : > { %v4175_v8 = vsel %vm1989_vm10, %v1603_v60, %v2053_v3  ;;  %v4179_v12 = vsel %vm1990_vm11, %v1617_v61, %v2054_v7 }
 0x15d   : > { %v2409_v10 = vadd.f32 %v2408_v4, %v2345_v6  ;;  %v2314_v11 = vmul.f32 %v4175_v8, %v4175_v8  ;;  %v2179_v15 = vpack.c.bf16 %v4179_v12, %v4175_v8  ;;  %v2315_v16 = vmul.f32 %v4179_v12, %v4179_v12 }
 0x15e   : > { %v1604_v19 = vpop.f32.mrf.mxu0  ;;  %v1618_v20 = vpop.f32.mrf.mxu1  ;;  %v2244_v6 = vadd.f32 %v4165_v46, %v4175_v8 }
 0x15f   : > { %v1630_v13 = vpop.f32.mrf.mxu2  ;;  %v1644_v14 = vpop.f32.mrf.mxu3  ;;  %v2377_v21 = vadd.f32 %v2376_v55, %v2314_v11  ;;  %v1605_v23 = vadd.f32 %v1604_v19, %v4155_v22  ;;  %v1619_v24 = vadd.f32 %v1618_v20, %v4155_v22  ;;  %2211 = vst [vmem:[%s4157_s27 + $0x10] sm:$0xff] %v2179_v15 }
 0x160   : > { %v1631_v17 = vadd.f32 %v1630_v13, %v4145_v9  ;;  %v1645_v18 = vadd.f32 %v1644_v14, %v4145_v9  ;;  %v2245_v46 = vadd.f32 %v2244_v6, %v4179_v12 }
 0x161   : > { %v4190_v26 = vadd.f32 %v2377_v21, %v2315_v16  ;;  %vm2021_vm14 = vcmp.ge.f32.partialorder %v1605_v23, 0.0  ;;  %v2085_v29 = vmul.f32 0.2, %v1605_v23  ;;  %vm2022_vm15 = vcmp.ge.f32.partialorder %v1619_v24, 0.0 }
 0x162   : > { %vm1991_vm12 = vcmp.ge.f32.partialorder %v1631_v17, 0.0  ;;  %v2055_v25 = vmul.f32 0.2, %v1631_v17  ;;  %vm1992_vm13 = vcmp.ge.f32.partialorder %v1645_v18, 0.0  ;;  %v2056_v28 = vmul.f32 0.2, %v1645_v18 }
 0x163   : > { %v2086_v30 = vmul.f32 0.2, %v1619_v24  ;;  %v4196_v33 = vsel %vm2021_vm14, %v1605_v23, %v2085_v29 }
 0x164   : > { %v4192_v31 = vsel %vm1991_vm12, %v1631_v17, %v2055_v25  ;;  %v4194_v32 = vsel %vm1992_vm13, %v1645_v18, %v2056_v28  ;;  %v2346_v35 = vmul.f32 %v4196_v33, %v4196_v33  ;;  %v2277_v29 = vadd.f32 %v4172_v5, %v4196_v33 }
 0x165   : > { %v2180_v34 = vpack.c.bf16 %v4194_v32, %v4192_v31  ;;  %v4202_v36 = vsel %vm2022_vm15, %v1619_v24, %v2086_v30  ;;  %v2246_v21 = vadd.f32 %v2245_v46, %v4192_v31  ;;  %v2316_v23 = vmul.f32 %v4192_v31, %v4192_v31 }
 0x166   : > { %v2410_v39 = vadd.f32 %v2409_v10, %v2346_v35  ;;  %v2195_v40 = vpack.c.bf16 %v4202_v36, %v4196_v33  ;;  %v2347_v41 = vmul.f32 %v4202_v36, %v4202_v36  ;;  %v2317_v35 = vmul.f32 %v4194_v32, %v4194_v32 }
 0x167   : > { %v1632_v37 = vpop.f32.mrf.mxu2  ;;  %v1646_v38 = vpop.f32.mrf.mxu3  ;;  %2212 = vst [vmem:[%s4157_s27 + $0x18] sm:$0xff] %v2180_v34 }
 0x168   : > { %v1633_v42 = vadd.f32 %v1632_v37, %v4155_v22  ;;  %v1647_v43 = vadd.f32 %v1646_v38, %v4155_v22  ;;  %2227 = vst [vmem:[%s4157_s27 + $0x90] sm:$0xff] %v2195_v40  ;;  %v4212_v44 = vadd.f32 %v2410_v39, %v2347_v41  ;;  %v2379_v38 = vadd.f32 %v4190_v26, %v2316_v23 }
 0x169   : > { %v2247_v40 = vadd.f32 %v2246_v21, %v4194_v32  ;;  %v2278_v41 = vadd.f32 %v2277_v29, %v4202_v36 }
 0x16a   : > { %v1658_v45 = vpop.f32.mrf.mxu0  ;;  %v1672_v47 = vpop.f32.mrf.mxu1  ;;  %vm2023_vm0 = vcmp.ge.f32.partialorder %v1633_v42, 0.0  ;;  %v2087_v48 = vmul.f32 0.2, %v1633_v42  ;;  %vm2024_vm1 = vcmp.ge.f32.partialorder %v1647_v43, 0.0  ;;  %v2088_v49 = vmul.f32 0.2, %v1647_v43 }
 0x16b   : > { %v1659_v50 = vadd.f32 %v1658_v45, %v4145_v9  ;;  %v1673_v51 = vadd.f32 %v1672_v47, %v4145_v9  ;;  %v2380_v32 = vadd.f32 %v2379_v38, %v2317_v35 }
 0x16c   : > { %v4216_v52 = vsel %vm2023_vm0, %v1633_v42, %v2087_v48  ;;  %v4218_v53 = vsel %vm2024_vm1, %v1647_v43, %v2088_v49 }
 0x16d   : > { %v2196_v54 = vpack.c.bf16 %v4218_v53, %v4216_v52  ;;  %vm1993_vm2 = vcmp.ge.f32.partialorder %v1659_v50, 0.0  ;;  %v2057_v55 = vmul.f32 0.2, %v1659_v50  ;;  %vm1994_vm3 = vcmp.ge.f32.partialorder %v1673_v51, 0.0 }
 0x16e   : > { %v2058_v56 = vmul.f32 0.2, %v1673_v51  ;;  %v2348_v42 = vmul.f32 %v4216_v52, %v4216_v52 }
 0x16f   : > { %2228 = vst [vmem:[%s4157_s27 + $0x98] sm:$0xff] %v2196_v54  ;;  %v2121_v57 = vsel %vm1993_vm2, %v1659_v50, %v2057_v55  ;;  %v2279_v50 = vadd.f32 %v2278_v41, %v4216_v52  ;;  %v2349_v55 = vmul.f32 %v4218_v53, %v4218_v53 }
 0x170   : > { %v4223_v58 = vsel %vm1994_vm3, %v1673_v51, %v2058_v56  ;;  %v2318_v43 = vmul.f32 %v2121_v57, %v2121_v57  ;;  %v2248_v45 = vadd.f32 %v2247_v40, %v2121_v57 }
 0x171   : > { %v2181_v60 = vpack.c.bf16 %v4223_v58, %v2121_v57  ;;  %v2319_v52 = vmul.f32 %v4223_v58, %v4223_v58 }
 0x172   : > { %v1660_v61 = vpop.f32.mrf.mxu0  ;;  %v1674_v62 = vpop.f32.mrf.mxu1 }
 0x173   : > { %v1686_v27 = vpop.f32.mrf.mxu2  ;;  %v1700_v59 = vpop.f32.mrf.mxu3  ;;  %v1661_v1 = vadd.f32 %v1660_v61, %v4155_v22  ;;  %2213 = vst [vmem:[%s4157_s27 + $0x20] sm:$0xff] %v2181_v60  ;;  %v1675_v2 = vadd.f32 %v1674_v62, %v4155_v22  ;;  %v2381_v60 = vadd.f32 %v2380_v32, %v2318_v43  ;;  %v2249_v62 = vadd.f32 %v2248_v45, %v4223_v58 }
 0x174   : > { %v1687_v63 = vadd.f32 %v1686_v27, %v4145_v9  ;;  %v1701_v0 = vadd.f32 %v1700_v59, %v4145_v9  ;;  %v2412_v59 = vadd.f32 %v4212_v44, %v2348_v42 }
 0x175   : > { %vm2025_vm6 = vcmp.ge.f32.partialorder %v1661_v1, 0.0  ;;  %v2089_v7 = vmul.f32 0.2, %v1661_v1  ;;  %vm2026_vm7 = vcmp.ge.f32.partialorder %v1675_v2, 0.0  ;;  %v2090_v13 = vmul.f32 0.2, %v1675_v2 }
 0x176   : > { %vm1995_vm4 = vcmp.ge.f32.partialorder %v1687_v63, 0.0  ;;  %v2059_v3 = vmul.f32 0.2, %v1687_v63  ;;  %vm1996_vm5 = vcmp.ge.f32.partialorder %v1701_v0, 0.0  ;;  %v2060_v4 = vmul.f32 0.2, %v1701_v0 }
 0x177   : > { %v4239_v15 = vsel %vm2025_vm6, %v1661_v1, %v2089_v7  ;;  %v4241_v16 = vsel %vm2026_vm7, %v1675_v2, %v2090_v13 }
 0x178   : > { %v4233_v10 = vsel %vm1995_vm4, %v1687_v63, %v2059_v3  ;;  %v4235_v11 = vsel %vm1996_vm5, %v1701_v0, %v2060_v4  ;;  %v2197_v8 = vpack.c.bf16 %v4241_v16, %v4239_v15  ;;  %v2280_v0 = vadd.f32 %v2279_v50, %v4218_v53 }
 0x179   : > { %v2182_v14 = vpack.c.bf16 %v4235_v11, %v4233_v10  ;;  %v2250_v3 = vadd.f32 %v2249_v62, %v4233_v10  ;;  %v2320_v44 = vmul.f32 %v4233_v10, %v4233_v10  ;;  %v2350_v6 = vmul.f32 %v4239_v15, %v4239_v15 }
 0x17a   : > { %2229 = vst [vmem:[%s4157_s27 + $0xa0] sm:$0xff] %v2197_v8  ;;  %v2281_v53 = vadd.f32 %v2280_v0, %v4239_v15  ;;  %v2413_v8 = vadd.f32 %v2412_v59, %v2349_v55  ;;  %v2321_v10 = vmul.f32 %v4235_v11, %v4235_v11 }
 0x17b   : > { %v1688_v17 = vpop.f32.mrf.mxu2  ;;  %v1702_v18 = vpop.f32.mrf.mxu3  ;;  %2214 = vst [vmem:[%s4157_s27 + $0x28] sm:$0xff] %v2182_v14  ;;  %v2382_v14 = vadd.f32 %v2381_v60, %v2319_v52  ;;  %v2251_v23 = vadd.f32 %v2250_v3, %v4235_v11 }
 0x17c   : > { %v1689_v19 = vadd.f32 %v1688_v17, %v4155_v22  ;;  %v1703_v20 = vadd.f32 %v1702_v18, %v4155_v22 }
 0x17d   : > { %v2383_v21 = vadd.f32 %v2382_v14, %v2320_v44 }
 0x17e   : > { %v1714_v24 = vpop.f32.mrf.mxu0  ;;  %v1728_v25 = vpop.f32.mrf.mxu1  ;;  %vm2027_vm8 = vcmp.ge.f32.partialorder %v1689_v19, 0.0  ;;  %v2091_v28 = vmul.f32 0.2, %v1689_v19  ;;  %vm2028_vm9 = vcmp.ge.f32.partialorder %v1703_v20, 0.0  ;;  %v2092_v30 = vmul.f32 0.2, %v1703_v20 }
 0x17f   : > { %v1715_v12 = vadd.f32 %v1714_v24, %v4145_v9  ;;  %v1729_v34 = vadd.f32 %v1728_v25, %v4145_v9  ;;  %v2351_v24 = vmul.f32 %v4241_v16, %v4241_v16  ;;  %v2414_v25 = vadd.f32 %v2413_v8, %v2350_v6 }
 0x180   : > { %v4259_v37 = vsel %vm2027_vm8, %v1689_v19, %v2091_v28  ;;  %v4262_v39 = vsel %vm2028_vm9, %v1703_v20, %v2092_v30 }
 0x181   : > { %v2061_v31 = vmul.f32 0.2, %v1715_v12  ;;  %vm1997_vm10 = vcmp.ge.f32.partialorder %v1715_v12, 0.0  ;;  %vm1998_vm11 = vcmp.ge.f32.partialorder %v1729_v34, 0.0  ;;  %v2198_v5 = vpack.c.bf16 %v4262_v39, %v4259_v37 }
 0x182   : > { %v2062_v33 = vmul.f32 0.2, %v1729_v34  ;;  %v2352_v35 = vmul.f32 %v4259_v37, %v4259_v37  ;;  %v2415_v42 = vadd.f32 %v2414_v25, %v2351_v24 }
 0x183   : > { %2230 = vst [vmem:[%s4157_s27 + $0xa8] sm:$0xff] %v2198_v5  ;;  %v4271_v47 = vsel %vm1997_vm10, %v1715_v12, %v2061_v31 }
 0x184   : > { %v4273_v26 = vsel %vm1998_vm11, %v1729_v34, %v2062_v33  ;;  %v2282_v34 = vadd.f32 %v2281_v53, %v4241_v16  ;;  %v2252_v38 = vadd.f32 %v2251_v23, %v4271_v47  ;;  %v2322_v41 = vmul.f32 %v4271_v47, %v4271_v47 }
 0x185   : > { %v2183_v51 = vpack.c.bf16 %v4273_v26, %v4271_v47  ;;  %v2416_v50 = vadd.f32 %v2415_v42, %v2352_v35  ;;  %v2323_v55 = vmul.f32 %v4273_v26, %v4273_v26 }
 0x186   : > { %v1716_v36 = vpop.f32.mrf.mxu0  ;;  %v1730_v54 = vpop.f32.mrf.mxu1  ;;  %v2283_v33 = vadd.f32 %v2282_v34, %v4259_v37  ;;  %v2253_v37 = vadd.f32 %v2252_v38, %v4273_v26 }
 0x187   : > { %v1742_v48 = vpop.f32.mrf.mxu2  ;;  %v1756_v49 = vpop.f32.mrf.mxu3  ;;  %v1717_v27 = vadd.f32 %v1716_v36, %v4155_v22  ;;  %2215 = vst [vmem:[%s4157_s27 + $0x30] sm:$0xff] %v2183_v51  ;;  %v1731_v61 = vadd.f32 %v1730_v54, %v4155_v22 }
 0x188   : > { %v1743_v56 = vadd.f32 %v1742_v48, %v4145_v9  ;;  %v1757_v57 = vadd.f32 %v1756_v49, %v4145_v9  ;;  %v2384_v48 = vadd.f32 %v2383_v21, %v2321_v10  ;;  %v2353_v49 = vmul.f32 %v4262_v39, %v4262_v39 }
 0x189   : > { %vm2029_vm14 = vcmp.ge.f32.partialorder %v1717_v27, 0.0  ;;  %v2093_v2 = vmul.f32 0.2, %v1717_v27  ;;  %vm2030_vm15 = vcmp.ge.f32.partialorder %v1731_v61, 0.0  ;;  %v2094_v4 = vmul.f32 0.2, %v1731_v61 }
 0x18a   : > { %vm1999_vm12 = vcmp.ge.f32.partialorder %v1743_v56, 0.0  ;;  %v2063_v63 = vmul.f32 0.2, %v1743_v56  ;;  %vm2000_vm13 = vcmp.ge.f32.partialorder %v1757_v57, 0.0  ;;  %v2064_v1 = vmul.f32 0.2, %v1757_v57 }
 0x18b   : > { %v2157_v13 = vsel %vm2029_vm14, %v1717_v27, %v2093_v2  ;;  %v4301_v19 = vsel %vm2030_vm15, %v1731_v61, %v2094_v4  ;;  %v2284_v47 = vadd.f32 %v2283_v33, %v4262_v39  ;;  %v2385_v54 = vadd.f32 %v2384_v48, %v2322_v41 }
 0x18c   : > { %v2127_v58 = vsel %vm1999_vm12, %v1743_v56, %v2063_v63  ;;  %v4295_v7 = vsel %vm2000_vm13, %v1757_v57, %v2064_v1  ;;  %v2199_v15 = vpack.c.bf16 %v4301_v19, %v2157_v13  ;;  %v2354_v1 = vmul.f32 %v2157_v13, %v2157_v13 }
 0x18d   : > { %v2184_v17 = vpack.c.bf16 %v4295_v7, %v2127_v58  ;;  %v2254_v59 = vadd.f32 %v2253_v37, %v2127_v58  ;;  %v2324_v60 = vmul.f32 %v2127_v58, %v2127_v58  ;;  %v2285_v0 = vadd.f32 %v2284_v47, %v2157_v13 }
 0x18e   : > { %2231 = vst [vmem:[%s4157_s27 + $0xb0] sm:$0xff] %v2199_v15  ;;  %v2386_v44 = vadd.f32 %v2385_v54, %v2323_v55  ;;  %v2417_v6 = vadd.f32 %v2416_v50, %v2353_v49  ;;  %v2325_v13 = vmul.f32 %v4295_v7, %v4295_v7  ;;  %v2355_v23 = vmul.f32 %v4301_v19, %v4301_v19 }
 0x18f   : > { %v1744_v18 = vpop.f32.mrf.mxu2  ;;  %v1758_v46 = vpop.f32.mrf.mxu3  ;;  %2216 = vst [vmem:[%s4157_s27 + $0x38] sm:$0xff] %v2184_v17  ;;  %v2255_v8 = vadd.f32 %v2254_v59, %v4295_v7 }
 0x190   : > { %v1745_v20 = vadd.f32 %v1744_v18, %v4155_v22  ;;  %v1759_v12 = vadd.f32 %v1758_v46, %v4155_v22  ;;  %v2387_v17 = vadd.f32 %v2386_v44, %v2324_v60  ;;  %v2286_v18 = vadd.f32 %v2285_v0, %v4301_v19 }
 0x191   : > { %v2418_v10 = vadd.f32 %v2417_v6, %v2354_v1 }
 0x192   : > { %vm2031_vm0 = vcmp.ge.f32.partialorder %v1745_v20, 0.0  ;;  %v2095_v28 = vmul.f32 0.2, %v1745_v20  ;;  %v1770_v29 = vpop.f32.mrf.mxu0  ;;  %v1784_v30 = vpop.f32.mrf.mxu1  ;;  %vm2032_vm1 = vcmp.ge.f32.partialorder %v1759_v12, 0.0  ;;  %v2096_v5 = vmul.f32 0.2, %v1759_v12 }
 0x193   : > { %v1771_v11 = vadd.f32 %v1770_v29, %v4145_v9  ;;  %v1785_v31 = vadd.f32 %v1784_v30, %v4145_v9  ;;  %v2388_v7 = vadd.f32 %v2387_v17, %v2325_v13 }
 0x194   : > { %v2159_v40 = vsel %vm2031_vm0, %v1745_v20, %v2095_v28  ;;  %v4320_v43 = vsel %vm2032_vm1, %v1759_v12, %v2096_v5 }
 0x195   : > { %vm2001_vm2 = vcmp.ge.f32.partialorder %v1771_v11, 0.0  ;;  %v2065_v16 = vmul.f32 0.2, %v1771_v11  ;;  %vm2002_vm3 = vcmp.ge.f32.partialorder %v1785_v31, 0.0  ;;  %v2066_v45 = vmul.f32 0.2, %v1785_v31 }
 0x196   : > { %v2200_v32 = vpack.c.bf16 %v4320_v43, %v2159_v40  ;;  %v2287_v24 = vadd.f32 %v2286_v18, %v2159_v40  ;;  %v2356_v15 = vmul.f32 %v2159_v40, %v2159_v40  ;;  %v2357_v54 = vmul.f32 %v4320_v43, %v4320_v43 }
 0x197   : > { %v2129_v51 = vsel %vm2001_vm2, %v1771_v11, %v2065_v16  ;;  %v4326_v36 = vsel %vm2002_vm3, %v1785_v31, %v2066_v45  ;;  %v2419_v11 = vadd.f32 %v2418_v10, %v2355_v23 }
 0x198   : > { %2232 = vst [vmem:[%s4157_s27 + $0xb8] sm:$0xff] %v2200_v32  ;;  %v2185_v56 = vpack.c.bf16 %v4326_v36, %v2129_v51  ;;  %v2326_v25 = vmul.f32 %v2129_v51, %v2129_v51  ;;  %v2256_v29 = vadd.f32 %v2255_v8, %v2129_v51  ;;  %v2288_v42 = vadd.f32 %v2287_v24, %v4320_v43 }
 0x199   : > { %v2420_v16 = vadd.f32 %v2419_v11, %v2356_v15  ;;  %v2327_v49 = vmul.f32 %v4326_v36, %v4326_v36 }
 0x19a   : > { %v1772_v62 = vpop.f32.mrf.mxu0  ;;  %v1786_v63 = vpop.f32.mrf.mxu1  ;;  %2217 = vst [vmem:[%s4157_s27 + $0x40] sm:$0xff] %v2185_v56  ;;  %v2389_v5 = vadd.f32 %v2388_v7, %v2326_v25  ;;  %v2257_v45 = vadd.f32 %v2256_v29, %v4326_v36 }
 0x19b   : > { %v1798_v57 = vpop.f32.mrf.mxu2  ;;  %v1812_v27 = vpop.f32.mrf.mxu3  ;;  %v1773_v39 = vadd.f32 %v1772_v62, %v4155_v22  ;;  %v1787_v26 = vadd.f32 %v1786_v63, %v4155_v22  ;;  %v2421_v60 = vadd.f32 %v2420_v16, %v2357_v54 }
 0x19c   : > { %v1799_v52 = vadd.f32 %v1798_v57, %v4145_v9  ;;  %v1813_v61 = vadd.f32 %v1812_v27, %v4145_v9  ;;  %v2390_v55 = vadd.f32 %v2389_v5, %v2327_v49 }
 0x19d   : > { %vm2033_vm6 = vcmp.ge.f32.partialorder %v1773_v39, 0.0  ;;  %v2097_v4 = vmul.f32 0.2, %v1773_v39  ;;  %vm2034_vm7 = vcmp.ge.f32.partialorder %v1787_v26, 0.0  ;;  %v2098_v53 = vmul.f32 0.2, %v1787_v26 }
 0x19e   : > { %vm2003_vm4 = vcmp.ge.f32.partialorder %v1799_v52, 0.0  ;;  %v2067_v2 = vmul.f32 0.2, %v1799_v52  ;;  %vm2004_vm5 = vcmp.ge.f32.partialorder %v1813_v61, 0.0  ;;  %v2068_v3 = vmul.f32 0.2, %v1813_v61 }
 0x19f   : > { %v2161_v20 = vsel %vm2033_vm6, %v1773_v39, %v2097_v4  ;;  %v2162_v21 = vsel %vm2034_vm7, %v1787_v26, %v2098_v53 }
 0x1a0   : > { %v2131_v58 = vsel %vm2003_vm4, %v1799_v52, %v2067_v2  ;;  %v2132_v14 = vsel %vm2004_vm5, %v1813_v61, %v2068_v3  ;;  %v2201_v30 = vpack.c.bf16 %v2162_v21, %v2161_v20  ;;  %v2358_v56 = vmul.f32 %v2161_v20, %v2161_v20 }
 0x1a1   : > { %v2186_v46 = vpack.c.bf16 %v2132_v14, %v2131_v58  ;;  %v2328_v32 = vmul.f32 %v2131_v58, %v2131_v58  ;;  %v2258_v37 = vadd.f32 %v2257_v45, %v2131_v58  ;;  %v2289_v27 = vadd.f32 %v2288_v42, %v2161_v20 }
 0x1a2   : > { %2233 = vst [vmem:[%s4157_s27 + $0xc0] sm:$0xff] %v2201_v30  ;;  %v2329_v36 = vmul.f32 %v2132_v14, %v2132_v14  ;;  %v2422_v3 = vadd.f32 %v2421_v60, %v2358_v56  ;;  %v2359_v44 = vmul.f32 %v2162_v21, %v2162_v21 }
 0x1a3   : > { %2218 = vst [vmem:[%s4157_s27 + $0x48] sm:$0xff] %v2186_v46  ;;  %v1800_v28 = vpop.f32.mrf.mxu2  ;;  %v1814_v12 = vpop.f32.mrf.mxu3  ;;  %v2391_v52 = vadd.f32 %v2390_v55, %v2328_v32  ;;  %v2259_v0 = vadd.f32 %v2258_v37, %v2132_v14  ;;  %v2290_v58 = vadd.f32 %v2289_v27, %v2162_v21 }
 0x1a4   : > { %v1801_v34 = vadd.f32 %v1800_v28, %v4155_v22  ;;  %v1815_v35 = vadd.f32 %v1814_v12, %v4155_v22  ;;  %v2423_v15 = vadd.f32 %v2422_v3, %v2359_v44 }
 0x1a5   : > { %v2392_v24 = vadd.f32 %v2391_v52, %v2329_v36 }
 0x1a6   : > { %vm2035_vm8 = vcmp.ge.f32.partialorder %v1801_v34, 0.0  ;;  %v2099_v31 = vmul.f32 0.2, %v1801_v34  ;;  %vm2036_vm9 = vcmp.ge.f32.partialorder %v1815_v35, 0.0  ;;  %v1826_v38 = vpop.f32.mrf.mxu0  ;;  %v1840_v19 = vpop.f32.mrf.mxu1  ;;  %v2100_v40 = vmul.f32 0.2, %v1815_v35 }
 0x1a7   : > { %v1827_v33 = vadd.f32 %v1826_v38, %v4145_v9  ;;  %v1841_v41 = vadd.f32 %v1840_v19, %v4145_v9 }
 0x1a8   : > { %v2163_v48 = vsel %vm2035_vm8, %v1801_v34, %v2099_v31  ;;  %v2164_v50 = vsel %vm2036_vm9, %v1815_v35, %v2100_v40 }
 0x1a9   : > { %vm2005_vm10 = vcmp.ge.f32.partialorder %v1827_v33, 0.0  ;;  %v2202_v51 = vpack.c.bf16 %v2164_v50, %v2163_v48  ;;  %v2069_v47 = vmul.f32 0.2, %v1827_v33  ;;  %vm2006_vm11 = vcmp.ge.f32.partialorder %v1841_v41, 0.0 }
 0x1aa   : > { %v2070_v57 = vmul.f32 0.2, %v1841_v41  ;;  %v2360_v17 = vmul.f32 %v2163_v48, %v2163_v48  ;;  %v2291_v10 = vadd.f32 %v2290_v58, %v2163_v48  ;;  %v2361_v11 = vmul.f32 %v2164_v50, %v2164_v50 }
 0x1ab   : > { %2234 = vst [vmem:[%s4157_s27 + $0xc8] sm:$0xff] %v2202_v51  ;;  %v2133_v59 = vsel %vm2005_vm10, %v1827_v33, %v2069_v47 }
 0x1ac   : > { %v2134_v61 = vsel %vm2006_vm11, %v1841_v41, %v2070_v57  ;;  %v2330_v18 = vmul.f32 %v2133_v59, %v2133_v59  ;;  %v2260_v25 = vadd.f32 %v2259_v0, %v2133_v59  ;;  %v2424_v30 = vadd.f32 %v2423_v15, %v2360_v17 }
 0x1ad   : > { %v2187_v1 = vpack.c.bf16 %v2134_v61, %v2133_v59  ;;  %v2292_v7 = vadd.f32 %v2291_v10, %v2164_v50  ;;  %v2331_v5 = vmul.f32 %v2134_v61, %v2134_v61 }
 0x1ae   : > { %v1828_v43 = vpop.f32.mrf.mxu0  ;;  %v1842_v2 = vpop.f32.mrf.mxu1  ;;  %v2393_v34 = vadd.f32 %v2392_v24, %v2330_v18  ;;  %v2261_v19 = vadd.f32 %v2260_v25, %v2134_v61  ;;  %v2425_v48 = vadd.f32 %v2424_v30, %v2361_v11 }
 0x1af   : > { %v1854_v62 = vpop.f32.mrf.mxu2  ;;  %v1868_v63 = vpop.f32.mrf.mxu3  ;;  %v1829_v4 = vadd.f32 %v1828_v43, %v4155_v22  ;;  %v1843_v6 = vadd.f32 %v1842_v2, %v4155_v22  ;;  %2219 = vst [vmem:[%s4157_s27 + $0x50] sm:$0xff] %v2187_v1 }
 0x1b0   : > { %v1855_v39 = vadd.f32 %v1854_v62, %v4145_v9  ;;  %v1869_v26 = vadd.f32 %v1868_v63, %v4145_v9  ;;  %v2394_v49 = vadd.f32 %v2393_v34, %v2331_v5 }
 0x1b1   : > { %vm2037_vm14 = vcmp.ge.f32.partialorder %v1829_v4, 0.0  ;;  %v2101_v13 = vmul.f32 0.2, %v1829_v4  ;;  %vm2038_vm15 = vcmp.ge.f32.partialorder %v1843_v6, 0.0  ;;  %v2102_v8 = vmul.f32 0.2, %v1843_v6 }
 0x1b2   : > { %vm2007_vm12 = vcmp.ge.f32.partialorder %v1855_v39, 0.0  ;;  %v2071_v53 = vmul.f32 0.2, %v1855_v39  ;;  %vm2008_vm13 = vcmp.ge.f32.partialorder %v1869_v26, 0.0  ;;  %v2072_v14 = vmul.f32 0.2, %v1869_v26 }
 0x1b3   : > { %v2165_v23 = vsel %vm2037_vm14, %v1829_v4, %v2101_v13  ;;  %v2166_v28 = vsel %vm2038_vm15, %v1843_v6, %v2102_v8 }
 0x1b4   : > { %v2135_v46 = vsel %vm2007_vm12, %v1855_v39, %v2071_v53  ;;  %v2136_v20 = vsel %vm2008_vm13, %v1869_v26, %v2072_v14  ;;  %v2203_v35 = vpack.c.bf16 %v2166_v28, %v2165_v23  ;;  %v2362_v33 = vmul.f32 %v2165_v23, %v2165_v23 }
 0x1b5   : > { %v2188_v21 = vpack.c.bf16 %v2136_v20, %v2135_v46  ;;  %v2332_v40 = vmul.f32 %v2135_v46, %v2135_v46  ;;  %v2262_v37 = vadd.f32 %v2261_v19, %v2135_v46  ;;  %v2293_v55 = vadd.f32 %v2292_v7, %v2165_v23 }
 0x1b6   : > { %2235 = vst [vmem:[%s4157_s27 + $0xd0] sm:$0xff] %v2203_v35  ;;  %v2426_v56 = vadd.f32 %v2425_v48, %v2362_v33  ;;  %v2363_v60 = vmul.f32 %v2166_v28, %v2166_v28  ;;  %v2333_v61 = vmul.f32 %v2136_v20, %v2136_v20 }
 0x1b7   : > { %v1856_v12 = vpop.f32.mrf.mxu2  ;;  %v1870_v29 = vpop.f32.mrf.mxu3  ;;  %2220 = vst [vmem:[%s4157_s27 + $0x58] sm:$0xff] %v2188_v21  ;;  %v2395_v54 = vadd.f32 %v2394_v49, %v2332_v40  ;;  %v2263_v36 = vadd.f32 %v2262_v37, %v2136_v20  ;;  %v2294_v39 = vadd.f32 %v2293_v55, %v2166_v28 }
 0x1b8   : > { %v1857_v31 = vadd.f32 %v1856_v12, %v4155_v22  ;;  %v1871_v38 = vadd.f32 %v1870_v29, %v4155_v22  ;;  %v2427_v26 = vadd.f32 %v2426_v56, %v2363_v60 }
 0x1b9   : > { %v2396_v4 = vadd.f32 %v2395_v54, %v2333_v61 }
 0x1ba   : > { %v1882_v41 = vpop.f32.mrf.mxu0  ;;  %v1896_v16 = vpop.f32.mrf.mxu1  ;;  %vm2039_vm0 = vcmp.ge.f32.partialorder %v1857_v31, 0.0  ;;  %v2103_v42 = vmul.f32 0.2, %v1857_v31  ;;  %vm2040_vm1 = vcmp.ge.f32.partialorder %v1871_v38, 0.0  ;;  %v2104_v45 = vmul.f32 0.2, %v1871_v38 }
 0x1bb   : > { %v1883_v32 = vadd.f32 %v1882_v41, %v4145_v9  ;;  %v1897_v50 = vadd.f32 %v1896_v16, %v4145_v9 }
 0x1bc   : > { %v2167_v51 = vsel %vm2039_vm0, %v1857_v31, %v2103_v42  ;;  %v2168_v47 = vsel %vm2040_vm1, %v1871_v38, %v2104_v45 }
 0x1bd   : > { %v2204_v57 = vpack.c.bf16 %v2168_v47, %v2167_v51  ;;  %vm2009_vm2 = vcmp.ge.f32.partialorder %v1883_v32, 0.0  ;;  %v2073_v27 = vmul.f32 0.2, %v1883_v32  ;;  %vm2010_vm3 = vcmp.ge.f32.partialorder %v1897_v50, 0.0 }
 0x1be   : > { %v2074_v59 = vmul.f32 0.2, %v1897_v50  ;;  %v2364_v52 = vmul.f32 %v2167_v51, %v2167_v51  ;;  %v2295_v17 = vadd.f32 %v2294_v39, %v2167_v51  ;;  %v2365_v23 = vmul.f32 %v2168_v47, %v2168_v47 }
 0x1bf   : > { %2236 = vst [vmem:[%s4157_s27 + $0xd8] sm:$0xff] %v2204_v57  ;;  %v2137_v62 = vsel %vm2009_vm2, %v1883_v32, %v2073_v27  ;;  %vm2307_vm2 = vcmask 7168  }
 0x1c0   : > { %v2138_v63 = vsel %vm2010_vm3, %v1897_v50, %v2074_v59  ;;  %v2334_v43 = vmul.f32 %v2137_v62, %v2137_v62  ;;  %v2428_v14 = vadd.f32 %v2427_v26, %v2364_v52  ;;  %v2264_v13 = vadd.f32 %v2263_v36, %v2137_v62 }
 0x1c1   : > { %v2189_v2 = vpack.c.bf16 %v2138_v63, %v2137_v62  ;;  %v2335_v28 = vmul.f32 %v2138_v63, %v2138_v63  ;;  %v2296_v30 = vadd.f32 %v2295_v17, %v2168_v47 }
 0x1c2   : > { %v1884_v3 = vpop.f32.mrf.mxu0  ;;  %v1898_v44 = vpop.f32.mrf.mxu1  ;;  %v2397_v10 = vadd.f32 %v2396_v4, %v2334_v43  ;;  %v2265_v21 = vadd.f32 %v2264_v13, %v2138_v63  ;;  %v2429_v31 = vadd.f32 %v2428_v14, %v2365_v23 }
 0x1c3   : > { %v1910_v0 = vpop.f32.mrf.mxu2  ;;  %v1924_v1 = vpop.f32.mrf.mxu3  ;;  %v1885_v53 = vadd.f32 %v1884_v3, %v4155_v22  ;;  %2221 = vst [vmem:[%s4157_s27 + $0x60] sm:$0xff] %v2189_v2  ;;  %v1899_v18 = vadd.f32 %v1898_v44, %v4155_v22 }
 0x1c4   : > { %v1911_v6 = vadd.f32 %v1910_v0, %v4145_v9  ;;  %v1925_v58 = vadd.f32 %v1924_v1, %v4145_v9  ;;  %v2398_v38 = vadd.f32 %v2397_v10, %v2335_v28 }
 0x1c5   : > { %vm2041_vm6 = vcmp.ge.f32.partialorder %v1885_v53, 0.0  ;;  %v2105_v20 = vmul.f32 0.2, %v1885_v53  ;;  %vm2042_vm7 = vcmp.ge.f32.partialorder %v1899_v18, 0.0  ;;  %v2106_v25 = vmul.f32 0.2, %v1899_v18 }
 0x1c6   : > { %vm2011_vm4 = vcmp.ge.f32.partialorder %v1911_v6, 0.0  ;;  %v2075_v46 = vmul.f32 0.2, %v1911_v6  ;;  %vm2012_vm5 = vcmp.ge.f32.partialorder %v1925_v58, 0.0  ;;  %v2076_v8 = vmul.f32 0.2, %v1925_v58 }
 0x1c7   : > { %v2169_v34 = vsel %vm2041_vm6, %v1885_v53, %v2105_v20  ;;  %v2170_v35 = vsel %vm2042_vm7, %v1899_v18, %v2106_v25 }
 0x1c8   : > { %v2139_v24 = vsel %vm2011_vm4, %v1911_v6, %v2075_v46  ;;  %v2140_v15 = vsel %vm2012_vm5, %v1925_v58, %v2076_v8  ;;  %v2366_v5 = vmul.f32 %v2169_v34, %v2169_v34  ;;  %v2205_v33 = vpack.c.bf16 %v2170_v35, %v2169_v34 }
 0x1c9   : > { %v2336_v12 = vmul.f32 %v2139_v24, %v2139_v24  ;;  %v2190_v29 = vpack.c.bf16 %v2140_v15, %v2139_v24  ;;  %v2266_v19 = vadd.f32 %v2265_v21, %v2139_v24  ;;  %v2337_v40 = vmul.f32 %v2140_v15, %v2140_v15 }
 0x1ca   : > { %v2297_v49 = vadd.f32 %v2296_v30, %v2169_v34  ;;  %v2430_v37 = vadd.f32 %v2429_v31, %v2366_v5  ;;  %2237 = vst [vmem:[%s4157_s27 + $0xe0] sm:$0xff] %v2205_v33  ;;  %v2367_v56 = vmul.f32 %v2170_v35, %v2170_v35 }
 0x1cb   : > { %v1912_v7 = vpop.f32.mrf.mxu2  ;;  %v1926_v11 = vpop.f32.mrf.mxu3  ;;  %2222 = vst [vmem:[%s4157_s27 + $0x68] sm:$0xff] %v2190_v29  ;;  %v2399_v48 = vadd.f32 %v2398_v38, %v2336_v12  ;;  %v2267_v47 = vadd.f32 %v2266_v19, %v2140_v15 }
 0x1cc   : > { %v1913_v41 = vadd.f32 %v1912_v7, %v4155_v22  ;;  %v1927_v16 = vadd.f32 %v1926_v11, %v4155_v22  ;;  %v2298_v59 = vadd.f32 %v2297_v49, %v2170_v35  ;;  %v2431_v61 = vadd.f32 %v2430_v37, %v2367_v56 }
 0x1cd   : > { %v2400_v3 = vadd.f32 %v2399_v48, %v2337_v40 }
 0x1ce   : > { %v1938_v42 = vpop.f32.mrf.mxu0  ;;  %v1952_v45 = vpop.f32.mrf.mxu1  ;;  %vm2043_vm8 = vcmp.ge.f32.partialorder %v1913_v41, 0.0  ;;  %v2107_v51 = vmul.f32 0.2, %v1913_v41  ;;  %vm2044_vm9 = vcmp.ge.f32.partialorder %v1927_v16, 0.0  ;;  %v2108_v54 = vmul.f32 0.2, %v1927_v16 }
 0x1cf   : > { %v1939_v32 = vadd.f32 %v1938_v42, %v4145_v9  ;;  %v1953_v50 = vadd.f32 %v1952_v45, %v4145_v9 }
 0x1d0   : > { %v2171_v57 = vsel %vm2043_vm8, %v1913_v41, %v2107_v51  ;;  %v2172_v52 = vsel %vm2044_vm9, %v1927_v16, %v2108_v54 }
 0x1d1   : > { %vm2013_vm10 = vcmp.ge.f32.partialorder %v1939_v32, 0.0  ;;  %v2077_v55 = vmul.f32 0.2, %v1939_v32  ;;  %vm2014_vm11 = vcmp.ge.f32.partialorder %v1953_v50, 0.0  ;;  %v2078_v27 = vmul.f32 0.2, %v1953_v50 }
 0x1d2   : > { %v2368_v60 = vmul.f32 %v2171_v57, %v2171_v57  ;;  %v2206_v62 = vpack.c.bf16 %v2172_v52, %v2171_v57  ;;  %v2299_v1 = vadd.f32 %v2298_v59, %v2171_v57  ;;  %v2369_v4 = vmul.f32 %v2172_v52, %v2172_v52 }
 0x1d3   : > { %v2141_v36 = vsel %vm2013_vm10, %v1939_v32, %v2077_v55  ;;  %v2142_v0 = vsel %vm2014_vm11, %v1953_v50, %v2078_v27 }
 0x1d4   : > { %v2338_v63 = vmul.f32 %v2141_v36, %v2141_v36  ;;  %v2191_v39 = vpack.c.bf16 %v2142_v0, %v2141_v36  ;;  %v2268_v2 = vadd.f32 %v2267_v47, %v2141_v36  ;;  %v2432_v44 = vadd.f32 %v2431_v61, %v2368_v60  ;;  %2238 = vst [vmem:[%s4157_s27 + $0xe8] sm:$0xff] %v2206_v62  ;;  %v2474_v62 = vld [vmem:[%s4157_s27] sm:$0xff] (%p3466_p5) }
 0x1d5   : > { %v1966_v26 = vpop.f32.mrf.mxu2  ;;  %v1980_v43 = vpop.f32.mrf.mxu3  ;;  %v2300_v24 = vadd.f32 %v2299_v1, %v2172_v52  ;;  %v2339_v25 = vmul.f32 %v2142_v0, %v2142_v0  ;;  %2475 = vst [vmem:[%s4407_s13] sm:$0xff] (%p3466_p5), %v2474_v62  ;;  %v2480_v1 = vld [vmem:[%s4157_s27 + $0x18] sm:$0xff] (%p3466_p5) }
 0x1d6   : > { %v1967_v6 = vadd.f32 %v1966_v26, %v4145_v9  ;;  %v1981_v58 = vadd.f32 %v1980_v43, %v4145_v9  ;;  %v1940_v53 = vpop.f32.mrf.mxu0  ;;  %v1954_v17 = vpop.f32.mrf.mxu1  ;;  %2223 = vst [vmem:[%s4157_s27 + $0x70] sm:$0xff] %v2191_v39  ;;  %v2269_v18 = vadd.f32 %v2268_v2, %v2142_v0  ;;  %v2401_v46 = vadd.f32 %v2400_v3, %v2338_v63  ;;  %v2476_v63 = vld [vmem:[%s4157_s27 + $0x8] sm:$0xff] (%p3466_p5)  ;;  %v2478_v0 = vld [vmem:[%s4157_s27 + $0x10] sm:$0xff] (%p3466_p5)  ;;  %v2482_v39 = vld [vmem:[%s4157_s27 + $0x20] sm:$0xff] (%p3466_p5) }
 0x1d7   : > { %v1941_v14 = vadd.f32 %v1940_v53, %v4155_v22  ;;  %v1955_v13 = vadd.f32 %v1954_v17, %v4155_v22  ;;  %v2433_v30 = vadd.f32 %v2432_v44, %v2369_v4  ;;  %2477 = vst [vmem:[%s4407_s13 + $0x8] sm:$0xff] (%p3466_p5), %v2476_v63  ;;  %v2484_v26 = vld [vmem:[%s4157_s27 + $0x28] sm:$0xff] (%p3466_p5)  ;;  %v2486_v43 = vld [vmem:[%s4157_s27 + $0x30] sm:$0xff] (%p3466_p5)  ;;  %v2488_v2 = vld [vmem:[%s4157_s27 + $0x38] sm:$0xff] (%p3466_p5) }
 0x1d8   : > { %vm2015_vm12 = vcmp.ge.f32.partialorder %v1967_v6, 0.0  ;;  %v2079_v8 = vmul.f32 0.2, %v1967_v6  ;;  %v2080_v10 = vmul.f32 0.2, %v1981_v58  ;;  %vm2016_vm13 = vcmp.ge.f32.partialorder %v1981_v58, 0.0 }
 0x1d9   : > { %vm2045_vm14 = vcmp.ge.f32.partialorder %v1941_v14, 0.0  ;;  %v2109_v20 = vmul.f32 0.2, %v1941_v14  ;;  %vm2046_vm15 = vcmp.ge.f32.partialorder %v1955_v13, 0.0  ;;  %v2110_v23 = vmul.f32 0.2, %v1955_v13 }
 0x1da   : > { %v2143_v9 = vsel %vm2015_vm12, %v1967_v6, %v2079_v8  ;;  %v2144_v15 = vsel %vm2016_vm13, %v1981_v58, %v2080_v10  ;;  %v2402_v5 = vadd.f32 %v2401_v46, %v2339_v25  ;;  %2479 = vst [vmem:[%s4407_s13 + $0x10] sm:$0xff] (%p3466_p5), %v2478_v0  ;;  %v2490_v3 = vld [vmem:[%s4157_s27 + $0x40] sm:$0xff] (%p3466_p5)  ;;  %v2492_v44 = vld [vmem:[%s4157_s27 + $0x48] sm:$0xff] (%p3466_p5)  ;;  %v2494_v4 = vld [vmem:[%s4157_s27 + $0x50] sm:$0xff] (%p3466_p5) }
 0x1db   : > { %v2173_v21 = vsel %vm2045_vm14, %v1941_v14, %v2109_v20  ;;  %v2174_v28 = vsel %vm2046_vm15, %v1955_v13, %v2110_v23  ;;  %v2192_v12 = vpack.c.bf16 %v2144_v15, %v2143_v9  ;;  %v2270_v29 = vadd.f32 %v2269_v18, %v2143_v9  ;;  %2481 = vst [vmem:[%s4407_s13 + $0x18] sm:$0xff] (%p3466_p5), %v2480_v1  ;;  %v2496_v6 = vld [vmem:[%s4157_s27 + $0x58] sm:$0xff] (%p3466_p5)  ;;  %v2498_v58 = vld [vmem:[%s4157_s27 + $0x60] sm:$0xff] (%p3466_p5)  ;;  %v2500_v53 = vld [vmem:[%s4157_s27 + $0x68] sm:$0xff] (%p3466_p5) }
 0x1dc   : > { %v2370_v34 = vmul.f32 %v2173_v21, %v2173_v21  ;;  %v2207_v35 = vpack.c.bf16 %v2174_v28, %v2173_v21  ;;  %v2301_v7 = vadd.f32 %v2300_v24, %v2173_v21  ;;  %v2340_v19 = vmul.f32 %v2143_v9, %v2143_v9  ;;  %2483 = vst [vmem:[%s4407_s13 + $0x20] sm:$0xff] (%p3466_p5), %v2482_v39  ;;  %v2506_v13 = vld [vmem:[%s4157_s27 + $0x80] sm:$0xff] (%p3466_p5)  ;;  %v2508_v18 = vld [vmem:[%s4157_s27 + $0x88] sm:$0xff] (%p3466_p5)  ;;  %v2510_v46 = vld [vmem:[%s4157_s27 + $0x90] sm:$0xff] (%p3466_p5) }
 0x1dd   : > { %v1968_v11 = vpop.f32.mrf.mxu2  ;;  %v1982_v31 = vpop.f32.mrf.mxu3  ;;  %2224 = vst [vmem:[%s4157_s27 + $0x78] sm:$0xff] %v2192_v12  ;;  %v2271_v38 = vadd.f32 %v2270_v29, %v2144_v15  ;;  %v2341_v41 = vmul.f32 %v2144_v15, %v2144_v15  ;;  %v2371_v49 = vmul.f32 %v2174_v28, %v2174_v28  ;;  %v2502_v17 = vld [vmem:[%s4157_s27 + $0x70] sm:$0xff] (%p3466_p5)  ;;  %v2512_v8 = vld [vmem:[%s4157_s27 + $0x98] sm:$0xff] (%p3466_p5)  ;;  %v2514_v10 = vld [vmem:[%s4157_s27 + $0xa0] sm:$0xff] (%p3466_p5) }
 0x1de   : > { %2239 = vst [vmem:[%s4157_s27 + $0xf0] sm:$0xff] %v2207_v35  ;;  %v1969_v40 = vadd.f32 %v1968_v11, %v4155_v22  ;;  %v1983_v33 = vadd.f32 %v1982_v31, %v4155_v22  ;;  %v2403_v16 = vadd.f32 %v2402_v5, %v2340_v19  ;;  %v2434_v42 = vadd.f32 %v2433_v30, %v2370_v34  ;;  %v2516_v20 = vld [vmem:[%s4157_s27 + $0xa8] sm:$0xff] (%p3466_p5)  ;;  %v2518_v23 = vld [vmem:[%s4157_s27 + $0xb0] sm:$0xff] (%p3466_p5)  ;;  %v2520_v24 = vld [vmem:[%s4157_s27 + $0xb8] sm:$0xff] (%p3466_p5) }
 0x1df   : > { %2272 = vadd.xlane.f32.xlu1 %v2271_v38  ;;  %v2302_v50 = vadd.f32 %v2301_v7, %v2174_v28  ;;  %2485 = vst [vmem:[%s4407_s13 + $0x28] sm:$0xff] (%p3466_p5), %v2484_v26  ;;  %v2522_v9 = vld [vmem:[%s4157_s27 + $0xc0] sm:$0xff] (%p3466_p5)  ;;  %v2524_v15 = vld [vmem:[%s4157_s27 + $0xc8] sm:$0xff] (%p3466_p5)  ;;  %v2526_v25 = vld [vmem:[%s4157_s27 + $0xd0] sm:$0xff] (%p3466_p5) }
 0x1e0   : > { %vm2047_vm0 = vcmp.ge.f32.partialorder %v1969_v40, 0.0  ;;  %v2111_v45 = vmul.f32 0.2, %v1969_v40  ;;  %vm2048_vm1 = vcmp.ge.f32.partialorder %v1983_v33, 0.0  ;;  %v2112_v48 = vmul.f32 0.2, %v1983_v33 }
 0x1e1   : > { %v2404_v32 = vadd.f32 %v2403_v16, %v2341_v41  ;;  %v2435_v55 = vadd.f32 %v2434_v42, %v2371_v49  ;;  %2487 = vst [vmem:[%s4407_s13 + $0x30] sm:$0xff] (%p3466_p5), %v2486_v43  ;;  %v2528_v21 = vld [vmem:[%s4157_s27 + $0xd8] sm:$0xff] (%p3466_p5)  ;;  %v2530_v28 = vld [vmem:[%s4157_s27 + $0xe0] sm:$0xff] (%p3466_p5)  ;;  %v2532_v12 = vld [vmem:[%s4157_s27 + $0xe8] sm:$0xff] (%p3466_p5) }
 0x1e2   : > { %v2175_v37 = vsel %vm2047_vm0, %v1969_v40, %v2111_v45  ;;  %v2176_v51 = vsel %vm2048_vm1, %v1983_v33, %v2112_v48  ;;  %2489 = vst [vmem:[%s4407_s13 + $0x38] sm:$0xff] (%p3466_p5), %v2488_v2 }
 0x1e3   : > { %2405 = vadd.xlane.f32.xlu2 %v2404_v32  ;;  %v2208_v47 = vpack.c.bf16 %v2176_v51, %v2175_v37  ;;  %v2303_v54 = vadd.f32 %v2302_v50, %v2175_v37  ;;  %v2372_v22 = vmul.f32 %v2175_v37, %v2175_v37  ;;  %v2373_v57 = vmul.f32 %v2176_v51, %v2176_v51 }
 0x1e4   : > { %2491 = vst [vmem:[%s4407_s13 + $0x40] sm:$0xff] (%p3466_p5), %v2490_v3  ;;  %v2504_v14 = vld [vmem:[%s4157_s27 + $0x78] sm:$0xff] (%p3466_p5) }
 0x1e5   : > { %2240 = vst [vmem:[%s4157_s27 + $0xf8] sm:$0xff] %v2208_v47  ;;  %v2304_v56 = vadd.f32 %v2303_v54, %v2176_v51  ;;  %v2436_v27 = vadd.f32 %v2435_v55, %v2372_v22  ;;  %v2534_v29 = vld [vmem:[%s4157_s27 + $0xf0] sm:$0xff] (%p3466_p5) }
 0x1e6   : > { %2493 = vst [vmem:[%s4407_s13 + $0x48] sm:$0xff] (%p3466_p5), %v2492_v44 }
 0x1e7   : > { %2305 = vadd.xlane.f32.xlu1 %v2304_v56  ;;  %v2437_v59 = vadd.f32 %v2436_v27, %v2373_v57  ;;  %2495 = vst [vmem:[%s4407_s13 + $0x50] sm:$0xff] (%p3466_p5), %v2494_v4 }
 0x1e8   : > { %2497 = vst [vmem:[%s4407_s13 + $0x58] sm:$0xff] (%p3466_p5), %v2496_v6 }
 0x1e9   : > { %2499 = vst [vmem:[%s4407_s13 + $0x60] sm:$0xff] (%p3466_p5), %v2498_v58 }
 0x1ea   : > { %2501 = vst [vmem:[%s4407_s13 + $0x68] sm:$0xff] (%p3466_p5), %v2500_v53 }
 0x1eb   : > { %2438 = vadd.xlane.f32.xlu2 %v2437_v59  ;;  %2503 = vst [vmem:[%s4407_s13 + $0x70] sm:$0xff] (%p3466_p5), %v2502_v17 }
 0x1ec   : > { %2505 = vst [vmem:[%s4407_s13 + $0x78] sm:$0xff] (%p3466_p5), %v2504_v14  ;;  %v2536_v30 = vld [vmem:[%s4157_s27 + $0xf8] sm:$0xff] (%p3466_p5) }
 0x1ed   : > { %2507 = vst [vmem:[%s4407_s13 + $0x100] sm:$0xff] (%p3466_p5), %v2506_v13 }
 0x1ee   : > { %2509 = vst [vmem:[%s4407_s13 + $0x108] sm:$0xff] (%p3466_p5), %v2508_v18 }
 0x1ef   : > { %2511 = vst [vmem:[%s4407_s13 + $0x110] sm:$0xff] (%p3466_p5), %v2510_v46 }
 0x1f0   : > { %2513 = vst [vmem:[%s4407_s13 + $0x118] sm:$0xff] (%p3466_p5), %v2512_v8 }
 0x1f1   : > { %2515 = vst [vmem:[%s4407_s13 + $0x120] sm:$0xff] (%p3466_p5), %v2514_v10 }
 0x1f2   : > { %2517 = vst [vmem:[%s4407_s13 + $0x128] sm:$0xff] (%p3466_p5), %v2516_v20 }
 0x1f3   : > { %2519 = vst [vmem:[%s4407_s13 + $0x130] sm:$0xff] (%p3466_p5), %v2518_v23 }
 0x1f4   : > { %2521 = vst [vmem:[%s4407_s13 + $0x138] sm:$0xff] (%p3466_p5), %v2520_v24 }
 0x1f5   : > { %2523 = vst [vmem:[%s4407_s13 + $0x140] sm:$0xff] (%p3466_p5), %v2522_v9 }
 0x1f6   : > { %2525 = vst [vmem:[%s4407_s13 + $0x148] sm:$0xff] (%p3466_p5), %v2524_v15 }
 0x1f7   : > { %2527 = vst [vmem:[%s4407_s13 + $0x150] sm:$0xff] (%p3466_p5), %v2526_v25 }
 0x1f8   : > { %2529 = vst [vmem:[%s4407_s13 + $0x158] sm:$0xff] (%p3466_p5), %v2528_v21 }
 0x1f9   : > { %2531 = vst [vmem:[%s4407_s13 + $0x160] sm:$0xff] (%p3466_p5), %v2530_v28 }
 0x1fa   : > { %2533 = vst [vmem:[%s4407_s13 + $0x168] sm:$0xff] (%p3466_p5), %v2532_v12 }
 0x1fb   : > { %2535 = vst [vmem:[%s4407_s13 + $0x170] sm:$0xff] (%p3466_p5), %v2534_v29 }
 0x1fc   : > { %2537 = vst [vmem:[%s4407_s13 + $0x178] sm:$0xff] (%p3466_p5), %v2536_v30 }
 0x252   : > { %v2273_v60 = vpop.xlane.xlu1 %2272 }
 0x253   : > { %2308 = vst.msk [vmem:[%s546_s6] sm:$0xff] %vm2307_vm2, %v2273_v60 }
 0x256   : > { %v2406_v52 = vpop.xlane.xlu2 %2405 }
 0x257   : > { %2440 = vst.msk [vmem:[%s551_s9] sm:$0xff] %vm2307_vm2, %v2406_v52 }
 0x25a   : > { %v2306_v36 = vpop.xlane.xlu1 %2305 }
 0x25b   : > { %2309 = vst.msk [vmem:[%s546_s6 + $0x8] sm:$0xff] %vm2307_vm2, %v2306_v36  ;;  %2458 = sbr.rel (!%p3466_p5) target bundleno = 608 (0x260), region = 59 }
 0x25e   : > { %v2439_v61 = vpop.xlane.xlu2 %2438 }
 0x25f   : > { %2441 = vst.msk [vmem:[%s551_s9 + $0x8] sm:$0xff] %vm2307_vm2, %v2439_v61 }
 0x260 PF: > { %p13_p11 = scmp.ge.s32.totalorder %s3454_s22, 4   ;;  %s4488_s18 = smov %s3398_s19 }
 0x261   : > { %s4489_s19 = smov %s3464_s25  ;;  %s4490_s20 = smov %s3454_s22 }
 0x262   :  { %15 = sbr.rel (!%p13_p11) target bundleno = 2 (0x2), region = 137 }

// kernel: squeeze.30
= control target key start
LH: loop header
LB: loop body
LE: loop exit
PB: predicated region body
PF: predicated region fallthrough
CT: control target
= control target key end

     0   :  { %s37_s8 = smov 116   ;;  %s38_s9 = smov 120   ;;  %vm7_vm0 = vcmask 31744   ;;  %s55_s0 = inlined_call_operand.vmem [shape: f32[16], index: 0, kind: input, shape index: {}]   ;;  %s56_s1 = inlined_call_operand.vmem [shape: f32[4,4], index: 1, kind: output, shape index: {}]  }
   0x1   :  { %v4_v0 = vld [vmem:[%s55_s0] sm:$0x1]  ;;  %s36_s0 = smov 124  }
   0x2   :  { %5 = vst [vmem:[#allocation1] sm:$0x1] %v4_v0 }
   0x9   :  { %v9_v1 = vld [vmem:[#allocation1] sm:$0x1]  }
   0xa   :  { %v21_v2 = vld [vmem:[#allocation1] sm:$0x1]   ;;  %10 = vrot.lane.b32.xlu0 %v9_v1, %s36_s0 }
   0xb   :  { %22 = vrot.lane.b32.xlu1 %v21_v2, %s37_s8  ;;  %v15_v3 = vld [vmem:[#allocation1] sm:$0x1]  }
   0xc   :  { %v6_v4 = vld [vmem:[#allocation1] sm:$0x1]  }
   0xd   :  { %8 = vst.msk [vmem:[#allocation0] sm:$0x1] %vm7_vm0, %v6_v4  }
  0x12   :  { %16 = vrot.lane.b32.xlu0 %v15_v3, %s38_s9 }
  0x7c   :  { %v11_v5 = vpop.permute.xlu0 %10  }
  0x7d   :  { %v23_v6 = vpop.permute.xlu1 %22   ;;  %14 = vst.msk [vmem:[#allocation0 + $0x1] sm:$0x1] %vm7_vm0, %v11_v5  }
  0x7e   :  { %26 = vst.msk [vmem:[#allocation0 + $0x3] sm:$0x1] %vm7_vm0, %v23_v6  }
  0x84   :  { %v17_v7 = vpop.permute.xlu0 %16  }
  0x85   :  { %20 = vst.msk [vmem:[#allocation0 + $0x2] sm:$0x1] %vm7_vm0, %v17_v7  }
  0x8c   :  { %v29_v8 = vld [vmem:[#allocation0] sm:$0xf] }
  0x8d   :  { %32 = vst [vmem:[%s56_s1] sm:$0xf] %v29_v8 }

// kernel: tile.142
= control target key start
LH: loop header
LB: loop body
LE: loop exit
PB: predicated region body
PF: predicated region fallthrough
CT: control target
= control target key end

     0   :  { %s22_s0 = inlined_call_operand.vmem [shape: f32[4], index: 0, kind: input, shape index: {}]   ;;  %s23_s1 = inlined_call_operand.vmem [shape: f32[4,4], index: 1, kind: output, shape index: {}]  }
   0x1   :  { %v4_v0 = vld [vmem:[%s22_s0] ss:$0 sm:$0xff] }
   0x2   :  { %5 = vst [vmem:[%s23_s1] sm:$0xf] %v4_v0 }

// kernel: mf_decoder_forward.17
= control target key start
LH: loop header
LB: loop body
LE: loop exit
PB: predicated region body
PF: predicated region fallthrough
CT: control target
= control target key end

     0   :  { %s3553_s12 = smov 0   ;;  %s3555_s13 = smov 0   ;;  %s4560_s0 = inlined_call_operand.vmem [shape: bf16[4,36], index: 0, kind: input, shape index: {}]   ;;  %s4561_s1 = inlined_call_operand.vmem [shape: bf16[36,32768], index: 1, kind: input, shape index: {}]   ;;  %s4562_s2 = inlined_call_operand.vmem [shape: f32[4,1], index: 2, kind: input, shape index: {}]   ;;  %s4563_s3 = inlined_call_operand.vmem [shape: f32[4,32768], index: 3, kind: output, shape index: {}]  }
   0x1   :  { %s3557_s14 = smov 0  }
   0x2 LB: > { %s2763_s15 = sadd.s32 4294967295, %s3530_s14   ;;  %s3570_s16 = sadd.s32 1, %s3530_s14   ;;  %s3530_s14 = sphi %s3557_s14, %s4566_s14   ;;  %s3526_s13 = sphi %s3555_s13, %s4565_s13   ;;  %s3522_s12 = sphi %s3553_s12, %s4564_s12  }
   0x3   : > { %s38_s17 = ssub.s32 %s3530_s14, %s3570_s16  ;;  %s41_s18 = sadd.s32 1, %s3526_s13 }
   0x4   : > { %p39_p0 = scmp.eq.s32.totalorder %s38_s17, 0  ;;  %p48_p1 = scmp.ne.s32.totalorder %s3526_s13, %s3522_s12 }
   0x5   : > { %p49_p2 = scmp.eq.s32.totalorder %s3530_s14, 0  ;;  %p2766_p4 = scmp.ge.s32.totalorder %s3530_s14, 4 }
   0x6   : > { %s3579_s19 = scalar_select %p39_p0, %s3526_s13, %s41_s18  }
   0x7   : > { %p50_p3 = por %p49_p2, %p48_p1  ;;  %127 = sbr.rel (%p2766_p4) target bundleno = 176 (0xb0), region = 24 }
   0xc   : > { %130 = sbr.rel (!%p50_p3) target bundleno = 176 (0xb0), region = 28  ;;  %s132_s20 = sand.u32 (%p50_p3), 1, %s3526_s13  }
   0xd   : > { %s3350_s21 = sshll.u32 (%p50_p3), %s3530_s14, 8  ;;  %s3479_s22 = smul.u32 (%p50_p3), 1280, %s132_s20 }
   0xe   : > { %s3587_s25 = scalar_lea.vmem (%p50_p3), %s4561_s1, %s3350_s21 }
   0xf   : > { %v150_v0 = vld [vmem:[%s3587_s25] sm:$0xff] (%p50_p3)  ;;  %v152_v1 = vld [vmem:[%s3587_s25 + $0x8] sm:$0xff] (%p50_p3)  ;;  %v154_v2 = vld [vmem:[%s3587_s25 + $0x10] sm:$0xff] (%p50_p3)  ;;  %s3592_s26 = scalar_lea.vmem (%p50_p3), [#allocation2], %s3479_s22 }
  0x10   : > { %151 = vst [vmem:[%s3592_s26] sm:$0xff] (%p50_p3), %v150_v0  ;;  %v156_v3 = vld [vmem:[%s3587_s25 + $0x18] sm:$0xff] (%p50_p3)  ;;  %v158_v4 = vld [vmem:[%s3587_s25 + $0x20] sm:$0xff] (%p50_p3)  ;;  %v160_v5 = vld [vmem:[%s3587_s25 + $0x28] sm:$0xff] (%p50_p3) }
  0x11   : > { %153 = vst [vmem:[%s3592_s26 + $0x8] sm:$0xff] %v152_v1  ;;  %v162_v6 = vld [vmem:[%s3587_s25 + $0x30] sm:$0xff]  ;;  %v164_v7 = vld [vmem:[%s3587_s25 + $0x38] sm:$0xff]  ;;  %v166_v8 = vld [vmem:[%s3587_s25 + $0x40] sm:$0xff] }
  0x12   : > { %155 = vst [vmem:[%s3592_s26 + $0x10] sm:$0xff] %v154_v2  ;;  %v168_v9 = vld [vmem:[%s3587_s25 + $0x48] sm:$0xff]  ;;  %v170_v10 = vld [vmem:[%s3587_s25 + $0x50] sm:$0xff]  ;;  %v172_v11 = vld [vmem:[%s3587_s25 + $0x58] sm:$0xff] }
  0x13   : > { %157 = vst [vmem:[%s3592_s26 + $0x18] sm:$0xff] %v156_v3  ;;  %v174_v12 = vld [vmem:[%s3587_s25 + $0x60] sm:$0xff]  ;;  %v176_v13 = vld [vmem:[%s3587_s25 + $0x68] sm:$0xff]  ;;  %v178_v14 = vld [vmem:[%s3587_s25 + $0x70] sm:$0xff] }
  0x14   : > { %159 = vst [vmem:[%s3592_s26 + $0x20] sm:$0xff] %v158_v4  ;;  %v180_v15 = vld [vmem:[%s3587_s25 + $0x78] sm:$0xff]  ;;  %v182_v16 = vld [vmem:[%s3587_s25 + $0x80] sm:$0xff]  ;;  %v184_v17 = vld [vmem:[%s3587_s25 + $0x88] sm:$0xff] }
  0x15   : > { %161 = vst [vmem:[%s3592_s26 + $0x28] sm:$0xff] %v160_v5  ;;  %v186_v18 = vld [vmem:[%s3587_s25 + $0x90] sm:$0xff]  ;;  %v188_v19 = vld [vmem:[%s3587_s25 + $0x98] sm:$0xff]  ;;  %v190_v20 = vld [vmem:[%s3587_s25 + $0xa0] sm:$0xff] }
  0x16   : > { %163 = vst [vmem:[%s3592_s26 + $0x30] sm:$0xff] %v162_v6  ;;  %v192_v21 = vld [vmem:[%s3587_s25 + $0xa8] sm:$0xff]  ;;  %v194_v22 = vld [vmem:[%s3587_s25 + $0xb0] sm:$0xff]  ;;  %v196_v23 = vld [vmem:[%s3587_s25 + $0xb8] sm:$0xff] }
  0x17   : > { %165 = vst [vmem:[%s3592_s26 + $0x38] sm:$0xff] %v164_v7  ;;  %v198_v24 = vld [vmem:[%s3587_s25 + $0xc0] sm:$0xff]  ;;  %v200_v25 = vld [vmem:[%s3587_s25 + $0xc8] sm:$0xff]  ;;  %v202_v26 = vld [vmem:[%s3587_s25 + $0xd0] sm:$0xff] }
  0x18   : > { %167 = vst [vmem:[%s3592_s26 + $0x40] sm:$0xff] %v166_v8  ;;  %v204_v27 = vld [vmem:[%s3587_s25 + $0xd8] sm:$0xff]  ;;  %v206_v28 = vld [vmem:[%s3587_s25 + $0xe0] sm:$0xff]  ;;  %v208_v29 = vld [vmem:[%s3587_s25 + $0xe8] sm:$0xff] }
  0x19   : > { %169 = vst [vmem:[%s3592_s26 + $0x48] sm:$0xff] %v168_v9  ;;  %v210_v30 = vld [vmem:[%s3587_s25 + $0xf0] sm:$0xff]  ;;  %v212_v31 = vld [vmem:[%s3587_s25 + $0xf8] sm:$0xff]  ;;  %v214_v32 = vld [vmem:[%s3587_s25 + $0x400] sm:$0xff] }
  0x1a   : > { %171 = vst [vmem:[%s3592_s26 + $0x50] sm:$0xff] %v170_v10  ;;  %v216_v33 = vld [vmem:[%s3587_s25 + $0x408] sm:$0xff]  ;;  %v218_v34 = vld [vmem:[%s3587_s25 + $0x410] sm:$0xff]  ;;  %v220_v35 = vld [vmem:[%s3587_s25 + $0x418] sm:$0xff] }
  0x1b   : > { %173 = vst [vmem:[%s3592_s26 + $0x58] sm:$0xff] %v172_v11  ;;  %v222_v36 = vld [vmem:[%s3587_s25 + $0x420] sm:$0xff]  ;;  %v224_v37 = vld [vmem:[%s3587_s25 + $0x428] sm:$0xff]  ;;  %v226_v38 = vld [vmem:[%s3587_s25 + $0x430] sm:$0xff] }
  0x1c   : > { %175 = vst [vmem:[%s3592_s26 + $0x60] sm:$0xff] %v174_v12  ;;  %v228_v39 = vld [vmem:[%s3587_s25 + $0x438] sm:$0xff]  ;;  %v230_v40 = vld [vmem:[%s3587_s25 + $0x440] sm:$0xff]  ;;  %v232_v41 = vld [vmem:[%s3587_s25 + $0x448] sm:$0xff] }
  0x1d   : > { %177 = vst [vmem:[%s3592_s26 + $0x68] sm:$0xff] %v176_v13  ;;  %v234_v42 = vld [vmem:[%s3587_s25 + $0x450] sm:$0xff]  ;;  %v236_v43 = vld [vmem:[%s3587_s25 + $0x458] sm:$0xff]  ;;  %v238_v44 = vld [vmem:[%s3587_s25 + $0x460] sm:$0xff] }
  0x1e   : > { %179 = vst [vmem:[%s3592_s26 + $0x70] sm:$0xff] %v178_v14  ;;  %v240_v45 = vld [vmem:[%s3587_s25 + $0x468] sm:$0xff]  ;;  %v242_v46 = vld [vmem:[%s3587_s25 + $0x470] sm:$0xff]  ;;  %v244_v47 = vld [vmem:[%s3587_s25 + $0x478] sm:$0xff] }
  0x1f   : > { %181 = vst [vmem:[%s3592_s26 + $0x78] sm:$0xff] %v180_v15  ;;  %v246_v48 = vld [vmem:[%s3587_s25 + $0x480] sm:$0xff]  ;;  %v248_v49 = vld [vmem:[%s3587_s25 + $0x488] sm:$0xff]  ;;  %v250_v50 = vld [vmem:[%s3587_s25 + $0x490] sm:$0xff] }
  0x20   : > { %183 = vst [vmem:[%s3592_s26 + $0x80] sm:$0xff] %v182_v16  ;;  %v252_v51 = vld [vmem:[%s3587_s25 + $0x498] sm:$0xff]  ;;  %v254_v52 = vld [vmem:[%s3587_s25 + $0x4a0] sm:$0xff]  ;;  %v256_v53 = vld [vmem:[%s3587_s25 + $0x4a8] sm:$0xff] }
  0x21   : > { %185 = vst [vmem:[%s3592_s26 + $0x88] sm:$0xff] %v184_v17  ;;  %v258_v54 = vld [vmem:[%s3587_s25 + $0x4b0] sm:$0xff]  ;;  %v260_v55 = vld [vmem:[%s3587_s25 + $0x4b8] sm:$0xff]  ;;  %v262_v56 = vld [vmem:[%s3587_s25 + $0x4c0] sm:$0xff] }
  0x22   : > { %187 = vst [vmem:[%s3592_s26 + $0x90] sm:$0xff] %v186_v18  ;;  %v264_v57 = vld [vmem:[%s3587_s25 + $0x4c8] sm:$0xff]  ;;  %v266_v58 = vld [vmem:[%s3587_s25 + $0x4d0] sm:$0xff]  ;;  %v268_v59 = vld [vmem:[%s3587_s25 + $0x4d8] sm:$0xff] }
  0x23   : > { %189 = vst [vmem:[%s3592_s26 + $0x98] sm:$0xff] %v188_v19  ;;  %v270_v60 = vld [vmem:[%s3587_s25 + $0x4e0] sm:$0xff]  ;;  %v272_v61 = vld [vmem:[%s3587_s25 + $0x4e8] sm:$0xff]  ;;  %v274_v62 = vld [vmem:[%s3587_s25 + $0x4f0] sm:$0xff] }
  0x24   : > { %191 = vst [vmem:[%s3592_s26 + $0xa0] sm:$0xff] %v190_v20  ;;  %v276_v63 = vld [vmem:[%s3587_s25 + $0x4f8] sm:$0xff]  ;;  %v278_v0 = vld [vmem:[%s3587_s25 + $0x800] sm:$0xff]  ;;  %v280_v1 = vld [vmem:[%s3587_s25 + $0x808] sm:$0xff] }
  0x25   : > { %193 = vst [vmem:[%s3592_s26 + $0xa8] sm:$0xff] %v192_v21  ;;  %v282_v2 = vld [vmem:[%s3587_s25 + $0x810] sm:$0xff]  ;;  %v284_v3 = vld [vmem:[%s3587_s25 + $0x818] sm:$0xff]  ;;  %v286_v4 = vld [vmem:[%s3587_s25 + $0x820] sm:$0xff] }
  0x26   : > { %195 = vst [vmem:[%s3592_s26 + $0xb0] sm:$0xff] %v194_v22  ;;  %v288_v5 = vld [vmem:[%s3587_s25 + $0x828] sm:$0xff]  ;;  %v290_v6 = vld [vmem:[%s3587_s25 + $0x830] sm:$0xff]  ;;  %v292_v7 = vld [vmem:[%s3587_s25 + $0x838] sm:$0xff] }
  0x27   : > { %197 = vst [vmem:[%s3592_s26 + $0xb8] sm:$0xff] %v196_v23  ;;  %v294_v8 = vld [vmem:[%s3587_s25 + $0x840] sm:$0xff]  ;;  %v296_v9 = vld [vmem:[%s3587_s25 + $0x848] sm:$0xff]  ;;  %v298_v10 = vld [vmem:[%s3587_s25 + $0x850] sm:$0xff] }
  0x28   : > { %199 = vst [vmem:[%s3592_s26 + $0xc0] sm:$0xff] %v198_v24  ;;  %v300_v11 = vld [vmem:[%s3587_s25 + $0x858] sm:$0xff]  ;;  %v302_v12 = vld [vmem:[%s3587_s25 + $0x860] sm:$0xff]  ;;  %v304_v13 = vld [vmem:[%s3587_s25 + $0x868] sm:$0xff] }
  0x29   : > { %201 = vst [vmem:[%s3592_s26 + $0xc8] sm:$0xff] %v200_v25  ;;  %v306_v14 = vld [vmem:[%s3587_s25 + $0x870] sm:$0xff]  ;;  %v308_v15 = vld [vmem:[%s3587_s25 + $0x878] sm:$0xff]  ;;  %v310_v16 = vld [vmem:[%s3587_s25 + $0x880] sm:$0xff] }
  0x2a   : > { %203 = vst [vmem:[%s3592_s26 + $0xd0] sm:$0xff] %v202_v26  ;;  %v312_v17 = vld [vmem:[%s3587_s25 + $0x888] sm:$0xff]  ;;  %v314_v18 = vld [vmem:[%s3587_s25 + $0x890] sm:$0xff]  ;;  %v316_v19 = vld [vmem:[%s3587_s25 + $0x898] sm:$0xff] }
  0x2b   : > { %205 = vst [vmem:[%s3592_s26 + $0xd8] sm:$0xff] %v204_v27  ;;  %v318_v20 = vld [vmem:[%s3587_s25 + $0x8a0] sm:$0xff]  ;;  %v320_v21 = vld [vmem:[%s3587_s25 + $0x8a8] sm:$0xff]  ;;  %v322_v22 = vld [vmem:[%s3587_s25 + $0x8b0] sm:$0xff] }
  0x2c   : > { %207 = vst [vmem:[%s3592_s26 + $0xe0] sm:$0xff] %v206_v28  ;;  %v324_v23 = vld [vmem:[%s3587_s25 + $0x8b8] sm:$0xff]  ;;  %v326_v24 = vld [vmem:[%s3587_s25 + $0x8c0] sm:$0xff]  ;;  %v328_v25 = vld [vmem:[%s3587_s25 + $0x8c8] sm:$0xff] }
  0x2d   : > { %209 = vst [vmem:[%s3592_s26 + $0xe8] sm:$0xff] %v208_v29  ;;  %v330_v26 = vld [vmem:[%s3587_s25 + $0x8d0] sm:$0xff]  ;;  %v332_v27 = vld [vmem:[%s3587_s25 + $0x8d8] sm:$0xff]  ;;  %v334_v28 = vld [vmem:[%s3587_s25 + $0x8e0] sm:$0xff] }
  0x2e   : > { %211 = vst [vmem:[%s3592_s26 + $0xf0] sm:$0xff] %v210_v30  ;;  %v336_v29 = vld [vmem:[%s3587_s25 + $0x8e8] sm:$0xff]  ;;  %v338_v30 = vld [vmem:[%s3587_s25 + $0x8f0] sm:$0xff] }
  0x2f   : > { %213 = vst [vmem:[%s3592_s26 + $0xf8] sm:$0xff] %v212_v31  ;;  %v340_v31 = vld [vmem:[%s3587_s25 + $0x8f8] sm:$0xff] }
  0x30   : > { %215 = vst [vmem:[%s3592_s26 + $0x100] sm:$0xff] %v214_v32  ;;  %v342_v32 = vld [vmem:[%s3587_s25 + $0xc00] sm:$0xff] }
  0x31   : > { %217 = vst [vmem:[%s3592_s26 + $0x108] sm:$0xff] %v216_v33  ;;  %v344_v33 = vld [vmem:[%s3587_s25 + $0xc08] sm:$0xff] }
  0x32   : > { %219 = vst [vmem:[%s3592_s26 + $0x110] sm:$0xff] %v218_v34  ;;  %v346_v34 = vld [vmem:[%s3587_s25 + $0xc10] sm:$0xff] }
  0x33   : > { %221 = vst [vmem:[%s3592_s26 + $0x118] sm:$0xff] %v220_v35  ;;  %v348_v35 = vld [vmem:[%s3587_s25 + $0xc18] sm:$0xff] }
  0x34   : > { %223 = vst [vmem:[%s3592_s26 + $0x120] sm:$0xff] %v222_v36  ;;  %v350_v36 = vld [vmem:[%s3587_s25 + $0xc20] sm:$0xff] }
  0x35   : > { %225 = vst [vmem:[%s3592_s26 + $0x128] sm:$0xff] %v224_v37  ;;  %v352_v37 = vld [vmem:[%s3587_s25 + $0xc28] sm:$0xff] }
  0x36   : > { %227 = vst [vmem:[%s3592_s26 + $0x130] sm:$0xff] %v226_v38  ;;  %v354_v38 = vld [vmem:[%s3587_s25 + $0xc30] sm:$0xff] }
  0x37   : > { %229 = vst [vmem:[%s3592_s26 + $0x138] sm:$0xff] %v228_v39  ;;  %v356_v39 = vld [vmem:[%s3587_s25 + $0xc38] sm:$0xff] }
  0x38   : > { %231 = vst [vmem:[%s3592_s26 + $0x140] sm:$0xff] %v230_v40  ;;  %v358_v40 = vld [vmem:[%s3587_s25 + $0xc40] sm:$0xff] }
  0x39   : > { %233 = vst [vmem:[%s3592_s26 + $0x148] sm:$0xff] %v232_v41  ;;  %v360_v41 = vld [vmem:[%s3587_s25 + $0xc48] sm:$0xff] }
  0x3a   : > { %235 = vst [vmem:[%s3592_s26 + $0x150] sm:$0xff] %v234_v42  ;;  %v362_v42 = vld [vmem:[%s3587_s25 + $0xc50] sm:$0xff] }
  0x3b   : > { %237 = vst [vmem:[%s3592_s26 + $0x158] sm:$0xff] %v236_v43  ;;  %v364_v43 = vld [vmem:[%s3587_s25 + $0xc58] sm:$0xff] }
  0x3c   : > { %239 = vst [vmem:[%s3592_s26 + $0x160] sm:$0xff] %v238_v44  ;;  %v366_v44 = vld [vmem:[%s3587_s25 + $0xc60] sm:$0xff] }
  0x3d   : > { %241 = vst [vmem:[%s3592_s26 + $0x168] sm:$0xff] %v240_v45  ;;  %v368_v45 = vld [vmem:[%s3587_s25 + $0xc68] sm:$0xff] }
  0x3e   : > { %243 = vst [vmem:[%s3592_s26 + $0x170] sm:$0xff] %v242_v46  ;;  %v370_v46 = vld [vmem:[%s3587_s25 + $0xc70] sm:$0xff] }
  0x3f   : > { %245 = vst [vmem:[%s3592_s26 + $0x178] sm:$0xff] %v244_v47  ;;  %v372_v47 = vld [vmem:[%s3587_s25 + $0xc78] sm:$0xff] }
  0x40   : > { %247 = vst [vmem:[%s3592_s26 + $0x180] sm:$0xff] %v246_v48  ;;  %v374_v48 = vld [vmem:[%s3587_s25 + $0xc80] sm:$0xff] }
  0x41   : > { %249 = vst [vmem:[%s3592_s26 + $0x188] sm:$0xff] %v248_v49  ;;  %v376_v49 = vld [vmem:[%s3587_s25 + $0xc88] sm:$0xff] }
  0x42   : > { %251 = vst [vmem:[%s3592_s26 + $0x190] sm:$0xff] %v250_v50  ;;  %v378_v50 = vld [vmem:[%s3587_s25 + $0xc90] sm:$0xff] }
  0x43   : > { %253 = vst [vmem:[%s3592_s26 + $0x198] sm:$0xff] %v252_v51  ;;  %v380_v51 = vld [vmem:[%s3587_s25 + $0xc98] sm:$0xff] }
  0x44   : > { %255 = vst [vmem:[%s3592_s26 + $0x1a0] sm:$0xff] %v254_v52  ;;  %v382_v52 = vld [vmem:[%s3587_s25 + $0xca0] sm:$0xff] }
  0x45   : > { %257 = vst [vmem:[%s3592_s26 + $0x1a8] sm:$0xff] %v256_v53  ;;  %v384_v53 = vld [vmem:[%s3587_s25 + $0xca8] sm:$0xff] }
  0x46   : > { %259 = vst [vmem:[%s3592_s26 + $0x1b0] sm:$0xff] %v258_v54  ;;  %v386_v54 = vld [vmem:[%s3587_s25 + $0xcb0] sm:$0xff] }
  0x47   : > { %261 = vst [vmem:[%s3592_s26 + $0x1b8] sm:$0xff] %v260_v55  ;;  %v388_v55 = vld [vmem:[%s3587_s25 + $0xcb8] sm:$0xff] }
  0x48   : > { %263 = vst [vmem:[%s3592_s26 + $0x1c0] sm:$0xff] %v262_v56  ;;  %v390_v56 = vld [vmem:[%s3587_s25 + $0xcc0] sm:$0xff] }
  0x49   : > { %265 = vst [vmem:[%s3592_s26 + $0x1c8] sm:$0xff] %v264_v57  ;;  %v392_v57 = vld [vmem:[%s3587_s25 + $0xcc8] sm:$0xff] }
  0x4a   : > { %267 = vst [vmem:[%s3592_s26 + $0x1d0] sm:$0xff] %v266_v58  ;;  %v394_v58 = vld [vmem:[%s3587_s25 + $0xcd0] sm:$0xff] }
  0x4b   : > { %269 = vst [vmem:[%s3592_s26 + $0x1d8] sm:$0xff] %v268_v59  ;;  %v396_v59 = vld [vmem:[%s3587_s25 + $0xcd8] sm:$0xff] }
  0x4c   : > { %271 = vst [vmem:[%s3592_s26 + $0x1e0] sm:$0xff] %v270_v60  ;;  %v398_v60 = vld [vmem:[%s3587_s25 + $0xce0] sm:$0xff] }
  0x4d   : > { %273 = vst [vmem:[%s3592_s26 + $0x1e8] sm:$0xff] %v272_v61  ;;  %v400_v61 = vld [vmem:[%s3587_s25 + $0xce8] sm:$0xff] }
  0x4e   : > { %275 = vst [vmem:[%s3592_s26 + $0x1f0] sm:$0xff] %v274_v62  ;;  %v402_v62 = vld [vmem:[%s3587_s25 + $0xcf0] sm:$0xff] }
  0x4f   : > { %277 = vst [vmem:[%s3592_s26 + $0x1f8] sm:$0xff] %v276_v63  ;;  %v404_v63 = vld [vmem:[%s3587_s25 + $0xcf8] sm:$0xff] }
  0x50   : > { %279 = vst [vmem:[%s3592_s26 + $0x200] sm:$0xff] %v278_v0  ;;  %v406_v0 = vld [vmem:[%s3587_s25 + $0x1000] sm:$0xff] }
  0x51   : > { %281 = vst [vmem:[%s3592_s26 + $0x208] sm:$0xff] %v280_v1  ;;  %v408_v1 = vld [vmem:[%s3587_s25 + $0x1008] sm:$0xff] }
  0x52   : > { %283 = vst [vmem:[%s3592_s26 + $0x210] sm:$0xff] %v282_v2  ;;  %v410_v2 = vld [vmem:[%s3587_s25 + $0x1010] sm:$0xff] }
  0x53   : > { %285 = vst [vmem:[%s3592_s26 + $0x218] sm:$0xff] %v284_v3  ;;  %v412_v3 = vld [vmem:[%s3587_s25 + $0x1018] sm:$0xff] }
  0x54   : > { %287 = vst [vmem:[%s3592_s26 + $0x220] sm:$0xff] %v286_v4  ;;  %v414_v4 = vld [vmem:[%s3587_s25 + $0x1020] sm:$0xff] }
  0x55   : > { %289 = vst [vmem:[%s3592_s26 + $0x228] sm:$0xff] %v288_v5  ;;  %v416_v5 = vld [vmem:[%s3587_s25 + $0x1028] sm:$0xff] }
  0x56   : > { %291 = vst [vmem:[%s3592_s26 + $0x230] sm:$0xff] %v290_v6  ;;  %v418_v6 = vld [vmem:[%s3587_s25 + $0x1030] sm:$0xff] }
  0x57   : > { %293 = vst [vmem:[%s3592_s26 + $0x238] sm:$0xff] %v292_v7  ;;  %v420_v7 = vld [vmem:[%s3587_s25 + $0x1038] sm:$0xff] }
  0x58   : > { %295 = vst [vmem:[%s3592_s26 + $0x240] sm:$0xff] %v294_v8  ;;  %v422_v8 = vld [vmem:[%s3587_s25 + $0x1040] sm:$0xff] }
  0x59   : > { %297 = vst [vmem:[%s3592_s26 + $0x248] sm:$0xff] %v296_v9  ;;  %v424_v9 = vld [vmem:[%s3587_s25 + $0x1048] sm:$0xff] }
  0x5a   : > { %299 = vst [vmem:[%s3592_s26 + $0x250] sm:$0xff] %v298_v10  ;;  %v426_v10 = vld [vmem:[%s3587_s25 + $0x1050] sm:$0xff] }
  0x5b   : > { %301 = vst [vmem:[%s3592_s26 + $0x258] sm:$0xff] %v300_v11  ;;  %v428_v11 = vld [vmem:[%s3587_s25 + $0x1058] sm:$0xff] }
  0x5c   : > { %303 = vst [vmem:[%s3592_s26 + $0x260] sm:$0xff] %v302_v12  ;;  %v430_v12 = vld [vmem:[%s3587_s25 + $0x1060] sm:$0xff] }
  0x5d   : > { %305 = vst [vmem:[%s3592_s26 + $0x268] sm:$0xff] %v304_v13  ;;  %v432_v13 = vld [vmem:[%s3587_s25 + $0x1068] sm:$0xff] }
  0x5e   : > { %307 = vst [vmem:[%s3592_s26 + $0x270] sm:$0xff] %v306_v14  ;;  %v434_v14 = vld [vmem:[%s3587_s25 + $0x1070] sm:$0xff] }
  0x5f   : > { %309 = vst [vmem:[%s3592_s26 + $0x278] sm:$0xff] %v308_v15  ;;  %v436_v15 = vld [vmem:[%s3587_s25 + $0x1078] sm:$0xff] }
  0x60   : > { %311 = vst [vmem:[%s3592_s26 + $0x280] sm:$0xff] %v310_v16  ;;  %v438_v16 = vld [vmem:[%s3587_s25 + $0x1080] sm:$0xff] }
  0x61   : > { %313 = vst [vmem:[%s3592_s26 + $0x288] sm:$0xff] %v312_v17  ;;  %v440_v17 = vld [vmem:[%s3587_s25 + $0x1088] sm:$0xff] }
  0x62   : > { %315 = vst [vmem:[%s3592_s26 + $0x290] sm:$0xff] %v314_v18  ;;  %v442_v18 = vld [vmem:[%s3587_s25 + $0x1090] sm:$0xff] }
  0x63   : > { %317 = vst [vmem:[%s3592_s26 + $0x298] sm:$0xff] %v316_v19  ;;  %v444_v19 = vld [vmem:[%s3587_s25 + $0x1098] sm:$0xff] }
  0x64   : > { %319 = vst [vmem:[%s3592_s26 + $0x2a0] sm:$0xff] %v318_v20  ;;  %v446_v20 = vld [vmem:[%s3587_s25 + $0x10a0] sm:$0xff] }
  0x65   : > { %321 = vst [vmem:[%s3592_s26 + $0x2a8] sm:$0xff] %v320_v21  ;;  %v448_v21 = vld [vmem:[%s3587_s25 + $0x10a8] sm:$0xff] }
  0x66   : > { %323 = vst [vmem:[%s3592_s26 + $0x2b0] sm:$0xff] %v322_v22  ;;  %v450_v22 = vld [vmem:[%s3587_s25 + $0x10b0] sm:$0xff] }
  0x67   : > { %325 = vst [vmem:[%s3592_s26 + $0x2b8] sm:$0xff] %v324_v23  ;;  %v452_v23 = vld [vmem:[%s3587_s25 + $0x10b8] sm:$0xff] }
  0x68   : > { %327 = vst [vmem:[%s3592_s26 + $0x2c0] sm:$0xff] %v326_v24  ;;  %v454_v24 = vld [vmem:[%s3587_s25 + $0x10c0] sm:$0xff] }
  0x69   : > { %329 = vst [vmem:[%s3592_s26 + $0x2c8] sm:$0xff] %v328_v25  ;;  %v456_v25 = vld [vmem:[%s3587_s25 + $0x10c8] sm:$0xff] }
  0x6a   : > { %331 = vst [vmem:[%s3592_s26 + $0x2d0] sm:$0xff] %v330_v26  ;;  %v458_v26 = vld [vmem:[%s3587_s25 + $0x10d0] sm:$0xff] }
  0x6b   : > { %333 = vst [vmem:[%s3592_s26 + $0x2d8] sm:$0xff] %v332_v27  ;;  %v460_v27 = vld [vmem:[%s3587_s25 + $0x10d8] sm:$0xff] }
  0x6c   : > { %335 = vst [vmem:[%s3592_s26 + $0x2e0] sm:$0xff] %v334_v28  ;;  %v462_v28 = vld [vmem:[%s3587_s25 + $0x10e0] sm:$0xff] }
  0x6d   : > { %337 = vst [vmem:[%s3592_s26 + $0x2e8] sm:$0xff] %v336_v29  ;;  %v464_v29 = vld [vmem:[%s3587_s25 + $0x10e8] sm:$0xff] }
  0x6e   : > { %339 = vst [vmem:[%s3592_s26 + $0x2f0] sm:$0xff] %v338_v30  ;;  %v466_v30 = vld [vmem:[%s3587_s25 + $0x10f0] sm:$0xff] }
  0x6f   : > { %341 = vst [vmem:[%s3592_s26 + $0x2f8] sm:$0xff] %v340_v31  ;;  %v468_v31 = vld [vmem:[%s3587_s25 + $0x10f8] sm:$0xff] }
  0x70   : > { %343 = vst [vmem:[%s3592_s26 + $0x300] sm:$0xff] %v342_v32 }
  0x71   : > { %345 = vst [vmem:[%s3592_s26 + $0x308] sm:$0xff] %v344_v33 }
  0x72   : > { %347 = vst [vmem:[%s3592_s26 + $0x310] sm:$0xff] %v346_v34 }
  0x73   : > { %349 = vst [vmem:[%s3592_s26 + $0x318] sm:$0xff] %v348_v35 }
  0x74   : > { %351 = vst [vmem:[%s3592_s26 + $0x320] sm:$0xff] %v350_v36 }
  0x75   : > { %353 = vst [vmem:[%s3592_s26 + $0x328] sm:$0xff] %v352_v37 }
  0x76   : > { %355 = vst [vmem:[%s3592_s26 + $0x330] sm:$0xff] %v354_v38 }
  0x77   : > { %357 = vst [vmem:[%s3592_s26 + $0x338] sm:$0xff] %v356_v39 }
  0x78   : > { %359 = vst [vmem:[%s3592_s26 + $0x340] sm:$0xff] %v358_v40 }
  0x79   : > { %361 = vst [vmem:[%s3592_s26 + $0x348] sm:$0xff] %v360_v41 }
  0x7a   : > { %363 = vst [vmem:[%s3592_s26 + $0x350] sm:$0xff] %v362_v42 }
  0x7b   : > { %365 = vst [vmem:[%s3592_s26 + $0x358] sm:$0xff] %v364_v43 }
  0x7c   : > { %367 = vst [vmem:[%s3592_s26 + $0x360] sm:$0xff] %v366_v44 }
  0x7d   : > { %369 = vst [vmem:[%s3592_s26 + $0x368] sm:$0xff] %v368_v45 }
  0x7e   : > { %371 = vst [vmem:[%s3592_s26 + $0x370] sm:$0xff] %v370_v46 }
  0x7f   : > { %373 = vst [vmem:[%s3592_s26 + $0x378] sm:$0xff] %v372_v47 }
  0x80   : > { %375 = vst [vmem:[%s3592_s26 + $0x380] sm:$0xff] %v374_v48 }
  0x81   : > { %377 = vst [vmem:[%s3592_s26 + $0x388] sm:$0xff] %v376_v49 }
  0x82   : > { %379 = vst [vmem:[%s3592_s26 + $0x390] sm:$0xff] %v378_v50 }
  0x83   : > { %381 = vst [vmem:[%s3592_s26 + $0x398] sm:$0xff] %v380_v51 }
  0x84   : > { %383 = vst [vmem:[%s3592_s26 + $0x3a0] sm:$0xff] %v382_v52 }
  0x85   : > { %385 = vst [vmem:[%s3592_s26 + $0x3a8] sm:$0xff] %v384_v53 }
  0x86   : > { %387 = vst [vmem:[%s3592_s26 + $0x3b0] sm:$0xff] %v386_v54 }
  0x87   : > { %389 = vst [vmem:[%s3592_s26 + $0x3b8] sm:$0xff] %v388_v55 }
  0x88   : > { %391 = vst [vmem:[%s3592_s26 + $0x3c0] sm:$0xff] %v390_v56 }
  0x89   : > { %393 = vst [vmem:[%s3592_s26 + $0x3c8] sm:$0xff] %v392_v57 }
  0x8a   : > { %395 = vst [vmem:[%s3592_s26 + $0x3d0] sm:$0xff] %v394_v58 }
  0x8b   : > { %397 = vst [vmem:[%s3592_s26 + $0x3d8] sm:$0xff] %v396_v59 }
  0x8c   : > { %399 = vst [vmem:[%s3592_s26 + $0x3e0] sm:$0xff] %v398_v60 }
  0x8d   : > { %401 = vst [vmem:[%s3592_s26 + $0x3e8] sm:$0xff] %v400_v61 }
  0x8e   : > { %403 = vst [vmem:[%s3592_s26 + $0x3f0] sm:$0xff] %v402_v62 }
  0x8f   : > { %405 = vst [vmem:[%s3592_s26 + $0x3f8] sm:$0xff] %v404_v63 }
  0x90   : > { %407 = vst [vmem:[%s3592_s26 + $0x400] sm:$0xff] %v406_v0 }
  0x91   : > { %409 = vst [vmem:[%s3592_s26 + $0x408] sm:$0xff] %v408_v1 }
  0x92   : > { %411 = vst [vmem:[%s3592_s26 + $0x410] sm:$0xff] %v410_v2 }
  0x93   : > { %413 = vst [vmem:[%s3592_s26 + $0x418] sm:$0xff] %v412_v3 }
  0x94   : > { %415 = vst [vmem:[%s3592_s26 + $0x420] sm:$0xff] %v414_v4 }
  0x95   : > { %417 = vst [vmem:[%s3592_s26 + $0x428] sm:$0xff] %v416_v5 }
  0x96   : > { %419 = vst [vmem:[%s3592_s26 + $0x430] sm:$0xff] %v418_v6 }
  0x97   : > { %421 = vst [vmem:[%s3592_s26 + $0x438] sm:$0xff] %v420_v7 }
  0x98   : > { %423 = vst [vmem:[%s3592_s26 + $0x440] sm:$0xff] %v422_v8 }
  0x99   : > { %425 = vst [vmem:[%s3592_s26 + $0x448] sm:$0xff] %v424_v9 }
  0x9a   : > { %427 = vst [vmem:[%s3592_s26 + $0x450] sm:$0xff] %v426_v10 }
  0x9b   : > { %429 = vst [vmem:[%s3592_s26 + $0x458] sm:$0xff] %v428_v11 }
  0x9c   : > { %431 = vst [vmem:[%s3592_s26 + $0x460] sm:$0xff] %v430_v12 }
  0x9d   : > { %433 = vst [vmem:[%s3592_s26 + $0x468] sm:$0xff] %v432_v13 }
  0x9e   : > { %435 = vst [vmem:[%s3592_s26 + $0x470] sm:$0xff] %v434_v14 }
  0x9f   : > { %437 = vst [vmem:[%s3592_s26 + $0x478] sm:$0xff] %v436_v15 }
  0xa0   : > { %439 = vst [vmem:[%s3592_s26 + $0x480] sm:$0xff] %v438_v16 }
  0xa1   : > { %441 = vst [vmem:[%s3592_s26 + $0x488] sm:$0xff] %v440_v17 }
  0xa2   : > { %443 = vst [vmem:[%s3592_s26 + $0x490] sm:$0xff] %v442_v18 }
  0xa3   : > { %445 = vst [vmem:[%s3592_s26 + $0x498] sm:$0xff] %v444_v19 }
  0xa4   : > { %447 = vst [vmem:[%s3592_s26 + $0x4a0] sm:$0xff] %v446_v20 }
  0xa5   : > { %449 = vst [vmem:[%s3592_s26 + $0x4a8] sm:$0xff] %v448_v21 }
  0xa6   : > { %451 = vst [vmem:[%s3592_s26 + $0x4b0] sm:$0xff] %v450_v22 }
  0xa7   : > { %453 = vst [vmem:[%s3592_s26 + $0x4b8] sm:$0xff] %v452_v23 }
  0xa8   : > { %455 = vst [vmem:[%s3592_s26 + $0x4c0] sm:$0xff] %v454_v24 }
  0xa9   : > { %457 = vst [vmem:[%s3592_s26 + $0x4c8] sm:$0xff] %v456_v25 }
  0xaa   : > { %459 = vst [vmem:[%s3592_s26 + $0x4d0] sm:$0xff] %v458_v26 }
  0xab   : > { %461 = vst [vmem:[%s3592_s26 + $0x4d8] sm:$0xff] %v460_v27 }
  0xac   : > { %463 = vst [vmem:[%s3592_s26 + $0x4e0] sm:$0xff] %v462_v28 }
  0xad   : > { %465 = vst [vmem:[%s3592_s26 + $0x4e8] sm:$0xff] %v464_v29 }
  0xae   : > { %467 = vst [vmem:[%s3592_s26 + $0x4f0] sm:$0xff] %v466_v30 }
  0xaf   : > { %469 = vst [vmem:[%s3592_s26 + $0x4f8] sm:$0xff] %v468_v31 }
  0xb0 PF: > { %p2769_p5 = scmp.ge.s32.totalorder %s3530_s14, 1  ;;  %p474_p6 = scmp.lt.s32.totalorder %s3530_s14, 5 }
  0xb2   : > { %p475_p7 = pnand %p2769_p5, %p474_p6 }
  0xb3   : > { %s481_s27 = sand.u32 (!%p475_p7), 1, %s3522_s12   ;;  %s4202_s7 = sshll.u32 (!%p475_p7), %s2763_s15, 6 }
  0xb4   : > { %478 = sbr.rel (%p475_p7) target bundleno = 582 (0x246), region = 51  ;;  %p506_p8 = scmp.lt.s32.totalorder (!%p475_p7), %s4202_s7, 255 }
  0xb5   : > { %s3480_s28 = smul.u32 (!%p475_p7), 1280, %s481_s27 }
  0xb7   : > { %s3917_s4 = scalar_lea.vmem (!%p475_p7), [#allocation2], %s3480_s28 }
  0xb9   : > { %v3532_v32 = vmov 0   ;;  %v673_v33 = vld [vmem:[%s4562_s2] sm:$0xf]  ;;  %v642_v35 = vld [vmem:[%s3917_s4 + $0x408] sm:$0x33]  ;;  %vm1483_vm0 = vcmask 1041408  }
  0xba   : > { %3506 = vset.pattern.permute.xlu0 %v3532_v32  ;;  %v641_v34 = vld [vmem:[%s3917_s4 + $0x400] sm:$0x33]  ;;  %v1097_v38 = vunpack.c.l.b16 %v642_v35  ;;  %v1098_v39 = vunpack.c.h.b16 %v642_v35  ;;  %v3038_v48 = vld [vmem:[%s3917_s4 + $0x208] sm:$0xf]  ;;  %v3416_v50 = vld [vmem:[%s3917_s4 + $0x20c] sm:$0xf] }
  0xbb   : > { %676 = vperm.xlu0 %3506, %v673_v33   ;;  %v1095_v36 = vunpack.c.l.b16 %v641_v34  ;;  %v1096_v37 = vunpack.c.h.b16 %v641_v34  ;;  %v3030_v40 = vld [vmem:[%s3917_s4 + $0x200] sm:$0xf]  ;;  %v3415_v46 = vld [vmem:[%s3917_s4 + $0x204] sm:$0xf]  ;;  %v3448_v49 = vld [vmem:[%s3917_s4 + $0x304] sm:$0xf0] }
  0xbc   : > { %v3447_v41 = vld [vmem:[%s3917_s4 + $0x2fc] sm:$0xf0]  ;;  %v1289_v44 = vpack.c.b16 %v1097_v38, %v1097_v38  ;;  %v1290_v45 = vpack.c.b16 %v1098_v39, %v1098_v39  ;;  %v3032_v47 = vld [vmem:[%s3917_s4 + $0x300] sm:$0xf0]  ;;  %v3040_v51 = vld [vmem:[%s3917_s4 + $0x308] sm:$0xf0]  ;;  %v3039_v62 = vor.u32 %v3448_v49, %v3038_v48 }
  0xbd   : > { %v1287_v42 = vpack.c.b16 %v1095_v36, %v1095_v36  ;;  %v1288_v43 = vpack.c.b16 %v1096_v37, %v1096_v37  ;;  %v2774_v56 = vld [vmem:[%s3917_s4] sm:$0xf]  ;;  %v3031_v57 = vor.u32 %v3447_v41, %v3030_v40  ;;  %v3035_v58 = vor.u32 %v3415_v46, %v3032_v47  ;;  %v3351_v60 = vld [vmem:[%s3917_s4 + $0x4] sm:$0xf]  ;;  %v644_v61 = vld [vmem:[%s3917_s4 + $0x418] sm:$0x33] }
  0xbe   : > { %v1491_v54 = vsel %vm1483_vm0, %v1289_v44, 0  ;;  %v1494_v55 = vsel %vm1483_vm0, %v1290_v45, 0  ;;  %v3383_v59 = vld [vmem:[%s3917_s4 + $0xfc] sm:$0xf0]  ;;  %v3043_v63 = vor.u32 %v3416_v50, %v3040_v51  ;;  %v2776_v0 = vld [vmem:[%s3917_s4 + $0x100] sm:$0xf0]  ;;  %v1101_v2 = vunpack.c.l.b16 %v644_v61 }
  0xbf   : > { %v1485_v52 = vsel %vm1483_vm0, %v1287_v42, 0  ;;  %v1488_v53 = vsel %vm1483_vm0, %v1288_v43, 0  ;;  %1707 = vmatpush.bf16.msra.mxu2 %v1491_v54  ;;  %1720 = vmatpush.bf16.msra.mxu3 %v1494_v55  ;;  %v2782_v1 = vld [vmem:[%s3917_s4 + $0x8] sm:$0xf]  ;;  %v1102_v3 = vunpack.c.h.b16 %v644_v61  ;;  %v643_v4 = vld [vmem:[%s3917_s4 + $0x410] sm:$0x33]  ;;  %v2775_v12 = vor.u32 %v3383_v59, %v2774_v56 }
  0xc0   : > { %1681 = vmatpush.bf16.msra.mxu0 %v1485_v52  ;;  %1694 = vmatpush.bf16.msra.mxu1 %v1488_v53  ;;  %v3384_v5 = vld [vmem:[%s3917_s4 + $0x104] sm:$0xf0]  ;;  %v3352_v6 = vld [vmem:[%s3917_s4 + $0xc] sm:$0xf]  ;;  %v1099_v8 = vunpack.c.l.b16 %v643_v4  ;;  %v1100_v9 = vunpack.c.h.b16 %v643_v4  ;;  %v1293_v10 = vpack.c.b16 %v1101_v2, %v1101_v2  ;;  %v2779_v13 = vor.u32 %v3351_v60, %v2776_v0  ;;  %v3054_v18 = vld [vmem:[%s3917_s4 + $0x218] sm:$0xf] }
  0xc1   : > { %v2784_v7 = vld [vmem:[%s3917_s4 + $0x108] sm:$0xf0]  ;;  %v1294_v11 = vpack.c.b16 %v1102_v3, %v1102_v3  ;;  %v2783_v14 = vor.u32 %v3384_v5, %v2782_v1  ;;  %v3450_v19 = vld [vmem:[%s3917_s4 + $0x314] sm:$0xf0]  ;;  %v3418_v20 = vld [vmem:[%s3917_s4 + $0x21c] sm:$0xf] }
  0xc2   : > { %v2787_v15 = vor.u32 %v3352_v6, %v2784_v7  ;;  %v1291_v16 = vpack.c.b16 %v1099_v8, %v1099_v8  ;;  %v1292_v17 = vpack.c.b16 %v1100_v9, %v1100_v9  ;;  %v1503_v21 = vsel %vm1483_vm0, %v1293_v10, 0  ;;  %v3056_v23 = vld [vmem:[%s3917_s4 + $0x318] sm:$0xf0]  ;;  %v646_v24 = vld [vmem:[%s3917_s4 + $0x428] sm:$0x33]  ;;  %s4568_s7 = smov (!%p506_p8, %s4202_s7), 255 }
  0xc3   : > { %1708 = vmatpush.bf16.msra.mxu2 %v3039_v62  ;;  %1721 = vmatpush.bf16.msra.mxu3 %v3043_v63  ;;  %v1506_v22 = vsel %vm1483_vm0, %v1294_v11, 0  ;;  %v3953_v25 = vld [vmem:[%s4560_s0] sm:$0x3]  ;;  %vm1479_vm1 = vcmask 293888   ;;  %v1105_v26 = vunpack.c.l.b16 %v646_v24  ;;  %v1106_v27 = vunpack.c.h.b16 %v646_v24  ;;  %v3046_v29 = vld [vmem:[%s3917_s4 + $0x210] sm:$0xf] }
  0xc4   : > { %1682 = vmatpush.bf16.msra.mxu0 %v3031_v57  ;;  %1695 = vmatpush.bf16.msra.mxu1 %v3035_v58  ;;  %v645_v28 = vld [vmem:[%s3917_s4 + $0x420] sm:$0x33]  ;;  %v3449_v30 = vld [vmem:[%s3917_s4 + $0x30c] sm:$0xf0]  ;;  %v3417_v31 = vld [vmem:[%s3917_s4 + $0x214] sm:$0xf]  ;;  %v3055_v34 = vor.u32 %v3450_v19, %v3054_v18  ;;  %v3059_v35 = vor.u32 %v3418_v20, %v3056_v23 }
  0xc5   : > { %v1497_v32 = vsel %vm1483_vm0, %v1291_v16, 0  ;;  %v1500_v33 = vsel %vm1483_vm0, %v1292_v17, 0  ;;  %v3048_v36 = vld [vmem:[%s3917_s4 + $0x310] sm:$0xf0]  ;;  %v2798_v37 = vld [vmem:[%s3917_s4 + $0x18] sm:$0xf]  ;;  %v1103_v41 = vunpack.c.l.b16 %v645_v28  ;;  %v1104_v42 = vunpack.c.h.b16 %v645_v28 }
  0xc6   : > { %v3386_v38 = vld [vmem:[%s3917_s4 + $0x114] sm:$0xf0]  ;;  %v3354_v39 = vld [vmem:[%s3917_s4 + $0x1c] sm:$0xf]  ;;  %v1297_v43 = vpack.c.b16 %v1105_v26, %v1105_v26  ;;  %v1298_v44 = vpack.c.b16 %v1106_v27, %v1106_v27  ;;  %v3047_v45 = vor.u32 %v3449_v30, %v3046_v29  ;;  %v3051_v46 = vor.u32 %v3417_v31, %v3048_v36  ;;  %v2790_v47 = vld [vmem:[%s3917_s4 + $0x10] sm:$0xf] }
  0xc7   : > { %1709 = vmatpush.bf16.msra.mxu2 %v2783_v14  ;;  %1722 = vmatpush.bf16.msra.mxu3 %v2787_v15  ;;  %v2800_v40 = vld [vmem:[%s3917_s4 + $0x118] sm:$0xf0]  ;;  %v2799_v48 = vor.u32 %v3386_v38, %v2798_v37  ;;  %v3385_v50 = vld [vmem:[%s3917_s4 + $0x10c] sm:$0xf0]  ;;  %v3353_v51 = vld [vmem:[%s3917_s4 + $0x14] sm:$0xf]  ;;  %v1295_v53 = vpack.c.b16 %v1103_v41, %v1103_v41  ;;  %v1296_v54 = vpack.c.b16 %v1104_v42, %v1104_v42 }
  0xc8   : > { %1683 = vmatpush.bf16.msra.mxu0 %v2775_v12  ;;  %1696 = vmatpush.bf16.msra.mxu1 %v2779_v13  ;;  %v2803_v49 = vor.u32 %v3354_v39, %v2800_v40  ;;  %v2792_v52 = vld [vmem:[%s3917_s4 + $0x110] sm:$0xf0]  ;;  %v3070_v55 = vld [vmem:[%s3917_s4 + $0x228] sm:$0xf]  ;;  %v1515_v57 = vsel %vm1483_vm0, %v1297_v43, 0  ;;  %v1518_v58 = vsel %vm1483_vm0, %v1298_v44, 0  ;;  %v2791_v61 = vor.u32 %v3385_v50, %v2790_v47 }
  0xc9   : > { %v3452_v56 = vld [vmem:[%s3917_s4 + $0x324] sm:$0xf0]  ;;  %v3420_v59 = vld [vmem:[%s3917_s4 + $0x22c] sm:$0xf]  ;;  %v2795_v62 = vor.u32 %v3353_v51, %v2792_v52  ;;  %v648_v63 = vld [vmem:[%s3917_s4 + $0x438] sm:$0x33] }
  0xca   : > { %3286 = vmatmul.msk.bf16.vlgmr.msra.gmra.mxu2 %vm1479_vm1, %v3953_v25  ;;  %3287 = vmatmul.msk.bf16.vlgmr.msra.gmra.mxu3 %vm1479_vm1, %v3953_v25  ;;  %v3072_v60 = vld [vmem:[%s3917_s4 + $0x328] sm:$0xf0]  ;;  %v3062_v0 = vld [vmem:[%s3917_s4 + $0x220] sm:$0xf]  ;;  %v647_v2 = vld [vmem:[%s3917_s4 + $0x430] sm:$0x33]  ;;  %v3071_v5 = vor.u32 %v3452_v56, %v3070_v55  ;;  %v1109_v9 = vunpack.c.l.b16 %v648_v63  ;;  %v1110_v10 = vunpack.c.h.b16 %v648_v63 }
  0xcb   : > { %1759 = vmatpush.bf16.msrb.mxu2 %v1503_v21  ;;  %1772 = vmatpush.bf16.msrb.mxu3 %v1506_v22  ;;  %v3451_v1 = vld [vmem:[%s3917_s4 + $0x31c] sm:$0xf0]  ;;  %v1509_v3 = vsel %vm1483_vm0, %v1295_v53, 0  ;;  %v1512_v4 = vsel %vm1483_vm0, %v1296_v54, 0  ;;  %v3075_v6 = vor.u32 %v3420_v59, %v3072_v60  ;;  %v3419_v7 = vld [vmem:[%s3917_s4 + $0x224] sm:$0xf]  ;;  %v1107_v13 = vunpack.c.l.b16 %v647_v2 }
  0xcc   : > { %3284 = vmatmul.msk.bf16.vlgmr.msra.gmra.mxu0 %vm1479_vm1, %v3953_v25  ;;  %3285 = vmatmul.msk.bf16.vlgmr.msra.gmra.mxu1 %vm1479_vm1, %v3953_v25  ;;  %v3064_v8 = vld [vmem:[%s3917_s4 + $0x320] sm:$0xf0]  ;;  %v2814_v11 = vld [vmem:[%s3917_s4 + $0x28] sm:$0xf]  ;;  %v1108_v14 = vunpack.c.h.b16 %v647_v2  ;;  %v3063_v15 = vor.u32 %v3451_v1, %v3062_v0  ;;  %v3356_v17 = vld [vmem:[%s3917_s4 + $0x2c] sm:$0xf]  ;;  %v1301_v23 = vpack.c.b16 %v1109_v9, %v1109_v9  ;;  %v1302_v24 = vpack.c.b16 %v1110_v10, %v1110_v10 }
  0xcd   : > { %1733 = vmatpush.bf16.msrb.mxu0 %v1497_v32  ;;  %1746 = vmatpush.bf16.msrb.mxu1 %v1500_v33  ;;  %v3388_v12 = vld [vmem:[%s3917_s4 + $0x124] sm:$0xf0]  ;;  %v3067_v16 = vor.u32 %v3419_v7, %v3064_v8  ;;  %v2816_v18 = vld [vmem:[%s3917_s4 + $0x128] sm:$0xf0]  ;;  %v2806_v19 = vld [vmem:[%s3917_s4 + $0x20] sm:$0xf]  ;;  %v1299_v28 = vpack.c.b16 %v1107_v13, %v1107_v13 }
  0xce   : > { %v3387_v20 = vld [vmem:[%s3917_s4 + $0x11c] sm:$0xf0]  ;;  %v3355_v21 = vld [vmem:[%s3917_s4 + $0x24] sm:$0xf]  ;;  %v2815_v26 = vor.u32 %v3388_v12, %v2814_v11  ;;  %v2819_v27 = vor.u32 %v3356_v17, %v2816_v18  ;;  %v1300_v29 = vpack.c.b16 %v1108_v14, %v1108_v14  ;;  %v3086_v32 = vld [vmem:[%s3917_s4 + $0x238] sm:$0xf] }
  0xcf   : > { %1760 = vmatpush.bf16.msrb.mxu2 %v3055_v34  ;;  %1773 = vmatpush.bf16.msrb.mxu3 %v3059_v35  ;;  %v2808_v22 = vld [vmem:[%s3917_s4 + $0x120] sm:$0xf0]  ;;  %v2807_v30 = vor.u32 %v3387_v20, %v2806_v19  ;;  %v3454_v33 = vld [vmem:[%s3917_s4 + $0x334] sm:$0xf0]  ;;  %v3422_v34 = vld [vmem:[%s3917_s4 + $0x23c] sm:$0xf] }
  0xd0   : > { %v2811_v31 = vor.u32 %v3355_v21, %v2808_v22  ;;  %v3088_v35 = vld [vmem:[%s3917_s4 + $0x338] sm:$0xf0]  ;;  %v1527_v36 = vsel %vm1483_vm0, %v1301_v23, 0  ;;  %v1530_v37 = vsel %vm1483_vm0, %v1302_v24, 0  ;;  %v3078_v38 = vld [vmem:[%s3917_s4 + $0x230] sm:$0xf] }
  0xd1   : > { %1734 = vmatpush.bf16.msrb.mxu0 %v3047_v45  ;;  %1747 = vmatpush.bf16.msrb.mxu1 %v3051_v46  ;;  %v3453_v39 = vld [vmem:[%s3917_s4 + $0x32c] sm:$0xf0]  ;;  %v1521_v40 = vsel %vm1483_vm0, %v1299_v28, 0  ;;  %v1524_v41 = vsel %vm1483_vm0, %v1300_v29, 0  ;;  %v3421_v42 = vld [vmem:[%s3917_s4 + $0x234] sm:$0xf]  ;;  %v3087_v45 = vor.u32 %v3454_v33, %v3086_v32  ;;  %v3091_v46 = vor.u32 %v3422_v34, %v3088_v35 }
  0xd2   : > { %v3080_v43 = vld [vmem:[%s3917_s4 + $0x330] sm:$0xf0]  ;;  %v2830_v44 = vld [vmem:[%s3917_s4 + $0x38] sm:$0xf]  ;;  %v3079_v50 = vor.u32 %v3453_v39, %v3078_v38  ;;  %v2832_v52 = vld [vmem:[%s3917_s4 + $0x138] sm:$0xf0] }
  0xd3   : > { %1761 = vmatpush.bf16.msrb.mxu2 %v2799_v48  ;;  %1774 = vmatpush.bf16.msrb.mxu3 %v2803_v49  ;;  %v3390_v47 = vld [vmem:[%s3917_s4 + $0x134] sm:$0xf0]  ;;  %v3358_v48 = vld [vmem:[%s3917_s4 + $0x3c] sm:$0xf]  ;;  %v650_v49 = vld [vmem:[%s3917_s4 + $0x448] sm:$0x33]  ;;  %v3083_v51 = vor.u32 %v3421_v42, %v3080_v43 }
  0xd4   : > { %v2822_v53 = vld [vmem:[%s3917_s4 + $0x30] sm:$0xf]  ;;  %v649_v54 = vld [vmem:[%s3917_s4 + $0x440] sm:$0x33]  ;;  %v3357_v56 = vld [vmem:[%s3917_s4 + $0x34] sm:$0xf]  ;;  %v1114_v59 = vunpack.c.h.b16 %v650_v49  ;;  %v2831_v60 = vor.u32 %v3390_v47, %v2830_v44 }
  0xd5   : > { %1735 = vmatpush.bf16.msrb.mxu0 %v2791_v61  ;;  %1748 = vmatpush.bf16.msrb.mxu1 %v2795_v62  ;;  %v3389_v55 = vld [vmem:[%s3917_s4 + $0x12c] sm:$0xf0]  ;;  %v2835_v61 = vor.u32 %v3358_v48, %v2832_v52  ;;  %v1111_v62 = vunpack.c.l.b16 %v649_v54  ;;  %v1112_v63 = vunpack.c.h.b16 %v649_v54  ;;  %v3456_v7 = vld [vmem:[%s3917_s4 + $0x344] sm:$0xf0]  ;;  %v3424_v8 = vld [vmem:[%s3917_s4 + $0x24c] sm:$0xf] }
  0xd6   : > { %v2823_v0 = vor.u32 %v3389_v55, %v2822_v53  ;;  %v3104_v9 = vld [vmem:[%s3917_s4 + $0x348] sm:$0xf0]  ;;  %v3094_v12 = vld [vmem:[%s3917_s4 + $0x240] sm:$0xf]  ;;  %v3096_v17 = vld [vmem:[%s3917_s4 + $0x340] sm:$0xf0] }
  0xd7   : > { %1811 = vmatpush.bf16.msra.mxu2 %v1515_v57  ;;  %1824 = vmatpush.bf16.msra.mxu3 %v1518_v58  ;;  %v2824_v57 = vld [vmem:[%s3917_s4 + $0x130] sm:$0xf0]  ;;  %v1113_v58 = vunpack.c.l.b16 %v650_v49  ;;  %v3455_v13 = vld [vmem:[%s3917_s4 + $0x33c] sm:$0xf0]  ;;  %v3107_v19 = vor.u32 %v3424_v8, %v3104_v9  ;;  %v2846_v20 = vld [vmem:[%s3917_s4 + $0x48] sm:$0xf] }
  0xd8   : > { %v2827_v1 = vor.u32 %v3357_v56, %v2824_v57  ;;  %v3392_v21 = vld [vmem:[%s3917_s4 + $0x144] sm:$0xf0]  ;;  %v3360_v22 = vld [vmem:[%s3917_s4 + $0x4c] sm:$0xf]  ;;  %v3095_v23 = vor.u32 %v3455_v13, %v3094_v12  ;;  %v3391_v28 = vld [vmem:[%s3917_s4 + $0x13c] sm:$0xf0] }
  0xd9   : > { %1785 = vmatpush.bf16.msra.mxu0 %v1509_v3  ;;  %1798 = vmatpush.bf16.msra.mxu1 %v1512_v4  ;;  %v1305_v2 = vpack.c.b16 %v1113_v58, %v1113_v58  ;;  %v1306_v3 = vpack.c.b16 %v1114_v59, %v1114_v59  ;;  %v1303_v4 = vpack.c.b16 %v1111_v62, %v1111_v62  ;;  %v3359_v29 = vld [vmem:[%s3917_s4 + $0x44] sm:$0xf]  ;;  %v651_v32 = vld [vmem:[%s3917_s4 + $0x450] sm:$0x33]  ;;  %v3426_v47 = vld [vmem:[%s3917_s4 + $0x25c] sm:$0xf] }
  0xda   : > { %3290 = vmatmul.msk.bf16.vlgmr.msrb.gmra.mxu2 %vm1479_vm1, %v3953_v25  ;;  %3291 = vmatmul.msk.bf16.vlgmr.msrb.gmra.mxu3 %vm1479_vm1, %v3953_v25  ;;  %v2847_v33 = vor.u32 %v3392_v21, %v2846_v20  ;;  %v1115_v39 = vunpack.c.l.b16 %v651_v32  ;;  %v3120_v48 = vld [vmem:[%s3917_s4 + $0x358] sm:$0xf0]  ;;  %v3457_v52 = vld [vmem:[%s3917_s4 + $0x34c] sm:$0xf0]  ;;  %v3425_v55 = vld [vmem:[%s3917_s4 + $0x254] sm:$0xf] }
  0xdb   : > { %1812 = vmatpush.bf16.msra.mxu2 %v3071_v5  ;;  %1825 = vmatpush.bf16.msra.mxu3 %v3075_v6  ;;  %v1304_v5 = vpack.c.b16 %v1112_v63, %v1112_v63  ;;  %v3102_v6 = vld [vmem:[%s3917_s4 + $0x248] sm:$0xf]  ;;  %v1539_v10 = vsel %vm1483_vm0, %v1305_v2, 0  ;;  %v1542_v11 = vsel %vm1483_vm0, %v1306_v3, 0  ;;  %v1533_v14 = vsel %vm1483_vm0, %v1303_v4, 0  ;;  %s2771_s8 = sshll.u32 %s4568_s7, 2 }
  0xdc   : > { %3288 = vmatmul.msk.bf16.vlgmr.msrb.gmra.mxu0 %vm1479_vm1, %v3953_v25  ;;  %3289 = vmatmul.msk.bf16.vlgmr.msrb.gmra.mxu1 %vm1479_vm1, %v3953_v25  ;;  %v3103_v18 = vor.u32 %v3456_v7, %v3102_v6  ;;  %v1307_v43 = vpack.c.b16 %v1115_v39, %v1115_v39  ;;  %v3112_v56 = vld [vmem:[%s3917_s4 + $0x350] sm:$0xf0]  ;;  %v3123_v58 = vor.u32 %v3426_v47, %v3120_v48  ;;  %v2862_v59 = vld [vmem:[%s3917_s4 + $0x58] sm:$0xf]  ;;  %v3393_v2 = vld [vmem:[%s3917_s4 + $0x14c] sm:$0xf0]  ;;  %s4236_s11 = scalar_lea.vmem %s4563_s3, %s2771_s8 }
  0xdd   : > { %1786 = vmatpush.bf16.msra.mxu0 %v3063_v15  ;;  %1799 = vmatpush.bf16.msra.mxu1 %v3067_v16  ;;  %v1536_v15 = vsel %vm1483_vm0, %v1304_v5, 0  ;;  %v3423_v16 = vld [vmem:[%s3917_s4 + $0x244] sm:$0xf]  ;;  %v3115_v63 = vor.u32 %v3425_v55, %v3112_v56  ;;  %v3361_v3 = vld [vmem:[%s3917_s4 + $0x54] sm:$0xf]  ;;  %vm2604_vm2 = vcmask 1043456  }
  0xde   : > { %v3099_v24 = vor.u32 %v3423_v16, %v3096_v17  ;;  %v1545_v53 = vsel %vm1483_vm0, %v1307_v43, 0  ;;  %v2856_v4 = vld [vmem:[%s3917_s4 + $0x150] sm:$0xf0]  ;;  %v654_v5 = vld [vmem:[%s3917_s4 + $0x468] sm:$0x33] }
  0xdf   : > { %1813 = vmatpush.bf16.msra.mxu2 %v2815_v26  ;;  %1826 = vmatpush.bf16.msra.mxu3 %v2819_v27  ;;  %v2848_v26 = vld [vmem:[%s3917_s4 + $0x148] sm:$0xf0]  ;;  %v2838_v27 = vld [vmem:[%s3917_s4 + $0x40] sm:$0xf]  ;;  %v1122_v12 = vunpack.c.h.b16 %v654_v5  ;;  %v3460_v20 = vld [vmem:[%s3917_s4 + $0x364] sm:$0xf0] }
  0xe0   : > { %v2851_v34 = vor.u32 %v3360_v22, %v2848_v26  ;;  %v2839_v35 = vor.u32 %v3391_v28, %v2838_v27  ;;  %v653_v6 = vld [vmem:[%s3917_s4 + $0x460] sm:$0x33]  ;;  %v3428_v21 = vld [vmem:[%s3917_s4 + $0x26c] sm:$0xf] }
  0xe1   : > { %1787 = vmatpush.bf16.msra.mxu0 %v2807_v30  ;;  %1800 = vmatpush.bf16.msra.mxu1 %v2811_v31  ;;  %v2840_v30 = vld [vmem:[%s3917_s4 + $0x140] sm:$0xf0]  ;;  %v652_v31 = vld [vmem:[%s3917_s4 + $0x458] sm:$0x33]  ;;  %v1119_v13 = vunpack.c.l.b16 %v653_v6  ;;  %v1314_v16 = vpack.c.b16 %v1122_v12, %v1122_v12  ;;  %v3136_v22 = vld [vmem:[%s3917_s4 + $0x368] sm:$0xf0] }
  0xe2   : > { %v1118_v38 = vunpack.c.h.b16 %v652_v31  ;;  %v3126_v26 = vld [vmem:[%s3917_s4 + $0x260] sm:$0xf]  ;;  %v2880_v39 = vld [vmem:[%s3917_s4 + $0x168] sm:$0xf0]  ;;  %v2872_v43 = vld [vmem:[%s3917_s4 + $0x160] sm:$0xf0] }
  0xe3   : > { %1863 = vmatpush.bf16.msrb.mxu2 %v1527_v36  ;;  %1876 = vmatpush.bf16.msrb.mxu3 %v1530_v37  ;;  %v2843_v36 = vor.u32 %v3359_v29, %v2840_v30  ;;  %v1117_v37 = vunpack.c.l.b16 %v652_v31  ;;  %v1311_v17 = vpack.c.b16 %v1119_v13, %v1119_v13  ;;  %v3459_v27 = vld [vmem:[%s3917_s4 + $0x35c] sm:$0xf0]  ;;  %v3427_v30 = vld [vmem:[%s3917_s4 + $0x264] sm:$0xf]  ;;  %v2896_v13 = vld [vmem:[%s3917_s4 + $0x178] sm:$0xf0] }
  0xe4   : > { %v1310_v42 = vpack.c.b16 %v1118_v38, %v1118_v38  ;;  %v3128_v31 = vld [vmem:[%s3917_s4 + $0x360] sm:$0xf0] }
  0xe5   : > { %1837 = vmatpush.bf16.msrb.mxu0 %v1521_v40  ;;  %1850 = vmatpush.bf16.msrb.mxu1 %v1524_v41  ;;  %v1116_v40 = vunpack.c.h.b16 %v651_v32  ;;  %v1309_v41 = vpack.c.b16 %v1117_v37, %v1117_v37  ;;  %v1557_v28 = vsel %vm1483_vm0, %v1311_v17, 0  ;;  %v3127_v37 = vor.u32 %v3459_v27, %v3126_v26  ;;  %v2888_v17 = vld [vmem:[%s3917_s4 + $0x170] sm:$0xf0] }
  0xe6   : > { %v3131_v38 = vor.u32 %v3427_v30, %v3128_v31 }
  0xe7   : > { %1864 = vmatpush.bf16.msrb.mxu2 %v3087_v45  ;;  %1877 = vmatpush.bf16.msrb.mxu3 %v3091_v46  ;;  %v1308_v44 = vpack.c.b16 %v1116_v40, %v1116_v40  ;;  %v3118_v45 = vld [vmem:[%s3917_s4 + $0x258] sm:$0xf]  ;;  %v1551_v49 = vsel %vm1483_vm0, %v1309_v41, 0  ;;  %v2870_v40 = vld [vmem:[%s3917_s4 + $0x60] sm:$0xf] }
  0xe8   : > { %v3458_v46 = vld [vmem:[%s3917_s4 + $0x354] sm:$0xf0]  ;;  %v3395_v41 = vld [vmem:[%s3917_s4 + $0x15c] sm:$0xf0] }
  0xe9   : > { %1838 = vmatpush.bf16.msrb.mxu0 %v3079_v50  ;;  %1851 = vmatpush.bf16.msrb.mxu1 %v3083_v51  ;;  %v1554_v50 = vsel %vm1483_vm0, %v1310_v42, 0  ;;  %v3110_v51 = vld [vmem:[%s3917_s4 + $0x250] sm:$0xf]  ;;  %v1548_v54 = vsel %vm1483_vm0, %v1308_v44, 0  ;;  %v3119_v57 = vor.u32 %v3458_v46, %v3118_v45  ;;  %v3363_v42 = vld [vmem:[%s3917_s4 + $0x64] sm:$0xf]  ;;  %v2871_v48 = vor.u32 %v3395_v41, %v2870_v40 }
  0xea   : > { %3294 = vmatmul.msk.bf16.vlgmr.msra.gmra.mxu2 %vm1479_vm1, %v3953_v25  ;;  %3295 = vmatmul.msk.bf16.vlgmr.msra.gmra.mxu3 %vm1479_vm1, %v3953_v25  ;;  %v3111_v62 = vor.u32 %v3457_v52, %v3110_v51  ;;  %v656_v44 = vld [vmem:[%s3917_s4 + $0x478] sm:$0x33]  ;;  %v655_v45 = vld [vmem:[%s3917_s4 + $0x470] sm:$0x33]  ;;  %v3463_v40 = vld [vmem:[%s3917_s4 + $0x37c] sm:$0xf0] }
  0xeb   : > { %1865 = vmatpush.bf16.msrb.mxu2 %v2831_v60  ;;  %1878 = vmatpush.bf16.msrb.mxu3 %v2835_v61  ;;  %v3394_v60 = vld [vmem:[%s3917_s4 + $0x154] sm:$0xf0]  ;;  %v3362_v61 = vld [vmem:[%s3917_s4 + $0x5c] sm:$0xf]  ;;  %v1126_v51 = vunpack.c.h.b16 %v656_v44  ;;  %v1123_v52 = vunpack.c.l.b16 %v655_v45 }
  0xec   : > { %3292 = vmatmul.msk.bf16.vlgmr.msra.gmra.mxu0 %vm1479_vm1, %v3953_v25  ;;  %3293 = vmatmul.msk.bf16.vlgmr.msra.gmra.mxu1 %vm1479_vm1, %v3953_v25  ;;  %v2863_v7 = vor.u32 %v3394_v60, %v2862_v59  ;;  %v3462_v59 = vld [vmem:[%s3917_s4 + $0x374] sm:$0xf0]  ;;  %v3430_v60 = vld [vmem:[%s3917_s4 + $0x27c] sm:$0xf] }
  0xed   : > { %1839 = vmatpush.bf16.msrb.mxu0 %v2823_v0  ;;  %1852 = vmatpush.bf16.msrb.mxu1 %v2827_v1  ;;  %v2864_v0 = vld [vmem:[%s3917_s4 + $0x158] sm:$0xf0]  ;;  %v2854_v1 = vld [vmem:[%s3917_s4 + $0x50] sm:$0xf]  ;;  %v1318_v55 = vpack.c.b16 %v1126_v51, %v1126_v51  ;;  %v1315_v56 = vpack.c.b16 %v1123_v52, %v1123_v52 }
  0xee   : > { %v2867_v8 = vor.u32 %v3362_v61, %v2864_v0  ;;  %v2855_v9 = vor.u32 %v3393_v2, %v2854_v1  ;;  %v3152_v61 = vld [vmem:[%s3917_s4 + $0x378] sm:$0xf0]  ;;  %v3142_v0 = vld [vmem:[%s3917_s4 + $0x270] sm:$0xf] }
  0xef   : > { %1915 = vmatpush.bf16.msra.mxu2 %v1539_v10  ;;  %1928 = vmatpush.bf16.msra.mxu3 %v1542_v11  ;;  %v2859_v10 = vor.u32 %v3361_v3, %v2856_v4  ;;  %v1121_v11 = vunpack.c.l.b16 %v654_v5  ;;  %v3461_v1 = vld [vmem:[%s3917_s4 + $0x36c] sm:$0xf0]  ;;  %v1569_v2 = vsel %vm1483_vm0, %v1315_v56, 0  ;;  %v3429_v4 = vld [vmem:[%s3917_s4 + $0x274] sm:$0xf] }
  0xf0   : > { %v3144_v5 = vld [vmem:[%s3917_s4 + $0x370] sm:$0xf0]  ;;  %v3399_v56 = vld [vmem:[%s3917_s4 + $0x17c] sm:$0xf0] }
  0xf1   : > { %1889 = vmatpush.bf16.msra.mxu0 %v1533_v14  ;;  %1902 = vmatpush.bf16.msra.mxu1 %v1536_v15  ;;  %v1120_v14 = vunpack.c.h.b16 %v653_v6  ;;  %v1313_v15 = vpack.c.b16 %v1121_v11, %v1121_v11  ;;  %v3143_v11 = vor.u32 %v3461_v1, %v3142_v0  ;;  %v3147_v12 = vor.u32 %v3429_v4, %v3144_v5 }
  0xf3   : > { %1916 = vmatpush.bf16.msra.mxu2 %v3103_v18  ;;  %1929 = vmatpush.bf16.msra.mxu3 %v3107_v19  ;;  %v1312_v18 = vpack.c.b16 %v1120_v14, %v1120_v14  ;;  %v3134_v19 = vld [vmem:[%s3917_s4 + $0x268] sm:$0xf]  ;;  %v2886_v14 = vld [vmem:[%s3917_s4 + $0x70] sm:$0xf] }
  0xf4   : > { %v3135_v32 = vor.u32 %v3460_v20, %v3134_v19  ;;  %v657_v19 = vld [vmem:[%s3917_s4 + $0x480] sm:$0x33] }
  0xf5   : > { %1890 = vmatpush.bf16.msra.mxu0 %v3095_v23  ;;  %1903 = vmatpush.bf16.msra.mxu1 %v3099_v24  ;;  %v1563_v23 = vsel %vm1483_vm0, %v1313_v15, 0  ;;  %v1566_v24 = vsel %vm1483_vm0, %v1314_v16, 0  ;;  %v1560_v29 = vsel %vm1483_vm0, %v1312_v18, 0  ;;  %v3397_v15 = vld [vmem:[%s3917_s4 + $0x16c] sm:$0xf0]  ;;  %v1127_v27 = vunpack.c.l.b16 %v657_v19 }
  0xf6   : > { %v3365_v16 = vld [vmem:[%s3917_s4 + $0x74] sm:$0xf]  ;;  %v658_v18 = vld [vmem:[%s3917_s4 + $0x488] sm:$0x33] }
  0xf7   : > { %1917 = vmatpush.bf16.msra.mxu2 %v2847_v33  ;;  %1930 = vmatpush.bf16.msra.mxu3 %v2851_v34  ;;  %v3139_v33 = vor.u32 %v3428_v21, %v3136_v22  ;;  %v2878_v34 = vld [vmem:[%s3917_s4 + $0x68] sm:$0xf]  ;;  %v2887_v22 = vor.u32 %v3397_v15, %v2886_v14  ;;  %v1130_v26 = vunpack.c.h.b16 %v658_v18  ;;  %v1319_v31 = vpack.c.b16 %v1127_v27, %v1127_v27  ;;  %v3184_v14 = vld [vmem:[%s3917_s4 + $0x398] sm:$0xf0]  ;;  %v3174_v15 = vld [vmem:[%s3917_s4 + $0x290] sm:$0xf] }
  0xf9   : > { %1891 = vmatpush.bf16.msra.mxu0 %v2839_v35  ;;  %1904 = vmatpush.bf16.msra.mxu1 %v2843_v36  ;;  %v3396_v35 = vld [vmem:[%s3917_s4 + $0x164] sm:$0xf0]  ;;  %v3364_v36 = vld [vmem:[%s3917_s4 + $0x6c] sm:$0xf]  ;;  %v1322_v30 = vpack.c.b16 %v1130_v26, %v1130_v26  ;;  %v1581_v41 = vsel %vm1483_vm0, %v1319_v31, 0 }
  0xfa   : > { %3298 = vmatmul.msk.bf16.vlgmr.msrb.gmra.mxu2 %vm1479_vm1, %v3953_v25  ;;  %3299 = vmatmul.msk.bf16.vlgmr.msrb.gmra.mxu3 %vm1479_vm1, %v3953_v25  ;;  %v2879_v46 = vor.u32 %v3396_v35, %v2878_v34  ;;  %v2883_v47 = vor.u32 %v3364_v36, %v2880_v39  ;;  %v3464_v34 = vld [vmem:[%s3917_s4 + $0x384] sm:$0xf0]  ;;  %v3432_v35 = vld [vmem:[%s3917_s4 + $0x28c] sm:$0xf]  ;;  %v3158_v39 = vld [vmem:[%s3917_s4 + $0x280] sm:$0xf] }
  0xfb   : > { %1967 = vmatpush.bf16.msrb.mxu2 %v1551_v49  ;;  %1980 = vmatpush.bf16.msrb.mxu3 %v1554_v50  ;;  %v2875_v49 = vor.u32 %v3363_v42, %v2872_v43  ;;  %v1125_v50 = vunpack.c.l.b16 %v656_v44  ;;  %v3168_v36 = vld [vmem:[%s3917_s4 + $0x388] sm:$0xf0]  ;;  %v3431_v43 = vld [vmem:[%s3917_s4 + $0x284] sm:$0xf]  ;;  %v3159_v51 = vor.u32 %v3463_v40, %v3158_v39  ;;  %v3401_v31 = vld [vmem:[%s3917_s4 + $0x18c] sm:$0xf0] }
  0xfc   : > { %3296 = vmatmul.msk.bf16.vlgmr.msrb.gmra.mxu0 %vm1479_vm1, %v3953_v25  ;;  %3297 = vmatmul.msk.bf16.vlgmr.msrb.gmra.mxu1 %vm1479_vm1, %v3953_v25  ;;  %v3160_v44 = vld [vmem:[%s3917_s4 + $0x380] sm:$0xf0] }
  0xfd   : > { %1941 = vmatpush.bf16.msrb.mxu0 %v1545_v53  ;;  %1954 = vmatpush.bf16.msrb.mxu1 %v1548_v54  ;;  %v1124_v53 = vunpack.c.h.b16 %v655_v45  ;;  %v1317_v54 = vpack.c.b16 %v1125_v50, %v1125_v50  ;;  %v2910_v45 = vld [vmem:[%s3917_s4 + $0x88] sm:$0xf]  ;;  %v660_v50 = vld [vmem:[%s3917_s4 + $0x498] sm:$0x33]  ;;  %v3163_v52 = vor.u32 %v3431_v43, %v3160_v44 }
  0xff   : > { %1968 = vmatpush.bf16.msrb.mxu2 %v3119_v57  ;;  %1981 = vmatpush.bf16.msrb.mxu3 %v3123_v58  ;;  %v1316_v57 = vpack.c.b16 %v1124_v53, %v1124_v53  ;;  %v3150_v58 = vld [vmem:[%s3917_s4 + $0x278] sm:$0xf]  ;;  %v2912_v53 = vld [vmem:[%s3917_s4 + $0x188] sm:$0xf0] }
 0x100   : > { %v3151_v6 = vor.u32 %v3462_v59, %v3150_v58  ;;  %v2904_v58 = vld [vmem:[%s3917_s4 + $0x180] sm:$0xf0]  ;;  %v1133_v59 = vunpack.c.l.b16 %v660_v50 }
 0x101   : > { %1942 = vmatpush.bf16.msrb.mxu0 %v3111_v62  ;;  %1955 = vmatpush.bf16.msrb.mxu1 %v3115_v63  ;;  %v1575_v62 = vsel %vm1483_vm0, %v1317_v54, 0  ;;  %v1578_v63 = vsel %vm1483_vm0, %v1318_v55, 0  ;;  %v1572_v3 = vsel %vm1483_vm0, %v1316_v57, 0  ;;  %v2902_v54 = vld [vmem:[%s3917_s4 + $0x80] sm:$0xf] }
 0x102   : > { %v659_v55 = vld [vmem:[%s3917_s4 + $0x490] sm:$0x33]  ;;  %v3367_v57 = vld [vmem:[%s3917_s4 + $0x84] sm:$0xf]  ;;  %v2903_v1 = vor.u32 %v3399_v56, %v2902_v54  ;;  %v3198_v54 = vld [vmem:[%s3917_s4 + $0x2a8] sm:$0xf] }
 0x103   : > { %1969 = vmatpush.bf16.msrb.mxu2 %v2863_v7  ;;  %1982 = vmatpush.bf16.msrb.mxu3 %v2867_v8  ;;  %v3155_v7 = vor.u32 %v3430_v60, %v3152_v61  ;;  %v2894_v8 = vld [vmem:[%s3917_s4 + $0x78] sm:$0xf]  ;;  %v1134_v60 = vunpack.c.h.b16 %v660_v50  ;;  %v1132_v0 = vunpack.c.h.b16 %v659_v55  ;;  %v3436_v56 = vld [vmem:[%s3917_s4 + $0x2ac] sm:$0xf] }
 0x105   : > { %1943 = vmatpush.bf16.msrb.mxu0 %v2855_v9  ;;  %1956 = vmatpush.bf16.msrb.mxu1 %v2859_v10  ;;  %v3398_v9 = vld [vmem:[%s3917_s4 + $0x174] sm:$0xf0]  ;;  %v3366_v10 = vld [vmem:[%s3917_s4 + $0x7c] sm:$0xf]  ;;  %v1326_v4 = vpack.c.b16 %v1134_v60, %v1134_v60 }
 0x106   : > { %v2895_v20 = vor.u32 %v3398_v9, %v2894_v8  ;;  %v2899_v21 = vor.u32 %v3366_v10, %v2896_v13  ;;  %v3434_v13 = vld [vmem:[%s3917_s4 + $0x29c] sm:$0xf] }
 0x107   : > { %v1602_v8 = vsel %vm1483_vm0, %v1326_v4, 0  ;;  %v3404_v4 = vld [vmem:[%s3917_s4 + $0x1a4] sm:$0xf0] }
 0x10a   : > { %3302 = vmatmul.msk.bf16.vlgmr.msra.gmra.mxu2 %vm1479_vm1, %v3953_v25  ;;  %3303 = vmatmul.msk.bf16.vlgmr.msra.gmra.mxu3 %vm1479_vm1, %v3953_v25 }
 0x10b   : > { %2019 = vmatpush.bf16.msra.mxu2 %v1563_v23  ;;  %2032 = vmatpush.bf16.msra.mxu3 %v1566_v24  ;;  %v2891_v23 = vor.u32 %v3365_v16, %v2888_v17  ;;  %v1129_v24 = vunpack.c.l.b16 %v658_v18  ;;  %v3465_v16 = vld [vmem:[%s3917_s4 + $0x38c] sm:$0xf0]  ;;  %v3433_v17 = vld [vmem:[%s3917_s4 + $0x294] sm:$0xf] }
 0x10c   : > { %3300 = vmatmul.msk.bf16.vlgmr.msra.gmra.mxu0 %vm1479_vm1, %v3953_v25  ;;  %3301 = vmatmul.msk.bf16.vlgmr.msra.gmra.mxu1 %vm1479_vm1, %v3953_v25  ;;  %v3176_v18 = vld [vmem:[%s3917_s4 + $0x390] sm:$0xf0]  ;;  %v3175_v26 = vor.u32 %v3465_v16, %v3174_v15  ;;  %v2936_v15 = vld [vmem:[%s3917_s4 + $0x1a0] sm:$0xf0] }
 0x10d   : > { %1993 = vmatpush.bf16.msra.mxu0 %v1557_v28  ;;  %2006 = vmatpush.bf16.msra.mxu1 %v1560_v29  ;;  %v1128_v28 = vunpack.c.h.b16 %v657_v19  ;;  %v1321_v29 = vpack.c.b16 %v1129_v24, %v1129_v24  ;;  %v2926_v19 = vld [vmem:[%s3917_s4 + $0x98] sm:$0xf]  ;;  %v661_v24 = vld [vmem:[%s3917_s4 + $0x4a0] sm:$0x33]  ;;  %v3179_v27 = vor.u32 %v3433_v17, %v3176_v18 }
 0x10f   : > { %2020 = vmatpush.bf16.msra.mxu2 %v3135_v32  ;;  %2033 = vmatpush.bf16.msra.mxu3 %v3139_v33  ;;  %v1320_v32 = vpack.c.b16 %v1128_v28, %v1128_v28  ;;  %v3166_v33 = vld [vmem:[%s3917_s4 + $0x288] sm:$0xf]  ;;  %v3370_v28 = vld [vmem:[%s3917_s4 + $0x9c] sm:$0xf] }
 0x111   : > { %1994 = vmatpush.bf16.msra.mxu0 %v3127_v37  ;;  %2007 = vmatpush.bf16.msra.mxu1 %v3131_v38  ;;  %v1587_v37 = vsel %vm1483_vm0, %v1321_v29, 0  ;;  %v1590_v38 = vsel %vm1483_vm0, %v1322_v30, 0  ;;  %v1584_v42 = vsel %vm1483_vm0, %v1320_v32, 0  ;;  %v2928_v29 = vld [vmem:[%s3917_s4 + $0x198] sm:$0xf0] }
 0x112   : > { %v2918_v30 = vld [vmem:[%s3917_s4 + $0x90] sm:$0xf]  ;;  %v3369_v32 = vld [vmem:[%s3917_s4 + $0x94] sm:$0xf] }
 0x113   : > { %2021 = vmatpush.bf16.msra.mxu2 %v2879_v46  ;;  %2034 = vmatpush.bf16.msra.mxu3 %v2883_v47  ;;  %v3167_v46 = vor.u32 %v3464_v34, %v3166_v33  ;;  %v3171_v47 = vor.u32 %v3432_v35, %v3168_v36  ;;  %v2920_v33 = vld [vmem:[%s3917_s4 + $0x190] sm:$0xf0]  ;;  %v1135_v36 = vunpack.c.l.b16 %v661_v24  ;;  %v2919_v39 = vor.u32 %v3401_v31, %v2918_v30 }
 0x114   : > { %v2923_v40 = vor.u32 %v3369_v32, %v2920_v33 }
 0x115   : > { %1995 = vmatpush.bf16.msra.mxu0 %v2871_v48  ;;  %2008 = vmatpush.bf16.msra.mxu1 %v2875_v49  ;;  %v3400_v48 = vld [vmem:[%s3917_s4 + $0x184] sm:$0xf0]  ;;  %v3368_v49 = vld [vmem:[%s3917_s4 + $0x8c] sm:$0xf]  ;;  %v1327_v44 = vpack.c.b16 %v1135_v36, %v1135_v36 }
 0x116   : > { %v2911_v61 = vor.u32 %v3400_v48, %v2910_v45 }
 0x11a   : > { %3306 = vmatmul.msk.bf16.vlgmr.msrb.gmra.mxu2 %vm1479_vm1, %v3953_v25  ;;  %3307 = vmatmul.msk.bf16.vlgmr.msrb.gmra.mxu3 %vm1479_vm1, %v3953_v25 }
 0x11b   : > { %2071 = vmatpush.bf16.msrb.mxu2 %v1575_v62  ;;  %2084 = vmatpush.bf16.msrb.mxu3 %v1578_v63  ;;  %v2915_v62 = vor.u32 %v3368_v49, %v2912_v53  ;;  %v1131_v63 = vunpack.c.l.b16 %v659_v55  ;;  %v3468_v55 = vld [vmem:[%s3917_s4 + $0x3a4] sm:$0xf0] }
 0x11c   : > { %3304 = vmatmul.msk.bf16.vlgmr.msrb.gmra.mxu0 %vm1479_vm1, %v3953_v25  ;;  %3305 = vmatmul.msk.bf16.vlgmr.msrb.gmra.mxu1 %vm1479_vm1, %v3953_v25 }
 0x11d   : > { %2045 = vmatpush.bf16.msrb.mxu0 %v1569_v2  ;;  %2058 = vmatpush.bf16.msrb.mxu1 %v1572_v3  ;;  %v2907_v2 = vor.u32 %v3367_v57, %v2904_v58  ;;  %v1325_v3 = vpack.c.b16 %v1133_v59, %v1133_v59  ;;  %v1323_v5 = vpack.c.b16 %v1131_v63, %v1131_v63  ;;  %v3200_v57 = vld [vmem:[%s3917_s4 + $0x3a8] sm:$0xf0]  ;;  %v3190_v58 = vld [vmem:[%s3917_s4 + $0x2a0] sm:$0xf]  ;;  %v3192_v63 = vld [vmem:[%s3917_s4 + $0x3a0] sm:$0xf0] }
 0x11e   : > { %v3467_v59 = vld [vmem:[%s3917_s4 + $0x39c] sm:$0xf0] }
 0x11f   : > { %2072 = vmatpush.bf16.msrb.mxu2 %v3151_v6  ;;  %2085 = vmatpush.bf16.msrb.mxu3 %v3155_v7  ;;  %v1324_v6 = vpack.c.b16 %v1132_v0, %v1132_v0  ;;  %v1599_v7 = vsel %vm1483_vm0, %v1325_v3, 0  ;;  %v1593_v9 = vsel %vm1483_vm0, %v1323_v5, 0  ;;  %v2942_v0 = vld [vmem:[%s3917_s4 + $0xa8] sm:$0xf]  ;;  %v3203_v3 = vor.u32 %v3436_v56, %v3200_v57  ;;  %v664_v5 = vld [vmem:[%s3917_s4 + $0x4b8] sm:$0x33] }
 0x120   : > { %v2958_v56 = vld [vmem:[%s3917_s4 + $0xb8] sm:$0xf] }
 0x121   : > { %2046 = vmatpush.bf16.msrb.mxu0 %v3143_v11  ;;  %2059 = vmatpush.bf16.msrb.mxu1 %v3147_v12  ;;  %v1596_v10 = vsel %vm1483_vm0, %v1324_v6, 0  ;;  %v3182_v11 = vld [vmem:[%s3917_s4 + $0x298] sm:$0xf]  ;;  %v663_v6 = vld [vmem:[%s3917_s4 + $0x4b0] sm:$0x33] }
 0x122   : > { %v3466_v12 = vld [vmem:[%s3917_s4 + $0x394] sm:$0xf0] }
 0x123   : > { %2073 = vmatpush.bf16.msrb.mxu2 %v2895_v20  ;;  %2086 = vmatpush.bf16.msrb.mxu3 %v2899_v21  ;;  %v3183_v20 = vor.u32 %v3466_v12, %v3182_v11  ;;  %v3187_v21 = vor.u32 %v3434_v13, %v3184_v14  ;;  %v3403_v13 = vld [vmem:[%s3917_s4 + $0x19c] sm:$0xf0]  ;;  %v3371_v14 = vld [vmem:[%s3917_s4 + $0xa4] sm:$0xf]  ;;  %v3406_v57 = vld [vmem:[%s3917_s4 + $0x1b4] sm:$0xf0] }
 0x125   : > { %2047 = vmatpush.bf16.msrb.mxu0 %v2887_v22  ;;  %2060 = vmatpush.bf16.msrb.mxu1 %v2891_v23  ;;  %v3402_v22 = vld [vmem:[%s3917_s4 + $0x194] sm:$0xf0]  ;;  %v662_v23 = vld [vmem:[%s3917_s4 + $0x4a8] sm:$0x33] }
 0x126   : > { %v1137_v34 = vunpack.c.l.b16 %v662_v23  ;;  %v1138_v35 = vunpack.c.h.b16 %v662_v23 }
 0x128   : > { %v1330_v43 = vpack.c.b16 %v1138_v35, %v1138_v35 }
 0x12a   : > { %3310 = vmatmul.msk.bf16.vlgmr.msra.gmra.mxu2 %vm1479_vm1, %v3953_v25  ;;  %3311 = vmatmul.msk.bf16.vlgmr.msra.gmra.mxu3 %vm1479_vm1, %v3953_v25  ;;  %v1614_v50 = vsel %vm1483_vm0, %v1330_v43, 0 }
 0x12b   : > { %2123 = vmatpush.bf16.msra.mxu2 %v1587_v37  ;;  %2136 = vmatpush.bf16.msra.mxu3 %v1590_v38  ;;  %v2927_v37 = vor.u32 %v3402_v22, %v2926_v19  ;;  %v2931_v38 = vor.u32 %v3370_v28, %v2928_v29  ;;  %v1141_v19 = vunpack.c.l.b16 %v664_v5  ;;  %v2943_v22 = vor.u32 %v3404_v4, %v2942_v0 }
 0x12c   : > { %3308 = vmatmul.msk.bf16.vlgmr.msra.gmra.mxu0 %vm1479_vm1, %v3953_v25  ;;  %3309 = vmatmul.msk.bf16.vlgmr.msra.gmra.mxu1 %vm1479_vm1, %v3953_v25  ;;  %v2939_v28 = vor.u32 %v3371_v14, %v2936_v15  ;;  %v1140_v29 = vunpack.c.h.b16 %v663_v6  ;;  %v2959_v14 = vor.u32 %v3406_v57, %v2958_v56 }
 0x12d   : > { %2097 = vmatpush.bf16.msra.mxu0 %v1581_v41  ;;  %2110 = vmatpush.bf16.msra.mxu1 %v1584_v42  ;;  %v1136_v41 = vunpack.c.h.b16 %v661_v24  ;;  %v1329_v42 = vpack.c.b16 %v1137_v34, %v1137_v34  ;;  %v4216_v45 = vpop.permute.xlu0 %676  ;;  %v1333_v31 = vpack.c.b16 %v1141_v19, %v1141_v19 }
 0x12e   : > { %v1332_v36 = vpack.c.b16 %v1140_v29, %v1140_v29 }
 0x12f   : > { %2124 = vmatpush.bf16.msra.mxu2 %v3167_v46  ;;  %2137 = vmatpush.bf16.msra.mxu3 %v3171_v47  ;;  %v1328_v46 = vpack.c.b16 %v1136_v41, %v1136_v41  ;;  %v1611_v49 = vsel %vm1483_vm0, %v1329_v42, 0 }
 0x131   : > { %2098 = vmatpush.bf16.msra.mxu0 %v3159_v51  ;;  %2111 = vmatpush.bf16.msra.mxu1 %v3163_v52  ;;  %v1605_v51 = vsel %vm1483_vm0, %v1327_v44, 0  ;;  %v3214_v44 = vld [vmem:[%s3917_s4 + $0x2b8] sm:$0xf] }
 0x133   : > { %2125 = vmatpush.bf16.msra.mxu2 %v2911_v61  ;;  %2138 = vmatpush.bf16.msra.mxu3 %v2915_v62  ;;  %v1608_v61 = vsel %vm1483_vm0, %v1328_v46, 0  ;;  %v3435_v62 = vld [vmem:[%s3917_s4 + $0x2a4] sm:$0xf]  ;;  %v3470_v46 = vld [vmem:[%s3917_s4 + $0x3b4] sm:$0xf0] }
 0x135   : > { %2099 = vmatpush.bf16.msra.mxu0 %v2903_v1  ;;  %2112 = vmatpush.bf16.msra.mxu1 %v2907_v2  ;;  %v3199_v2 = vor.u32 %v3468_v55, %v3198_v54  ;;  %v3437_v54 = vld [vmem:[%s3917_s4 + $0x2b4] sm:$0xf] }
 0x136   : > { %v3208_v55 = vld [vmem:[%s3917_s4 + $0x3b0] sm:$0xf0] }
 0x13a   : > { %3314 = vmatmul.msk.bf16.vlgmr.msrb.gmra.mxu2 %vm1479_vm1, %v3953_v25  ;;  %3315 = vmatmul.msk.bf16.vlgmr.msrb.gmra.mxu3 %vm1479_vm1, %v3953_v25 }
 0x13b   : > { %2175 = vmatpush.bf16.msrb.mxu2 %v1599_v7  ;;  %2188 = vmatpush.bf16.msrb.mxu3 %v1602_v8  ;;  %v3191_v7 = vor.u32 %v3467_v59, %v3190_v58  ;;  %v3372_v8 = vld [vmem:[%s3917_s4 + $0xac] sm:$0xf]  ;;  %v3215_v59 = vor.u32 %v3470_v46, %v3214_v44  ;;  %v3439_v44 = vld [vmem:[%s3917_s4 + $0x2c4] sm:$0xf] }
 0x13c   : > { %3312 = vmatmul.msk.bf16.vlgmr.msrb.gmra.mxu0 %vm1479_vm1, %v3953_v25  ;;  %3313 = vmatmul.msk.bf16.vlgmr.msrb.gmra.mxu1 %vm1479_vm1, %v3953_v25  ;;  %v3224_v46 = vld [vmem:[%s3917_s4 + $0x3c0] sm:$0xf0] }
 0x13d   : > { %2149 = vmatpush.bf16.msrb.mxu0 %v1593_v9  ;;  %2162 = vmatpush.bf16.msrb.mxu1 %v1596_v10  ;;  %v2944_v9 = vld [vmem:[%s3917_s4 + $0x1a8] sm:$0xf0]  ;;  %v2934_v10 = vld [vmem:[%s3917_s4 + $0xa0] sm:$0xf]  ;;  %v3227_v57 = vor.u32 %v3439_v44, %v3224_v46 }
 0x13e   : > { %v2947_v23 = vor.u32 %v3372_v8, %v2944_v9  ;;  %v670_v44 = vld [vmem:[%s3917_s4 + $0x4e8] sm:$0x33]  ;;  %v669_v46 = vld [vmem:[%s3917_s4 + $0x4e0] sm:$0x33] }
 0x13f   : > { %2176 = vmatpush.bf16.msrb.mxu2 %v3183_v20  ;;  %2189 = vmatpush.bf16.msrb.mxu3 %v3187_v21  ;;  %v1142_v20 = vunpack.c.h.b16 %v664_v5  ;;  %v1139_v21 = vunpack.c.l.b16 %v663_v6  ;;  %v3405_v6 = vld [vmem:[%s3917_s4 + $0x1ac] sm:$0xf0] }
 0x141   : > { %2150 = vmatpush.bf16.msrb.mxu0 %v3175_v26  ;;  %2163 = vmatpush.bf16.msrb.mxu1 %v3179_v27  ;;  %v2935_v27 = vor.u32 %v3403_v13, %v2934_v10  ;;  %v1334_v32 = vpack.c.b16 %v1142_v20, %v1142_v20  ;;  %v1331_v33 = vpack.c.b16 %v1139_v21, %v1139_v21 }
 0x143   : > { %2177 = vmatpush.bf16.msrb.mxu2 %v2927_v37  ;;  %2190 = vmatpush.bf16.msrb.mxu3 %v2931_v38  ;;  %v1617_v41 = vsel %vm1483_vm0, %v1331_v33, 0 }
 0x145   : > { %2151 = vmatpush.bf16.msrb.mxu0 %v2919_v39  ;;  %2164 = vmatpush.bf16.msrb.mxu1 %v2923_v40  ;;  %v1623_v39 = vsel %vm1483_vm0, %v1333_v31, 0  ;;  %v1626_v40 = vsel %vm1483_vm0, %v1334_v32, 0 }
 0x149   : > { %v1685_v47 = vpop.f32.mrf.mxu0  ;;  %v1698_v48 = vpop.f32.mrf.mxu1 }
 0x14a   : > { %v1686_v52 = vadd.f32 %v1685_v47, %v4216_v45  ;;  %v1699_v53 = vadd.f32 %v1698_v48, %v4216_v45  ;;  %3318 = vmatmul.msk.bf16.vlgmr.msra.gmra.mxu2 %vm1479_vm1, %v3953_v25  ;;  %3319 = vmatmul.msk.bf16.vlgmr.msra.gmra.mxu3 %vm1479_vm1, %v3953_v25  ;;  %v3438_v47 = vld [vmem:[%s3917_s4 + $0x2bc] sm:$0xf] }
 0x14b   : > { %2227 = vmatpush.bf16.msra.mxu2 %v1611_v49  ;;  %2240 = vmatpush.bf16.msra.mxu3 %v1614_v50  ;;  %v3216_v48 = vld [vmem:[%s3917_s4 + $0x3b8] sm:$0xf0]  ;;  %v3206_v49 = vld [vmem:[%s3917_s4 + $0x2b0] sm:$0xf] }
 0x14c   : > { %3316 = vmatmul.msk.bf16.vlgmr.msra.gmra.mxu0 %vm1479_vm1, %v3953_v25  ;;  %3317 = vmatmul.msk.bf16.vlgmr.msra.gmra.mxu1 %vm1479_vm1, %v3953_v25  ;;  %v2572_v60 = vrot.slane %v1699_v53, 4  ;;  %v3195_v25 = vor.u32 %v3435_v62, %v3192_v63  ;;  %v3469_v50 = vld [vmem:[%s3917_s4 + $0x3ac] sm:$0xf0]  ;;  %v1620_v53 = vsel %vm1483_vm0, %v1332_v36, 0  ;;  %v666_v62 = vld [vmem:[%s3917_s4 + $0x4c8] sm:$0x33] }
 0x14d   : > { %2201 = vmatpush.bf16.msra.mxu0 %v1605_v51  ;;  %2214 = vmatpush.bf16.msra.mxu1 %v1608_v61  ;;  %v1711_v11 = vpop.f32.mrf.mxu2  ;;  %v1724_v12 = vpop.f32.mrf.mxu3  ;;  %v3374_v61 = vld [vmem:[%s3917_s4 + $0xbc] sm:$0xf]  ;;  %v665_v63 = vld [vmem:[%s3917_s4 + $0x4c0] sm:$0x33]  ;;  %v3207_v0 = vor.u32 %v3469_v50, %v3206_v49  ;;  %v3230_v36 = vld [vmem:[%s3917_s4 + $0x2c8] sm:$0xf] }
 0x14e   : > { %v2605_v1 = vsel %vm2604_vm2, %v1686_v52, %v2572_v60  ;;  %v1725_v16 = vadd.f32 %v1724_v12, %v4216_v45  ;;  %v1712_v24 = vadd.f32 %v1711_v11, %v4216_v45  ;;  %v4275_v52 = vld [vmem:[%s4560_s0] sm:$0x3]  ;;  %v3219_v60 = vor.u32 %v3438_v47, %v3216_v48  ;;  %v2974_v47 = vld [vmem:[%s3917_s4 + $0xc8] sm:$0xf] }
 0x14f   : > { %2669 = vst [vmem:[%s4236_s11] sm:$0xff] %v2605_v1  ;;  %2228 = vmatpush.bf16.msra.mxu2 %v3199_v2  ;;  %2241 = vmatpush.bf16.msra.mxu3 %v3203_v3  ;;  %v3211_v1 = vor.u32 %v3437_v54, %v3208_v55  ;;  %v2960_v2 = vld [vmem:[%s3917_s4 + $0x1b8] sm:$0xf0]  ;;  %v2950_v3 = vld [vmem:[%s3917_s4 + $0xb0] sm:$0xf]  ;;  %v1145_v11 = vunpack.c.l.b16 %v666_v62  ;;  %v1146_v12 = vunpack.c.h.b16 %v666_v62  ;;  %v1143_v13 = vunpack.c.l.b16 %v665_v63  ;;  %v3408_v48 = vld [vmem:[%s3917_s4 + $0x1c4] sm:$0xf0] }
 0x150   : > { %v2573_v26 = vrot.slane %v1725_v16, 4  ;;  %v2963_v15 = vor.u32 %v3374_v61, %v2960_v2  ;;  %v1144_v20 = vunpack.c.h.b16 %v665_v63  ;;  %v668_v54 = vld [vmem:[%s3917_s4 + $0x4d8] sm:$0x33]  ;;  %v667_v55 = vld [vmem:[%s3917_s4 + $0x4d0] sm:$0x33] }
 0x151   : > { %v1687_v17 = vpop.f32.mrf.mxu0  ;;  %v1700_v18 = vpop.f32.mrf.mxu1  ;;  %2202 = vmatpush.bf16.msra.mxu0 %v3191_v7  ;;  %2215 = vmatpush.bf16.msra.mxu1 %v3195_v25  ;;  %v3373_v7 = vld [vmem:[%s3917_s4 + $0xb4] sm:$0xf]  ;;  %v3407_v62 = vld [vmem:[%s3917_s4 + $0x1bc] sm:$0xf0]  ;;  %v3375_v63 = vld [vmem:[%s3917_s4 + $0xc4] sm:$0xf] }
 0x152   : > { %v2606_v30 = vsel %vm2604_vm2, %v1712_v24, %v2573_v26  ;;  %v2952_v25 = vld [vmem:[%s3917_s4 + $0x1b0] sm:$0xf0]  ;;  %v2951_v18 = vor.u32 %v3405_v6, %v2950_v3  ;;  %v1335_v24 = vpack.c.b16 %v1143_v13, %v1143_v13  ;;  %v1147_v6 = vunpack.c.l.b16 %v667_v55 }
 0x153   : > { %2670 = vst [vmem:[%s4236_s11 + $0x8] sm:$0xff] %v2606_v30  ;;  %2229 = vmatpush.bf16.msra.mxu2 %v2943_v22  ;;  %2242 = vmatpush.bf16.msra.mxu3 %v2947_v23  ;;  %v2955_v19 = vor.u32 %v3373_v7, %v2952_v25  ;;  %v1337_v22 = vpack.c.b16 %v1145_v11, %v1145_v11 }
 0x154   : > { %v1338_v23 = vpack.c.b16 %v1146_v12, %v1146_v12  ;;  %v1629_v33 = vsel %vm1483_vm0, %v1335_v24, 0  ;;  %v2975_v7 = vor.u32 %v3408_v48, %v2974_v47  ;;  %v1148_v12 = vunpack.c.h.b16 %v667_v55  ;;  %v3377_v55 = vld [vmem:[%s3917_s4 + $0xd4] sm:$0xf] }
 0x155   : > { %2203 = vmatpush.bf16.msra.mxu0 %v2935_v27  ;;  %2216 = vmatpush.bf16.msra.mxu1 %v2939_v28  ;;  %v1713_v34 = vpop.f32.mrf.mxu2  ;;  %v1726_v35 = vpop.f32.mrf.mxu3  ;;  %v1336_v28 = vpack.c.b16 %v1144_v20, %v1144_v20  ;;  %v1635_v31 = vsel %vm1483_vm0, %v1337_v22, 0 }
 0x156   : > { %v1638_v32 = vsel %vm1483_vm0, %v1338_v23, 0 }
 0x159   : > { %v1737_v37 = vpop.f32.mrf.mxu0  ;;  %v1750_v38 = vpop.f32.mrf.mxu1 }
 0x15a   : > { %v1738_v42 = vadd.f32 %v1737_v37, %v4216_v45  ;;  %v1751_v43 = vadd.f32 %v1750_v38, %v4216_v45  ;;  %3322 = vmatmul.msk.bf16.vlgmr.msrb.gmra.mxu2 %vm1479_vm1, %v4275_v52  ;;  %3323 = vmatmul.msk.bf16.vlgmr.msrb.gmra.mxu3 %vm1479_vm1, %v4275_v52  ;;  %v3472_v37 = vld [vmem:[%s3917_s4 + $0x3c4] sm:$0xf0]  ;;  %v3440_v38 = vld [vmem:[%s3917_s4 + $0x2cc] sm:$0xf] }
 0x15b   : > { %2279 = vmatpush.bf16.msrb.mxu2 %v1623_v39  ;;  %2292 = vmatpush.bf16.msrb.mxu3 %v1626_v40  ;;  %v3232_v39 = vld [vmem:[%s3917_s4 + $0x3c8] sm:$0xf0]  ;;  %v3222_v40 = vld [vmem:[%s3917_s4 + $0x2c0] sm:$0xf]  ;;  %v3231_v50 = vor.u32 %v3472_v37, %v3230_v36  ;;  %v3441_v36 = vld [vmem:[%s3917_s4 + $0x2d4] sm:$0xf] }
 0x15c   : > { %v2574_v51 = vrot.slane %v1751_v43, 4  ;;  %3320 = vmatmul.msk.bf16.vlgmr.msrb.gmra.mxu0 %vm1479_vm1, %v4275_v52  ;;  %3321 = vmatmul.msk.bf16.vlgmr.msrb.gmra.mxu1 %vm1479_vm1, %v4275_v52  ;;  %v1632_v43 = vsel %vm1483_vm0, %v1336_v28, 0  ;;  %v3246_v28 = vld [vmem:[%s3917_s4 + $0x2d8] sm:$0xf]  ;;  %v3240_v37 = vld [vmem:[%s3917_s4 + $0x3d0] sm:$0xf0] }
 0x15d   : > { %2253 = vmatpush.bf16.msrb.mxu0 %v1617_v41  ;;  %2266 = vmatpush.bf16.msrb.mxu1 %v1620_v53  ;;  %v1763_v4 = vpop.f32.mrf.mxu2  ;;  %v1776_v5 = vpop.f32.mrf.mxu3  ;;  %v3471_v41 = vld [vmem:[%s3917_s4 + $0x3bc] sm:$0xf0]  ;;  %v3376_v53 = vld [vmem:[%s3917_s4 + $0xcc] sm:$0xf]  ;;  %v3243_v48 = vor.u32 %v3441_v36, %v3240_v37  ;;  %v672_v36 = vld [vmem:[%s3917_s4 + $0x4f8] sm:$0x33] }
 0x15e   : > { %v2607_v58 = vsel %vm2604_vm2, %v1738_v42, %v2574_v51  ;;  %v1777_v8 = vadd.f32 %v1776_v5, %v4216_v45  ;;  %v1764_v16 = vadd.f32 %v1763_v4, %v4216_v45  ;;  %v3235_v51 = vor.u32 %v3440_v38, %v3232_v39  ;;  %v2990_v38 = vld [vmem:[%s3917_s4 + $0xd8] sm:$0xf]  ;;  %v671_v37 = vld [vmem:[%s3917_s4 + $0x4f0] sm:$0x33] }
 0x15f   : > { %2671 = vst [vmem:[%s4236_s11 + $0x10] sm:$0xff] %v2607_v58  ;;  %2280 = vmatpush.bf16.msrb.mxu2 %v3215_v59  ;;  %2293 = vmatpush.bf16.msrb.mxu3 %v3219_v60  ;;  %v3223_v56 = vor.u32 %v3471_v41, %v3222_v40  ;;  %v2976_v58 = vld [vmem:[%s3917_s4 + $0x1c8] sm:$0xf0]  ;;  %v2966_v59 = vld [vmem:[%s3917_s4 + $0xc0] sm:$0xf]  ;;  %v1149_v4 = vunpack.c.l.b16 %v668_v54  ;;  %v1150_v5 = vunpack.c.h.b16 %v668_v54 }
 0x160   : > { %v2575_v17 = vrot.slane %v1777_v8, 4  ;;  %v2979_v25 = vor.u32 %v3376_v53, %v2976_v58  ;;  %v3410_v39 = vld [vmem:[%s3917_s4 + $0x1d4] sm:$0xf0]  ;;  %v3409_v54 = vld [vmem:[%s3917_s4 + $0x1cc] sm:$0xf0] }
 0x161   : > { %v1739_v9 = vpop.f32.mrf.mxu0  ;;  %v1752_v10 = vpop.f32.mrf.mxu1  ;;  %2254 = vmatpush.bf16.msrb.mxu0 %v3207_v0  ;;  %2267 = vmatpush.bf16.msrb.mxu1 %v3211_v1  ;;  %v2968_v0 = vld [vmem:[%s3917_s4 + $0x1c0] sm:$0xf0] }
 0x162   : > { %v2608_v21 = vsel %vm2604_vm2, %v1764_v16, %v2575_v17  ;;  %v2967_v10 = vor.u32 %v3407_v62, %v2966_v59  ;;  %v2971_v11 = vor.u32 %v3375_v63, %v2968_v0  ;;  %v1339_v16 = vpack.c.b16 %v1147_v6, %v1147_v6 }
 0x163   : > { %2672 = vst [vmem:[%s4236_s11 + $0x18] sm:$0xff] %v2608_v21  ;;  %2281 = vmatpush.bf16.msrb.mxu2 %v2959_v14  ;;  %2294 = vmatpush.bf16.msrb.mxu3 %v2963_v15  ;;  %v1341_v14 = vpack.c.b16 %v1149_v4, %v1149_v4  ;;  %v1342_v15 = vpack.c.b16 %v1150_v5, %v1150_v5  ;;  %v1151_v62 = vunpack.c.l.b16 %v669_v46  ;;  %v1152_v5 = vunpack.c.h.b16 %v669_v46  ;;  %v3379_v46 = vld [vmem:[%s3917_s4 + $0xe4] sm:$0xf] }
 0x164   : > { %v1641_v24 = vsel %vm1483_vm0, %v1339_v16, 0  ;;  %v2991_v63 = vor.u32 %v3410_v39, %v2990_v38 }
 0x165   : > { %2255 = vmatpush.bf16.msrb.mxu0 %v2951_v18  ;;  %2268 = vmatpush.bf16.msrb.mxu1 %v2955_v19  ;;  %v1765_v26 = vpop.f32.mrf.mxu2  ;;  %v1778_v27 = vpop.f32.mrf.mxu3  ;;  %v1340_v19 = vpack.c.b16 %v1148_v12, %v1148_v12  ;;  %v1647_v22 = vsel %vm1483_vm0, %v1341_v14, 0  ;;  %v1650_v23 = vsel %vm1483_vm0, %v1342_v15, 0 }
 0x169   : > { %v1789_v29 = vpop.f32.mrf.mxu0  ;;  %v1802_v30 = vpop.f32.mrf.mxu1 }
 0x16a   : > { %v1790_v34 = vadd.f32 %v1789_v29, %v4216_v45  ;;  %v1803_v35 = vadd.f32 %v1802_v30, %v4216_v45  ;;  %3326 = vmatmul.msk.bf16.vlgmr.msra.gmra.mxu2 %vm1479_vm1, %v4275_v52  ;;  %3327 = vmatmul.msk.bf16.vlgmr.msra.gmra.mxu3 %vm1479_vm1, %v4275_v52  ;;  %v3474_v29 = vld [vmem:[%s3917_s4 + $0x3d4] sm:$0xf0]  ;;  %v3442_v30 = vld [vmem:[%s3917_s4 + $0x2dc] sm:$0xf] }
 0x16b   : > { %2331 = vmatpush.bf16.msra.mxu2 %v1635_v31  ;;  %2344 = vmatpush.bf16.msra.mxu3 %v1638_v32  ;;  %v3248_v31 = vld [vmem:[%s3917_s4 + $0x3d8] sm:$0xf0]  ;;  %v3238_v32 = vld [vmem:[%s3917_s4 + $0x2d0] sm:$0xf]  ;;  %v3247_v41 = vor.u32 %v3474_v29, %v3246_v28  ;;  %v3443_v28 = vld [vmem:[%s3917_s4 + $0x2e4] sm:$0xf] }
 0x16c   : > { %v2576_v42 = vrot.slane %v1803_v35, 4  ;;  %3324 = vmatmul.msk.bf16.vlgmr.msra.gmra.mxu0 %vm1479_vm1, %v4275_v52  ;;  %3325 = vmatmul.msk.bf16.vlgmr.msra.gmra.mxu1 %vm1479_vm1, %v4275_v52  ;;  %v1644_v35 = vsel %vm1483_vm0, %v1340_v19, 0  ;;  %v3262_v19 = vld [vmem:[%s3917_s4 + $0x2e8] sm:$0xf]  ;;  %v3256_v29 = vld [vmem:[%s3917_s4 + $0x3e0] sm:$0xf0] }
 0x16d   : > { %2305 = vmatpush.bf16.msra.mxu0 %v1629_v33  ;;  %2318 = vmatpush.bf16.msra.mxu1 %v1632_v43  ;;  %v1815_v60 = vpop.f32.mrf.mxu2  ;;  %v1828_v61 = vpop.f32.mrf.mxu3  ;;  %v3473_v33 = vld [vmem:[%s3917_s4 + $0x3cc] sm:$0xf0]  ;;  %v3378_v43 = vld [vmem:[%s3917_s4 + $0xdc] sm:$0xf]  ;;  %v3259_v39 = vor.u32 %v3443_v28, %v3256_v29 }
 0x16e   : > { %v2609_v49 = vsel %vm2604_vm2, %v1790_v34, %v2576_v42  ;;  %v1829_v1 = vadd.f32 %v1828_v61, %v4216_v45  ;;  %v1816_v8 = vadd.f32 %v1815_v60, %v4216_v45  ;;  %v3251_v42 = vor.u32 %v3442_v30, %v3248_v31  ;;  %v3006_v30 = vld [vmem:[%s3917_s4 + $0xe8] sm:$0xf] }
 0x16f   : > { %2673 = vst [vmem:[%s4236_s11 + $0x20] sm:$0xff] %v2609_v49  ;;  %2332 = vmatpush.bf16.msra.mxu2 %v3231_v50  ;;  %2345 = vmatpush.bf16.msra.mxu3 %v3235_v51  ;;  %v3239_v47 = vor.u32 %v3473_v33, %v3238_v32  ;;  %v2992_v49 = vld [vmem:[%s3917_s4 + $0x1d8] sm:$0xf0]  ;;  %v2982_v50 = vld [vmem:[%s3917_s4 + $0xd0] sm:$0xf]  ;;  %v1153_v60 = vunpack.c.l.b16 %v670_v44  ;;  %v1154_v61 = vunpack.c.h.b16 %v670_v44 }
 0x170   : > { %v2577_v9 = vrot.slane %v1829_v1, 4  ;;  %v2995_v0 = vor.u32 %v3378_v43, %v2992_v49  ;;  %v3412_v31 = vld [vmem:[%s3917_s4 + $0x1e4] sm:$0xf0]  ;;  %v3411_v44 = vld [vmem:[%s3917_s4 + $0x1dc] sm:$0xf0] }
 0x171   : > { %v1791_v2 = vpop.f32.mrf.mxu0  ;;  %v1804_v3 = vpop.f32.mrf.mxu1  ;;  %2306 = vmatpush.bf16.msra.mxu0 %v3223_v56  ;;  %2319 = vmatpush.bf16.msra.mxu1 %v3227_v57  ;;  %v2984_v56 = vld [vmem:[%s3917_s4 + $0x1d0] sm:$0xf0] }
 0x172   : > { %v2610_v13 = vsel %vm2604_vm2, %v1816_v8, %v2577_v9  ;;  %v2983_v3 = vor.u32 %v3409_v54, %v2982_v50  ;;  %v2987_v4 = vor.u32 %v3377_v55, %v2984_v56  ;;  %v1343_v8 = vpack.c.b16 %v1151_v62, %v1151_v62 }
 0x173   : > { %2674 = vst [vmem:[%s4236_s11 + $0x28] sm:$0xff] %v2610_v13  ;;  %2333 = vmatpush.bf16.msra.mxu2 %v2975_v7  ;;  %2346 = vmatpush.bf16.msra.mxu3 %v2979_v25  ;;  %v1345_v7 = vpack.c.b16 %v1153_v60, %v1153_v60  ;;  %v1346_v25 = vpack.c.b16 %v1154_v61, %v1154_v61  ;;  %v1155_v54 = vunpack.c.l.b16 %v671_v37  ;;  %v1156_v61 = vunpack.c.h.b16 %v671_v37 }
 0x174   : > { %v1653_v16 = vsel %vm1483_vm0, %v1343_v8, 0  ;;  %v3007_v55 = vor.u32 %v3412_v31, %v3006_v30  ;;  %v3024_v30 = vld [vmem:[%s3917_s4 + $0x1f8] sm:$0xf0]  ;;  %v3014_v31 = vld [vmem:[%s3917_s4 + $0xf0] sm:$0xf] }
 0x175   : > { %2307 = vmatpush.bf16.msra.mxu0 %v2967_v10  ;;  %2320 = vmatpush.bf16.msra.mxu1 %v2971_v11  ;;  %v1817_v17 = vpop.f32.mrf.mxu2  ;;  %v1830_v18 = vpop.f32.mrf.mxu3  ;;  %v1344_v11 = vpack.c.b16 %v1152_v5, %v1152_v5  ;;  %v1659_v14 = vsel %vm1483_vm0, %v1345_v7, 0  ;;  %v1662_v15 = vsel %vm1483_vm0, %v1346_v25, 0 }
 0x179   : > { %v1841_v20 = vpop.f32.mrf.mxu0  ;;  %v1854_v21 = vpop.f32.mrf.mxu1 }
 0x17a   : > { %v1842_v26 = vadd.f32 %v1841_v20, %v4216_v45  ;;  %v1855_v27 = vadd.f32 %v1854_v21, %v4216_v45  ;;  %3330 = vmatmul.msk.bf16.vlgmr.msrb.gmra.mxu2 %vm1479_vm1, %v4275_v52  ;;  %3331 = vmatmul.msk.bf16.vlgmr.msrb.gmra.mxu3 %vm1479_vm1, %v4275_v52  ;;  %v3476_v20 = vld [vmem:[%s3917_s4 + $0x3e4] sm:$0xf0]  ;;  %v3444_v21 = vld [vmem:[%s3917_s4 + $0x2ec] sm:$0xf] }
 0x17b   : > { %2383 = vmatpush.bf16.msrb.mxu2 %v1647_v22  ;;  %2396 = vmatpush.bf16.msrb.mxu3 %v1650_v23  ;;  %v3264_v22 = vld [vmem:[%s3917_s4 + $0x3e8] sm:$0xf0]  ;;  %v3254_v23 = vld [vmem:[%s3917_s4 + $0x2e0] sm:$0xf]  ;;  %v3263_v33 = vor.u32 %v3476_v20, %v3262_v19  ;;  %v3445_v19 = vld [vmem:[%s3917_s4 + $0x2f4] sm:$0xf] }
 0x17c   : > { %v2578_v34 = vrot.slane %v1855_v27, 4  ;;  %3328 = vmatmul.msk.bf16.vlgmr.msrb.gmra.mxu0 %vm1479_vm1, %v4275_v52  ;;  %3329 = vmatmul.msk.bf16.vlgmr.msrb.gmra.mxu1 %vm1479_vm1, %v4275_v52  ;;  %v1656_v27 = vsel %vm1483_vm0, %v1344_v11, 0  ;;  %v3278_v11 = vld [vmem:[%s3917_s4 + $0x2f8] sm:$0xf]  ;;  %v3272_v20 = vld [vmem:[%s3917_s4 + $0x3f0] sm:$0xf0] }
 0x17d   : > { %2357 = vmatpush.bf16.msrb.mxu0 %v1641_v24  ;;  %2370 = vmatpush.bf16.msrb.mxu1 %v1644_v35  ;;  %v1867_v51 = vpop.f32.mrf.mxu2  ;;  %v1880_v53 = vpop.f32.mrf.mxu3  ;;  %v3475_v24 = vld [vmem:[%s3917_s4 + $0x3dc] sm:$0xf0]  ;;  %v3380_v35 = vld [vmem:[%s3917_s4 + $0xec] sm:$0xf]  ;;  %v3275_v29 = vor.u32 %v3445_v19, %v3272_v20 }
 0x17e   : > { %v2611_v40 = vsel %vm2604_vm2, %v1842_v26, %v2578_v34  ;;  %v1881_v57 = vadd.f32 %v1880_v53, %v4216_v45  ;;  %v1868_v1 = vadd.f32 %v1867_v51, %v4216_v45  ;;  %v3267_v34 = vor.u32 %v3444_v21, %v3264_v22 }
 0x17f   : > { %2675 = vst [vmem:[%s4236_s11 + $0x30] sm:$0xff] %v2611_v40  ;;  %2384 = vmatpush.bf16.msrb.mxu2 %v3247_v41  ;;  %2397 = vmatpush.bf16.msrb.mxu3 %v3251_v42  ;;  %v3255_v38 = vor.u32 %v3475_v24, %v3254_v23  ;;  %v3008_v40 = vld [vmem:[%s3917_s4 + $0x1e8] sm:$0xf0]  ;;  %v2998_v41 = vld [vmem:[%s3917_s4 + $0xe0] sm:$0xf]  ;;  %v1157_v51 = vunpack.c.l.b16 %v672_v36  ;;  %v1158_v53 = vunpack.c.h.b16 %v672_v36 }
 0x180   : > { %v2579_v2 = vrot.slane %v1881_v57, 4  ;;  %v3011_v56 = vor.u32 %v3380_v35, %v3008_v40  ;;  %v3022_v24 = vld [vmem:[%s3917_s4 + $0xf8] sm:$0xf]  ;;  %v3381_v35 = vld [vmem:[%s3917_s4 + $0xf4] sm:$0xf] }
 0x181   : > { %v1843_v58 = vpop.f32.mrf.mxu0  ;;  %v1856_v59 = vpop.f32.mrf.mxu1  ;;  %2358 = vmatpush.bf16.msrb.mxu0 %v3239_v47  ;;  %2371 = vmatpush.bf16.msrb.mxu1 %v3243_v48  ;;  %v3000_v47 = vld [vmem:[%s3917_s4 + $0x1e0] sm:$0xf0]  ;;  %v3016_v36 = vld [vmem:[%s3917_s4 + $0x1f0] sm:$0xf0] }
 0x182   : > { %v2612_v6 = vsel %vm2604_vm2, %v1868_v1, %v2579_v2  ;;  %v2999_v59 = vor.u32 %v3411_v44, %v2998_v41  ;;  %v3003_v60 = vor.u32 %v3379_v46, %v3000_v47  ;;  %v1347_v1 = vpack.c.b16 %v1155_v54, %v1155_v54 }
 0x183   : > { %2676 = vst [vmem:[%s4236_s11 + $0x38] sm:$0xff] %v2612_v6  ;;  %2385 = vmatpush.bf16.msrb.mxu2 %v2991_v63  ;;  %2398 = vmatpush.bf16.msrb.mxu3 %v2995_v0  ;;  %v1349_v63 = vpack.c.b16 %v1157_v51, %v1157_v51  ;;  %v1350_v0 = vpack.c.b16 %v1158_v53, %v1158_v53 }
 0x184   : > { %v1665_v8 = vsel %vm1483_vm0, %v1347_v1, 0  ;;  %v3019_v46 = vor.u32 %v3381_v35, %v3016_v36 }
 0x185   : > { %2359 = vmatpush.bf16.msrb.mxu0 %v2983_v3  ;;  %2372 = vmatpush.bf16.msrb.mxu1 %v2987_v4  ;;  %v1869_v9 = vpop.f32.mrf.mxu2  ;;  %v1882_v10 = vpop.f32.mrf.mxu3  ;;  %v1348_v4 = vpack.c.b16 %v1156_v61, %v1156_v61  ;;  %v1671_v7 = vsel %vm1483_vm0, %v1349_v63, 0  ;;  %v1674_v25 = vsel %vm1483_vm0, %v1350_v0, 0 }
 0x189   : > { %v1893_v12 = vpop.f32.mrf.mxu0  ;;  %v1906_v13 = vpop.f32.mrf.mxu1 }
 0x18a   : > { %v1894_v17 = vadd.f32 %v1893_v12, %v4216_v45  ;;  %v1907_v18 = vadd.f32 %v1906_v13, %v4216_v45  ;;  %3334 = vmatmul.msk.bf16.vlgmr.msra.gmra.mxu2 %vm1479_vm1, %v4275_v52  ;;  %3335 = vmatmul.msk.bf16.vlgmr.msra.gmra.mxu3 %vm1479_vm1, %v4275_v52  ;;  %v3478_v12 = vld [vmem:[%s3917_s4 + $0x3f4] sm:$0xf0]  ;;  %v3446_v13 = vld [vmem:[%s3917_s4 + $0x2fc] sm:$0xf] }
 0x18b   : > { %2435 = vmatpush.bf16.msra.mxu2 %v1659_v14  ;;  %2448 = vmatpush.bf16.msra.mxu3 %v1662_v15  ;;  %v3280_v14 = vld [vmem:[%s3917_s4 + $0x3f8] sm:$0xf0]  ;;  %v3270_v15 = vld [vmem:[%s3917_s4 + $0x2f0] sm:$0xf]  ;;  %v3279_v22 = vor.u32 %v3478_v12, %v3278_v11 }
 0x18c   : > { %v2580_v26 = vrot.slane %v1907_v18, 4  ;;  %3332 = vmatmul.msk.bf16.vlgmr.msra.gmra.mxu0 %vm1479_vm1, %v4275_v52  ;;  %3333 = vmatmul.msk.bf16.vlgmr.msra.gmra.mxu1 %vm1479_vm1, %v4275_v52  ;;  %v1668_v18 = vsel %vm1483_vm0, %v1348_v4, 0  ;;  %v3283_v23 = vor.u32 %v3446_v13, %v3280_v14 }
 0x18d   : > { %2409 = vmatpush.bf16.msra.mxu0 %v1653_v16  ;;  %2422 = vmatpush.bf16.msra.mxu1 %v1656_v27  ;;  %v1919_v42 = vpop.f32.mrf.mxu2  ;;  %v1932_v43 = vpop.f32.mrf.mxu3  ;;  %v3477_v16 = vld [vmem:[%s3917_s4 + $0x3ec] sm:$0xf0]  ;;  %v3382_v27 = vld [vmem:[%s3917_s4 + $0xfc] sm:$0xf] }
 0x18e   : > { %v2613_v32 = vsel %vm2604_vm2, %v1894_v17, %v2580_v26  ;;  %v1933_v48 = vadd.f32 %v1932_v43, %v4216_v45  ;;  %v1920_v57 = vadd.f32 %v1919_v42, %v4216_v45  ;;  %v3414_v26 = vld [vmem:[%s3917_s4 + $0x1f4] sm:$0xf0]  ;;  %v3271_v28 = vor.u32 %v3477_v16, %v3270_v15 }
 0x18f   : > { %2677 = vst [vmem:[%s4236_s11 + $0x40] sm:$0xff] %v2613_v32  ;;  %2436 = vmatpush.bf16.msra.mxu2 %v3263_v33  ;;  %2449 = vmatpush.bf16.msra.mxu3 %v3267_v34  ;;  %v3413_v34 = vld [vmem:[%s3917_s4 + $0x1ec] sm:$0xf0]  ;;  %v3023_v40 = vor.u32 %v3414_v26, %v3022_v24  ;;  %v3027_v41 = vor.u32 %v3382_v27, %v3024_v30 }
 0x190   : > { %v2581_v58 = vrot.slane %v1933_v48, 4  ;;  %v3015_v44 = vor.u32 %v3413_v34, %v3014_v31 }
 0x191   : > { %v1895_v49 = vpop.f32.mrf.mxu0  ;;  %v1908_v50 = vpop.f32.mrf.mxu1  ;;  %2410 = vmatpush.bf16.msra.mxu0 %v3255_v38  ;;  %2423 = vmatpush.bf16.msra.mxu1 %v3259_v39 }
 0x192   : > { %v2614_v62 = vsel %vm2604_vm2, %v1920_v57, %v2581_v58 }
 0x193   : > { %2678 = vst [vmem:[%s4236_s11 + $0x48] sm:$0xff] %v2614_v62  ;;  %2437 = vmatpush.bf16.msra.mxu2 %v3007_v55  ;;  %2450 = vmatpush.bf16.msra.mxu3 %v3011_v56 }
 0x195   : > { %2411 = vmatpush.bf16.msra.mxu0 %v2999_v59  ;;  %2424 = vmatpush.bf16.msra.mxu1 %v3003_v60  ;;  %v1921_v2 = vpop.f32.mrf.mxu2  ;;  %v1934_v3 = vpop.f32.mrf.mxu3 }
 0x199   : > { %v1945_v5 = vpop.f32.mrf.mxu0  ;;  %v1958_v6 = vpop.f32.mrf.mxu1 }
 0x19a   : > { %v1946_v9 = vadd.f32 %v1945_v5, %v4216_v45  ;;  %v1959_v10 = vadd.f32 %v1958_v6, %v4216_v45  ;;  %3338 = vmatmul.msk.bf16.vlgmr.msrb.gmra.mxu2 %vm1479_vm1, %v4275_v52  ;;  %3339 = vmatmul.msk.bf16.vlgmr.msrb.gmra.mxu3 %vm1479_vm1, %v4275_v52 }
 0x19b   : > { %2487 = vmatpush.bf16.msrb.mxu2 %v1671_v7  ;;  %2500 = vmatpush.bf16.msrb.mxu3 %v1674_v25 }
 0x19c   : > { %v2582_v17 = vrot.slane %v1959_v10, 4  ;;  %3336 = vmatmul.msk.bf16.vlgmr.msrb.gmra.mxu0 %vm1479_vm1, %v4275_v52  ;;  %3337 = vmatmul.msk.bf16.vlgmr.msrb.gmra.mxu1 %vm1479_vm1, %v4275_v52 }
 0x19d   : > { %2461 = vmatpush.bf16.msrb.mxu0 %v1665_v8  ;;  %2474 = vmatpush.bf16.msrb.mxu1 %v1668_v18  ;;  %v1971_v32 = vpop.f32.mrf.mxu2  ;;  %v1984_v33 = vpop.f32.mrf.mxu3 }
 0x19e   : > { %v2615_v21 = vsel %vm2604_vm2, %v1946_v9, %v2582_v17  ;;  %v1985_v37 = vadd.f32 %v1984_v33, %v4216_v45  ;;  %v1972_v42 = vadd.f32 %v1971_v32, %v4216_v45 }
 0x19f   : > { %2679 = vst [vmem:[%s4236_s11 + $0x50] sm:$0xff] %v2615_v21  ;;  %2488 = vmatpush.bf16.msrb.mxu2 %v3279_v22  ;;  %2501 = vmatpush.bf16.msrb.mxu3 %v3283_v23 }
 0x1a0   : > { %v2583_v43 = vrot.slane %v1985_v37, 4 }
 0x1a1   : > { %v1947_v38 = vpop.f32.mrf.mxu0  ;;  %v1960_v39 = vpop.f32.mrf.mxu1  ;;  %2462 = vmatpush.bf16.msrb.mxu0 %v3271_v28  ;;  %2475 = vmatpush.bf16.msrb.mxu1 %v3275_v29 }
 0x1a2   : > { %v2616_v47 = vsel %vm2604_vm2, %v1972_v42, %v2583_v43 }
 0x1a3   : > { %2680 = vst [vmem:[%s4236_s11 + $0x58] sm:$0xff] %v2616_v47  ;;  %2489 = vmatpush.bf16.msrb.mxu2 %v3023_v40  ;;  %2502 = vmatpush.bf16.msrb.mxu3 %v3027_v41 }
 0x1a5   : > { %2463 = vmatpush.bf16.msrb.mxu0 %v3015_v44  ;;  %2476 = vmatpush.bf16.msrb.mxu1 %v3019_v46  ;;  %v1973_v48 = vpop.f32.mrf.mxu2  ;;  %v1986_v49 = vpop.f32.mrf.mxu3 }
 0x1a9   : > { %v1997_v50 = vpop.f32.mrf.mxu0  ;;  %v2010_v51 = vpop.f32.mrf.mxu1 }
 0x1aa   : > { %v1998_v53 = vadd.f32 %v1997_v50, %v4216_v45  ;;  %v2011_v54 = vadd.f32 %v2010_v51, %v4216_v45  ;;  %3342 = vmatmul.msk.bf16.vlgmr.msra.gmra.mxu2 %vm1479_vm1, %v4275_v52  ;;  %3343 = vmatmul.msk.bf16.vlgmr.msra.gmra.mxu3 %vm1479_vm1, %v4275_v52 }
 0x1ac   : > { %v2584_v55 = vrot.slane %v2011_v54, 4  ;;  %3340 = vmatmul.msk.bf16.vlgmr.msra.gmra.mxu0 %vm1479_vm1, %v4275_v52  ;;  %3341 = vmatmul.msk.bf16.vlgmr.msra.gmra.mxu1 %vm1479_vm1, %v4275_v52 }
 0x1ad   : > { %v2023_v57 = vpop.f32.mrf.mxu2  ;;  %v2036_v58 = vpop.f32.mrf.mxu3 }
 0x1ae   : > { %v2617_v56 = vsel %vm2604_vm2, %v1998_v53, %v2584_v55  ;;  %v2037_v59 = vadd.f32 %v2036_v58, %v4216_v45  ;;  %v2024_v62 = vadd.f32 %v2023_v57, %v4216_v45 }
 0x1af   : > { %2681 = vst [vmem:[%s4236_s11 + $0x60] sm:$0xff] %v2617_v56 }
 0x1b0   : > { %v2585_v63 = vrot.slane %v2037_v59, 4 }
 0x1b1   : > { %v1999_v60 = vpop.f32.mrf.mxu0  ;;  %v2012_v61 = vpop.f32.mrf.mxu1 }
 0x1b2   : > { %v2618_v0 = vsel %vm2604_vm2, %v2024_v62, %v2585_v63 }
 0x1b3   : > { %2682 = vst [vmem:[%s4236_s11 + $0x68] sm:$0xff] %v2618_v0 }
 0x1b5   : > { %v2025_v1 = vpop.f32.mrf.mxu2  ;;  %v2038_v2 = vpop.f32.mrf.mxu3 }
 0x1b9   : > { %v2049_v3 = vpop.f32.mrf.mxu0  ;;  %v2062_v4 = vpop.f32.mrf.mxu1 }
 0x1ba   : > { %v2050_v5 = vadd.f32 %v2049_v3, %v4216_v45  ;;  %v2063_v6 = vadd.f32 %v2062_v4, %v4216_v45  ;;  %3346 = vmatmul.msk.bf16.vlgmr.msrb.gmra.mxu2 %vm1479_vm1, %v4275_v52  ;;  %3347 = vmatmul.msk.bf16.vlgmr.msrb.gmra.mxu3 %vm1479_vm1, %v4275_v52 }
 0x1bc   : > { %v2586_v7 = vrot.slane %v2063_v6, 4  ;;  %3344 = vmatmul.msk.bf16.vlgmr.msrb.gmra.mxu0 %vm1479_vm1, %v4275_v52  ;;  %3345 = vmatmul.msk.bf16.vlgmr.msrb.gmra.mxu1 %vm1479_vm1, %v4275_v52 }
 0x1bd   : > { %v2075_v8 = vpop.f32.mrf.mxu2  ;;  %v2088_v9 = vpop.f32.mrf.mxu3 }
 0x1be   : > { %v2619_v25 = vsel %vm2604_vm2, %v2050_v5, %v2586_v7  ;;  %v2089_v10 = vadd.f32 %v2088_v9, %v4216_v45  ;;  %v2076_v13 = vadd.f32 %v2075_v8, %v4216_v45 }
 0x1bf   : > { %2683 = vst [vmem:[%s4236_s11 + $0x70] sm:$0xff] %v2619_v25 }
 0x1c0   : > { %v2587_v14 = vrot.slane %v2089_v10, 4 }
 0x1c1   : > { %v2051_v11 = vpop.f32.mrf.mxu0  ;;  %v2064_v12 = vpop.f32.mrf.mxu1 }
 0x1c2   : > { %v2620_v15 = vsel %vm2604_vm2, %v2076_v13, %v2587_v14 }
 0x1c3   : > { %2684 = vst [vmem:[%s4236_s11 + $0x78] sm:$0xff] %v2620_v15 }
 0x1c5   : > { %v2077_v16 = vpop.f32.mrf.mxu2  ;;  %v2090_v17 = vpop.f32.mrf.mxu3 }
 0x1c9   : > { %v2101_v52 = vpop.f32.mrf.mxu0  ;;  %v2114_v18 = vpop.f32.mrf.mxu1 }
 0x1ca   : > { %v2102_v19 = vadd.f32 %v2101_v52, %v4216_v45  ;;  %v2115_v20 = vadd.f32 %v2114_v18, %v4216_v45 }
 0x1cc   : > { %v2588_v21 = vrot.slane %v2115_v20, 4 }
 0x1cd   : > { %v2127_v23 = vpop.f32.mrf.mxu2  ;;  %v2140_v24 = vpop.f32.mrf.mxu3 }
 0x1ce   : > { %v2621_v22 = vsel %vm2604_vm2, %v2102_v19, %v2588_v21  ;;  %v2141_v26 = vadd.f32 %v2140_v24, %v4216_v45  ;;  %v2128_v29 = vadd.f32 %v2127_v23, %v4216_v45 }
 0x1cf   : > { %2685 = vst [vmem:[%s4236_s11 + $0x80] sm:$0xff] %v2621_v22 }
 0x1d0   : > { %v2589_v30 = vrot.slane %v2141_v26, 4 }
 0x1d1   : > { %v2103_v27 = vpop.f32.mrf.mxu0  ;;  %v2116_v28 = vpop.f32.mrf.mxu1 }
 0x1d2   : > { %v2622_v31 = vsel %vm2604_vm2, %v2128_v29, %v2589_v30 }
 0x1d3   : > { %2686 = vst [vmem:[%s4236_s11 + $0x88] sm:$0xff] %v2622_v31 }
 0x1d5   : > { %v2129_v32 = vpop.f32.mrf.mxu2  ;;  %v2142_v33 = vpop.f32.mrf.mxu3 }
 0x1d9   : > { %v2153_v34 = vpop.f32.mrf.mxu0  ;;  %v2166_v35 = vpop.f32.mrf.mxu1 }
 0x1da   : > { %v2154_v36 = vadd.f32 %v2153_v34, %v4216_v45  ;;  %v2167_v37 = vadd.f32 %v2166_v35, %v4216_v45 }
 0x1dc   : > { %v2590_v38 = vrot.slane %v2167_v37, 4 }
 0x1dd   : > { %v2179_v40 = vpop.f32.mrf.mxu2  ;;  %v2192_v41 = vpop.f32.mrf.mxu3 }
 0x1de   : > { %v2623_v39 = vsel %vm2604_vm2, %v2154_v36, %v2590_v38  ;;  %v2193_v42 = vadd.f32 %v2192_v41, %v4216_v45  ;;  %v2180_v46 = vadd.f32 %v2179_v40, %v4216_v45 }
 0x1df   : > { %2687 = vst [vmem:[%s4236_s11 + $0x90] sm:$0xff] %v2623_v39 }
 0x1e0   : > { %v2591_v47 = vrot.slane %v2193_v42, 4 }
 0x1e1   : > { %v2155_v43 = vpop.f32.mrf.mxu0  ;;  %v2168_v44 = vpop.f32.mrf.mxu1 }
 0x1e2   : > { %v2624_v48 = vsel %vm2604_vm2, %v2180_v46, %v2591_v47 }
 0x1e3   : > { %2688 = vst [vmem:[%s4236_s11 + $0x98] sm:$0xff] %v2624_v48 }
 0x1e5   : > { %v2181_v49 = vpop.f32.mrf.mxu2  ;;  %v2194_v50 = vpop.f32.mrf.mxu3 }
 0x1e9   : > { %v2205_v51 = vpop.f32.mrf.mxu0  ;;  %v2218_v53 = vpop.f32.mrf.mxu1 }
 0x1ea   : > { %v2206_v54 = vadd.f32 %v2205_v51, %v4216_v45  ;;  %v2219_v55 = vadd.f32 %v2218_v53, %v4216_v45 }
 0x1ec   : > { %v2592_v56 = vrot.slane %v2219_v55, 4 }
 0x1ed   : > { %v2231_v58 = vpop.f32.mrf.mxu2  ;;  %v2244_v59 = vpop.f32.mrf.mxu3 }
 0x1ee   : > { %v2625_v57 = vsel %vm2604_vm2, %v2206_v54, %v2592_v56  ;;  %v2245_v60 = vadd.f32 %v2244_v59, %v4216_v45  ;;  %v2232_v63 = vadd.f32 %v2231_v58, %v4216_v45 }
 0x1ef   : > { %2689 = vst [vmem:[%s4236_s11 + $0xa0] sm:$0xff] %v2625_v57 }
 0x1f0   : > { %v2593_v0 = vrot.slane %v2245_v60, 4 }
 0x1f1   : > { %v2207_v61 = vpop.f32.mrf.mxu0  ;;  %v2220_v62 = vpop.f32.mrf.mxu1 }
 0x1f2   : > { %v2626_v1 = vsel %vm2604_vm2, %v2232_v63, %v2593_v0 }
 0x1f3   : > { %2690 = vst [vmem:[%s4236_s11 + $0xa8] sm:$0xff] %v2626_v1 }
 0x1f5   : > { %v2233_v2 = vpop.f32.mrf.mxu2  ;;  %v2246_v3 = vpop.f32.mrf.mxu3 }
 0x1f9   : > { %v2257_v4 = vpop.f32.mrf.mxu0  ;;  %v2270_v5 = vpop.f32.mrf.mxu1 }
 0x1fa   : > { %v2258_v6 = vadd.f32 %v2257_v4, %v4216_v45  ;;  %v2271_v7 = vadd.f32 %v2270_v5, %v4216_v45 }
 0x1fc   : > { %v2594_v25 = vrot.slane %v2271_v7, 4 }
 0x1fd   : > { %v2283_v9 = vpop.f32.mrf.mxu2  ;;  %v2296_v10 = vpop.f32.mrf.mxu3 }
 0x1fe   : > { %v2627_v8 = vsel %vm2604_vm2, %v2258_v6, %v2594_v25  ;;  %v2297_v11 = vadd.f32 %v2296_v10, %v4216_v45  ;;  %v2284_v14 = vadd.f32 %v2283_v9, %v4216_v45 }
 0x1ff   : > { %2691 = vst [vmem:[%s4236_s11 + $0xb0] sm:$0xff] %v2627_v8 }
 0x200   : > { %v2595_v15 = vrot.slane %v2297_v11, 4 }
 0x201   : > { %v2259_v12 = vpop.f32.mrf.mxu0  ;;  %v2272_v13 = vpop.f32.mrf.mxu1 }
 0x202   : > { %v2628_v16 = vsel %vm2604_vm2, %v2284_v14, %v2595_v15 }
 0x203   : > { %2692 = vst [vmem:[%s4236_s11 + $0xb8] sm:$0xff] %v2628_v16 }
 0x205   : > { %v2285_v17 = vpop.f32.mrf.mxu2  ;;  %v2298_v52 = vpop.f32.mrf.mxu3 }
 0x209   : > { %v2309_v18 = vpop.f32.mrf.mxu0  ;;  %v2322_v19 = vpop.f32.mrf.mxu1 }
 0x20a   : > { %v2310_v20 = vadd.f32 %v2309_v18, %v4216_v45  ;;  %v2323_v21 = vadd.f32 %v2322_v19, %v4216_v45 }
 0x20c   : > { %v2596_v22 = vrot.slane %v2323_v21, 4 }
 0x20d   : > { %v2335_v24 = vpop.f32.mrf.mxu2  ;;  %v2348_v26 = vpop.f32.mrf.mxu3 }
 0x20e   : > { %v2629_v23 = vsel %vm2604_vm2, %v2310_v20, %v2596_v22  ;;  %v2349_v27 = vadd.f32 %v2348_v26, %v4216_v45  ;;  %v2336_v30 = vadd.f32 %v2335_v24, %v4216_v45 }
 0x20f   : > { %2693 = vst [vmem:[%s4236_s11 + $0xc0] sm:$0xff] %v2629_v23 }
 0x210   : > { %v2597_v31 = vrot.slane %v2349_v27, 4 }
 0x211   : > { %v2311_v28 = vpop.f32.mrf.mxu0  ;;  %v2324_v29 = vpop.f32.mrf.mxu1 }
 0x212   : > { %v2630_v32 = vsel %vm2604_vm2, %v2336_v30, %v2597_v31 }
 0x213   : > { %2694 = vst [vmem:[%s4236_s11 + $0xc8] sm:$0xff] %v2630_v32 }
 0x215   : > { %v2337_v33 = vpop.f32.mrf.mxu2  ;;  %v2350_v34 = vpop.f32.mrf.mxu3 }
 0x219   : > { %v2361_v35 = vpop.f32.mrf.mxu0  ;;  %v2374_v36 = vpop.f32.mrf.mxu1 }
 0x21a   : > { %v2362_v37 = vadd.f32 %v2361_v35, %v4216_v45  ;;  %v2375_v38 = vadd.f32 %v2374_v36, %v4216_v45 }
 0x21c   : > { %v2598_v39 = vrot.slane %v2375_v38, 4 }
 0x21d   : > { %v2387_v41 = vpop.f32.mrf.mxu2  ;;  %v2400_v42 = vpop.f32.mrf.mxu3 }
 0x21e   : > { %v2631_v40 = vsel %vm2604_vm2, %v2362_v37, %v2598_v39  ;;  %v2401_v43 = vadd.f32 %v2400_v42, %v4216_v45  ;;  %v2388_v47 = vadd.f32 %v2387_v41, %v4216_v45 }
 0x21f   : > { %2695 = vst [vmem:[%s4236_s11 + $0xd0] sm:$0xff] %v2631_v40 }
 0x220   : > { %v2599_v48 = vrot.slane %v2401_v43, 4 }
 0x221   : > { %v2363_v44 = vpop.f32.mrf.mxu0  ;;  %v2376_v46 = vpop.f32.mrf.mxu1 }
 0x222   : > { %v2632_v49 = vsel %vm2604_vm2, %v2388_v47, %v2599_v48 }
 0x223   : > { %2696 = vst [vmem:[%s4236_s11 + $0xd8] sm:$0xff] %v2632_v49 }
 0x225   : > { %v2389_v50 = vpop.f32.mrf.mxu2  ;;  %v2402_v51 = vpop.f32.mrf.mxu3 }
 0x229   : > { %v2413_v53 = vpop.f32.mrf.mxu0  ;;  %v2426_v54 = vpop.f32.mrf.mxu1 }
 0x22a   : > { %v2414_v55 = vadd.f32 %v2413_v53, %v4216_v45  ;;  %v2427_v56 = vadd.f32 %v2426_v54, %v4216_v45 }
 0x22c   : > { %v2600_v57 = vrot.slane %v2427_v56, 4 }
 0x22d   : > { %v2439_v59 = vpop.f32.mrf.mxu2  ;;  %v2452_v60 = vpop.f32.mrf.mxu3 }
 0x22e   : > { %v2633_v58 = vsel %vm2604_vm2, %v2414_v55, %v2600_v57  ;;  %v2453_v61 = vadd.f32 %v2452_v60, %v4216_v45  ;;  %v2440_v0 = vadd.f32 %v2439_v59, %v4216_v45 }
 0x22f   : > { %2697 = vst [vmem:[%s4236_s11 + $0xe0] sm:$0xff] %v2633_v58 }
 0x230   : > { %v2601_v1 = vrot.slane %v2453_v61, 4 }
 0x231   : > { %v2415_v62 = vpop.f32.mrf.mxu0  ;;  %v2428_v63 = vpop.f32.mrf.mxu1 }
 0x232   : > { %v2634_v2 = vsel %vm2604_vm2, %v2440_v0, %v2601_v1 }
 0x233   : > { %2698 = vst [vmem:[%s4236_s11 + $0xe8] sm:$0xff] %v2634_v2 }
 0x235   : > { %v2441_v3 = vpop.f32.mrf.mxu2  ;;  %v2454_v4 = vpop.f32.mrf.mxu3 }
 0x239   : > { %v2465_v5 = vpop.f32.mrf.mxu0  ;;  %v2478_v6 = vpop.f32.mrf.mxu1 }
 0x23a   : > { %v2466_v7 = vadd.f32 %v2465_v5, %v4216_v45  ;;  %v2479_v25 = vadd.f32 %v2478_v6, %v4216_v45 }
 0x23c   : > { %v2602_v8 = vrot.slane %v2479_v25, 4 }
 0x23d   : > { %v2491_v10 = vpop.f32.mrf.mxu2  ;;  %v2504_v11 = vpop.f32.mrf.mxu3 }
 0x23e   : > { %v2635_v9 = vsel %vm2604_vm2, %v2466_v7, %v2602_v8  ;;  %v2505_v12 = vadd.f32 %v2504_v11, %v4216_v45  ;;  %v2492_v15 = vadd.f32 %v2491_v10, %v4216_v45 }
 0x23f   : > { %2699 = vst [vmem:[%s4236_s11 + $0xf0] sm:$0xff] %v2635_v9 }
 0x240   : > { %v2603_v16 = vrot.slane %v2505_v12, 4 }
 0x241   : > { %v2467_v13 = vpop.f32.mrf.mxu0  ;;  %v2480_v14 = vpop.f32.mrf.mxu1 }
 0x242   : > { %v2636_v17 = vsel %vm2604_vm2, %v2492_v15, %v2603_v16 }
 0x243   : > { %2700 = vst [vmem:[%s4236_s11 + $0xf8] sm:$0xff] %v2636_v17 }
 0x245   : > { %v2493_v52 = vpop.f32.mrf.mxu2  ;;  %v2506_v18 = vpop.f32.mrf.mxu3 }
 0x246 PF: > { %p10_p9 = scmp.ge.s32.totalorder %s3570_s16, 6   ;;  %s4564_s12 = smov %s3526_s13 }
 0x247   : > { %s4565_s13 = smov %s3579_s19  ;;  %s4566_s14 = smov %s3570_s16 }
 0x248   :  { %12 = sbr.rel (!%p10_p9) target bundleno = 2 (0x2), region = 90 }

</bundles_post_ra>
